<compile_context>
chip_gen: v7x
topology: tpu7x:2x2x1
jax: 0.10.0
libtpu: 0.0.40
codegen_flags: <defaults>
</compile_context>

<pallas_src>
import math

import jax
import jax.numpy as jnp
from jax.experimental import pallas as pl
from jax.experimental.pallas import tpu as pltpu

# ----------------------------- configuration --------------------------------
D_NUMERICAL = 8
N_TOKENS = D_NUMERICAL + 1          # +1 for [CLS]
T_PAD = 16                          # token axis padded 9 -> 16
N_LAYERS = 2
D_TOKEN = 32
N_HEADS = 4
D_HEAD = D_TOKEN // N_HEADS
D_HIDDEN = int(D_TOKEN * 2.0)       # d_ffn_factor = 2.0
D_OUT = 1
BATCH = 4
LN_EPS = 1e-5                       # torch.nn.LayerNorm default
HEAD_PAD = 128                      # lane-dense head output width
VEC_W = 128                         # width of the merged small-param slab

# ------------- row layout of the merged small-parameter ("vec") slab ---------
VROW_N0G, VROW_N0B, VROW_N1G, VROW_N1B, VROW_BO, VROW_L1B = 0, 1, 2, 3, 4, 5
VROW_B0V, VROW_B0G = 6, 7           # linear0 value / gate biases (width 64)
VROW_BQKV = 8                       # + c*N_HEADS + h ; c in {0:q, 1:k, 2:v}
VPL = 24                            # rows per layer (20 used, padded to 24)
GBASE = N_LAYERS * VPL              # 48
GROW_LNG, GROW_LNB, GROW_HB = GBASE, GBASE + 1, GBASE + 2
NVEC_ROWS = GBASE + 8               # 56 (multiple of 8)


# ------------------------------ shared helper --------------------------------
def _layernorm(z, g, b):
    mu = jnp.mean(z, axis=-1, keepdims=True)
    var = jnp.mean((z - mu) ** 2, axis=-1, keepdims=True)
    return (z - mu) * jax.lax.rsqrt(var + LN_EPS) * g + b


# ------------------------------ fused kernel ---------------------------------
def fused_transformer_kernel(x_ref, tok_ref, wqkv_ref, wo_ref, wffn_ref,
                             vec_ref, hw_ref, out_ref):
    """Whole forward pass: tokenizer -> N_LAYERS blocks -> LN -> ReLU -> head."""
    f32 = jnp.float32
    B, T, d = x_ref.shape                      # (4, 16, 32)
    dh = D_HEAD
    R = B * T
    scale = 1.0 / math.sqrt(dh)

    def vrow(r, w):                            # one row of the merged param slab
        return vec_ref[r:r + 1, :w]            # (1, w), static offsets

    # ----------------------------- tokenizer ---------------------------------
    # x_ref is pre-broadcast (B, T, d): per-token scalar replicated across d.
    h = (x_ref[...] * tok_ref[0] + tok_ref[1]).reshape(R, d)      # (R, d)

    # Additive key mask: padded tokens (t >= N_TOKENS) never attend as keys.
    kidx = jax.lax.broadcasted_iota(jnp.int32, (1, T), 1)
    key_bias = jnp.where(kidx < N_TOKENS, 0.0, -1e30).astype(f32)  # (1, T)

    # --------------------------- transformer layers ---------------------------
    for li in range(N_LAYERS):                 # static, unrolled
        vbase = li * VPL

        # --------------- attention block (pre-norm; layer 0 has no norm0) ----
        if li == 0:
            xr = h
        else:
            xr = _layernorm(h, vrow(vbase + VROW_N0G, d),
                            vrow(vbase + VROW_N0B, d))

        attn = jnp.zeros((R, d), f32)
        for hi in range(N_HEADS):              # per-head weights packed on host
            q = jnp.dot(xr, wqkv_ref[li, 0, hi], preferred_element_type=f32) \
                + vrow(vbase + VROW_BQKV + 0 * N_HEADS + hi, dh)
            k = jnp.dot(xr, wqkv_ref[li, 1, hi], preferred_element_type=f32) \
                + vrow(vbase + VROW_BQKV + 1 * N_HEADS + hi, dh)
            v = jnp.dot(xr, wqkv_ref[li, 2, hi], preferred_element_type=f32) \
                + vrow(vbase + VROW_BQKV + 2 * N_HEADS + hi, dh)
            qh = q.reshape(B, T, dh)           # free sublane-split reshapes
            kh = k.reshape(B, T, dh)
            vh = v.reshape(B, T, dh)

            s = jnp.einsum('bqe,bke->bqk', qh, kh,
                           preferred_element_type=f32) * scale + key_bias
            m = jnp.max(s, axis=-1, keepdims=True)
            e = jnp.exp(s - m)
            p = e / jnp.sum(e, axis=-1, keepdims=True)     # exact reciprocal
            ctx = jnp.einsum('bqk,bke->bqe', p, vh,
                             preferred_element_type=f32).reshape(R, dh)
            attn = attn + jnp.dot(ctx, wo_ref[li, hi],
                                  preferred_element_type=f32)
        attn = attn + vrow(vbase + VROW_BO, d)
        h = h + attn                                           # residual

        # --------------- FFN block (pre-norm, ReGLU) --------------------------
        xr2 = _layernorm(h, vrow(vbase + VROW_N1G, d),
                         vrow(vbase + VROW_N1B, d))
        val = jnp.dot(xr2, wffn_ref[li, 0, :d, :],
                      preferred_element_type=f32) + vrow(vbase + VROW_B0V, D_HIDDEN)
        gate = jnp.dot(xr2, wffn_ref[li, 1, :d, :],
                       preferred_element_type=f32) + vrow(vbase + VROW_B0G, D_HIDDEN)
        hid = val * jnp.maximum(gate, 0.0)                     # aligned ReGLU
        ffn = jnp.dot(hid, wffn_ref[li, 2, :, :d],
                      preferred_element_type=f32) + vrow(vbase + VROW_L1B, d)
        h = h + ffn                                            # residual

    # ------------------- head: CLS rows -> last LN -> ReLU -> Linear ---------
    cls = h.reshape(B, T, d)[:, 0, :]                          # (B, d) [CLS]
    cls = jnp.maximum(_layernorm(cls, vrow(GROW_LNG, d), vrow(GROW_LNB, d)), 0.0)
    out_ref[...] = jnp.dot(cls, hw_ref[...],
                           preferred_element_type=f32) + vrow(GROW_HB, HEAD_PAD)


# --------------------------- parameter packing -------------------------------
def pack_params(p):
    """Re-pack raw params into a few contiguous, relayout-free slabs."""
    f32 = jnp.float32
    layers = p['layers']

    # Tokenizer weight / bias (CLS row has no bias), padded to T_PAD rows.
    tok_w = jnp.pad(p['tok_w'], ((0, T_PAD - N_TOKENS), (0, 0)))
    tok_b = jnp.concatenate([jnp.zeros((1, D_TOKEN), f32), p['tok_b']], axis=0)
    tok_b = jnp.pad(tok_b, ((0, T_PAD - N_TOKENS), (0, 0)))
    tok = jnp.stack([tok_w, tok_b], axis=0)                        # (2, T_PAD, d)

    def heads_cols(w):  # (d, d) -> (H, d, dh): head-major output columns
        return w.reshape(D_TOKEN, N_HEADS, D_HEAD).transpose(1, 0, 2)

    w_qkv = jnp.stack([jnp.stack([heads_cols(lp['wq']),
                                  heads_cols(lp['wk']),
                                  heads_cols(lp['wv'])], axis=0)
                       for lp in layers], axis=0)                  # (L,3,H,d,dh)
    w_o = jnp.stack([lp['wo'].reshape(N_HEADS, D_HEAD, D_TOKEN)
                     for lp in layers], axis=0)                    # (L,H,dh,d)

    pad_r = D_HIDDEN - D_TOKEN
    w_ffn = jnp.stack([jnp.stack([
        jnp.pad(lp['l0w'][:, :D_HIDDEN], ((0, pad_r), (0, 0))),    # value weight
        jnp.pad(lp['l0w'][:, D_HIDDEN:], ((0, pad_r), (0, 0))),    # gate weight
        jnp.pad(lp['l1w'], ((0, 0), (0, pad_r)))], axis=0)         # linear1
        for lp in layers], axis=0)                                 # (L,3,DH,DH)

    def pad_row(v):
        v = jnp.asarray(v, f32).reshape(1, -1)
        return jnp.pad(v, ((0, 0), (0, VEC_W - v.shape[1])))

    zero_row = jnp.zeros((1, VEC_W), f32)
    rows = []
    for lp in layers:
        rows += [pad_row(lp['n0g']), pad_row(lp['n0b']),
                 pad_row(lp['n1g']), pad_row(lp['n1b']),
                 pad_row(lp['bo']), pad_row(lp['l1b']),
                 pad_row(lp['l0b'][:, :D_HIDDEN]),
                 pad_row(lp['l0b'][:, D_HIDDEN:])]
        for name in ('bq', 'bk', 'bv'):
            bh = lp[name].reshape(N_HEADS, D_HEAD)
            rows += [pad_row(bh[hi]) for hi in range(N_HEADS)]
        rows += [zero_row] * (VPL - 8 - 3 * N_HEADS)
    rows += [pad_row(p['lng']), pad_row(p['lnb']), pad_row(p['hb'])]
    rows += [zero_row] * (NVEC_ROWS - GBASE - 3)
    vec = jnp.concatenate(rows, axis=0)                            # (56, 128)

    hw = jnp.pad(p['hw'], ((0, 0), (0, HEAD_PAD - D_OUT)))         # (d, 128)

    return {'tok': tok, 'w_qkv': w_qkv, 'w_o': w_o, 'w_ffn': w_ffn,
            'vec': vec, 'hw': hw}


# ------------------------------ model wrapper --------------------------------
def pallas_transformer_forward(x, packed):
    B = x.shape[0]
    # [CLS]=1.0 column + numeric features, pad tokens to T_PAD, pre-broadcast
    # across the d lanes so the tokenizer load is lane-dense.
    x_aug = jnp.concatenate([jnp.ones((B, 1), jnp.float32),
                             x.astype(jnp.float32)], axis=1)       # (B, 9)
    x_aug = jnp.pad(x_aug, ((0, 0), (0, T_PAD - N_TOKENS)))        # (B, 16)
    x_bcast = jnp.broadcast_to(x_aug[:, :, None], (B, T_PAD, D_TOKEN))

    vmem = pl.BlockSpec(memory_space=pltpu.MemorySpace.VMEM)
    args = (x_bcast, packed['tok'], packed['w_qkv'], packed['w_o'],
            packed['w_ffn'], packed['vec'], packed['hw'])
    out = pl.pallas_call(
        fused_transformer_kernel,
        out_shape=jax.ShapeDtypeStruct((B, HEAD_PAD), jnp.float32),
        in_specs=[vmem] * len(args),
        out_specs=vmem,
        # Gridless on purpose: whole model + activations ~50 KB of VMEM.
        # For large batches, add grid=(pl.cdiv(B, TB),) with a "parallel"
        # dimension semantic so v7x's two TensorCores split the batch.
    )(*args)
    return out[:, 0]                                               # (B,)


# --------------------------- plain-JAX reference -----------------------------
def _ref_layer(x, lp, is_first, is_last):
    dh = D_HEAD
    xr = x if is_first else _layernorm(x, lp['n0g'], lp['n0b'])
    q_in = xr[:, :1, :] if is_last else xr
    q = q_in @ lp['wq'] + lp['bq']
    k = xr @ lp['wk'] + lp['bk']
    v = xr @ lp['wv'] + lp['bv']
    heads = []
    for h_i in range(N_HEADS):
        sl = slice(h_i * dh, (h_i + 1) * dh)
        s = jnp.einsum('bqd,bkd->bqk', q[:, :, sl], k[:, :, sl]) / math.sqrt(dh)
        p = jax.nn.softmax(s, axis=-1)
        heads.append(jnp.einsum('bqk,bkd->bqd', p, v[:, :, sl]))
    ctx = jnp.concatenate(heads, axis=-1)
    attn_out = ctx @ lp['wo'] + lp['bo']
    x1 = (x[:, :1, :] if is_last else x) + attn_out
    xr2 = _layernorm(x1, lp['n1g'], lp['n1b'])
    hidden = xr2 @ lp['l0w'] + lp['l0b']
    hidden = hidden[..., :D_HIDDEN] * jnp.maximum(hidden[..., D_HIDDEN:], 0.0)
    return x1 + hidden @ lp['l1w'] + lp['l1b']


def reference_forward(x, params):
    B = x.shape[0]
    x_num = jnp.concatenate([jnp.ones((B, 1), jnp.float32), x], axis=1)
    h = params['tok_w'][None] * x_num[:, :, None]
    bias_full = jnp.concatenate(
        [jnp.zeros((1, D_TOKEN), jnp.float32), params['tok_b']], axis=0)
    h = h + bias_full[None]
    for idx, lp in enumerate(params['layers']):
        h = _ref_layer(h, lp, idx == 0, idx == len(params['layers']) - 1)
    cls = h[:, 0, :]
    cls = jnp.maximum(_layernorm(cls, params['lng'], params['lnb']), 0.0)
    return (cls @ params['hw'] + params['hb'])[:, 0]


# ------------------------------ parameter init --------------------------------
def init_params(key):
    keys = iter(jax.random.split(key, 64))

    def lin(fan_in, fan_out):
        bound = 1.0 / math.sqrt(fan_in)
        w = jax.random.uniform(next(keys), (fan_in, fan_out), jnp.float32,
                               -bound, bound)
        b = jax.random.uniform(next(keys), (1, fan_out), jnp.float32,
                               -bound, bound)
        return w, b

    def ln():
        g = 1.0 + 0.1 * jax.random.normal(next(keys), (1, D_TOKEN), jnp.float32)
        b = 0.1 * jax.random.normal(next(keys), (1, D_TOKEN), jnp.float32)
        return g, b

    params = {}
    bound = 1.0 / math.sqrt(D_TOKEN)
    params['tok_w'] = jax.random.uniform(next(keys), (N_TOKENS, D_TOKEN),
                                         jnp.float32, -bound, bound)
    params['tok_b'] = jax.random.uniform(next(keys), (D_NUMERICAL, D_TOKEN),
                                         jnp.float32, -bound, bound)
    layers = []
    for li in range(N_LAYERS):
        lp = {}
        if li == 0:   # prenormalization=True -> first layer has no norm0
            lp['n0g'] = jnp.ones((1, D_TOKEN), jnp.float32)   # unused dummies
            lp['n0b'] = jnp.zeros((1, D_TOKEN), jnp.float32)
        else:
            lp['n0g'], lp['n0b'] = ln()
        lp['wq'], lp['bq'] = lin(D_TOKEN, D_TOKEN)
        lp['wk'], lp['bk'] = lin(D_TOKEN, D_TOKEN)
        lp['wv'], lp['bv'] = lin(D_TOKEN, D_TOKEN)
        lp['wo'], lp['bo'] = lin(D_TOKEN, D_TOKEN)
        lp['n1g'], lp['n1b'] = ln()
        lp['l0w'], lp['l0b'] = lin(D_TOKEN, 2 * D_HIDDEN)     # reglu -> 2x
        lp['l1w'], lp['l1b'] = lin(D_HIDDEN, D_TOKEN)
        layers.append(lp)
    params['layers'] = layers
    params['lng'], params['lnb'] = ln()                       # last_normalization
    params['hw'], params['hb'] = lin(D_TOKEN, D_OUT)          # head
    return params


# ----------------------------------- main -------------------------------------
if __name__ == "__main__":
    key = jax.random.PRNGKey(0)
    k_param, k_x = jax.random.split(key)
    params = init_params(k_param)
    packed = pack_params(params)
    x = jax.random.normal(k_x, (BATCH, D_NUMERICAL), jnp.float32)

    fwd = jax.jit(pallas_transformer_forward)
    out = jax.block_until_ready(fwd(x, packed))

    ref = jax.block_until_ready(reference_forward(x, params))
    assert out.shape == (BATCH,)
    # Residual difference comes from MXU default-precision accumulation order;
    # the approx EUP reciprocal was removed (exact softmax denominator).
    assert jnp.max(jnp.abs(out - ref)) < 5e-3, (out, ref)

    print("KERNEL_OK")
</pallas_src>

<mosaic_0001>
module attributes {stable_mosaic.version = 11 : i64} {
  func.func @fused_transformer_kernel(%arg0: memref<4x16x32xf32, #tpu.memory_space<vmem>>, %arg1: memref<2x16x32xf32, #tpu.memory_space<vmem>>, %arg2: memref<2x3x4x32x8xf32, #tpu.memory_space<vmem>>, %arg3: memref<2x4x8x32xf32, #tpu.memory_space<vmem>>, %arg4: memref<2x3x64x64xf32, #tpu.memory_space<vmem>>, %arg5: memref<56x128xf32, #tpu.memory_space<vmem>>, %arg6: memref<32x128xf32, #tpu.memory_space<vmem>>, %arg7: memref<4x128xf32, #tpu.memory_space<vmem>>) attributes {dimension_semantics = [], scalar_prefetch = 0 : i64, scratch_operands = 0 : i64, tpu.core_type = #tpu.core_type<tc>} {
    %c0 = arith.constant 0 : index
    %c0_0 = arith.constant 0 : index
    %c0_1 = arith.constant 0 : index
    %0 = vector.load %arg0[%c0, %c0_0, %c0_1] : memref<4x16x32xf32, #tpu.memory_space<vmem>>, vector<4x16x32xf32>
    %c0_2 = arith.constant 0 : index
    %c0_3 = arith.constant 0 : index
    %c0_4 = arith.constant 0 : index
    %1 = vector.load %arg1[%c0_2, %c0_3, %c0_4] : memref<2x16x32xf32, #tpu.memory_space<vmem>>, vector<1x16x32xf32>
    %2 = vector.shape_cast %1 : vector<1x16x32xf32> to vector<16x32xf32>
    %3 = vector.shape_cast %2 : vector<16x32xf32> to vector<1x16x32xf32>
    %4 = vector.broadcast %3 : vector<1x16x32xf32> to vector<4x16x32xf32>
    %5 = arith.mulf %0, %4 : vector<4x16x32xf32>
    %c1 = arith.constant 1 : index
    %c0_5 = arith.constant 0 : index
    %c0_6 = arith.constant 0 : index
    %6 = vector.load %arg1[%c1, %c0_5, %c0_6] : memref<2x16x32xf32, #tpu.memory_space<vmem>>, vector<1x16x32xf32>
    %7 = vector.shape_cast %6 : vector<1x16x32xf32> to vector<16x32xf32>
    %8 = vector.shape_cast %7 : vector<16x32xf32> to vector<1x16x32xf32>
    %9 = vector.broadcast %8 : vector<1x16x32xf32> to vector<4x16x32xf32>
    %10 = arith.addf %5, %9 : vector<4x16x32xf32>
    %11 = vector.shape_cast %10 : vector<4x16x32xf32> to vector<64x32xf32>
    %12 = tpu.iota {dimensions = array<i32: 1>} : vector<1x16xi32>
    %c9_i32 = arith.constant 9 : i32
    %13 = vector.broadcast %c9_i32 : i32 to vector<1x16xi32>
    %14 = arith.cmpi slt, %12, %13 : vector<1x16xi32>
    %cst = arith.constant 0.000000e+00 : f32
    %cst_7 = arith.constant -1.000000e+30 : f32
    %15 = vector.broadcast %cst : f32 to vector<1x16xf32>
    %16 = vector.broadcast %cst_7 : f32 to vector<1x16xf32>
    %17 = arith.select %14, %15, %16 : vector<1x16xi1>, vector<1x16xf32>
    %cst_8 = arith.constant 0.000000e+00 : f32
    %18 = vector.broadcast %cst_8 : f32 to vector<64x32xf32>
    %c0_9 = arith.constant 0 : index
    %c0_10 = arith.constant 0 : index
    %c0_11 = arith.constant 0 : index
    %c0_12 = arith.constant 0 : index
    %c0_13 = arith.constant 0 : index
    %19 = vector.load %arg2[%c0_9, %c0_10, %c0_11, %c0_12, %c0_13] : memref<2x3x4x32x8xf32, #tpu.memory_space<vmem>>, vector<1x1x1x32x8xf32>
    %20 = vector.shape_cast %19 : vector<1x1x1x32x8xf32> to vector<32x8xf32>
    %cst_14 = arith.constant dense<0.000000e+00> : vector<64x8xf32>
    %21 = tpu.matmul %11, %20, %cst_14 {dimension_numbers = #tpu.dot_dimension_numbers<[1], [0], [0], [1], [0, 0, 1, 1], [], []>} : vector<64x32xf32>, vector<32x8xf32>, vector<64x8xf32> -> vector<64x8xf32>
    %c8 = arith.constant 8 : index
    %c0_15 = arith.constant 0 : index
    %22 = vector.load %arg5[%c8, %c0_15] : memref<56x128xf32, #tpu.memory_space<vmem>>, vector<1x8xf32>
    %23 = vector.broadcast %22 : vector<1x8xf32> to vector<64x8xf32>
    %24 = arith.addf %21, %23 : vector<64x8xf32>
    %c0_16 = arith.constant 0 : index
    %c1_17 = arith.constant 1 : index
    %c0_18 = arith.constant 0 : index
    %c0_19 = arith.constant 0 : index
    %c0_20 = arith.constant 0 : index
    %25 = vector.load %arg2[%c0_16, %c1_17, %c0_18, %c0_19, %c0_20] : memref<2x3x4x32x8xf32, #tpu.memory_space<vmem>>, vector<1x1x1x32x8xf32>
    %26 = vector.shape_cast %25 : vector<1x1x1x32x8xf32> to vector<32x8xf32>
    %cst_21 = arith.constant dense<0.000000e+00> : vector<64x8xf32>
    %27 = tpu.matmul %11, %26, %cst_21 {dimension_numbers = #tpu.dot_dimension_numbers<[1], [0], [0], [1], [0, 0, 1, 1], [], []>} : vector<64x32xf32>, vector<32x8xf32>, vector<64x8xf32> -> vector<64x8xf32>
    %c12 = arith.constant 12 : index
    %c0_22 = arith.constant 0 : index
    %28 = vector.load %arg5[%c12, %c0_22] : memref<56x128xf32, #tpu.memory_space<vmem>>, vector<1x8xf32>
    %29 = vector.broadcast %28 : vector<1x8xf32> to vector<64x8xf32>
    %30 = arith.addf %27, %29 : vector<64x8xf32>
    %c0_23 = arith.constant 0 : index
    %c2 = arith.constant 2 : index
    %c0_24 = arith.constant 0 : index
    %c0_25 = arith.constant 0 : index
    %c0_26 = arith.constant 0 : index
    %31 = vector.load %arg2[%c0_23, %c2, %c0_24, %c0_25, %c0_26] : memref<2x3x4x32x8xf32, #tpu.memory_space<vmem>>, vector<1x1x1x32x8xf32>
    %32 = vector.shape_cast %31 : vector<1x1x1x32x8xf32> to vector<32x8xf32>
    %cst_27 = arith.constant dense<0.000000e+00> : vector<64x8xf32>
    %33 = tpu.matmul %11, %32, %cst_27 {dimension_numbers = #tpu.dot_dimension_numbers<[1], [0], [0], [1], [0, 0, 1, 1], [], []>} : vector<64x32xf32>, vector<32x8xf32>, vector<64x8xf32> -> vector<64x8xf32>
    %c16 = arith.constant 16 : index
    %c0_28 = arith.constant 0 : index
    %34 = vector.load %arg5[%c16, %c0_28] : memref<56x128xf32, #tpu.memory_space<vmem>>, vector<1x8xf32>
    %35 = vector.broadcast %34 : vector<1x8xf32> to vector<64x8xf32>
    %36 = arith.addf %33, %35 : vector<64x8xf32>
    %37 = vector.shape_cast %24 : vector<64x8xf32> to vector<4x16x8xf32>
    %38 = vector.shape_cast %30 : vector<64x8xf32> to vector<4x16x8xf32>
    %39 = vector.shape_cast %36 : vector<64x8xf32> to vector<4x16x8xf32>
    "tpu.trace_start"() <{level = 10 : i32, message = "bqe,bke->bqk"}> : () -> ()
    %cst_29 = arith.constant dense<0.000000e+00> : vector<4x16x16xf32>
    %40 = tpu.matmul %37, %38, %cst_29 {dimension_numbers = #tpu.dot_dimension_numbers<[2], [2], [1], [1], [0, 0, 0, 1, 1, 1], [0], [0]>} : vector<4x16x8xf32>, vector<4x16x8xf32>, vector<4x16x16xf32> -> vector<4x16x16xf32>
    "tpu.trace_stop"() : () -> ()
    %cst_30 = arith.constant 0.353553385 : f32
    %41 = vector.broadcast %cst_30 : f32 to vector<4x16x16xf32>
    %42 = arith.mulf %40, %41 : vector<4x16x16xf32>
    %43 = vector.shape_cast %17 : vector<1x16xf32> to vector<1x1x16xf32>
    %44 = vector.broadcast %43 : vector<1x1x16xf32> to vector<4x16x16xf32>
    %45 = arith.addf %42, %44 : vector<4x16x16xf32>
    %cst_31 = arith.constant dense<0xFF800000> : vector<4x16xf32>
    %46 = vector.multi_reduction <maximumf>, %45, %cst_31 [2] : vector<4x16x16xf32> to vector<4x16xf32>
    %47 = vector.shape_cast %46 : vector<4x16xf32> to vector<4x16x1xf32>
    %48 = vector.broadcast %47 : vector<4x16x1xf32> to vector<4x16x16xf32>
    %49 = arith.subf %45, %48 : vector<4x16x16xf32>
    %50 = math.exp %49 : vector<4x16x16xf32>
    %cst_32 = arith.constant dense<0.000000e+00> : vector<4x16xf32>
    %51 = vector.multi_reduction <add>, %50, %cst_32 [2] : vector<4x16x16xf32> to vector<4x16xf32>
    %52 = vector.shape_cast %51 : vector<4x16xf32> to vector<4x16x1xf32>
    %53 = vector.broadcast %52 : vector<4x16x1xf32> to vector<4x16x16xf32>
    %54 = arith.divf %50, %53 : vector<4x16x16xf32>
    "tpu.trace_start"() <{level = 10 : i32, message = "bqk,bke->bqe"}> : () -> ()
    %cst_33 = arith.constant dense<0.000000e+00> : vector<4x16x8xf32>
    %55 = tpu.matmul %54, %39, %cst_33 {dimension_numbers = #tpu.dot_dimension_numbers<[2], [1], [1], [2], [0, 0, 0, 1, 1, 2], [0], [0]>} : vector<4x16x16xf32>, vector<4x16x8xf32>, vector<4x16x8xf32> -> vector<4x16x8xf32>
    "tpu.trace_stop"() : () -> ()
    %56 = vector.shape_cast %55 : vector<4x16x8xf32> to vector<64x8xf32>
    %c0_34 = arith.constant 0 : index
    %c0_35 = arith.constant 0 : index
    %c0_36 = arith.constant 0 : index
    %c0_37 = arith.constant 0 : index
    %57 = vector.load %arg3[%c0_34, %c0_35, %c0_36, %c0_37] : memref<2x4x8x32xf32, #tpu.memory_space<vmem>>, vector<1x1x8x32xf32>
    %58 = vector.shape_cast %57 : vector<1x1x8x32xf32> to vector<8x32xf32>
    %cst_38 = arith.constant dense<0.000000e+00> : vector<64x32xf32>
    %59 = tpu.matmul %56, %58, %cst_38 {dimension_numbers = #tpu.dot_dimension_numbers<[1], [0], [0], [1], [0, 0, 1, 1], [], []>} : vector<64x8xf32>, vector<8x32xf32>, vector<64x32xf32> -> vector<64x32xf32>
    %60 = arith.addf %18, %59 : vector<64x32xf32>
    %c0_39 = arith.constant 0 : index
    %c0_40 = arith.constant 0 : index
    %c1_41 = arith.constant 1 : index
    %c0_42 = arith.constant 0 : index
    %c0_43 = arith.constant 0 : index
    %61 = vector.load %arg2[%c0_39, %c0_40, %c1_41, %c0_42, %c0_43] : memref<2x3x4x32x8xf32, #tpu.memory_space<vmem>>, vector<1x1x1x32x8xf32>
    %62 = vector.shape_cast %61 : vector<1x1x1x32x8xf32> to vector<32x8xf32>
    %cst_44 = arith.constant dense<0.000000e+00> : vector<64x8xf32>
    %63 = tpu.matmul %11, %62, %cst_44 {dimension_numbers = #tpu.dot_dimension_numbers<[1], [0], [0], [1], [0, 0, 1, 1], [], []>} : vector<64x32xf32>, vector<32x8xf32>, vector<64x8xf32> -> vector<64x8xf32>
    %c9 = arith.constant 9 : index
    %c0_45 = arith.constant 0 : index
    %64 = vector.load %arg5[%c9, %c0_45] : memref<56x128xf32, #tpu.memory_space<vmem>>, vector<1x8xf32>
    %65 = vector.broadcast %64 : vector<1x8xf32> to vector<64x8xf32>
    %66 = arith.addf %63, %65 : vector<64x8xf32>
    %c0_46 = arith.constant 0 : index
    %c1_47 = arith.constant 1 : index
    %c1_48 = arith.constant 1 : index
    %c0_49 = arith.constant 0 : index
    %c0_50 = arith.constant 0 : index
    %67 = vector.load %arg2[%c0_46, %c1_47, %c1_48, %c0_49, %c0_50] : memref<2x3x4x32x8xf32, #tpu.memory_space<vmem>>, vector<1x1x1x32x8xf32>
    %68 = vector.shape_cast %67 : vector<1x1x1x32x8xf32> to vector<32x8xf32>
    %cst_51 = arith.constant dense<0.000000e+00> : vector<64x8xf32>
    %69 = tpu.matmul %11, %68, %cst_51 {dimension_numbers = #tpu.dot_dimension_numbers<[1], [0], [0], [1], [0, 0, 1, 1], [], []>} : vector<64x32xf32>, vector<32x8xf32>, vector<64x8xf32> -> vector<64x8xf32>
    %c13 = arith.constant 13 : index
    %c0_52 = arith.constant 0 : index
    %70 = vector.load %arg5[%c13, %c0_52] : memref<56x128xf32, #tpu.memory_space<vmem>>, vector<1x8xf32>
    %71 = vector.broadcast %70 : vector<1x8xf32> to vector<64x8xf32>
    %72 = arith.addf %69, %71 : vector<64x8xf32>
    %c0_53 = arith.constant 0 : index
    %c2_54 = arith.constant 2 : index
    %c1_55 = arith.constant 1 : index
    %c0_56 = arith.constant 0 : index
    %c0_57 = arith.constant 0 : index
    %73 = vector.load %arg2[%c0_53, %c2_54, %c1_55, %c0_56, %c0_57] : memref<2x3x4x32x8xf32, #tpu.memory_space<vmem>>, vector<1x1x1x32x8xf32>
    %74 = vector.shape_cast %73 : vector<1x1x1x32x8xf32> to vector<32x8xf32>
    %cst_58 = arith.constant dense<0.000000e+00> : vector<64x8xf32>
    %75 = tpu.matmul %11, %74, %cst_58 {dimension_numbers = #tpu.dot_dimension_numbers<[1], [0], [0], [1], [0, 0, 1, 1], [], []>} : vector<64x32xf32>, vector<32x8xf32>, vector<64x8xf32> -> vector<64x8xf32>
    %c17 = arith.constant 17 : index
    %c0_59 = arith.constant 0 : index
    %76 = vector.load %arg5[%c17, %c0_59] : memref<56x128xf32, #tpu.memory_space<vmem>>, vector<1x8xf32>
    %77 = vector.broadcast %76 : vector<1x8xf32> to vector<64x8xf32>
    %78 = arith.addf %75, %77 : vector<64x8xf32>
    %79 = vector.shape_cast %66 : vector<64x8xf32> to vector<4x16x8xf32>
    %80 = vector.shape_cast %72 : vector<64x8xf32> to vector<4x16x8xf32>
    %81 = vector.shape_cast %78 : vector<64x8xf32> to vector<4x16x8xf32>
    "tpu.trace_start"() <{level = 10 : i32, message = "bqe,bke->bqk"}> : () -> ()
    %cst_60 = arith.constant dense<0.000000e+00> : vector<4x16x16xf32>
    %82 = tpu.matmul %79, %80, %cst_60 {dimension_numbers = #tpu.dot_dimension_numbers<[2], [2], [1], [1], [0, 0, 0, 1, 1, 1], [0], [0]>} : vector<4x16x8xf32>, vector<4x16x8xf32>, vector<4x16x16xf32> -> vector<4x16x16xf32>
    "tpu.trace_stop"() : () -> ()
    %cst_61 = arith.constant 0.353553385 : f32
    %83 = vector.broadcast %cst_61 : f32 to vector<4x16x16xf32>
    %84 = arith.mulf %82, %83 : vector<4x16x16xf32>
    %85 = vector.shape_cast %17 : vector<1x16xf32> to vector<1x1x16xf32>
    %86 = vector.broadcast %85 : vector<1x1x16xf32> to vector<4x16x16xf32>
    %87 = arith.addf %84, %86 : vector<4x16x16xf32>
    %cst_62 = arith.constant dense<0xFF800000> : vector<4x16xf32>
    %88 = vector.multi_reduction <maximumf>, %87, %cst_62 [2] : vector<4x16x16xf32> to vector<4x16xf32>
    %89 = vector.shape_cast %88 : vector<4x16xf32> to vector<4x16x1xf32>
    %90 = vector.broadcast %89 : vector<4x16x1xf32> to vector<4x16x16xf32>
    %91 = arith.subf %87, %90 : vector<4x16x16xf32>
    %92 = math.exp %91 : vector<4x16x16xf32>
    %cst_63 = arith.constant dense<0.000000e+00> : vector<4x16xf32>
    %93 = vector.multi_reduction <add>, %92, %cst_63 [2] : vector<4x16x16xf32> to vector<4x16xf32>
    %94 = vector.shape_cast %93 : vector<4x16xf32> to vector<4x16x1xf32>
    %95 = vector.broadcast %94 : vector<4x16x1xf32> to vector<4x16x16xf32>
    %96 = arith.divf %92, %95 : vector<4x16x16xf32>
    "tpu.trace_start"() <{level = 10 : i32, message = "bqk,bke->bqe"}> : () -> ()
    %cst_64 = arith.constant dense<0.000000e+00> : vector<4x16x8xf32>
    %97 = tpu.matmul %96, %81, %cst_64 {dimension_numbers = #tpu.dot_dimension_numbers<[2], [1], [1], [2], [0, 0, 0, 1, 1, 2], [0], [0]>} : vector<4x16x16xf32>, vector<4x16x8xf32>, vector<4x16x8xf32> -> vector<4x16x8xf32>
    "tpu.trace_stop"() : () -> ()
    %98 = vector.shape_cast %97 : vector<4x16x8xf32> to vector<64x8xf32>
    %c0_65 = arith.constant 0 : index
    %c1_66 = arith.constant 1 : index
    %c0_67 = arith.constant 0 : index
    %c0_68 = arith.constant 0 : index
    %99 = vector.load %arg3[%c0_65, %c1_66, %c0_67, %c0_68] : memref<2x4x8x32xf32, #tpu.memory_space<vmem>>, vector<1x1x8x32xf32>
    %100 = vector.shape_cast %99 : vector<1x1x8x32xf32> to vector<8x32xf32>
    %cst_69 = arith.constant dense<0.000000e+00> : vector<64x32xf32>
    %101 = tpu.matmul %98, %100, %cst_69 {dimension_numbers = #tpu.dot_dimension_numbers<[1], [0], [0], [1], [0, 0, 1, 1], [], []>} : vector<64x8xf32>, vector<8x32xf32>, vector<64x32xf32> -> vector<64x32xf32>
    %102 = arith.addf %60, %101 : vector<64x32xf32>
    %c0_70 = arith.constant 0 : index
    %c0_71 = arith.constant 0 : index
    %c2_72 = arith.constant 2 : index
    %c0_73 = arith.constant 0 : index
    %c0_74 = arith.constant 0 : index
    %103 = vector.load %arg2[%c0_70, %c0_71, %c2_72, %c0_73, %c0_74] : memref<2x3x4x32x8xf32, #tpu.memory_space<vmem>>, vector<1x1x1x32x8xf32>
    %104 = vector.shape_cast %103 : vector<1x1x1x32x8xf32> to vector<32x8xf32>
    %cst_75 = arith.constant dense<0.000000e+00> : vector<64x8xf32>
    %105 = tpu.matmul %11, %104, %cst_75 {dimension_numbers = #tpu.dot_dimension_numbers<[1], [0], [0], [1], [0, 0, 1, 1], [], []>} : vector<64x32xf32>, vector<32x8xf32>, vector<64x8xf32> -> vector<64x8xf32>
    %c10 = arith.constant 10 : index
    %c0_76 = arith.constant 0 : index
    %106 = vector.load %arg5[%c10, %c0_76] : memref<56x128xf32, #tpu.memory_space<vmem>>, vector<1x8xf32>
    %107 = vector.broadcast %106 : vector<1x8xf32> to vector<64x8xf32>
    %108 = arith.addf %105, %107 : vector<64x8xf32>
    %c0_77 = arith.constant 0 : index
    %c1_78 = arith.constant 1 : index
    %c2_79 = arith.constant 2 : index
    %c0_80 = arith.constant 0 : index
    %c0_81 = arith.constant 0 : index
    %109 = vector.load %arg2[%c0_77, %c1_78, %c2_79, %c0_80, %c0_81] : memref<2x3x4x32x8xf32, #tpu.memory_space<vmem>>, vector<1x1x1x32x8xf32>
    %110 = vector.shape_cast %109 : vector<1x1x1x32x8xf32> to vector<32x8xf32>
    %cst_82 = arith.constant dense<0.000000e+00> : vector<64x8xf32>
    %111 = tpu.matmul %11, %110, %cst_82 {dimension_numbers = #tpu.dot_dimension_numbers<[1], [0], [0], [1], [0, 0, 1, 1], [], []>} : vector<64x32xf32>, vector<32x8xf32>, vector<64x8xf32> -> vector<64x8xf32>
    %c14 = arith.constant 14 : index
    %c0_83 = arith.constant 0 : index
    %112 = vector.load %arg5[%c14, %c0_83] : memref<56x128xf32, #tpu.memory_space<vmem>>, vector<1x8xf32>
    %113 = vector.broadcast %112 : vector<1x8xf32> to vector<64x8xf32>
    %114 = arith.addf %111, %113 : vector<64x8xf32>
    %c0_84 = arith.constant 0 : index
    %c2_85 = arith.constant 2 : index
    %c2_86 = arith.constant 2 : index
    %c0_87 = arith.constant 0 : index
    %c0_88 = arith.constant 0 : index
    %115 = vector.load %arg2[%c0_84, %c2_85, %c2_86, %c0_87, %c0_88] : memref<2x3x4x32x8xf32, #tpu.memory_space<vmem>>, vector<1x1x1x32x8xf32>
    %116 = vector.shape_cast %115 : vector<1x1x1x32x8xf32> to vector<32x8xf32>
    %cst_89 = arith.constant dense<0.000000e+00> : vector<64x8xf32>
    %117 = tpu.matmul %11, %116, %cst_89 {dimension_numbers = #tpu.dot_dimension_numbers<[1], [0], [0], [1], [0, 0, 1, 1], [], []>} : vector<64x32xf32>, vector<32x8xf32>, vector<64x8xf32> -> vector<64x8xf32>
    %c18 = arith.constant 18 : index
    %c0_90 = arith.constant 0 : index
    %118 = vector.load %arg5[%c18, %c0_90] : memref<56x128xf32, #tpu.memory_space<vmem>>, vector<1x8xf32>
    %119 = vector.broadcast %118 : vector<1x8xf32> to vector<64x8xf32>
    %120 = arith.addf %117, %119 : vector<64x8xf32>
    %121 = vector.shape_cast %108 : vector<64x8xf32> to vector<4x16x8xf32>
    %122 = vector.shape_cast %114 : vector<64x8xf32> to vector<4x16x8xf32>
    %123 = vector.shape_cast %120 : vector<64x8xf32> to vector<4x16x8xf32>
    "tpu.trace_start"() <{level = 10 : i32, message = "bqe,bke->bqk"}> : () -> ()
    %cst_91 = arith.constant dense<0.000000e+00> : vector<4x16x16xf32>
    %124 = tpu.matmul %121, %122, %cst_91 {dimension_numbers = #tpu.dot_dimension_numbers<[2], [2], [1], [1], [0, 0, 0, 1, 1, 1], [0], [0]>} : vector<4x16x8xf32>, vector<4x16x8xf32>, vector<4x16x16xf32> -> vector<4x16x16xf32>
    "tpu.trace_stop"() : () -> ()
    %cst_92 = arith.constant 0.353553385 : f32
    %125 = vector.broadcast %cst_92 : f32 to vector<4x16x16xf32>
    %126 = arith.mulf %124, %125 : vector<4x16x16xf32>
    %127 = vector.shape_cast %17 : vector<1x16xf32> to vector<1x1x16xf32>
    %128 = vector.broadcast %127 : vector<1x1x16xf32> to vector<4x16x16xf32>
    %129 = arith.addf %126, %128 : vector<4x16x16xf32>
    %cst_93 = arith.constant dense<0xFF800000> : vector<4x16xf32>
    %130 = vector.multi_reduction <maximumf>, %129, %cst_93 [2] : vector<4x16x16xf32> to vector<4x16xf32>
    %131 = vector.shape_cast %130 : vector<4x16xf32> to vector<4x16x1xf32>
    %132 = vector.broadcast %131 : vector<4x16x1xf32> to vector<4x16x16xf32>
    %133 = arith.subf %129, %132 : vector<4x16x16xf32>
    %134 = math.exp %133 : vector<4x16x16xf32>
    %cst_94 = arith.constant dense<0.000000e+00> : vector<4x16xf32>
    %135 = vector.multi_reduction <add>, %134, %cst_94 [2] : vector<4x16x16xf32> to vector<4x16xf32>
    %136 = vector.shape_cast %135 : vector<4x16xf32> to vector<4x16x1xf32>
    %137 = vector.broadcast %136 : vector<4x16x1xf32> to vector<4x16x16xf32>
    %138 = arith.divf %134, %137 : vector<4x16x16xf32>
    "tpu.trace_start"() <{level = 10 : i32, message = "bqk,bke->bqe"}> : () -> ()
    %cst_95 = arith.constant dense<0.000000e+00> : vector<4x16x8xf32>
    %139 = tpu.matmul %138, %123, %cst_95 {dimension_numbers = #tpu.dot_dimension_numbers<[2], [1], [1], [2], [0, 0, 0, 1, 1, 2], [0], [0]>} : vector<4x16x16xf32>, vector<4x16x8xf32>, vector<4x16x8xf32> -> vector<4x16x8xf32>
    "tpu.trace_stop"() : () -> ()
    %140 = vector.shape_cast %139 : vector<4x16x8xf32> to vector<64x8xf32>
    %c0_96 = arith.constant 0 : index
    %c2_97 = arith.constant 2 : index
    %c0_98 = arith.constant 0 : index
    %c0_99 = arith.constant 0 : index
    %141 = vector.load %arg3[%c0_96, %c2_97, %c0_98, %c0_99] : memref<2x4x8x32xf32, #tpu.memory_space<vmem>>, vector<1x1x8x32xf32>
    %142 = vector.shape_cast %141 : vector<1x1x8x32xf32> to vector<8x32xf32>
    %cst_100 = arith.constant dense<0.000000e+00> : vector<64x32xf32>
    %143 = tpu.matmul %140, %142, %cst_100 {dimension_numbers = #tpu.dot_dimension_numbers<[1], [0], [0], [1], [0, 0, 1, 1], [], []>} : vector<64x8xf32>, vector<8x32xf32>, vector<64x32xf32> -> vector<64x32xf32>
    %144 = arith.addf %102, %143 : vector<64x32xf32>
    %c0_101 = arith.constant 0 : index
    %c0_102 = arith.constant 0 : index
    %c3 = arith.constant 3 : index
    %c0_103 = arith.constant 0 : index
    %c0_104 = arith.constant 0 : index
    %145 = vector.load %arg2[%c0_101, %c0_102, %c3, %c0_103, %c0_104] : memref<2x3x4x32x8xf32, #tpu.memory_space<vmem>>, vector<1x1x1x32x8xf32>
    %146 = vector.shape_cast %145 : vector<1x1x1x32x8xf32> to vector<32x8xf32>
    %cst_105 = arith.constant dense<0.000000e+00> : vector<64x8xf32>
    %147 = tpu.matmul %11, %146, %cst_105 {dimension_numbers = #tpu.dot_dimension_numbers<[1], [0], [0], [1], [0, 0, 1, 1], [], []>} : vector<64x32xf32>, vector<32x8xf32>, vector<64x8xf32> -> vector<64x8xf32>
    %c11 = arith.constant 11 : index
    %c0_106 = arith.constant 0 : index
    %148 = vector.load %arg5[%c11, %c0_106] : memref<56x128xf32, #tpu.memory_space<vmem>>, vector<1x8xf32>
    %149 = vector.broadcast %148 : vector<1x8xf32> to vector<64x8xf32>
    %150 = arith.addf %147, %149 : vector<64x8xf32>
    %c0_107 = arith.constant 0 : index
    %c1_108 = arith.constant 1 : index
    %c3_109 = arith.constant 3 : index
    %c0_110 = arith.constant 0 : index
    %c0_111 = arith.constant 0 : index
    %151 = vector.load %arg2[%c0_107, %c1_108, %c3_109, %c0_110, %c0_111] : memref<2x3x4x32x8xf32, #tpu.memory_space<vmem>>, vector<1x1x1x32x8xf32>
    %152 = vector.shape_cast %151 : vector<1x1x1x32x8xf32> to vector<32x8xf32>
    %cst_112 = arith.constant dense<0.000000e+00> : vector<64x8xf32>
    %153 = tpu.matmul %11, %152, %cst_112 {dimension_numbers = #tpu.dot_dimension_numbers<[1], [0], [0], [1], [0, 0, 1, 1], [], []>} : vector<64x32xf32>, vector<32x8xf32>, vector<64x8xf32> -> vector<64x8xf32>
    %c15 = arith.constant 15 : index
    %c0_113 = arith.constant 0 : index
    %154 = vector.load %arg5[%c15, %c0_113] : memref<56x128xf32, #tpu.memory_space<vmem>>, vector<1x8xf32>
    %155 = vector.broadcast %154 : vector<1x8xf32> to vector<64x8xf32>
    %156 = arith.addf %153, %155 : vector<64x8xf32>
    %c0_114 = arith.constant 0 : index
    %c2_115 = arith.constant 2 : index
    %c3_116 = arith.constant 3 : index
    %c0_117 = arith.constant 0 : index
    %c0_118 = arith.constant 0 : index
    %157 = vector.load %arg2[%c0_114, %c2_115, %c3_116, %c0_117, %c0_118] : memref<2x3x4x32x8xf32, #tpu.memory_space<vmem>>, vector<1x1x1x32x8xf32>
    %158 = vector.shape_cast %157 : vector<1x1x1x32x8xf32> to vector<32x8xf32>
    %cst_119 = arith.constant dense<0.000000e+00> : vector<64x8xf32>
    %159 = tpu.matmul %11, %158, %cst_119 {dimension_numbers = #tpu.dot_dimension_numbers<[1], [0], [0], [1], [0, 0, 1, 1], [], []>} : vector<64x32xf32>, vector<32x8xf32>, vector<64x8xf32> -> vector<64x8xf32>
    %c19 = arith.constant 19 : index
    %c0_120 = arith.constant 0 : index
    %160 = vector.load %arg5[%c19, %c0_120] : memref<56x128xf32, #tpu.memory_space<vmem>>, vector<1x8xf32>
    %161 = vector.broadcast %160 : vector<1x8xf32> to vector<64x8xf32>
    %162 = arith.addf %159, %161 : vector<64x8xf32>
    %163 = vector.shape_cast %150 : vector<64x8xf32> to vector<4x16x8xf32>
    %164 = vector.shape_cast %156 : vector<64x8xf32> to vector<4x16x8xf32>
    %165 = vector.shape_cast %162 : vector<64x8xf32> to vector<4x16x8xf32>
    "tpu.trace_start"() <{level = 10 : i32, message = "bqe,bke->bqk"}> : () -> ()
    %cst_121 = arith.constant dense<0.000000e+00> : vector<4x16x16xf32>
    %166 = tpu.matmul %163, %164, %cst_121 {dimension_numbers = #tpu.dot_dimension_numbers<[2], [2], [1], [1], [0, 0, 0, 1, 1, 1], [0], [0]>} : vector<4x16x8xf32>, vector<4x16x8xf32>, vector<4x16x16xf32> -> vector<4x16x16xf32>
    "tpu.trace_stop"() : () -> ()
    %cst_122 = arith.constant 0.353553385 : f32
    %167 = vector.broadcast %cst_122 : f32 to vector<4x16x16xf32>
    %168 = arith.mulf %166, %167 : vector<4x16x16xf32>
    %169 = vector.shape_cast %17 : vector<1x16xf32> to vector<1x1x16xf32>
    %170 = vector.broadcast %169 : vector<1x1x16xf32> to vector<4x16x16xf32>
    %171 = arith.addf %168, %170 : vector<4x16x16xf32>
    %cst_123 = arith.constant dense<0xFF800000> : vector<4x16xf32>
    %172 = vector.multi_reduction <maximumf>, %171, %cst_123 [2] : vector<4x16x16xf32> to vector<4x16xf32>
    %173 = vector.shape_cast %172 : vector<4x16xf32> to vector<4x16x1xf32>
    %174 = vector.broadcast %173 : vector<4x16x1xf32> to vector<4x16x16xf32>
    %175 = arith.subf %171, %174 : vector<4x16x16xf32>
    %176 = math.exp %175 : vector<4x16x16xf32>
    %cst_124 = arith.constant dense<0.000000e+00> : vector<4x16xf32>
    %177 = vector.multi_reduction <add>, %176, %cst_124 [2] : vector<4x16x16xf32> to vector<4x16xf32>
    %178 = vector.shape_cast %177 : vector<4x16xf32> to vector<4x16x1xf32>
    %179 = vector.broadcast %178 : vector<4x16x1xf32> to vector<4x16x16xf32>
    %180 = arith.divf %176, %179 : vector<4x16x16xf32>
    "tpu.trace_start"() <{level = 10 : i32, message = "bqk,bke->bqe"}> : () -> ()
    %cst_125 = arith.constant dense<0.000000e+00> : vector<4x16x8xf32>
    %181 = tpu.matmul %180, %165, %cst_125 {dimension_numbers = #tpu.dot_dimension_numbers<[2], [1], [1], [2], [0, 0, 0, 1, 1, 2], [0], [0]>} : vector<4x16x16xf32>, vector<4x16x8xf32>, vector<4x16x8xf32> -> vector<4x16x8xf32>
    "tpu.trace_stop"() : () -> ()
    %182 = vector.shape_cast %181 : vector<4x16x8xf32> to vector<64x8xf32>
    %c0_126 = arith.constant 0 : index
    %c3_127 = arith.constant 3 : index
    %c0_128 = arith.constant 0 : index
    %c0_129 = arith.constant 0 : index
    %183 = vector.load %arg3[%c0_126, %c3_127, %c0_128, %c0_129] : memref<2x4x8x32xf32, #tpu.memory_space<vmem>>, vector<1x1x8x32xf32>
    %184 = vector.shape_cast %183 : vector<1x1x8x32xf32> to vector<8x32xf32>
    %cst_130 = arith.constant dense<0.000000e+00> : vector<64x32xf32>
    %185 = tpu.matmul %182, %184, %cst_130 {dimension_numbers = #tpu.dot_dimension_numbers<[1], [0], [0], [1], [0, 0, 1, 1], [], []>} : vector<64x8xf32>, vector<8x32xf32>, vector<64x32xf32> -> vector<64x32xf32>
    %186 = arith.addf %144, %185 : vector<64x32xf32>
    %c4 = arith.constant 4 : index
    %c0_131 = arith.constant 0 : index
    %187 = vector.load %arg5[%c4, %c0_131] : memref<56x128xf32, #tpu.memory_space<vmem>>, vector<1x32xf32>
    %188 = vector.broadcast %187 : vector<1x32xf32> to vector<64x32xf32>
    %189 = arith.addf %186, %188 : vector<64x32xf32>
    %190 = arith.addf %11, %189 : vector<64x32xf32>
    %c2_132 = arith.constant 2 : index
    %c0_133 = arith.constant 0 : index
    %191 = vector.load %arg5[%c2_132, %c0_133] : memref<56x128xf32, #tpu.memory_space<vmem>>, vector<1x32xf32>
    %c3_134 = arith.constant 3 : index
    %c0_135 = arith.constant 0 : index
    %192 = vector.load %arg5[%c3_134, %c0_135] : memref<56x128xf32, #tpu.memory_space<vmem>>, vector<1x32xf32>
    %cst_136 = arith.constant dense<0.000000e+00> : vector<64xf32>
    %193 = vector.multi_reduction <add>, %190, %cst_136 [1] : vector<64x32xf32> to vector<64xf32>
    %194 = vector.shape_cast %193 : vector<64xf32> to vector<64x1xf32>
    %cst_137 = arith.constant 3.200000e+01 : f32
    %195 = vector.broadcast %cst_137 : f32 to vector<64x1xf32>
    %196 = arith.divf %194, %195 : vector<64x1xf32>
    %197 = vector.broadcast %196 : vector<64x1xf32> to vector<64x32xf32>
    %198 = arith.subf %190, %197 : vector<64x32xf32>
    %199 = arith.mulf %198, %198 : vector<64x32xf32>
    %cst_138 = arith.constant dense<0.000000e+00> : vector<64xf32>
    %200 = vector.multi_reduction <add>, %199, %cst_138 [1] : vector<64x32xf32> to vector<64xf32>
    %201 = vector.shape_cast %200 : vector<64xf32> to vector<64x1xf32>
    %cst_139 = arith.constant 3.200000e+01 : f32
    %202 = vector.broadcast %cst_139 : f32 to vector<64x1xf32>
    %203 = arith.divf %201, %202 : vector<64x1xf32>
    %204 = vector.broadcast %196 : vector<64x1xf32> to vector<64x32xf32>
    %205 = arith.subf %190, %204 : vector<64x32xf32>
    %cst_140 = arith.constant 9.99999974E-6 : f32
    %206 = vector.broadcast %cst_140 : f32 to vector<64x1xf32>
    %207 = arith.addf %203, %206 : vector<64x1xf32>
    %208 = math.rsqrt %207 : vector<64x1xf32>
    %209 = vector.broadcast %208 : vector<64x1xf32> to vector<64x32xf32>
    %210 = arith.mulf %205, %209 : vector<64x32xf32>
    %211 = vector.broadcast %191 : vector<1x32xf32> to vector<64x32xf32>
    %212 = arith.mulf %210, %211 : vector<64x32xf32>
    %213 = vector.broadcast %192 : vector<1x32xf32> to vector<64x32xf32>
    %214 = arith.addf %212, %213 : vector<64x32xf32>
    %c0_141 = arith.constant 0 : index
    %c0_142 = arith.constant 0 : index
    %c0_143 = arith.constant 0 : index
    %c0_144 = arith.constant 0 : index
    %215 = vector.load %arg4[%c0_141, %c0_142, %c0_143, %c0_144] : memref<2x3x64x64xf32, #tpu.memory_space<vmem>>, vector<1x1x32x64xf32>
    %216 = vector.shape_cast %215 : vector<1x1x32x64xf32> to vector<32x64xf32>
    %cst_145 = arith.constant dense<0.000000e+00> : vector<64x64xf32>
    %217 = tpu.matmul %214, %216, %cst_145 {dimension_numbers = #tpu.dot_dimension_numbers<[1], [0], [0], [1], [0, 0, 1, 1], [], []>} : vector<64x32xf32>, vector<32x64xf32>, vector<64x64xf32> -> vector<64x64xf32>
    %c6 = arith.constant 6 : index
    %c0_146 = arith.constant 0 : index
    %218 = vector.load %arg5[%c6, %c0_146] : memref<56x128xf32, #tpu.memory_space<vmem>>, vector<1x64xf32>
    %219 = vector.broadcast %218 : vector<1x64xf32> to vector<64x64xf32>
    %220 = arith.addf %217, %219 : vector<64x64xf32>
    %c0_147 = arith.constant 0 : index
    %c1_148 = arith.constant 1 : index
    %c0_149 = arith.constant 0 : index
    %c0_150 = arith.constant 0 : index
    %221 = vector.load %arg4[%c0_147, %c1_148, %c0_149, %c0_150] : memref<2x3x64x64xf32, #tpu.memory_space<vmem>>, vector<1x1x32x64xf32>
    %222 = vector.shape_cast %221 : vector<1x1x32x64xf32> to vector<32x64xf32>
    %cst_151 = arith.constant dense<0.000000e+00> : vector<64x64xf32>
    %223 = tpu.matmul %214, %222, %cst_151 {dimension_numbers = #tpu.dot_dimension_numbers<[1], [0], [0], [1], [0, 0, 1, 1], [], []>} : vector<64x32xf32>, vector<32x64xf32>, vector<64x64xf32> -> vector<64x64xf32>
    %c7 = arith.constant 7 : index
    %c0_152 = arith.constant 0 : index
    %224 = vector.load %arg5[%c7, %c0_152] : memref<56x128xf32, #tpu.memory_space<vmem>>, vector<1x64xf32>
    %225 = vector.broadcast %224 : vector<1x64xf32> to vector<64x64xf32>
    %226 = arith.addf %223, %225 : vector<64x64xf32>
    %cst_153 = arith.constant 0.000000e+00 : f32
    %227 = vector.broadcast %cst_153 : f32 to vector<64x64xf32>
    %228 = arith.maximumf %226, %227 : vector<64x64xf32>
    %229 = arith.mulf %220, %228 : vector<64x64xf32>
    %c0_154 = arith.constant 0 : index
    %c2_155 = arith.constant 2 : index
    %c0_156 = arith.constant 0 : index
    %c0_157 = arith.constant 0 : index
    %230 = vector.load %arg4[%c0_154, %c2_155, %c0_156, %c0_157] : memref<2x3x64x64xf32, #tpu.memory_space<vmem>>, vector<1x1x64x32xf32>
    %231 = vector.shape_cast %230 : vector<1x1x64x32xf32> to vector<64x32xf32>
    %cst_158 = arith.constant dense<0.000000e+00> : vector<64x32xf32>
    %232 = tpu.matmul %229, %231, %cst_158 {dimension_numbers = #tpu.dot_dimension_numbers<[1], [0], [0], [1], [0, 0, 1, 1], [], []>} : vector<64x64xf32>, vector<64x32xf32>, vector<64x32xf32> -> vector<64x32xf32>
    %c5 = arith.constant 5 : index
    %c0_159 = arith.constant 0 : index
    %233 = vector.load %arg5[%c5, %c0_159] : memref<56x128xf32, #tpu.memory_space<vmem>>, vector<1x32xf32>
    %234 = vector.broadcast %233 : vector<1x32xf32> to vector<64x32xf32>
    %235 = arith.addf %232, %234 : vector<64x32xf32>
    %236 = arith.addf %190, %235 : vector<64x32xf32>
    %c24 = arith.constant 24 : index
    %c0_160 = arith.constant 0 : index
    %237 = vector.load %arg5[%c24, %c0_160] : memref<56x128xf32, #tpu.memory_space<vmem>>, vector<1x32xf32>
    %c25 = arith.constant 25 : index
    %c0_161 = arith.constant 0 : index
    %238 = vector.load %arg5[%c25, %c0_161] : memref<56x128xf32, #tpu.memory_space<vmem>>, vector<1x32xf32>
    %cst_162 = arith.constant dense<0.000000e+00> : vector<64xf32>
    %239 = vector.multi_reduction <add>, %236, %cst_162 [1] : vector<64x32xf32> to vector<64xf32>
    %240 = vector.shape_cast %239 : vector<64xf32> to vector<64x1xf32>
    %cst_163 = arith.constant 3.200000e+01 : f32
    %241 = vector.broadcast %cst_163 : f32 to vector<64x1xf32>
    %242 = arith.divf %240, %241 : vector<64x1xf32>
    %243 = vector.broadcast %242 : vector<64x1xf32> to vector<64x32xf32>
    %244 = arith.subf %236, %243 : vector<64x32xf32>
    %245 = arith.mulf %244, %244 : vector<64x32xf32>
    %cst_164 = arith.constant dense<0.000000e+00> : vector<64xf32>
    %246 = vector.multi_reduction <add>, %245, %cst_164 [1] : vector<64x32xf32> to vector<64xf32>
    %247 = vector.shape_cast %246 : vector<64xf32> to vector<64x1xf32>
    %cst_165 = arith.constant 3.200000e+01 : f32
    %248 = vector.broadcast %cst_165 : f32 to vector<64x1xf32>
    %249 = arith.divf %247, %248 : vector<64x1xf32>
    %250 = vector.broadcast %242 : vector<64x1xf32> to vector<64x32xf32>
    %251 = arith.subf %236, %250 : vector<64x32xf32>
    %cst_166 = arith.constant 9.99999974E-6 : f32
    %252 = vector.broadcast %cst_166 : f32 to vector<64x1xf32>
    %253 = arith.addf %249, %252 : vector<64x1xf32>
    %254 = math.rsqrt %253 : vector<64x1xf32>
    %255 = vector.broadcast %254 : vector<64x1xf32> to vector<64x32xf32>
    %256 = arith.mulf %251, %255 : vector<64x32xf32>
    %257 = vector.broadcast %237 : vector<1x32xf32> to vector<64x32xf32>
    %258 = arith.mulf %256, %257 : vector<64x32xf32>
    %259 = vector.broadcast %238 : vector<1x32xf32> to vector<64x32xf32>
    %260 = arith.addf %258, %259 : vector<64x32xf32>
    %cst_167 = arith.constant 0.000000e+00 : f32
    %261 = vector.broadcast %cst_167 : f32 to vector<64x32xf32>
    %c1_168 = arith.constant 1 : index
    %c0_169 = arith.constant 0 : index
    %c0_170 = arith.constant 0 : index
    %c0_171 = arith.constant 0 : index
    %c0_172 = arith.constant 0 : index
    %262 = vector.load %arg2[%c1_168, %c0_169, %c0_170, %c0_171, %c0_172] : memref<2x3x4x32x8xf32, #tpu.memory_space<vmem>>, vector<1x1x1x32x8xf32>
    %263 = vector.shape_cast %262 : vector<1x1x1x32x8xf32> to vector<32x8xf32>
    %cst_173 = arith.constant dense<0.000000e+00> : vector<64x8xf32>
    %264 = tpu.matmul %260, %263, %cst_173 {dimension_numbers = #tpu.dot_dimension_numbers<[1], [0], [0], [1], [0, 0, 1, 1], [], []>} : vector<64x32xf32>, vector<32x8xf32>, vector<64x8xf32> -> vector<64x8xf32>
    %c32 = arith.constant 32 : index
    %c0_174 = arith.constant 0 : index
    %265 = vector.load %arg5[%c32, %c0_174] : memref<56x128xf32, #tpu.memory_space<vmem>>, vector<1x8xf32>
    %266 = vector.broadcast %265 : vector<1x8xf32> to vector<64x8xf32>
    %267 = arith.addf %264, %266 : vector<64x8xf32>
    %c1_175 = arith.constant 1 : index
    %c1_176 = arith.constant 1 : index
    %c0_177 = arith.constant 0 : index
    %c0_178 = arith.constant 0 : index
    %c0_179 = arith.constant 0 : index
    %268 = vector.load %arg2[%c1_175, %c1_176, %c0_177, %c0_178, %c0_179] : memref<2x3x4x32x8xf32, #tpu.memory_space<vmem>>, vector<1x1x1x32x8xf32>
    %269 = vector.shape_cast %268 : vector<1x1x1x32x8xf32> to vector<32x8xf32>
    %cst_180 = arith.constant dense<0.000000e+00> : vector<64x8xf32>
    %270 = tpu.matmul %260, %269, %cst_180 {dimension_numbers = #tpu.dot_dimension_numbers<[1], [0], [0], [1], [0, 0, 1, 1], [], []>} : vector<64x32xf32>, vector<32x8xf32>, vector<64x8xf32> -> vector<64x8xf32>
    %c36 = arith.constant 36 : index
    %c0_181 = arith.constant 0 : index
    %271 = vector.load %arg5[%c36, %c0_181] : memref<56x128xf32, #tpu.memory_space<vmem>>, vector<1x8xf32>
    %272 = vector.broadcast %271 : vector<1x8xf32> to vector<64x8xf32>
    %273 = arith.addf %270, %272 : vector<64x8xf32>
    %c1_182 = arith.constant 1 : index
    %c2_183 = arith.constant 2 : index
    %c0_184 = arith.constant 0 : index
    %c0_185 = arith.constant 0 : index
    %c0_186 = arith.constant 0 : index
    %274 = vector.load %arg2[%c1_182, %c2_183, %c0_184, %c0_185, %c0_186] : memref<2x3x4x32x8xf32, #tpu.memory_space<vmem>>, vector<1x1x1x32x8xf32>
    %275 = vector.shape_cast %274 : vector<1x1x1x32x8xf32> to vector<32x8xf32>
    %cst_187 = arith.constant dense<0.000000e+00> : vector<64x8xf32>
    %276 = tpu.matmul %260, %275, %cst_187 {dimension_numbers = #tpu.dot_dimension_numbers<[1], [0], [0], [1], [0, 0, 1, 1], [], []>} : vector<64x32xf32>, vector<32x8xf32>, vector<64x8xf32> -> vector<64x8xf32>
    %c40 = arith.constant 40 : index
    %c0_188 = arith.constant 0 : index
    %277 = vector.load %arg5[%c40, %c0_188] : memref<56x128xf32, #tpu.memory_space<vmem>>, vector<1x8xf32>
    %278 = vector.broadcast %277 : vector<1x8xf32> to vector<64x8xf32>
    %279 = arith.addf %276, %278 : vector<64x8xf32>
    %280 = vector.shape_cast %267 : vector<64x8xf32> to vector<4x16x8xf32>
    %281 = vector.shape_cast %273 : vector<64x8xf32> to vector<4x16x8xf32>
    %282 = vector.shape_cast %279 : vector<64x8xf32> to vector<4x16x8xf32>
    "tpu.trace_start"() <{level = 10 : i32, message = "bqe,bke->bqk"}> : () -> ()
    %cst_189 = arith.constant dense<0.000000e+00> : vector<4x16x16xf32>
    %283 = tpu.matmul %280, %281, %cst_189 {dimension_numbers = #tpu.dot_dimension_numbers<[2], [2], [1], [1], [0, 0, 0, 1, 1, 1], [0], [0]>} : vector<4x16x8xf32>, vector<4x16x8xf32>, vector<4x16x16xf32> -> vector<4x16x16xf32>
    "tpu.trace_stop"() : () -> ()
    %cst_190 = arith.constant 0.353553385 : f32
    %284 = vector.broadcast %cst_190 : f32 to vector<4x16x16xf32>
    %285 = arith.mulf %283, %284 : vector<4x16x16xf32>
    %286 = vector.shape_cast %17 : vector<1x16xf32> to vector<1x1x16xf32>
    %287 = vector.broadcast %286 : vector<1x1x16xf32> to vector<4x16x16xf32>
    %288 = arith.addf %285, %287 : vector<4x16x16xf32>
    %cst_191 = arith.constant dense<0xFF800000> : vector<4x16xf32>
    %289 = vector.multi_reduction <maximumf>, %288, %cst_191 [2] : vector<4x16x16xf32> to vector<4x16xf32>
    %290 = vector.shape_cast %289 : vector<4x16xf32> to vector<4x16x1xf32>
    %291 = vector.broadcast %290 : vector<4x16x1xf32> to vector<4x16x16xf32>
    %292 = arith.subf %288, %291 : vector<4x16x16xf32>
    %293 = math.exp %292 : vector<4x16x16xf32>
    %cst_192 = arith.constant dense<0.000000e+00> : vector<4x16xf32>
    %294 = vector.multi_reduction <add>, %293, %cst_192 [2] : vector<4x16x16xf32> to vector<4x16xf32>
    %295 = vector.shape_cast %294 : vector<4x16xf32> to vector<4x16x1xf32>
    %296 = vector.broadcast %295 : vector<4x16x1xf32> to vector<4x16x16xf32>
    %297 = arith.divf %293, %296 : vector<4x16x16xf32>
    "tpu.trace_start"() <{level = 10 : i32, message = "bqk,bke->bqe"}> : () -> ()
    %cst_193 = arith.constant dense<0.000000e+00> : vector<4x16x8xf32>
    %298 = tpu.matmul %297, %282, %cst_193 {dimension_numbers = #tpu.dot_dimension_numbers<[2], [1], [1], [2], [0, 0, 0, 1, 1, 2], [0], [0]>} : vector<4x16x16xf32>, vector<4x16x8xf32>, vector<4x16x8xf32> -> vector<4x16x8xf32>
    "tpu.trace_stop"() : () -> ()
    %299 = vector.shape_cast %298 : vector<4x16x8xf32> to vector<64x8xf32>
    %c1_194 = arith.constant 1 : index
    %c0_195 = arith.constant 0 : index
    %c0_196 = arith.constant 0 : index
    %c0_197 = arith.constant 0 : index
    %300 = vector.load %arg3[%c1_194, %c0_195, %c0_196, %c0_197] : memref<2x4x8x32xf32, #tpu.memory_space<vmem>>, vector<1x1x8x32xf32>
    %301 = vector.shape_cast %300 : vector<1x1x8x32xf32> to vector<8x32xf32>
    %cst_198 = arith.constant dense<0.000000e+00> : vector<64x32xf32>
    %302 = tpu.matmul %299, %301, %cst_198 {dimension_numbers = #tpu.dot_dimension_numbers<[1], [0], [0], [1], [0, 0, 1, 1], [], []>} : vector<64x8xf32>, vector<8x32xf32>, vector<64x32xf32> -> vector<64x32xf32>
    %303 = arith.addf %261, %302 : vector<64x32xf32>
    %c1_199 = arith.constant 1 : index
    %c0_200 = arith.constant 0 : index
    %c1_201 = arith.constant 1 : index
    %c0_202 = arith.constant 0 : index
    %c0_203 = arith.constant 0 : index
    %304 = vector.load %arg2[%c1_199, %c0_200, %c1_201, %c0_202, %c0_203] : memref<2x3x4x32x8xf32, #tpu.memory_space<vmem>>, vector<1x1x1x32x8xf32>
    %305 = vector.shape_cast %304 : vector<1x1x1x32x8xf32> to vector<32x8xf32>
    %cst_204 = arith.constant dense<0.000000e+00> : vector<64x8xf32>
    %306 = tpu.matmul %260, %305, %cst_204 {dimension_numbers = #tpu.dot_dimension_numbers<[1], [0], [0], [1], [0, 0, 1, 1], [], []>} : vector<64x32xf32>, vector<32x8xf32>, vector<64x8xf32> -> vector<64x8xf32>
    %c33 = arith.constant 33 : index
    %c0_205 = arith.constant 0 : index
    %307 = vector.load %arg5[%c33, %c0_205] : memref<56x128xf32, #tpu.memory_space<vmem>>, vector<1x8xf32>
    %308 = vector.broadcast %307 : vector<1x8xf32> to vector<64x8xf32>
    %309 = arith.addf %306, %308 : vector<64x8xf32>
    %c1_206 = arith.constant 1 : index
    %c1_207 = arith.constant 1 : index
    %c1_208 = arith.constant 1 : index
    %c0_209 = arith.constant 0 : index
    %c0_210 = arith.constant 0 : index
    %310 = vector.load %arg2[%c1_206, %c1_207, %c1_208, %c0_209, %c0_210] : memref<2x3x4x32x8xf32, #tpu.memory_space<vmem>>, vector<1x1x1x32x8xf32>
    %311 = vector.shape_cast %310 : vector<1x1x1x32x8xf32> to vector<32x8xf32>
    %cst_211 = arith.constant dense<0.000000e+00> : vector<64x8xf32>
    %312 = tpu.matmul %260, %311, %cst_211 {dimension_numbers = #tpu.dot_dimension_numbers<[1], [0], [0], [1], [0, 0, 1, 1], [], []>} : vector<64x32xf32>, vector<32x8xf32>, vector<64x8xf32> -> vector<64x8xf32>
    %c37 = arith.constant 37 : index
    %c0_212 = arith.constant 0 : index
    %313 = vector.load %arg5[%c37, %c0_212] : memref<56x128xf32, #tpu.memory_space<vmem>>, vector<1x8xf32>
    %314 = vector.broadcast %313 : vector<1x8xf32> to vector<64x8xf32>
    %315 = arith.addf %312, %314 : vector<64x8xf32>
    %c1_213 = arith.constant 1 : index
    %c2_214 = arith.constant 2 : index
    %c1_215 = arith.constant 1 : index
    %c0_216 = arith.constant 0 : index
    %c0_217 = arith.constant 0 : index
    %316 = vector.load %arg2[%c1_213, %c2_214, %c1_215, %c0_216, %c0_217] : memref<2x3x4x32x8xf32, #tpu.memory_space<vmem>>, vector<1x1x1x32x8xf32>
    %317 = vector.shape_cast %316 : vector<1x1x1x32x8xf32> to vector<32x8xf32>
    %cst_218 = arith.constant dense<0.000000e+00> : vector<64x8xf32>
    %318 = tpu.matmul %260, %317, %cst_218 {dimension_numbers = #tpu.dot_dimension_numbers<[1], [0], [0], [1], [0, 0, 1, 1], [], []>} : vector<64x32xf32>, vector<32x8xf32>, vector<64x8xf32> -> vector<64x8xf32>
    %c41 = arith.constant 41 : index
    %c0_219 = arith.constant 0 : index
    %319 = vector.load %arg5[%c41, %c0_219] : memref<56x128xf32, #tpu.memory_space<vmem>>, vector<1x8xf32>
    %320 = vector.broadcast %319 : vector<1x8xf32> to vector<64x8xf32>
    %321 = arith.addf %318, %320 : vector<64x8xf32>
    %322 = vector.shape_cast %309 : vector<64x8xf32> to vector<4x16x8xf32>
    %323 = vector.shape_cast %315 : vector<64x8xf32> to vector<4x16x8xf32>
    %324 = vector.shape_cast %321 : vector<64x8xf32> to vector<4x16x8xf32>
    "tpu.trace_start"() <{level = 10 : i32, message = "bqe,bke->bqk"}> : () -> ()
    %cst_220 = arith.constant dense<0.000000e+00> : vector<4x16x16xf32>
    %325 = tpu.matmul %322, %323, %cst_220 {dimension_numbers = #tpu.dot_dimension_numbers<[2], [2], [1], [1], [0, 0, 0, 1, 1, 1], [0], [0]>} : vector<4x16x8xf32>, vector<4x16x8xf32>, vector<4x16x16xf32> -> vector<4x16x16xf32>
    "tpu.trace_stop"() : () -> ()
    %cst_221 = arith.constant 0.353553385 : f32
    %326 = vector.broadcast %cst_221 : f32 to vector<4x16x16xf32>
    %327 = arith.mulf %325, %326 : vector<4x16x16xf32>
    %328 = vector.shape_cast %17 : vector<1x16xf32> to vector<1x1x16xf32>
    %329 = vector.broadcast %328 : vector<1x1x16xf32> to vector<4x16x16xf32>
    %330 = arith.addf %327, %329 : vector<4x16x16xf32>
    %cst_222 = arith.constant dense<0xFF800000> : vector<4x16xf32>
    %331 = vector.multi_reduction <maximumf>, %330, %cst_222 [2] : vector<4x16x16xf32> to vector<4x16xf32>
    %332 = vector.shape_cast %331 : vector<4x16xf32> to vector<4x16x1xf32>
    %333 = vector.broadcast %332 : vector<4x16x1xf32> to vector<4x16x16xf32>
    %334 = arith.subf %330, %333 : vector<4x16x16xf32>
    %335 = math.exp %334 : vector<4x16x16xf32>
    %cst_223 = arith.constant dense<0.000000e+00> : vector<4x16xf32>
    %336 = vector.multi_reduction <add>, %335, %cst_223 [2] : vector<4x16x16xf32> to vector<4x16xf32>
    %337 = vector.shape_cast %336 : vector<4x16xf32> to vector<4x16x1xf32>
    %338 = vector.broadcast %337 : vector<4x16x1xf32> to vector<4x16x16xf32>
    %339 = arith.divf %335, %338 : vector<4x16x16xf32>
    "tpu.trace_start"() <{level = 10 : i32, message = "bqk,bke->bqe"}> : () -> ()
    %cst_224 = arith.constant dense<0.000000e+00> : vector<4x16x8xf32>
    %340 = tpu.matmul %339, %324, %cst_224 {dimension_numbers = #tpu.dot_dimension_numbers<[2], [1], [1], [2], [0, 0, 0, 1, 1, 2], [0], [0]>} : vector<4x16x16xf32>, vector<4x16x8xf32>, vector<4x16x8xf32> -> vector<4x16x8xf32>
    "tpu.trace_stop"() : () -> ()
    %341 = vector.shape_cast %340 : vector<4x16x8xf32> to vector<64x8xf32>
    %c1_225 = arith.constant 1 : index
    %c1_226 = arith.constant 1 : index
    %c0_227 = arith.constant 0 : index
    %c0_228 = arith.constant 0 : index
    %342 = vector.load %arg3[%c1_225, %c1_226, %c0_227, %c0_228] : memref<2x4x8x32xf32, #tpu.memory_space<vmem>>, vector<1x1x8x32xf32>
    %343 = vector.shape_cast %342 : vector<1x1x8x32xf32> to vector<8x32xf32>
    %cst_229 = arith.constant dense<0.000000e+00> : vector<64x32xf32>
    %344 = tpu.matmul %341, %343, %cst_229 {dimension_numbers = #tpu.dot_dimension_numbers<[1], [0], [0], [1], [0, 0, 1, 1], [], []>} : vector<64x8xf32>, vector<8x32xf32>, vector<64x32xf32> -> vector<64x32xf32>
    %345 = arith.addf %303, %344 : vector<64x32xf32>
    %c1_230 = arith.constant 1 : index
    %c0_231 = arith.constant 0 : index
    %c2_232 = arith.constant 2 : index
    %c0_233 = arith.constant 0 : index
    %c0_234 = arith.constant 0 : index
    %346 = vector.load %arg2[%c1_230, %c0_231, %c2_232, %c0_233, %c0_234] : memref<2x3x4x32x8xf32, #tpu.memory_space<vmem>>, vector<1x1x1x32x8xf32>
    %347 = vector.shape_cast %346 : vector<1x1x1x32x8xf32> to vector<32x8xf32>
    %cst_235 = arith.constant dense<0.000000e+00> : vector<64x8xf32>
    %348 = tpu.matmul %260, %347, %cst_235 {dimension_numbers = #tpu.dot_dimension_numbers<[1], [0], [0], [1], [0, 0, 1, 1], [], []>} : vector<64x32xf32>, vector<32x8xf32>, vector<64x8xf32> -> vector<64x8xf32>
    %c34 = arith.constant 34 : index
    %c0_236 = arith.constant 0 : index
    %349 = vector.load %arg5[%c34, %c0_236] : memref<56x128xf32, #tpu.memory_space<vmem>>, vector<1x8xf32>
    %350 = vector.broadcast %349 : vector<1x8xf32> to vector<64x8xf32>
    %351 = arith.addf %348, %350 : vector<64x8xf32>
    %c1_237 = arith.constant 1 : index
    %c1_238 = arith.constant 1 : index
    %c2_239 = arith.constant 2 : index
    %c0_240 = arith.constant 0 : index
    %c0_241 = arith.constant 0 : index
    %352 = vector.load %arg2[%c1_237, %c1_238, %c2_239, %c0_240, %c0_241] : memref<2x3x4x32x8xf32, #tpu.memory_space<vmem>>, vector<1x1x1x32x8xf32>
    %353 = vector.shape_cast %352 : vector<1x1x1x32x8xf32> to vector<32x8xf32>
    %cst_242 = arith.constant dense<0.000000e+00> : vector<64x8xf32>
    %354 = tpu.matmul %260, %353, %cst_242 {dimension_numbers = #tpu.dot_dimension_numbers<[1], [0], [0], [1], [0, 0, 1, 1], [], []>} : vector<64x32xf32>, vector<32x8xf32>, vector<64x8xf32> -> vector<64x8xf32>
    %c38 = arith.constant 38 : index
    %c0_243 = arith.constant 0 : index
    %355 = vector.load %arg5[%c38, %c0_243] : memref<56x128xf32, #tpu.memory_space<vmem>>, vector<1x8xf32>
    %356 = vector.broadcast %355 : vector<1x8xf32> to vector<64x8xf32>
    %357 = arith.addf %354, %356 : vector<64x8xf32>
    %c1_244 = arith.constant 1 : index
    %c2_245 = arith.constant 2 : index
    %c2_246 = arith.constant 2 : index
    %c0_247 = arith.constant 0 : index
    %c0_248 = arith.constant 0 : index
    %358 = vector.load %arg2[%c1_244, %c2_245, %c2_246, %c0_247, %c0_248] : memref<2x3x4x32x8xf32, #tpu.memory_space<vmem>>, vector<1x1x1x32x8xf32>
    %359 = vector.shape_cast %358 : vector<1x1x1x32x8xf32> to vector<32x8xf32>
    %cst_249 = arith.constant dense<0.000000e+00> : vector<64x8xf32>
    %360 = tpu.matmul %260, %359, %cst_249 {dimension_numbers = #tpu.dot_dimension_numbers<[1], [0], [0], [1], [0, 0, 1, 1], [], []>} : vector<64x32xf32>, vector<32x8xf32>, vector<64x8xf32> -> vector<64x8xf32>
    %c42 = arith.constant 42 : index
    %c0_250 = arith.constant 0 : index
    %361 = vector.load %arg5[%c42, %c0_250] : memref<56x128xf32, #tpu.memory_space<vmem>>, vector<1x8xf32>
    %362 = vector.broadcast %361 : vector<1x8xf32> to vector<64x8xf32>
    %363 = arith.addf %360, %362 : vector<64x8xf32>
    %364 = vector.shape_cast %351 : vector<64x8xf32> to vector<4x16x8xf32>
    %365 = vector.shape_cast %357 : vector<64x8xf32> to vector<4x16x8xf32>
    %366 = vector.shape_cast %363 : vector<64x8xf32> to vector<4x16x8xf32>
    "tpu.trace_start"() <{level = 10 : i32, message = "bqe,bke->bqk"}> : () -> ()
    %cst_251 = arith.constant dense<0.000000e+00> : vector<4x16x16xf32>
    %367 = tpu.matmul %364, %365, %cst_251 {dimension_numbers = #tpu.dot_dimension_numbers<[2], [2], [1], [1], [0, 0, 0, 1, 1, 1], [0], [0]>} : vector<4x16x8xf32>, vector<4x16x8xf32>, vector<4x16x16xf32> -> vector<4x16x16xf32>
    "tpu.trace_stop"() : () -> ()
    %cst_252 = arith.constant 0.353553385 : f32
    %368 = vector.broadcast %cst_252 : f32 to vector<4x16x16xf32>
    %369 = arith.mulf %367, %368 : vector<4x16x16xf32>
    %370 = vector.shape_cast %17 : vector<1x16xf32> to vector<1x1x16xf32>
    %371 = vector.broadcast %370 : vector<1x1x16xf32> to vector<4x16x16xf32>
    %372 = arith.addf %369, %371 : vector<4x16x16xf32>
    %cst_253 = arith.constant dense<0xFF800000> : vector<4x16xf32>
    %373 = vector.multi_reduction <maximumf>, %372, %cst_253 [2] : vector<4x16x16xf32> to vector<4x16xf32>
    %374 = vector.shape_cast %373 : vector<4x16xf32> to vector<4x16x1xf32>
    %375 = vector.broadcast %374 : vector<4x16x1xf32> to vector<4x16x16xf32>
    %376 = arith.subf %372, %375 : vector<4x16x16xf32>
    %377 = math.exp %376 : vector<4x16x16xf32>
    %cst_254 = arith.constant dense<0.000000e+00> : vector<4x16xf32>
    %378 = vector.multi_reduction <add>, %377, %cst_254 [2] : vector<4x16x16xf32> to vector<4x16xf32>
    %379 = vector.shape_cast %378 : vector<4x16xf32> to vector<4x16x1xf32>
    %380 = vector.broadcast %379 : vector<4x16x1xf32> to vector<4x16x16xf32>
    %381 = arith.divf %377, %380 : vector<4x16x16xf32>
    "tpu.trace_start"() <{level = 10 : i32, message = "bqk,bke->bqe"}> : () -> ()
    %cst_255 = arith.constant dense<0.000000e+00> : vector<4x16x8xf32>
    %382 = tpu.matmul %381, %366, %cst_255 {dimension_numbers = #tpu.dot_dimension_numbers<[2], [1], [1], [2], [0, 0, 0, 1, 1, 2], [0], [0]>} : vector<4x16x16xf32>, vector<4x16x8xf32>, vector<4x16x8xf32> -> vector<4x16x8xf32>
    "tpu.trace_stop"() : () -> ()
    %383 = vector.shape_cast %382 : vector<4x16x8xf32> to vector<64x8xf32>
    %c1_256 = arith.constant 1 : index
    %c2_257 = arith.constant 2 : index
    %c0_258 = arith.constant 0 : index
    %c0_259 = arith.constant 0 : index
    %384 = vector.load %arg3[%c1_256, %c2_257, %c0_258, %c0_259] : memref<2x4x8x32xf32, #tpu.memory_space<vmem>>, vector<1x1x8x32xf32>
    %385 = vector.shape_cast %384 : vector<1x1x8x32xf32> to vector<8x32xf32>
    %cst_260 = arith.constant dense<0.000000e+00> : vector<64x32xf32>
    %386 = tpu.matmul %383, %385, %cst_260 {dimension_numbers = #tpu.dot_dimension_numbers<[1], [0], [0], [1], [0, 0, 1, 1], [], []>} : vector<64x8xf32>, vector<8x32xf32>, vector<64x32xf32> -> vector<64x32xf32>
    %387 = arith.addf %345, %386 : vector<64x32xf32>
    %c1_261 = arith.constant 1 : index
    %c0_262 = arith.constant 0 : index
    %c3_263 = arith.constant 3 : index
    %c0_264 = arith.constant 0 : index
    %c0_265 = arith.constant 0 : index
    %388 = vector.load %arg2[%c1_261, %c0_262, %c3_263, %c0_264, %c0_265] : memref<2x3x4x32x8xf32, #tpu.memory_space<vmem>>, vector<1x1x1x32x8xf32>
    %389 = vector.shape_cast %388 : vector<1x1x1x32x8xf32> to vector<32x8xf32>
    %cst_266 = arith.constant dense<0.000000e+00> : vector<64x8xf32>
    %390 = tpu.matmul %260, %389, %cst_266 {dimension_numbers = #tpu.dot_dimension_numbers<[1], [0], [0], [1], [0, 0, 1, 1], [], []>} : vector<64x32xf32>, vector<32x8xf32>, vector<64x8xf32> -> vector<64x8xf32>
    %c35 = arith.constant 35 : index
    %c0_267 = arith.constant 0 : index
    %391 = vector.load %arg5[%c35, %c0_267] : memref<56x128xf32, #tpu.memory_space<vmem>>, vector<1x8xf32>
    %392 = vector.broadcast %391 : vector<1x8xf32> to vector<64x8xf32>
    %393 = arith.addf %390, %392 : vector<64x8xf32>
    %c1_268 = arith.constant 1 : index
    %c1_269 = arith.constant 1 : index
    %c3_270 = arith.constant 3 : index
    %c0_271 = arith.constant 0 : index
    %c0_272 = arith.constant 0 : index
    %394 = vector.load %arg2[%c1_268, %c1_269, %c3_270, %c0_271, %c0_272] : memref<2x3x4x32x8xf32, #tpu.memory_space<vmem>>, vector<1x1x1x32x8xf32>
    %395 = vector.shape_cast %394 : vector<1x1x1x32x8xf32> to vector<32x8xf32>
    %cst_273 = arith.constant dense<0.000000e+00> : vector<64x8xf32>
    %396 = tpu.matmul %260, %395, %cst_273 {dimension_numbers = #tpu.dot_dimension_numbers<[1], [0], [0], [1], [0, 0, 1, 1], [], []>} : vector<64x32xf32>, vector<32x8xf32>, vector<64x8xf32> -> vector<64x8xf32>
    %c39 = arith.constant 39 : index
    %c0_274 = arith.constant 0 : index
    %397 = vector.load %arg5[%c39, %c0_274] : memref<56x128xf32, #tpu.memory_space<vmem>>, vector<1x8xf32>
    %398 = vector.broadcast %397 : vector<1x8xf32> to vector<64x8xf32>
    %399 = arith.addf %396, %398 : vector<64x8xf32>
    %c1_275 = arith.constant 1 : index
    %c2_276 = arith.constant 2 : index
    %c3_277 = arith.constant 3 : index
    %c0_278 = arith.constant 0 : index
    %c0_279 = arith.constant 0 : index
    %400 = vector.load %arg2[%c1_275, %c2_276, %c3_277, %c0_278, %c0_279] : memref<2x3x4x32x8xf32, #tpu.memory_space<vmem>>, vector<1x1x1x32x8xf32>
    %401 = vector.shape_cast %400 : vector<1x1x1x32x8xf32> to vector<32x8xf32>
    %cst_280 = arith.constant dense<0.000000e+00> : vector<64x8xf32>
    %402 = tpu.matmul %260, %401, %cst_280 {dimension_numbers = #tpu.dot_dimension_numbers<[1], [0], [0], [1], [0, 0, 1, 1], [], []>} : vector<64x32xf32>, vector<32x8xf32>, vector<64x8xf32> -> vector<64x8xf32>
    %c43 = arith.constant 43 : index
    %c0_281 = arith.constant 0 : index
    %403 = vector.load %arg5[%c43, %c0_281] : memref<56x128xf32, #tpu.memory_space<vmem>>, vector<1x8xf32>
    %404 = vector.broadcast %403 : vector<1x8xf32> to vector<64x8xf32>
    %405 = arith.addf %402, %404 : vector<64x8xf32>
    %406 = vector.shape_cast %393 : vector<64x8xf32> to vector<4x16x8xf32>
    %407 = vector.shape_cast %399 : vector<64x8xf32> to vector<4x16x8xf32>
    %408 = vector.shape_cast %405 : vector<64x8xf32> to vector<4x16x8xf32>
    "tpu.trace_start"() <{level = 10 : i32, message = "bqe,bke->bqk"}> : () -> ()
    %cst_282 = arith.constant dense<0.000000e+00> : vector<4x16x16xf32>
    %409 = tpu.matmul %406, %407, %cst_282 {dimension_numbers = #tpu.dot_dimension_numbers<[2], [2], [1], [1], [0, 0, 0, 1, 1, 1], [0], [0]>} : vector<4x16x8xf32>, vector<4x16x8xf32>, vector<4x16x16xf32> -> vector<4x16x16xf32>
    "tpu.trace_stop"() : () -> ()
    %cst_283 = arith.constant 0.353553385 : f32
    %410 = vector.broadcast %cst_283 : f32 to vector<4x16x16xf32>
    %411 = arith.mulf %409, %410 : vector<4x16x16xf32>
    %412 = vector.shape_cast %17 : vector<1x16xf32> to vector<1x1x16xf32>
    %413 = vector.broadcast %412 : vector<1x1x16xf32> to vector<4x16x16xf32>
    %414 = arith.addf %411, %413 : vector<4x16x16xf32>
    %cst_284 = arith.constant dense<0xFF800000> : vector<4x16xf32>
    %415 = vector.multi_reduction <maximumf>, %414, %cst_284 [2] : vector<4x16x16xf32> to vector<4x16xf32>
    %416 = vector.shape_cast %415 : vector<4x16xf32> to vector<4x16x1xf32>
    %417 = vector.broadcast %416 : vector<4x16x1xf32> to vector<4x16x16xf32>
    %418 = arith.subf %414, %417 : vector<4x16x16xf32>
    %419 = math.exp %418 : vector<4x16x16xf32>
    %cst_285 = arith.constant dense<0.000000e+00> : vector<4x16xf32>
    %420 = vector.multi_reduction <add>, %419, %cst_285 [2] : vector<4x16x16xf32> to vector<4x16xf32>
    %421 = vector.shape_cast %420 : vector<4x16xf32> to vector<4x16x1xf32>
    %422 = vector.broadcast %421 : vector<4x16x1xf32> to vector<4x16x16xf32>
    %423 = arith.divf %419, %422 : vector<4x16x16xf32>
    "tpu.trace_start"() <{level = 10 : i32, message = "bqk,bke->bqe"}> : () -> ()
    %cst_286 = arith.constant dense<0.000000e+00> : vector<4x16x8xf32>
    %424 = tpu.matmul %423, %408, %cst_286 {dimension_numbers = #tpu.dot_dimension_numbers<[2], [1], [1], [2], [0, 0, 0, 1, 1, 2], [0], [0]>} : vector<4x16x16xf32>, vector<4x16x8xf32>, vector<4x16x8xf32> -> vector<4x16x8xf32>
    "tpu.trace_stop"() : () -> ()
    %425 = vector.shape_cast %424 : vector<4x16x8xf32> to vector<64x8xf32>
    %c1_287 = arith.constant 1 : index
    %c3_288 = arith.constant 3 : index
    %c0_289 = arith.constant 0 : index
    %c0_290 = arith.constant 0 : index
    %426 = vector.load %arg3[%c1_287, %c3_288, %c0_289, %c0_290] : memref<2x4x8x32xf32, #tpu.memory_space<vmem>>, vector<1x1x8x32xf32>
    %427 = vector.shape_cast %426 : vector<1x1x8x32xf32> to vector<8x32xf32>
    %cst_291 = arith.constant dense<0.000000e+00> : vector<64x32xf32>
    %428 = tpu.matmul %425, %427, %cst_291 {dimension_numbers = #tpu.dot_dimension_numbers<[1], [0], [0], [1], [0, 0, 1, 1], [], []>} : vector<64x8xf32>, vector<8x32xf32>, vector<64x32xf32> -> vector<64x32xf32>
    %429 = arith.addf %387, %428 : vector<64x32xf32>
    %c28 = arith.constant 28 : index
    %c0_292 = arith.constant 0 : index
    %430 = vector.load %arg5[%c28, %c0_292] : memref<56x128xf32, #tpu.memory_space<vmem>>, vector<1x32xf32>
    %431 = vector.broadcast %430 : vector<1x32xf32> to vector<64x32xf32>
    %432 = arith.addf %429, %431 : vector<64x32xf32>
    %433 = arith.addf %236, %432 : vector<64x32xf32>
    %c26 = arith.constant 26 : index
    %c0_293 = arith.constant 0 : index
    %434 = vector.load %arg5[%c26, %c0_293] : memref<56x128xf32, #tpu.memory_space<vmem>>, vector<1x32xf32>
    %c27 = arith.constant 27 : index
    %c0_294 = arith.constant 0 : index
    %435 = vector.load %arg5[%c27, %c0_294] : memref<56x128xf32, #tpu.memory_space<vmem>>, vector<1x32xf32>
    %cst_295 = arith.constant dense<0.000000e+00> : vector<64xf32>
    %436 = vector.multi_reduction <add>, %433, %cst_295 [1] : vector<64x32xf32> to vector<64xf32>
    %437 = vector.shape_cast %436 : vector<64xf32> to vector<64x1xf32>
    %cst_296 = arith.constant 3.200000e+01 : f32
    %438 = vector.broadcast %cst_296 : f32 to vector<64x1xf32>
    %439 = arith.divf %437, %438 : vector<64x1xf32>
    %440 = vector.broadcast %439 : vector<64x1xf32> to vector<64x32xf32>
    %441 = arith.subf %433, %440 : vector<64x32xf32>
    %442 = arith.mulf %441, %441 : vector<64x32xf32>
    %cst_297 = arith.constant dense<0.000000e+00> : vector<64xf32>
    %443 = vector.multi_reduction <add>, %442, %cst_297 [1] : vector<64x32xf32> to vector<64xf32>
    %444 = vector.shape_cast %443 : vector<64xf32> to vector<64x1xf32>
    %cst_298 = arith.constant 3.200000e+01 : f32
    %445 = vector.broadcast %cst_298 : f32 to vector<64x1xf32>
    %446 = arith.divf %444, %445 : vector<64x1xf32>
    %447 = vector.broadcast %439 : vector<64x1xf32> to vector<64x32xf32>
    %448 = arith.subf %433, %447 : vector<64x32xf32>
    %cst_299 = arith.constant 9.99999974E-6 : f32
    %449 = vector.broadcast %cst_299 : f32 to vector<64x1xf32>
    %450 = arith.addf %446, %449 : vector<64x1xf32>
    %451 = math.rsqrt %450 : vector<64x1xf32>
    %452 = vector.broadcast %451 : vector<64x1xf32> to vector<64x32xf32>
    %453 = arith.mulf %448, %452 : vector<64x32xf32>
    %454 = vector.broadcast %434 : vector<1x32xf32> to vector<64x32xf32>
    %455 = arith.mulf %453, %454 : vector<64x32xf32>
    %456 = vector.broadcast %435 : vector<1x32xf32> to vector<64x32xf32>
    %457 = arith.addf %455, %456 : vector<64x32xf32>
    %c1_300 = arith.constant 1 : index
    %c0_301 = arith.constant 0 : index
    %c0_302 = arith.constant 0 : index
    %c0_303 = arith.constant 0 : index
    %458 = vector.load %arg4[%c1_300, %c0_301, %c0_302, %c0_303] : memref<2x3x64x64xf32, #tpu.memory_space<vmem>>, vector<1x1x32x64xf32>
    %459 = vector.shape_cast %458 : vector<1x1x32x64xf32> to vector<32x64xf32>
    %cst_304 = arith.constant dense<0.000000e+00> : vector<64x64xf32>
    %460 = tpu.matmul %457, %459, %cst_304 {dimension_numbers = #tpu.dot_dimension_numbers<[1], [0], [0], [1], [0, 0, 1, 1], [], []>} : vector<64x32xf32>, vector<32x64xf32>, vector<64x64xf32> -> vector<64x64xf32>
    %c30 = arith.constant 30 : index
    %c0_305 = arith.constant 0 : index
    %461 = vector.load %arg5[%c30, %c0_305] : memref<56x128xf32, #tpu.memory_space<vmem>>, vector<1x64xf32>
    %462 = vector.broadcast %461 : vector<1x64xf32> to vector<64x64xf32>
    %463 = arith.addf %460, %462 : vector<64x64xf32>
    %c1_306 = arith.constant 1 : index
    %c1_307 = arith.constant 1 : index
    %c0_308 = arith.constant 0 : index
    %c0_309 = arith.constant 0 : index
    %464 = vector.load %arg4[%c1_306, %c1_307, %c0_308, %c0_309] : memref<2x3x64x64xf32, #tpu.memory_space<vmem>>, vector<1x1x32x64xf32>
    %465 = vector.shape_cast %464 : vector<1x1x32x64xf32> to vector<32x64xf32>
    %cst_310 = arith.constant dense<0.000000e+00> : vector<64x64xf32>
    %466 = tpu.matmul %457, %465, %cst_310 {dimension_numbers = #tpu.dot_dimension_numbers<[1], [0], [0], [1], [0, 0, 1, 1], [], []>} : vector<64x32xf32>, vector<32x64xf32>, vector<64x64xf32> -> vector<64x64xf32>
    %c31 = arith.constant 31 : index
    %c0_311 = arith.constant 0 : index
    %467 = vector.load %arg5[%c31, %c0_311] : memref<56x128xf32, #tpu.memory_space<vmem>>, vector<1x64xf32>
    %468 = vector.broadcast %467 : vector<1x64xf32> to vector<64x64xf32>
    %469 = arith.addf %466, %468 : vector<64x64xf32>
    %cst_312 = arith.constant 0.000000e+00 : f32
    %470 = vector.broadcast %cst_312 : f32 to vector<64x64xf32>
    %471 = arith.maximumf %469, %470 : vector<64x64xf32>
    %472 = arith.mulf %463, %471 : vector<64x64xf32>
    %c1_313 = arith.constant 1 : index
    %c2_314 = arith.constant 2 : index
    %c0_315 = arith.constant 0 : index
    %c0_316 = arith.constant 0 : index
    %473 = vector.load %arg4[%c1_313, %c2_314, %c0_315, %c0_316] : memref<2x3x64x64xf32, #tpu.memory_space<vmem>>, vector<1x1x64x32xf32>
    %474 = vector.shape_cast %473 : vector<1x1x64x32xf32> to vector<64x32xf32>
    %cst_317 = arith.constant dense<0.000000e+00> : vector<64x32xf32>
    %475 = tpu.matmul %472, %474, %cst_317 {dimension_numbers = #tpu.dot_dimension_numbers<[1], [0], [0], [1], [0, 0, 1, 1], [], []>} : vector<64x64xf32>, vector<64x32xf32>, vector<64x32xf32> -> vector<64x32xf32>
    %c29 = arith.constant 29 : index
    %c0_318 = arith.constant 0 : index
    %476 = vector.load %arg5[%c29, %c0_318] : memref<56x128xf32, #tpu.memory_space<vmem>>, vector<1x32xf32>
    %477 = vector.broadcast %476 : vector<1x32xf32> to vector<64x32xf32>
    %478 = arith.addf %475, %477 : vector<64x32xf32>
    %479 = arith.addf %433, %478 : vector<64x32xf32>
    %480 = vector.shape_cast %479 : vector<64x32xf32> to vector<4x16x32xf32>
    %481 = vector.extract_strided_slice %480 {offsets = [0, 0, 0], sizes = [4, 1, 32], strides = [1, 1, 1]} : vector<4x16x32xf32> to vector<4x1x32xf32>
    %482 = vector.shape_cast %481 : vector<4x1x32xf32> to vector<4x32xf32>
    %c48 = arith.constant 48 : index
    %c0_319 = arith.constant 0 : index
    %483 = vector.load %arg5[%c48, %c0_319] : memref<56x128xf32, #tpu.memory_space<vmem>>, vector<1x32xf32>
    %c49 = arith.constant 49 : index
    %c0_320 = arith.constant 0 : index
    %484 = vector.load %arg5[%c49, %c0_320] : memref<56x128xf32, #tpu.memory_space<vmem>>, vector<1x32xf32>
    %cst_321 = arith.constant dense<0.000000e+00> : vector<4xf32>
    %485 = vector.multi_reduction <add>, %482, %cst_321 [1] : vector<4x32xf32> to vector<4xf32>
    %486 = vector.shape_cast %485 : vector<4xf32> to vector<4x1xf32>
    %cst_322 = arith.constant 3.200000e+01 : f32
    %487 = vector.broadcast %cst_322 : f32 to vector<4x1xf32>
    %488 = arith.divf %486, %487 : vector<4x1xf32>
    %489 = vector.broadcast %488 : vector<4x1xf32> to vector<4x32xf32>
    %490 = arith.subf %482, %489 : vector<4x32xf32>
    %491 = arith.mulf %490, %490 : vector<4x32xf32>
    %cst_323 = arith.constant dense<0.000000e+00> : vector<4xf32>
    %492 = vector.multi_reduction <add>, %491, %cst_323 [1] : vector<4x32xf32> to vector<4xf32>
    %493 = vector.shape_cast %492 : vector<4xf32> to vector<4x1xf32>
    %cst_324 = arith.constant 3.200000e+01 : f32
    %494 = vector.broadcast %cst_324 : f32 to vector<4x1xf32>
    %495 = arith.divf %493, %494 : vector<4x1xf32>
    %496 = vector.broadcast %488 : vector<4x1xf32> to vector<4x32xf32>
    %497 = arith.subf %482, %496 : vector<4x32xf32>
    %cst_325 = arith.constant 9.99999974E-6 : f32
    %498 = vector.broadcast %cst_325 : f32 to vector<4x1xf32>
    %499 = arith.addf %495, %498 : vector<4x1xf32>
    %500 = math.rsqrt %499 : vector<4x1xf32>
    %501 = vector.broadcast %500 : vector<4x1xf32> to vector<4x32xf32>
    %502 = arith.mulf %497, %501 : vector<4x32xf32>
    %503 = vector.broadcast %483 : vector<1x32xf32> to vector<4x32xf32>
    %504 = arith.mulf %502, %503 : vector<4x32xf32>
    %505 = vector.broadcast %484 : vector<1x32xf32> to vector<4x32xf32>
    %506 = arith.addf %504, %505 : vector<4x32xf32>
    %cst_326 = arith.constant 0.000000e+00 : f32
    %507 = vector.broadcast %cst_326 : f32 to vector<4x32xf32>
    %508 = arith.maximumf %506, %507 : vector<4x32xf32>
    %c0_327 = arith.constant 0 : index
    %c0_328 = arith.constant 0 : index
    %509 = vector.load %arg6[%c0_327, %c0_328] : memref<32x128xf32, #tpu.memory_space<vmem>>, vector<32x128xf32>
    %cst_329 = arith.constant dense<0.000000e+00> : vector<4x128xf32>
    %510 = tpu.matmul %508, %509, %cst_329 {dimension_numbers = #tpu.dot_dimension_numbers<[1], [0], [0], [1], [0, 0, 1, 1], [], []>} : vector<4x32xf32>, vector<32x128xf32>, vector<4x128xf32> -> vector<4x128xf32>
    %c50 = arith.constant 50 : index
    %c0_330 = arith.constant 0 : index
    %511 = vector.load %arg5[%c50, %c0_330] : memref<56x128xf32, #tpu.memory_space<vmem>>, vector<1x128xf32>
    %512 = vector.broadcast %511 : vector<1x128xf32> to vector<4x128xf32>
    %513 = arith.addf %510, %512 : vector<4x128xf32>
    %c0_331 = arith.constant 0 : index
    %c0_332 = arith.constant 0 : index
    %514 = vector.load %arg7[%c0_331, %c0_332] : memref<4x128xf32, #tpu.memory_space<vmem>>, vector<4x128xf32>
    tpu.vector_store %arg7[%c0_331, %c0_332], %513 {strides = array<i32>} : memref<4x128xf32, #tpu.memory_space<vmem>>, vector<4x128xf32>,
    return
  }
}

</mosaic_0001>

<bundles_post_ra>
// kernel: pallas_transformer_forward.1
= control target key start
LH: loop header
LB: loop body
LE: loop exit
PB: predicated region body
PF: predicated region fallthrough
CT: control target
= control target key end

     0   :  { %vm68_vm0 = vcmask 261120   ;;  %vm428_vm1 = vcmask 64512   ;;  %vm793_vm4 = vcmask 130048   ;;  %vm5543_vm5 = vcmask 523264   ;;  %s17152_s2 = inlined_call_operand.vmem [shape: f32[2,3,4,32,8], index: 2, kind: input, shape index: {}]   ;;  %s17153_s0 = inlined_call_operand.vmem [shape: f32[4,16,32], index: 0, kind: input, shape index: {}]   ;;  %s17154_s1 = inlined_call_operand.vmem [shape: f32[2,16,32], index: 1, kind: input, shape index: {}]   ;;  %s17155_s5 = inlined_call_operand.vmem [shape: f32[56,128], index: 5, kind: input, shape index: {}]   ;;  %s17156_s3 = inlined_call_operand.vmem [shape: f32[2,4,8,32], index: 3, kind: input, shape index: {}]   ;;  %s17157_s4 = inlined_call_operand.vmem [shape: f32[2,3,64,64], index: 4, kind: input, shape index: {}]   ;;  %s17158_s6 = inlined_call_operand.vmem [shape: f32[32,128], index: 6, kind: input, shape index: {}]   ;;  %s17159_s7 = inlined_call_operand.vmem [shape: f32[4,128], index: 7, kind: output, shape index: {}]  }
   0x1   :  { %v11616_v0 = vld [vmem:[%s17152_s2 + $0x80] sm:$0xff]  ;;  %v11617_v1 = vld [vmem:[%s17152_s2 + $0x88] sm:$0xff]  ;;  %v11618_v2 = vld [vmem:[%s17152_s2 + $0x90] sm:$0xff]  ;;  %vm11430_vm6 = vcmask 1041409   ;;  %vm11433_vm7 = vcmask 1042434   ;;  %vm11436_vm8 = vcmask 1043459  }
   0x2   :  { %v14168_v3 = vpack.c.bf16 %v11617_v1, %v11616_v0  ;;  %v11619_v4 = vld [vmem:[%s17152_s2 + $0x98] sm:$0xff]  ;;  %v26_v5 = vld [vmem:[%s17153_s0] sm:$0xff]  ;;  %v11605_v9 = vld [vmem:[%s17154_s1 + $0x10] sm:$0xff]  ;;  %vm11439_vm9 = vcmask 257024   ;;  %vm15102_vm10 = vmmov 0  }
   0x3   :  { %v34_v6 = vld [vmem:[%s17154_s1] sm:$0xff]  ;;  %v14172_v7 = vpack.c.bf16 %v11619_v4, %v11618_v2  ;;  %v27_v10 = vld [vmem:[%s17153_s0 + $0x8] sm:$0xff]  ;;  %v11606_v13 = vld [vmem:[%s17154_s1 + $0x18] sm:$0xff] }
   0x4   :  { %v36_v8 = vmul.f32 %v34_v6, %v26_v5  ;;  %v35_v11 = vld [vmem:[%s17154_s1 + $0x8] sm:$0xff]  ;;  %14169 = vmatprep.subr.bf16.mxu1 %v14168_v3  ;;  %v59_v14 = vld [vmem:[%s17152_s2] sm:$0xff]  ;;  %v28_v18 = vld [vmem:[%s17153_s0 + $0x10] sm:$0xff] }
   0x5   :  { %v37_v12 = vmul.f32 %v35_v11, %v27_v10  ;;  %v60_v15 = vld [vmem:[%s17152_s2 + $0x8] sm:$0xff]  ;;  %14171 = vmatpush3.bf16.msra.mxu1 %v14168_v3  ;;  %v61_v19 = vld [vmem:[%s17152_s2 + $0x10] sm:$0xff]  ;;  %v62_v20 = vld [vmem:[%s17152_s2 + $0x18] sm:$0xff]  ;;  %v38_v21 = vmul.f32 %v34_v6, %v28_v18 }
   0x6   :  { %v15180_v16 = vadd.f32 %v11605_v9, %v36_v8  ;;  %v14160_v17 = vpack.c.bf16 %v60_v15, %v59_v14  ;;  %14173 = vmatprep.subr.bf16.mxu1 %v14172_v7  ;;  %v14164_v22 = vpack.c.bf16 %v62_v20, %v61_v19  ;;  %v29_v23 = vld [vmem:[%s17153_s0 + $0x18] sm:$0xff]  ;;  %v30_v24 = vld [vmem:[%s17153_s0 + $0x20] sm:$0xff]  ;;  %v11630_v28 = vld [vmem:[%s17152_s2 + $0x108] sm:$0xff] }
   0x7   :  { %v11629_v25 = vld [vmem:[%s17152_s2 + $0x100] sm:$0xff]  ;;  %v15202_v26 = vadd.f32 %v11606_v13, %v37_v12  ;;  %v39_v27 = vmul.f32 %v35_v11, %v29_v23  ;;  %v15209_v29 = vadd.f32 %v11605_v9, %v38_v21  ;;  %v40_v30 = vmul.f32 %v34_v6, %v30_v24  ;;  %v31_v31 = vld [vmem:[%s17153_s0 + $0x28] sm:$0xff]  ;;  %v32_v32 = vld [vmem:[%s17153_s0 + $0x30] sm:$0xff] }
   0x8   :  { %13001 = vmatprep.mubr.msk.f32.mxu1 %vm68_vm0, %v15180_v16  ;;  %14161 = vmatprep.subr.bf16.mxu0 %v14160_v17  ;;  %v14176_v33 = vpack.c.bf16 %v11630_v28, %v11629_v25  ;;  %v41_v35 = vmul.f32 %v35_v11, %v31_v31  ;;  %v42_v37 = vmul.f32 %v34_v6, %v32_v32  ;;  %v33_v38 = vld [vmem:[%s17153_s0 + $0x38] sm:$0xff]  ;;  %v11631_v43 = vld [vmem:[%s17152_s2 + $0x110] sm:$0xff]  ;;  %v11620_v46 = vld [vmem:[%s17155_s5 + $0xc] ss:$0 sm:$0xff] }
   0x9   :  { %14163 = vmatpush3.bf16.msra.mxu0 %v14160_v17  ;;  %12981 = vmatprep.mubr.msk.f32.mxu0 %vm68_vm0, %v15180_v16  ;;  %v15219_v34 = vadd.f32 %v11606_v13, %v39_v27  ;;  %v15223_v36 = vadd.f32 %v11605_v9, %v40_v30  ;;  %v43_v40 = vmul.f32 %v35_v11, %v33_v38  ;;  %v11632_v44 = vld [vmem:[%s17152_s2 + $0x118] sm:$0xff]  ;;  %v11607_v51 = vld [vmem:[%s17155_s5 + $0x8] ss:$0 sm:$0xff]  ;;  %vm15288_vm2 = vmpackc.low %vm428_vm1, %vm428_vm1 }
   0xa   :  { %14175 = vmatpush3.bf16.msra.mxu1 %v14172_v7  ;;  %14165 = vmatprep.subr.bf16.mxu0 %v14164_v22  ;;  %v15232_v39 = vadd.f32 %v11606_v13, %v41_v35  ;;  %v15238_v41 = vadd.f32 %v11605_v9, %v42_v37  ;;  %v14180_v45 = vpack.c.bf16 %v11632_v44, %v11631_v43  ;;  %v11633_v23 = vld [vmem:[%s17155_s5 + $0x10] ss:$0 sm:$0xff] }
   0xb   :  { %v15244_v42 = vadd.f32 %v11606_v13, %v43_v40 }
   0xd   :  { %13002 = vmatmul.mubr.msk.f32.vlgmr.msra.gmra.mrb[0].mxu1 %vm68_vm0, %v15202_v26  ;;  %14167 = vmatpush3.bf16.msra.mxu0 %v14164_v22 }
   0xe   :  { %13004 = vmatprep.mubr.msk.f32.mxu1 %vm68_vm0, %v15209_v29  ;;  %14177 = vmatprep.subr.bf16.mxu0 %v14176_v33 }
  0x10   :  { %12982 = vmatmul.mubr.msk.f32.vlgmr.msra.gmra.mrb[0].mxu0 %vm68_vm0, %v15202_v26 }
  0x11   :  { %13005 = vmatmul.mubr.msk.f32.gmra.mrb[2].mxu1 %vm68_vm0, %v15219_v34  ;;  %12984 = vmatprep.mubr.msk.f32.mxu0 %vm68_vm0, %v15209_v29 }
  0x12   :  { %13007 = vmatprep.mubr.msk.f32.mxu1 %vm68_vm0, %v15223_v36  ;;  %14179 = vmatpush3.bf16.msra.mxu0 %v14176_v33 }
  0x13   :  { %14181 = vmatprep.subr.bf16.mxu0 %v14180_v45 }
  0x14   :  { %12985 = vmatmul.mubr.msk.f32.gmra.mrb[2].mxu0 %vm68_vm0, %v15219_v34 }
  0x15   :  { %13008 = vmatmul.mubr.msk.f32.gmra.mrb[4].mxu1 %vm68_vm0, %v15232_v39  ;;  %12987 = vmatprep.mubr.msk.f32.mxu0 %vm68_vm0, %v15223_v36 }
  0x16   :  { %13010 = vmatprep.mubr.msk.f32.mxu1 %vm68_vm0, %v15238_v41  ;;  %14183 = vmatpush3.bf16.msra.mxu0 %v14180_v45 }
  0x18   :  { %12988 = vmatmul.mubr.msk.f32.gmra.mrb[4].mxu0 %vm68_vm0, %v15232_v39 }
  0x19   :  { %13011 = vmatmul.mubr.msk.f32.gmra.mrb[6].mxu1 %vm68_vm0, %v15244_v42  ;;  %12990 = vmatprep.mubr.msk.f32.mxu0 %vm68_vm0, %v15238_v41 }
  0x1c   :  { %12991 = vmatmul.mubr.msk.f32.gmra.mrb[6].mxu0 %vm68_vm0, %v15244_v42 }
  0x1d   :  { %13021 = vmatprep.mubr.msk.f32.mxu0 %vm68_vm0, %v15180_v16 }
  0x20   :  { %13022 = vmatmul.mubr.msk.f32.vlgmr.msra.gmra.mrb[8].mxu0 %vm68_vm0, %v15202_v26 }
  0x21   :  { %13024 = vmatprep.mubr.msk.f32.mxu0 %vm68_vm0, %v15209_v29 }
  0x24   :  { %13025 = vmatmul.mubr.msk.f32.gmra.mrb[10].mxu0 %vm68_vm0, %v15219_v34 }
  0x25   :  { %13027 = vmatprep.mubr.msk.f32.mxu0 %vm68_vm0, %v15223_v36 }
  0x28   :  { %13028 = vmatmul.mubr.msk.f32.gmra.mrb[12].mxu0 %vm68_vm0, %v15232_v39 }
  0x29   :  { %13030 = vmatprep.mubr.msk.f32.mxu0 %vm68_vm0, %v15238_v41 }
  0x2c   :  { %13031 = vmatmul.mubr.msk.f32.gmra.mrb[14].mxu0 %vm68_vm0, %v15244_v42 }
  0xe0   :  { %v13003_v47 = vpop.f32.mrb[0].mxu1 }
  0xe1   :  { %v280_v48 = vadd.f32 %v13003_v47, %v11620_v46  ;;  %v274_v49 = vpop.f32.mrb[1].mxu1 }
  0xe2   :  { %v275_v50 = vadd.f32 %v11620_v46, %v274_v49 }
  0xe3   :  { %v12983_v53 = vpop.f32.mrb[0].mxu0 }
  0xe4   :  { %v14184_v54 = vpack.c.bf16 %v280_v48, %v275_v50  ;;  %v13006_v55 = vpop.f32.mrb[2].mxu1  ;;  %v159_v56 = vpop.f32.mrb[1].mxu0  ;;  %v165_v3 = vadd.f32 %v12983_v53, %v11607_v51 }
  0xe5   :  { %v290_v57 = vadd.f32 %v13006_v55, %v11620_v46  ;;  %v284_v58 = vpop.f32.mrb[3].mxu1  ;;  %v160_v59 = vadd.f32 %v11607_v51, %v159_v56 }
  0xe6   :  { %14186 = vmatprep.subr.msk.bf16.mxu1 %vm15288_vm2, %v14184_v54  ;;  %v285_v60 = vadd.f32 %v11620_v46, %v284_v58 }
  0xe7   :  { %14189 = vmatpush3.bf16.xpose.msk.msra.mxu1 %vm15288_vm2, %v14184_v54  ;;  %13037 = vmatprep.mubr.msk.f32.mxu1 %vm428_vm1, %v160_v59  ;;  %v12986_v61 = vpop.f32.mrb[2].mxu0 }
  0xe8   :  { %v14190_v62 = vpack.c.bf16 %v290_v57, %v285_v60  ;;  %v13009_v63 = vpop.f32.mrb[4].mxu1  ;;  %v169_v0 = vpop.f32.mrb[3].mxu0  ;;  %v175_v20 = vadd.f32 %v12986_v61, %v11607_v51  ;;  %v15100_v61 = vmov -1e+30  }
  0xe9   :  { %v300_v1 = vadd.f32 %v13009_v63, %v11620_v46  ;;  %v294_v2 = vpop.f32.mrb[5].mxu1  ;;  %v170_v8 = vadd.f32 %v11607_v51, %v169_v0 }
  0xea   :  { %v295_v4 = vadd.f32 %v11620_v46, %v294_v2  ;;  %14192 = vmatprep.subr.msk.bf16.mxu1 %vm15288_vm2, %v14190_v62 }
  0xeb   :  { %v12989_v5 = vpop.f32.mrb[4].mxu0 }
  0xec   :  { %v14196_v6 = vpack.c.bf16 %v300_v1, %v295_v4  ;;  %v13012_v7 = vpop.f32.mrb[6].mxu1  ;;  %v179_v9 = vpop.f32.mrb[5].mxu0  ;;  %v185_v18 = vadd.f32 %v12989_v5, %v11607_v51 }
  0xed   :  { %v310_v10 = vadd.f32 %v13012_v7, %v11620_v46  ;;  %v304_v11 = vpop.f32.mrb[7].mxu1  ;;  %v180_v12 = vadd.f32 %v11607_v51, %v179_v9 }
  0xee   :  { %13038 = vmatmul.mubr.msk.f32.vlgmr.msra.gmra.mrb[8].mxu1 %vm428_vm1, %v165_v3  ;;  %14198 = vmatprep.subr.msk.bf16.mxu0 %vm15288_vm2, %v14196_v6  ;;  %v305_v13 = vadd.f32 %v11620_v46, %v304_v11 }
  0xef   :  { %14195 = vmatpush3.bf16.xpose.msk.msra.mxu1 %vm15288_vm2, %v14190_v62  ;;  %14201 = vmatpush3.bf16.xpose.msk.msra.mxu0 %vm15288_vm2, %v14196_v6  ;;  %v12992_v14 = vpop.f32.mrb[6].mxu0 }
  0xf0   :  { %v14202_v15 = vpack.c.bf16 %v310_v10, %v305_v13  ;;  %13044 = vmatprep.mubr.msk.f32.mxu1 %vm428_vm1, %v170_v8  ;;  %13051 = vmatprep.mubr.msk.f32.mxu0 %vm428_vm1, %v180_v12  ;;  %v189_v17 = vpop.f32.mrb[7].mxu0  ;;  %v195_v21 = vadd.f32 %v12992_v14, %v11607_v51 }
  0xf1   :  { %v190_v19 = vadd.f32 %v11607_v51, %v189_v17  ;;  %v55_v51 = vlaneseq }
  0xf2   :  { %14204 = vmatprep.subr.msk.bf16.mxu1 %vm15288_vm2, %v14202_v15 }
  0xf3   :  { %v13023_v22 = vpop.f32.mrb[8].mxu0  ;;  %v56_v54 = vand.u32 127, %v55_v51 }
  0xf4   :  { %v395_v24 = vadd.f32 %v13023_v22, %v11633_v23  ;;  %v389_v25 = vpop.f32.mrb[9].mxu0 }
  0xf5   :  { %v390_v27 = vadd.f32 %v11633_v23, %v389_v25  ;;  %vm57_vm3 = vcmp.lt.s32.totalorder %v56_v54, 9 }
  0xf6   :  { %13045 = vmatmul.mubr.msk.f32.vlgmr.msra.gmra.mrb[10].mxu1 %vm428_vm1, %v175_v20  ;;  %13052 = vmatmul.mubr.msk.f32.vlgmr.msra.gmra.mrb[16].mxu0 %vm428_vm1, %v185_v18  ;;  %v15325_v62 = vsel %vm57_vm3, 0.0, %v15100_v61 }
  0xf7   :  { %14207 = vmatpush3.bf16.xpose.msk.msra.mxu1 %vm15288_vm2, %v14202_v15  ;;  %13058 = vmatprep.mubr.msk.f32.mxu1 %vm428_vm1, %v190_v19  ;;  %v13026_v28 = vpop.f32.mrb[10].mxu0  ;;  %v14208_v32 = vpack.c.bf16 %v395_v24, %v390_v27 }
  0xf8   :  { %v405_v30 = vadd.f32 %v13026_v28, %v11633_v23  ;;  %v399_v31 = vpop.f32.mrb[11].mxu0 }
  0xf9   :  { %v400_v33 = vadd.f32 %v11633_v23, %v399_v31  ;;  %14209 = vmatprep.subr.bf16.mxu0 %v14208_v32 }
  0xfa   :  { %14211 = vmatpush3.bf16.msra.mxu0 %v14208_v32 }
  0xfb   :  { %v13029_v35 = vpop.f32.mrb[12].mxu0  ;;  %v14212_v40 = vpack.c.bf16 %v405_v30, %v400_v33 }
  0xfc   :  { %v415_v37 = vadd.f32 %v13029_v35, %v11633_v23  ;;  %v409_v38 = vpop.f32.mrb[13].mxu0 }
  0xfd   :  { %v410_v43 = vadd.f32 %v11633_v23, %v409_v38  ;;  %14213 = vmatprep.subr.bf16.mxu1 %v14212_v40 }
  0xfe   :  { %13059 = vmatmul.mubr.msk.f32.vlgmr.msra.gmra.mrb[12].mxu1 %vm428_vm1, %v195_v21 }
  0xff   :  { %v13032_v44 = vpop.f32.mrb[14].mxu0  ;;  %v15319_v47 = vpack.c.bf16 %v415_v37, %v410_v43  ;;  %14215 = vmatpush3.bf16.msra.mxu1 %v14212_v40 }
 0x100   :  { %v425_v45 = vadd.f32 %v13032_v44, %v11633_v23  ;;  %v419_v46 = vpop.f32.mrb[15].mxu0 }
 0x101   :  { %v420_v48 = vadd.f32 %v11633_v23, %v419_v46  ;;  %14217 = vmatprep.subr.bf16.mxu0 %v15319_v47 }
 0x103   :  { %v15321_v49 = vpack.c.bf16 %v425_v45, %v420_v48 }
 0x105   :  { %14221 = vmatprep.subr.bf16.mxu1 %v15321_v49 }
 0x1c1   :  { %v13039_v50 = vpop.f32.mrb[8].mxu1 }
 0x1c2   :  { %v507_v53 = vpop.f32.mrb[9].mxu1  ;;  %v778_v11 = vmul.f32 0.35355338, %v13039_v50 }
 0x1c3   :  { %v777_v0 = vmul.f32 0.35355338, %v507_v53 }
 0x1c4   :  { %v786_v20 = vadd.f32 %v778_v11, %v15325_v62 }
 0x1c5   :  { %v785_v9 = vadd.f32 %v777_v0, %v15325_v62 }
 0x1c6   :  { %v797_v21 = vsel %vm793_vm4, %v786_v20, -inf }
 0x1c7   :  { %v794_v12 = vsel %vm793_vm4, %v785_v9, -inf }
 0x1c9   :  { %v13046_v55 = vpop.f32.mrb[10].mxu1  ;;  %v13053_v56 = vpop.f32.mrb[16].mxu0 }
 0x1ca   :  { %v594_v57 = vpop.f32.mrb[11].mxu1  ;;  %v681_v58 = vpop.f32.mrb[17].mxu0  ;;  %v780_v59 = vmul.f32 0.35355338, %v13046_v55  ;;  %v782_v17 = vmul.f32 0.35355338, %v13053_v56 }
 0x1cb   :  { %v779_v60 = vmul.f32 0.35355338, %v594_v57  ;;  %v781_v4 = vmul.f32 0.35355338, %v681_v58 }
 0x1cc   :  { %v788_v2 = vadd.f32 %v780_v59, %v15325_v62  ;;  %v790_v22 = vadd.f32 %v782_v17, %v15325_v62 }
 0x1cd   :  { %v787_v63 = vadd.f32 %v779_v60, %v15325_v62  ;;  %v789_v14 = vadd.f32 %v781_v4, %v15325_v62 }
 0x1ce   :  { %v803_v8 = vsel %vm793_vm4, %v788_v2, -inf  ;;  %v809_v23 = vsel %vm793_vm4, %v790_v22, -inf }
 0x1cf   :  { %v800_v1 = vsel %vm793_vm4, %v787_v63, -inf  ;;  %v806_v18 = vsel %vm793_vm4, %v789_v14, -inf }
 0x1d0   :  { %801 = vmax.xlane.f32.xlu0 %v800_v1 }
 0x1d1   :  { %v13060_v3 = vpop.f32.mrb[12].mxu1 }
 0x1d2   :  { %v768_v5 = vpop.f32.mrb[13].mxu1  ;;  %v784_v6 = vmul.f32 0.35355338, %v13060_v3 }
 0x1d3   :  { %v783_v7 = vmul.f32 0.35355338, %v768_v5 }
 0x1d4   :  { %804 = vmax.xlane.f32.xlu0 %v803_v8  ;;  %v792_v15 = vadd.f32 %v784_v6, %v15325_v62 }
 0x1d5   :  { %v791_v10 = vadd.f32 %v783_v7, %v15325_v62 }
 0x1d6   :  { %v815_v19 = vsel %vm793_vm4, %v792_v15, -inf }
 0x1d7   :  { %v812_v13 = vsel %vm793_vm4, %v791_v10, -inf }
 0x1d8   :  { %795 = vmax.xlane.f32.xlu0 %v794_v12  ;;  %813 = vmax.xlane.f32.xlu1 %v812_v13 }
 0x1dc   :  { %807 = vmax.xlane.f32.xlu0 %v806_v18  ;;  %816 = vmax.xlane.f32.xlu1 %v815_v19  ;;  %v11679_v19 = vld [vmem:[%s17152_s2 + $0xa0] sm:$0xff] }
 0x1e0   :  { %798 = vmax.xlane.f32.xlu1 %v797_v21 }
 0x1e4   :  { %810 = vmax.xlane.f32.xlu1 %v809_v23 }
 0x25d   :  { %v802_v24 = vpop.xlane.xlu0 %801 }
 0x25e   :  { %v820_v25 = vsub.f32 %v787_v63, %v802_v24 }
 0x260   :  { %v830_v27 = vmul.f32 1.442695, %v820_v25 }
 0x261   :  { %v805_v28 = vpop.xlane.xlu0 %804 }
 0x262   :  { %14794 = vpow2.f32 %v830_v27  ;;  %v821_v30 = vsub.f32 %v788_v2, %v805_v28 }
 0x264   :  { %v832_v31 = vmul.f32 1.442695, %v821_v30 }
 0x265   :  { %v796_v32 = vpop.xlane.xlu0 %795  ;;  %v814_v33 = vpop.xlane.xlu1 %813 }
 0x266   :  { %14796 = vpow2.f32 %v832_v31  ;;  %v818_v35 = vsub.f32 %v785_v9, %v796_v32  ;;  %v824_v37 = vsub.f32 %v791_v10, %v814_v33  ;;  %v11681_v31 = vld [vmem:[%s17152_s2 + $0xb0] sm:$0xff]  ;;  %v11682_v32 = vld [vmem:[%s17152_s2 + $0xb8] sm:$0xff] }
 0x268   :  { %v838_v38 = vmul.f32 1.442695, %v824_v37  ;;  %v826_v40 = vmul.f32 1.442695, %v818_v35 }
 0x269   :  { %v808_v43 = vpop.xlane.xlu0 %807  ;;  %v817_v44 = vpop.xlane.xlu1 %816 }
 0x26a   :  { %v822_v45 = vsub.f32 %v789_v14, %v808_v43  ;;  %v825_v46 = vsub.f32 %v792_v15, %v817_v44  ;;  %14798 = vpow2.f32 %v838_v38  ;;  %v11667_v43 = vld [vmem:[%s17152_s2 + $0x28] sm:$0xff] }
 0x26b   :  { %14800 = vpow2.f32 %v826_v40  ;;  %v11666_v40 = vld [vmem:[%s17152_s2 + $0x20] sm:$0xff] }
 0x26c   :  { %v14795_v48 = vpop.eup %14794  ;;  %v840_v50 = vmul.f32 1.442695, %v825_v46  ;;  %v834_v51 = vmul.f32 1.442695, %v822_v45 }
 0x26d   :  { %v799_v53 = vpop.xlane.xlu1 %798  ;;  %v848_v54 = vsel %vm793_vm4, %v14795_v48, 0.0 }
 0x26e   :  { %v819_v55 = vsub.f32 %v786_v20, %v799_v53  ;;  %849 = vadd.xlane.f32.xlu0 %v848_v54  ;;  %14802 = vpow2.f32 %v840_v50  ;;  %v11680_v20 = vld [vmem:[%s17152_s2 + $0xa8] sm:$0xff]  ;;  %v14224_v50 = vpack.c.bf16 %v11667_v43, %v11666_v40  ;;  %v11669_v53 = vld [vmem:[%s17152_s2 + $0x38] sm:$0xff] }
 0x26f   :  { %14804 = vpow2.f32 %v834_v51  ;;  %v14232_v23 = vpack.c.bf16 %v11680_v20, %v11679_v19  ;;  %v11668_v51 = vld [vmem:[%s17152_s2 + $0x30] sm:$0xff] }
 0x270   :  { %v14797_v56 = vpop.eup %14796  ;;  %v828_v57 = vmul.f32 1.442695, %v819_v55 }
 0x271   :  { %v811_v58 = vpop.xlane.xlu1 %810  ;;  %v851_v59 = vsel %vm793_vm4, %v14797_v56, 0.0 }
 0x272   :  { %14806 = vpow2.f32 %v828_v57  ;;  %v823_v60 = vsub.f32 %v790_v22, %v811_v58  ;;  %852 = vadd.xlane.f32.xlu1 %v851_v59  ;;  %v11693_v57 = vld [vmem:[%s17152_s2 + $0x128] sm:$0xff]  ;;  %v11694_v59 = vld [vmem:[%s17152_s2 + $0x130] sm:$0xff] }
 0x274   :  { %v836_v61 = vmul.f32 1.442695, %v823_v60  ;;  %v14799_v63 = vpop.eup %14798  ;;  %v11695_v60 = vld [vmem:[%s17152_s2 + $0x138] sm:$0xff] }
 0x275   :  { %v860_v0 = vsel %vm793_vm4, %v14799_v63, 0.0  ;;  %v14801_v1 = vpop.eup %14800 }
 0x276   :  { %14808 = vpow2.f32 %v836_v61  ;;  %861 = vadd.xlane.f32.xlu0 %v860_v0  ;;  %v842_v3 = vsel %vm793_vm4, %v14801_v1, 0.0  ;;  %v14244_v61 = vpack.c.bf16 %v11695_v60, %v11694_v59 }
 0x278   :  { %v14803_v2 = vpop.eup %14802 }
 0x279   :  { %v863_v4 = vsel %vm793_vm4, %v14803_v2, 0.0  ;;  %v14805_v5 = vpop.eup %14804 }
 0x27a   :  { %843 = vadd.xlane.f32.xlu0 %v842_v3  ;;  %864 = vadd.xlane.f32.xlu1 %v863_v4  ;;  %v854_v8 = vsel %vm793_vm4, %v14805_v5, 0.0 }
 0x27c   :  { %v14807_v6 = vpop.eup %14806 }
 0x27d   :  { %v845_v7 = vsel %vm793_vm4, %v14807_v6, 0.0 }
 0x27e   :  { %855 = vadd.xlane.f32.xlu0 %v854_v8  ;;  %846 = vadd.xlane.f32.xlu1 %v845_v7 }
 0x280   :  { %v14809_v9 = vpop.eup %14808 }
 0x281   :  { %v857_v10 = vsel %vm793_vm4, %v14809_v9, 0.0 }
 0x282   :  { %858 = vadd.xlane.f32.xlu1 %v857_v10 }
 0x2fb   :  { %v850_v11 = vpop.xlane.xlu0 %849 }
 0x2fc   :  { %14810 = vrcp.f32 %v850_v11 }
 0x2ff   :  { %v853_v12 = vpop.xlane.xlu1 %852 }
 0x300   :  { %14812 = vrcp.f32 %v853_v12 }
 0x303   :  { %v862_v13 = vpop.xlane.xlu0 %861 }
 0x304   :  { %14814 = vrcp.f32 %v862_v13 }
 0x306   :  { %v14811_v14 = vpop.eup %14810 }
 0x307   :  { %v871_v15 = vmul.f32 %v14811_v14, %v14795_v48  ;;  %v844_v17 = vpop.xlane.xlu0 %843  ;;  %v865_v18 = vpop.xlane.xlu1 %864 }
 0x308   :  { %14816 = vrcp.f32 %v844_v17 }
 0x309   :  { %13072 = vmatprep.mubr.msk.f32.mxu1 %vm793_vm4, %v871_v15  ;;  %14818 = vrcp.f32 %v865_v18  ;;  %v11670_v18 = vld [vmem:[%s17155_s5 + $0x9] ss:$0 sm:$0xff] }
 0x30a   :  { %v14813_v21 = vpop.eup %14812 }
 0x30b   :  { %v873_v22 = vmul.f32 %v14813_v21, %v14797_v56  ;;  %v856_v24 = vpop.xlane.xlu0 %855  ;;  %v847_v25 = vpop.xlane.xlu1 %846  ;;  %v14228_v56 = vpack.c.bf16 %v11669_v53, %v11668_v51 }
 0x30c   :  { %14820 = vrcp.f32 %v856_v24 }
 0x30d   :  { %13073 = vmatmul.mubr.msk.f32.vlgmr.msra.gmra.mrb[14].mxu1 %vm793_vm4, %v873_v22  ;;  %14822 = vrcp.f32 %v847_v25 }
 0x30e   :  { %14223 = vmatpush3.bf16.msra.mxu1 %v15321_v49  ;;  %v14815_v27 = vpop.eup %14814  ;;  %v14236_v49 = vpack.c.bf16 %v11682_v32, %v11681_v31 }
 0x30f   :  { %14233 = vmatprep.subr.bf16.mxu1 %v14232_v23  ;;  %v859_v28 = vpop.xlane.xlu1 %858  ;;  %v879_v30 = vmul.f32 %v14815_v27, %v14799_v63 }
 0x310   :  { %14824 = vrcp.f32 %v859_v28 }
 0x311   :  { %13086 = vmatprep.mubr.msk.f32.mxu1 %vm793_vm4, %v879_v30 }
 0x312   :  { %v14817_v33 = vpop.eup %14816 }
 0x313   :  { %v14819_v35 = vpop.eup %14818  ;;  %v867_v37 = vmul.f32 %v14817_v33, %v14801_v1 }
 0x314   :  { %v881_v38 = vmul.f32 %v14819_v35, %v14803_v2 }
 0x315   :  { %13065 = vmatprep.mubr.msk.f32.mxu0 %vm793_vm4, %v867_v37 }
 0x316   :  { %v14821_v44 = vpop.eup %14820  ;;  %13087 = vmatmul.mubr.msk.f32.vlgmr.msra.gmra.mrb[16].mxu1 %vm793_vm4, %v881_v38 }
 0x317   :  { %v14823_v45 = vpop.eup %14822  ;;  %14235 = vmatpush3.bf16.msra.mxu1 %v14232_v23  ;;  %13117 = vmatprep.mubr.msk.f32.mxu1 %vm68_vm0, %v15180_v16  ;;  %v875_v48 = vmul.f32 %v14821_v44, %v14805_v5  ;;  %v11683_v5 = vld [vmem:[%s17155_s5 + $0xd] ss:$0 sm:$0xff] }
 0x318   :  { %14237 = vmatprep.subr.bf16.mxu1 %v14236_v49  ;;  %v869_v46 = vmul.f32 %v14823_v45, %v14807_v6 }
 0x31a   :  { %v14825_v54 = vpop.eup %14824  ;;  %13066 = vmatmul.mubr.msk.f32.vlgmr.msra.gmra.mrb[18].mxu0 %vm793_vm4, %v869_v46 }
 0x31b   :  { %14219 = vmatpush3.bf16.msra.mxu0 %v15319_v47  ;;  %14239 = vmatpush3.bf16.msra.mxu1 %v14236_v49  ;;  %v877_v55 = vmul.f32 %v14825_v54, %v14809_v9  ;;  %v11692_v47 = vld [vmem:[%s17152_s2 + $0x120] sm:$0xff] }
 0x31c   :  { %13079 = vmatprep.mubr.msk.f32.mxu0 %vm793_vm4, %v875_v48  ;;  %14225 = vmatprep.subr.bf16.mxu0 %v14224_v50  ;;  %v14240_v58 = vpack.c.bf16 %v11693_v57, %v11692_v47 }
 0x31e   :  { %13118 = vmatmul.mubr.msk.f32.vlgmr.msra.gmra.mrb[18].mxu1 %vm68_vm0, %v15202_v26  ;;  %13080 = vmatmul.mubr.msk.f32.vlgmr.msra.gmra.mrb[20].mxu0 %vm793_vm4, %v877_v55 }
 0x31f   :  { %14227 = vmatpush3.bf16.msra.mxu0 %v14224_v50  ;;  %13120 = vmatprep.mubr.msk.f32.mxu1 %vm68_vm0, %v15209_v29 }
 0x320   :  { %14229 = vmatprep.subr.bf16.mxu0 %v14228_v56  ;;  %13097 = vmatprep.mubr.msk.f32.mxu0 %vm68_vm0, %v15180_v16 }
 0x322   :  { %13121 = vmatmul.mubr.msk.f32.gmra.mrb[20].mxu1 %vm68_vm0, %v15219_v34 }
 0x323   :  { %14231 = vmatpush3.bf16.msra.mxu0 %v14228_v56  ;;  %13123 = vmatprep.mubr.msk.f32.mxu1 %vm68_vm0, %v15223_v36  ;;  %v11696_v56 = vld [vmem:[%s17155_s5 + $0x11] ss:$0 sm:$0xff] }
 0x324   :  { %14241 = vmatprep.subr.bf16.mxu0 %v14240_v58 }
 0x326   :  { %13098 = vmatmul.mubr.msk.f32.vlgmr.msra.gmra.mrb[22].mxu0 %vm68_vm0, %v15202_v26  ;;  %13124 = vmatmul.mubr.msk.f32.gmra.mrb[22].mxu1 %vm68_vm0, %v15232_v39 }
 0x327   :  { %13100 = vmatprep.mubr.msk.f32.mxu0 %vm68_vm0, %v15209_v29  ;;  %13126 = vmatprep.mubr.msk.f32.mxu1 %vm68_vm0, %v15238_v41 }
 0x328   :  { %14243 = vmatpush3.bf16.msra.mxu0 %v14240_v58 }
 0x329   :  { %14245 = vmatprep.subr.bf16.mxu0 %v14244_v61 }
 0x32a   :  { %13101 = vmatmul.mubr.msk.f32.gmra.mrb[24].mxu0 %vm68_vm0, %v15219_v34  ;;  %13127 = vmatmul.mubr.msk.f32.gmra.mrb[24].mxu1 %vm68_vm0, %v15244_v42 }
 0x32b   :  { %13103 = vmatprep.mubr.msk.f32.mxu0 %vm68_vm0, %v15223_v36 }
 0x32c   :  { %14247 = vmatpush3.bf16.msra.mxu0 %v14244_v61 }
 0x32e   :  { %13104 = vmatmul.mubr.msk.f32.gmra.mrb[26].mxu0 %vm68_vm0, %v15232_v39 }
 0x32f   :  { %13106 = vmatprep.mubr.msk.f32.mxu0 %vm68_vm0, %v15238_v41 }
 0x332   :  { %13107 = vmatmul.mubr.msk.f32.gmra.mrb[28].mxu0 %vm68_vm0, %v15244_v42 }
 0x333   :  { %13137 = vmatprep.mubr.msk.f32.mxu0 %vm68_vm0, %v15180_v16 }
 0x336   :  { %13138 = vmatmul.mubr.msk.f32.vlgmr.msra.gmra.mrb[30].mxu0 %vm68_vm0, %v15202_v26 }
 0x337   :  { %13140 = vmatprep.mubr.msk.f32.mxu0 %vm68_vm0, %v15209_v29 }
 0x33a   :  { %13141 = vmatmul.mubr.msk.f32.gmra.mrb[32].mxu0 %vm68_vm0, %v15219_v34 }
 0x33b   :  { %13143 = vmatprep.mubr.msk.f32.mxu0 %vm68_vm0, %v15223_v36 }
 0x33e   :  { %13144 = vmatmul.mubr.msk.f32.gmra.mrb[34].mxu0 %vm68_vm0, %v15232_v39 }
 0x33f   :  { %13146 = vmatprep.mubr.msk.f32.mxu0 %vm68_vm0, %v15238_v41 }
 0x342   :  { %13147 = vmatmul.mubr.msk.f32.gmra.mrb[36].mxu0 %vm68_vm0, %v15244_v42 }
 0x3e0   :  { %v15445_v63 = vpop.f32.mrb[14].mxu1 }
 0x3e1   :  { %v15447_v0 = vpop.f32.mrb[15].mxu1 }
 0x3e9   :  { %v15449_v1 = vpop.f32.mrb[16].mxu1 }
 0x3ea   :  { %v15451_v2 = vpop.f32.mrb[17].mxu1 }
 0x3ed   :  { %v15453_v3 = vpop.f32.mrb[18].mxu0 }
 0x3ee   :  { %v15455_v4 = vpop.f32.mrb[19].mxu0 }
 0x3f1   :  { %v13119_v6 = vpop.f32.mrb[18].mxu1  ;;  %v15460_v7 = vpop.f32.mrb[20].mxu0 }
 0x3f2   :  { %v1404_v8 = vadd.f32 %v13119_v6, %v11683_v5  ;;  %v1398_v9 = vpop.f32.mrb[19].mxu1  ;;  %v15462_v10 = vpop.f32.mrb[21].mxu0 }
 0x3f3   :  { %v1399_v11 = vadd.f32 %v11683_v5, %v1398_v9 }
 0x3f5   :  { %v14248_v12 = vpack.c.bf16 %v1404_v8, %v1399_v11  ;;  %v13122_v13 = vpop.f32.mrb[20].mxu1 }
 0x3f6   :  { %v1414_v14 = vadd.f32 %v13122_v13, %v11683_v5  ;;  %v1408_v15 = vpop.f32.mrb[21].mxu1 }
 0x3f7   :  { %14250 = vmatprep.subr.msk.bf16.mxu1 %vm15288_vm2, %v14248_v12  ;;  %v1409_v17 = vadd.f32 %v11683_v5, %v1408_v15 }
 0x3f8   :  { %14253 = vmatpush3.bf16.xpose.msk.msra.mxu1 %vm15288_vm2, %v14248_v12 }
 0x3f9   :  { %v14254_v19 = vpack.c.bf16 %v1414_v14, %v1409_v17  ;;  %v13099_v20 = vpop.f32.mrb[22].mxu0  ;;  %v13125_v21 = vpop.f32.mrb[22].mxu1 }
 0x3fa   :  { %v1424_v22 = vadd.f32 %v13125_v21, %v11683_v5  ;;  %v1283_v23 = vpop.f32.mrb[23].mxu0  ;;  %v1418_v24 = vpop.f32.mrb[23].mxu1  ;;  %v1289_v25 = vadd.f32 %v13099_v20, %v11670_v18 }
 0x3fb   :  { %v1284_v27 = vadd.f32 %v11670_v18, %v1283_v23  ;;  %v1419_v28 = vadd.f32 %v11683_v5, %v1418_v24  ;;  %14256 = vmatprep.subr.msk.bf16.mxu1 %vm15288_vm2, %v14254_v19 }
 0x3fd   :  { %v14260_v30 = vpack.c.bf16 %v1424_v22, %v1419_v28  ;;  %13153 = vmatprep.mubr.msk.f32.mxu1 %vm428_vm1, %v1284_v27  ;;  %v13128_v31 = vpop.f32.mrb[24].mxu1  ;;  %v13102_v32 = vpop.f32.mrb[24].mxu0 }
 0x3fe   :  { %v1434_v33 = vadd.f32 %v13128_v31, %v11683_v5  ;;  %v1428_v35 = vpop.f32.mrb[25].mxu1  ;;  %v1293_v37 = vpop.f32.mrb[25].mxu0  ;;  %v1299_v48 = vadd.f32 %v13102_v32, %v11670_v18 }
 0x3ff   :  { %13154 = vmatmul.mubr.msk.f32.vlgmr.msra.gmra.mrb[26].mxu1 %vm428_vm1, %v1289_v25  ;;  %14262 = vmatprep.subr.msk.bf16.mxu0 %vm15288_vm2, %v14260_v30  ;;  %v1429_v38 = vadd.f32 %v11683_v5, %v1428_v35  ;;  %v1294_v49 = vadd.f32 %v11670_v18, %v1293_v37 }
 0x400   :  { %14259 = vmatpush3.bf16.xpose.msk.msra.mxu1 %vm15288_vm2, %v14254_v19  ;;  %14265 = vmatpush3.bf16.xpose.msk.msra.mxu0 %vm15288_vm2, %v14260_v30 }
 0x401   :  { %v14266_v40 = vpack.c.bf16 %v1434_v33, %v1429_v38  ;;  %v13105_v43 = vpop.f32.mrb[26].mxu0  ;;  %13160 = vmatprep.mubr.msk.f32.mxu1 %vm428_vm1, %v1294_v49 }
 0x402   :  { %v1303_v44 = vpop.f32.mrb[27].mxu0  ;;  %v1309_v45 = vadd.f32 %v13105_v43, %v11670_v18 }
 0x403   :  { %v1304_v46 = vadd.f32 %v11670_v18, %v1303_v44  ;;  %14268 = vmatprep.subr.msk.bf16.mxu1 %vm15288_vm2, %v14266_v40 }
 0x405   :  { %13167 = vmatprep.mubr.msk.f32.mxu0 %vm428_vm1, %v1304_v46  ;;  %v13108_v50 = vpop.f32.mrb[28].mxu0 }
 0x406   :  { %v1313_v51 = vpop.f32.mrb[29].mxu0  ;;  %v1319_v54 = vadd.f32 %v13108_v50, %v11670_v18 }
 0x407   :  { %13161 = vmatmul.mubr.msk.f32.vlgmr.msra.gmra.mrb[28].mxu1 %vm428_vm1, %v1299_v48  ;;  %13168 = vmatmul.mubr.msk.f32.vlgmr.msra.gmra.mrb[38].mxu0 %vm428_vm1, %v1309_v45  ;;  %v1314_v53 = vadd.f32 %v11670_v18, %v1313_v51 }
 0x408   :  { %14271 = vmatpush3.bf16.xpose.msk.msra.mxu1 %vm15288_vm2, %v14266_v40 }
 0x409   :  { %13174 = vmatprep.mubr.msk.f32.mxu1 %vm428_vm1, %v1314_v53  ;;  %v13139_v55 = vpop.f32.mrb[30].mxu0 }
 0x40a   :  { %v1519_v47 = vadd.f32 %v13139_v55, %v11696_v56  ;;  %v1513_v57 = vpop.f32.mrb[31].mxu0 }
 0x40b   :  { %v1514_v58 = vadd.f32 %v11696_v56, %v1513_v57 }
 0x40d   :  { %v13142_v59 = vpop.f32.mrb[32].mxu0  ;;  %v14272_v5 = vpack.c.bf16 %v1519_v47, %v1514_v58 }
 0x40e   :  { %v1529_v60 = vadd.f32 %v13142_v59, %v11696_v56  ;;  %v1523_v61 = vpop.f32.mrb[33].mxu0 }
 0x40f   :  { %13175 = vmatmul.mubr.msk.f32.vlgmr.msra.gmra.mrb[30].mxu1 %vm428_vm1, %v1319_v54  ;;  %v1524_v6 = vadd.f32 %v11696_v56, %v1523_v61  ;;  %14273 = vmatprep.subr.bf16.mxu0 %v14272_v5 }
 0x410   :  { %14275 = vmatpush3.bf16.msra.mxu0 %v14272_v5 }
 0x411   :  { %v13145_v8 = vpop.f32.mrb[34].mxu0  ;;  %v14276_v12 = vpack.c.bf16 %v1529_v60, %v1524_v6 }
 0x412   :  { %v1539_v9 = vadd.f32 %v13145_v8, %v11696_v56  ;;  %v1533_v11 = vpop.f32.mrb[35].mxu0 }
 0x413   :  { %v1534_v13 = vadd.f32 %v11696_v56, %v1533_v11  ;;  %14277 = vmatprep.subr.bf16.mxu1 %v14276_v12 }
 0x414   :  { %14279 = vmatpush3.bf16.msra.mxu1 %v14276_v12 }
 0x415   :  { %v13148_v14 = vpop.f32.mrb[36].mxu0  ;;  %v15494_v18 = vpack.c.bf16 %v1539_v9, %v1534_v13 }
 0x416   :  { %v1549_v15 = vadd.f32 %v13148_v14, %v11696_v56  ;;  %v1543_v17 = vpop.f32.mrb[37].mxu0 }
 0x417   :  { %v1544_v19 = vadd.f32 %v11696_v56, %v1543_v17  ;;  %14281 = vmatprep.subr.bf16.mxu0 %v15494_v18 }
 0x419   :  { %v15496_v20 = vpack.c.bf16 %v1549_v15, %v1544_v19 }
 0x41b   :  { %14285 = vmatprep.subr.bf16.mxu1 %v15496_v20 }
 0x4d2   :  { %v13155_v21 = vpop.f32.mrb[26].mxu1 }
 0x4d3   :  { %v1901_v22 = vmul.f32 0.35355338, %v13155_v21  ;;  %v1630_v23 = vpop.f32.mrb[27].mxu1 }
 0x4d4   :  { %v1900_v24 = vmul.f32 0.35355338, %v1630_v23 }
 0x4d5   :  { %v1909_v25 = vadd.f32 %v1901_v22, %v15325_v62 }
 0x4d6   :  { %v1908_v27 = vadd.f32 %v1900_v24, %v15325_v62 }
 0x4d7   :  { %v1919_v28 = vsel %vm793_vm4, %v1909_v25, -inf }
 0x4d8   :  { %1920 = vmax.xlane.f32.xlu1 %v1919_v28  ;;  %v1916_v30 = vsel %vm793_vm4, %v1908_v27, -inf }
 0x4d9   :  { %1917 = vmax.xlane.f32.xlu0 %v1916_v30 }
 0x4da   :  { %v13162_v31 = vpop.f32.mrb[28].mxu1  ;;  %v13169_v32 = vpop.f32.mrb[38].mxu0 }
 0x4db   :  { %v1903_v33 = vmul.f32 0.35355338, %v13162_v31  ;;  %v1717_v35 = vpop.f32.mrb[29].mxu1  ;;  %v1804_v37 = vpop.f32.mrb[39].mxu0  ;;  %v1905_v46 = vmul.f32 0.35355338, %v13169_v32 }
 0x4dc   :  { %v1902_v38 = vmul.f32 0.35355338, %v1717_v35  ;;  %v1904_v51 = vmul.f32 0.35355338, %v1804_v37 }
 0x4dd   :  { %v1911_v49 = vadd.f32 %v1903_v33, %v15325_v62  ;;  %v1913_v47 = vadd.f32 %v1905_v46, %v15325_v62 }
 0x4de   :  { %v1910_v40 = vadd.f32 %v1902_v38, %v15325_v62  ;;  %v1912_v58 = vadd.f32 %v1904_v51, %v15325_v62 }
 0x4df   :  { %v1925_v43 = vsel %vm793_vm4, %v1911_v49, -inf  ;;  %v1931_v59 = vsel %vm793_vm4, %v1913_v47, -inf }
 0x4e0   :  { %1926 = vmax.xlane.f32.xlu1 %v1925_v43  ;;  %v1922_v44 = vsel %vm793_vm4, %v1910_v40, -inf  ;;  %v1928_v60 = vsel %vm793_vm4, %v1912_v58, -inf }
 0x4e1   :  { %1923 = vmax.xlane.f32.xlu0 %v1922_v44 }
 0x4e2   :  { %v13176_v45 = vpop.f32.mrb[30].mxu1 }
 0x4e3   :  { %v1907_v48 = vmul.f32 0.35355338, %v13176_v45  ;;  %v1891_v50 = vpop.f32.mrb[31].mxu1 }
 0x4e4   :  { %v1906_v53 = vmul.f32 0.35355338, %v1891_v50 }
 0x4e5   :  { %v1915_v54 = vadd.f32 %v1907_v48, %v15325_v62 }
 0x4e6   :  { %v1914_v55 = vadd.f32 %v1906_v53, %v15325_v62 }
 0x4e7   :  { %v1937_v56 = vsel %vm793_vm4, %v1915_v54, -inf }
 0x4e8   :  { %1938 = vmax.xlane.f32.xlu1 %v1937_v56  ;;  %v1934_v57 = vsel %vm793_vm4, %v1914_v55, -inf }
 0x4e9   :  { %1935 = vmax.xlane.f32.xlu0 %v1934_v57 }
 0x4ec   :  { %1932 = vmax.xlane.f32.xlu1 %v1931_v59 }
 0x4ed   :  { %1929 = vmax.xlane.f32.xlu0 %v1928_v60 }
 0x565   :  { %v1921_v61 = vpop.xlane.xlu1 %1920 }
 0x566   :  { %v1941_v5 = vsub.f32 %v1909_v25, %v1921_v61  ;;  %v1918_v6 = vpop.xlane.xlu0 %1917 }
 0x567   :  { %v1940_v8 = vsub.f32 %v1908_v27, %v1918_v6 }
 0x568   :  { %v1950_v9 = vmul.f32 1.442695, %v1941_v5 }
 0x569   :  { %v1948_v11 = vmul.f32 1.442695, %v1940_v8 }
 0x56a   :  { %14826 = vpow2.f32 %v1950_v9 }
 0x56b   :  { %14828 = vpow2.f32 %v1948_v11 }
 0x56d   :  { %v1927_v12 = vpop.xlane.xlu1 %1926 }
 0x56e   :  { %v1943_v13 = vsub.f32 %v1911_v49, %v1927_v12  ;;  %v1924_v14 = vpop.xlane.xlu0 %1923 }
 0x56f   :  { %v1942_v15 = vsub.f32 %v1910_v40, %v1924_v14  ;;  %v11747_v14 = vld [vmem:[%s17152_s2 + $0x48] sm:$0xff] }
 0x570   :  { %v1954_v17 = vmul.f32 1.442695, %v1943_v13  ;;  %v11746_v13 = vld [vmem:[%s17152_s2 + $0x40] sm:$0xff] }
 0x571   :  { %v1952_v19 = vmul.f32 1.442695, %v1942_v15 }
 0x572   :  { %14830 = vpow2.f32 %v1954_v17 }
 0x573   :  { %14832 = vpow2.f32 %v1952_v19 }
 0x574   :  { %v14827_v21 = vpop.eup %14826 }
 0x575   :  { %v14829_v22 = vpop.eup %14828  ;;  %v1939_v23 = vpop.xlane.xlu1 %1938  ;;  %v1967_v24 = vsel %vm793_vm4, %v14827_v21, 0.0 }
 0x576   :  { %v1947_v25 = vsub.f32 %v1915_v54, %v1939_v23  ;;  %1968 = vadd.xlane.f32.xlu1 %v1967_v24  ;;  %v1936_v27 = vpop.xlane.xlu0 %1935  ;;  %v1964_v28 = vsel %vm793_vm4, %v14829_v22, 0.0  ;;  %v14288_v23 = vpack.c.bf16 %v11747_v14, %v11746_v13  ;;  %v11748_v24 = vld [vmem:[%s17152_s2 + $0x50] sm:$0xff] }
 0x577   :  { %v1946_v30 = vsub.f32 %v1914_v55, %v1936_v27  ;;  %1965 = vadd.xlane.f32.xlu0 %v1964_v28 }
 0x578   :  { %v1962_v31 = vmul.f32 1.442695, %v1947_v25  ;;  %v11749_v25 = vld [vmem:[%s17152_s2 + $0x58] sm:$0xff] }
 0x579   :  { %v1960_v32 = vmul.f32 1.442695, %v1946_v30  ;;  %v1933_v33 = vpop.xlane.xlu1 %1932 }
 0x57a   :  { %14834 = vpow2.f32 %v1962_v31  ;;  %v1945_v35 = vsub.f32 %v1913_v47, %v1933_v33  ;;  %v1930_v37 = vpop.xlane.xlu0 %1929  ;;  %v14292_v31 = vpack.c.bf16 %v11749_v25, %v11748_v24  ;;  %v11760_v33 = vld [vmem:[%s17152_s2 + $0xc8] sm:$0xff] }
 0x57b   :  { %14836 = vpow2.f32 %v1960_v32  ;;  %v1944_v38 = vsub.f32 %v1912_v58, %v1930_v37 }
 0x57c   :  { %v14831_v49 = vpop.eup %14830  ;;  %v1958_v40 = vmul.f32 1.442695, %v1945_v35 }
 0x57d   :  { %v14833_v43 = vpop.eup %14832  ;;  %v1956_v44 = vmul.f32 1.442695, %v1944_v38  ;;  %v1973_v45 = vsel %vm793_vm4, %v14831_v49, 0.0 }
 0x57e   :  { %14838 = vpow2.f32 %v1958_v40  ;;  %1974 = vadd.xlane.f32.xlu1 %v1973_v45  ;;  %v1970_v46 = vsel %vm793_vm4, %v14833_v43, 0.0  ;;  %v11761_v40 = vld [vmem:[%s17152_s2 + $0xd0] sm:$0xff]  ;;  %v11729_v45 = vld [vmem:[%s17156_s3 + $0x8] sm:$0xff] }
 0x57f   :  { %14840 = vpow2.f32 %v1956_v44  ;;  %1971 = vadd.xlane.f32.xlu0 %v1970_v46  ;;  %v1206_v46 = vld [vmem:[%s17156_s3] sm:$0xff] }
 0x584   :  { %v14835_v48 = vpop.eup %14834 }
 0x585   :  { %v14837_v50 = vpop.eup %14836  ;;  %v1985_v51 = vsel %vm793_vm4, %v14835_v48, 0.0 }
 0x586   :  { %1986 = vadd.xlane.f32.xlu1 %v1985_v51  ;;  %v1982_v53 = vsel %vm793_vm4, %v14837_v50, 0.0 }
 0x587   :  { %1983 = vadd.xlane.f32.xlu0 %v1982_v53 }
 0x588   :  { %v14839_v54 = vpop.eup %14838 }
 0x589   :  { %v14841_v55 = vpop.eup %14840  ;;  %v1979_v56 = vsel %vm793_vm4, %v14839_v54, 0.0 }
 0x58a   :  { %1980 = vadd.xlane.f32.xlu1 %v1979_v56  ;;  %v1976_v47 = vsel %vm793_vm4, %v14841_v55, 0.0 }
 0x58b   :  { %1977 = vadd.xlane.f32.xlu0 %v1976_v47 }
 0x603   :  { %v1969_v57 = vpop.xlane.xlu1 %1968 }
 0x604   :  { %14842 = vrcp.f32 %v1969_v57  ;;  %v1966_v58 = vpop.xlane.xlu0 %1965 }
 0x605   :  { %14844 = vrcp.f32 %v1966_v58 }
 0x60b   :  { %v1975_v59 = vpop.xlane.xlu1 %1974 }
 0x60c   :  { %14846 = vrcp.f32 %v1975_v59  ;;  %v1972_v60 = vpop.xlane.xlu0 %1971 }
 0x60d   :  { %14848 = vrcp.f32 %v1972_v60  ;;  %v15611_v60 = vld [vmem:[%s17155_s5 + $0xa] ss:$0 sm:$0xff] }
 0x60e   :  { %v14843_v61 = vpop.eup %14842 }
 0x60f   :  { %v14845_v5 = vpop.eup %14844  ;;  %v1991_v8 = vmul.f32 %v14843_v61, %v14827_v21 }
 0x610   :  { %v1989_v6 = vmul.f32 %v14845_v5, %v14829_v22 }
 0x612   :  { %13181 = vmatprep.mubr.msk.f32.mxu0 %vm793_vm4, %v1989_v6 }
 0x613   :  { %v1987_v9 = vpop.xlane.xlu1 %1986  ;;  %13182 = vmatmul.mubr.msk.f32.vlgmr.msra.gmra.mrb[40].mxu0 %vm793_vm4, %v1991_v8  ;;  %v11774_v8 = vld [vmem:[%s17152_s2 + $0x150] sm:$0xff] }
 0x614   :  { %14850 = vrcp.f32 %v1987_v9  ;;  %14283 = vmatpush3.bf16.msra.mxu0 %v15494_v18  ;;  %v1984_v11 = vpop.xlane.xlu0 %1983  ;;  %v11775_v9 = vld [vmem:[%s17152_s2 + $0x158] sm:$0xff] }
 0x615   :  { %14852 = vrcp.f32 %v1984_v11  ;;  %13205 = vmatprep.subr.mxu0 %v11729_v45  ;;  %v14308_v13 = vpack.c.bf16 %v11775_v9, %v11774_v8 }
 0x616   :  { %v14847_v12 = vpop.eup %14846 }
 0x617   :  { %v14849_v15 = vpop.eup %14848  ;;  %v1981_v17 = vpop.xlane.xlu1 %1980  ;;  %v1995_v22 = vmul.f32 %v14847_v12, %v14831_v49 }
 0x618   :  { %14854 = vrcp.f32 %v1981_v17  ;;  %v1978_v19 = vpop.xlane.xlu0 %1977  ;;  %v1993_v21 = vmul.f32 %v14849_v15, %v14833_v43  ;;  %v11762_v43 = vld [vmem:[%s17152_s2 + $0xd8] sm:$0xff] }
 0x619   :  { %14856 = vrcp.f32 %v1978_v19  ;;  %v14300_v44 = vpack.c.bf16 %v11762_v43, %v11761_v40 }
 0x61a   :  { %13188 = vmatprep.mubr.msk.f32.mxu1 %vm793_vm4, %v1993_v21 }
 0x61b   :  { %13189 = vmatmul.mubr.msk.f32.vlgmr.msra.gmra.mrb[32].mxu1 %vm793_vm4, %v1995_v22 }
 0x61c   :  { %14287 = vmatpush3.bf16.msra.mxu1 %v15496_v20  ;;  %v11759_v20 = vld [vmem:[%s17152_s2 + $0xc0] sm:$0xff] }
 0x61d   :  { %14289 = vmatprep.subr.bf16.mxu1 %v14288_v23  ;;  %v14296_v49 = vpack.c.bf16 %v11760_v33, %v11759_v20 }
 0x61e   :  { %v14851_v18 = vpop.eup %14850 }
 0x61f   :  { %v14853_v27 = vpop.eup %14852  ;;  %v2003_v30 = vmul.f32 %v14851_v18, %v14835_v48  ;;  %v11772_v48 = vld [vmem:[%s17152_s2 + $0x140] sm:$0xff] }
 0x620   :  { %v2001_v28 = vmul.f32 %v14853_v27, %v14837_v50  ;;  %v11773_v50 = vld [vmem:[%s17152_s2 + $0x148] sm:$0xff] }
 0x622   :  { %v14855_v32 = vpop.eup %14854  ;;  %13202 = vmatprep.mubr.msk.f32.mxu1 %vm793_vm4, %v2001_v28 }
 0x623   :  { %v14857_v35 = vpop.eup %14856  ;;  %13203 = vmatmul.mubr.msk.f32.vlgmr.msra.gmra.mrb[34].mxu1 %vm793_vm4, %v2003_v30  ;;  %v1999_v38 = vmul.f32 %v14855_v32, %v14839_v54  ;;  %v14304_v54 = vpack.c.bf16 %v11773_v50, %v11772_v48 }
 0x624   :  { %14291 = vmatpush3.bf16.msra.mxu1 %v14288_v23  ;;  %v1997_v37 = vmul.f32 %v14857_v35, %v14841_v55  ;;  %13241 = vmatprep.mubr.msk.f32.mxu1 %vm68_vm0, %v15180_v16 }
 0x625   :  { %14293 = vmatprep.subr.bf16.mxu1 %v14292_v31 }
 0x626   :  { %13195 = vmatprep.mubr.msk.f32.mxu0 %vm793_vm4, %v1997_v37 }
 0x627   :  { %13196 = vmatmul.mubr.msk.f32.vlgmr.msra.gmra.mrb[42].mxu0 %vm793_vm4, %v1999_v38 }
 0x628   :  { %14295 = vmatpush3.bf16.msra.mxu1 %v14292_v31  ;;  %13206 = vmatpush3.msra.mxu0 %v11729_v45  ;;  %v11776_v45 = vld [vmem:[%s17155_s5 + $0x12] ss:$0 sm:$0xff] }
 0x629   :  { %14297 = vmatprep.subr.bf16.mxu1 %v14296_v49  ;;  %13219 = vmatprep.subr.mxu0 %v1206_v46 }
 0x62b   :  { %13242 = vmatmul.mubr.msk.f32.vlgmr.msra.gmra.mrb[36].mxu1 %vm68_vm0, %v15202_v26 }
 0x62c   :  { %13244 = vmatprep.mubr.msk.f32.mxu1 %vm68_vm0, %v15209_v29  ;;  %14299 = vmatpush3.bf16.msra.mxu1 %v14296_v49 }
 0x62d   :  { %14301 = vmatprep.subr.bf16.mxu1 %v14300_v44 }
 0x62f   :  { %13245 = vmatmul.mubr.msk.f32.gmra.mrb[38].mxu1 %vm68_vm0, %v15219_v34 }
 0x630   :  { %13247 = vmatprep.mubr.msk.f32.mxu1 %vm68_vm0, %v15223_v36  ;;  %14303 = vmatpush3.bf16.msra.mxu1 %v14300_v44 }
 0x633   :  { %13248 = vmatmul.mubr.msk.f32.gmra.mrb[40].mxu1 %vm68_vm0, %v15232_v39 }
 0x634   :  { %13250 = vmatprep.mubr.msk.f32.mxu1 %vm68_vm0, %v15238_v41 }
 0x637   :  { %13251 = vmatmul.mubr.msk.f32.gmra.mrb[42].mxu1 %vm68_vm0, %v15244_v42 }
 0x638   :  { %13261 = vmatprep.mubr.msk.f32.mxu1 %vm68_vm0, %v15180_v16 }
 0x63b   :  { %13262 = vmatmul.mubr.msk.f32.vlgmr.msra.gmra.mrb[44].mxu1 %vm68_vm0, %v15202_v26 }
 0x63c   :  { %13264 = vmatprep.mubr.msk.f32.mxu1 %vm68_vm0, %v15209_v29 }
 0x63f   :  { %13265 = vmatmul.mubr.msk.f32.gmra.mrb[46].mxu1 %vm68_vm0, %v15219_v34 }
 0x640   :  { %13267 = vmatprep.mubr.msk.f32.mxu1 %vm68_vm0, %v15223_v36 }
 0x643   :  { %13268 = vmatmul.mubr.msk.f32.gmra.mrb[48].mxu1 %vm68_vm0, %v15232_v39 }
 0x644   :  { %13270 = vmatprep.mubr.msk.f32.mxu1 %vm68_vm0, %v15238_v41 }
 0x647   :  { %13271 = vmatmul.mubr.msk.f32.gmra.mrb[50].mxu1 %vm68_vm0, %v15244_v42 }
 0x6e6   :  { %v13183_v51 = vpop.f32.mrb[40].mxu0 }
 0x6e7   :  { %v2076_v53 = vpop.f32.mrb[41].mxu0 }
 0x6e8   :  { %13207 = vmatprep.mubr.msk.f32.mxu0 %vm428_vm1, %v2076_v53 }
 0x6e9   :  { %13208 = vmatmul.mubr.msk.f32.vlgmr.msra.gmra.mrb[44].mxu0 %vm428_vm1, %v13183_v51 }
 0x6ea   :  { %13220 = vmatpush3.msra.mxu0 %v1206_v46 }
 0x6eb   :  { %14305 = vmatprep.subr.bf16.mxu0 %v14304_v54 }
 0x6ee   :  { %v13190_v55 = vpop.f32.mrb[32].mxu1 }
 0x6ef   :  { %v2157_v56 = vpop.f32.mrb[33].mxu1 }
 0x6f0   :  { %13210 = vmatprep.mubr.msk.f32.mxu0 %vm428_vm1, %v2157_v56 }
 0x6f1   :  { %13211 = vmatmul.mubr.msk.f32.gmra.mrb[46].mxu0 %vm428_vm1, %v13190_v55 }
 0x6f6   :  { %v13204_v47 = vpop.f32.mrb[34].mxu1 }
 0x6f7   :  { %v2319_v57 = vpop.f32.mrb[35].mxu1 }
 0x6fa   :  { %v13197_v58 = vpop.f32.mrb[42].mxu0 }
 0x6fb   :  { %v2238_v59 = vpop.f32.mrb[43].mxu0 }
 0x6fc   :  { %13213 = vmatprep.mubr.msk.f32.mxu0 %vm428_vm1, %v2238_v59 }
 0x6fd   :  { %13214 = vmatmul.mubr.msk.f32.gmra.mrb[48].mxu0 %vm428_vm1, %v13197_v58 }
 0x6fe   :  { %v13243_v61 = vpop.f32.mrb[36].mxu1  ;;  %13216 = vmatprep.mubr.msk.f32.mxu0 %vm428_vm1, %v2319_v57 }
 0x6ff   :  { %v2664_v5 = vpop.f32.mrb[37].mxu1  ;;  %v2670_v28 = vadd.f32 %v13243_v61, %v15611_v60 }
 0x700   :  { %v2665_v6 = vadd.f32 %v15611_v60, %v2664_v5 }
 0x701   :  { %13217 = vmatmul.mubr.msk.f32.gmra.mrb[50].mxu0 %vm428_vm1, %v13204_v47 }
 0x702   :  { %v13246_v11 = vpop.f32.mrb[38].mxu1  ;;  %13297 = vmatprep.mubr.msk.f32.mxu1 %vm428_vm1, %v2665_v6  ;;  %13221 = vmatprep.mubr.msk.f32.mxu0 %vm428_vm1, %v15455_v4 }
 0x703   :  { %v2674_v12 = vpop.f32.mrb[39].mxu1  ;;  %v2680_v49 = vadd.f32 %v13246_v11, %v15611_v60 }
 0x704   :  { %v2675_v32 = vadd.f32 %v15611_v60, %v2674_v12 }
 0x705   :  { %13222 = vmatmul.mubr.msk.f32.vlgmr.msra.gmra.mrb[44].mxu0 %vm428_vm1, %v15453_v3  ;;  %v11763_v3 = vld [vmem:[%s17155_s5 + $0xe] ss:$0 sm:$0xff] }
 0x706   :  { %v13249_v14 = vpop.f32.mrb[40].mxu1  ;;  %13224 = vmatprep.mubr.msk.f32.mxu0 %vm428_vm1, %v15447_v0  ;;  %14307 = vmatpush3.bf16.msra.mxu0 %v14304_v54 }
 0x707   :  { %v2684_v15 = vpop.f32.mrb[41].mxu1  ;;  %14309 = vmatprep.subr.bf16.mxu0 %v14308_v13  ;;  %v2690_v43 = vadd.f32 %v13249_v14, %v15611_v60 }
 0x708   :  { %v2685_v38 = vadd.f32 %v15611_v60, %v2684_v15 }
 0x709   :  { %13225 = vmatmul.mubr.msk.f32.gmra.mrb[46].mxu0 %vm428_vm1, %v15445_v63 }
 0x70a   :  { %v13252_v17 = vpop.f32.mrb[42].mxu1  ;;  %13227 = vmatprep.mubr.msk.f32.mxu0 %vm428_vm1, %v15462_v10  ;;  %14311 = vmatpush3.bf16.msra.mxu0 %v14308_v13 }
 0x70b   :  { %v2694_v4 = vpop.f32.mrb[43].mxu1  ;;  %v2700_v44 = vadd.f32 %v13252_v17, %v15611_v60 }
 0x70c   :  { %v2695_v40 = vadd.f32 %v15611_v60, %v2694_v4 }
 0x70d   :  { %13228 = vmatmul.mubr.msk.f32.gmra.mrb[48].mxu0 %vm428_vm1, %v15460_v7 }
 0x70e   :  { %v13263_v0 = vpop.f32.mrb[44].mxu1  ;;  %13230 = vmatprep.mubr.msk.f32.mxu0 %vm428_vm1, %v15451_v2 }
 0x70f   :  { %v2785_v19 = vadd.f32 %v13263_v0, %v11763_v3  ;;  %v2779_v21 = vpop.f32.mrb[45].mxu1 }
 0x710   :  { %v2780_v63 = vadd.f32 %v11763_v3, %v2779_v21 }
 0x711   :  { %13231 = vmatmul.mubr.msk.f32.gmra.mrb[50].mxu0 %vm428_vm1, %v15449_v1 }
 0x712   :  { %v14312_v10 = vpack.c.bf16 %v2785_v19, %v2780_v63  ;;  %v13266_v22 = vpop.f32.mrb[46].mxu1  ;;  %13281 = vmatprep.mubr.msk.f32.mxu0 %vm68_vm0, %v15180_v16 }
 0x713   :  { %v2795_v23 = vadd.f32 %v13266_v22, %v11763_v3  ;;  %v2789_v18 = vpop.f32.mrb[47].mxu1 }
 0x714   :  { %14314 = vmatprep.subr.msk.bf16.mxu1 %vm15288_vm2, %v14312_v10  ;;  %v2790_v7 = vadd.f32 %v11763_v3, %v2789_v18 }
 0x715   :  { %14317 = vmatpush3.bf16.xpose.msk.msra.mxu1 %vm15288_vm2, %v14312_v10  ;;  %13282 = vmatmul.mubr.msk.f32.vlgmr.msra.gmra.mrb[52].mxu0 %vm68_vm0, %v15202_v26 }
 0x716   :  { %v14318_v2 = vpack.c.bf16 %v2795_v23, %v2790_v7  ;;  %v13269_v24 = vpop.f32.mrb[48].mxu1  ;;  %13284 = vmatprep.mubr.msk.f32.mxu0 %vm68_vm0, %v15209_v29 }
 0x717   :  { %v2805_v1 = vadd.f32 %v13269_v24, %v11763_v3  ;;  %v2799_v25 = vpop.f32.mrb[49].mxu1 }
 0x718   :  { %v2800_v27 = vadd.f32 %v11763_v3, %v2799_v25  ;;  %14320 = vmatprep.subr.msk.bf16.mxu1 %vm15288_vm2, %v14318_v2 }
 0x719   :  { %13285 = vmatmul.mubr.msk.f32.gmra.mrb[54].mxu0 %vm68_vm0, %v15219_v34 }
 0x71a   :  { %v14324_v30 = vpack.c.bf16 %v2805_v1, %v2800_v27  ;;  %v13272_v31 = vpop.f32.mrb[50].mxu1  ;;  %13287 = vmatprep.mubr.msk.f32.mxu0 %vm68_vm0, %v15223_v36 }
 0x71b   :  { %v2815_v20 = vadd.f32 %v13272_v31, %v11763_v3  ;;  %v2809_v33 = vpop.f32.mrb[51].mxu1 }
 0x71c   :  { %13298 = vmatmul.mubr.msk.f32.vlgmr.msra.gmra.mrb[52].mxu1 %vm428_vm1, %v2670_v28  ;;  %v2810_v35 = vadd.f32 %v11763_v3, %v2809_v33  ;;  %14326 = vmatprep.subr.msk.bf16.mxu0 %vm15288_vm2, %v14324_v30 }
 0x71d   :  { %14323 = vmatpush3.bf16.xpose.msk.msra.mxu1 %vm15288_vm2, %v14318_v2  ;;  %13304 = vmatprep.mubr.msk.f32.mxu1 %vm428_vm1, %v2675_v32 }
 0x71e   :  { %v14330_v37 = vpack.c.bf16 %v2815_v20, %v2810_v35  ;;  %13288 = vmatmul.mubr.msk.f32.gmra.mrb[56].mxu0 %vm68_vm0, %v15232_v39 }
 0x71f   :  { %14329 = vmatpush3.bf16.xpose.msk.msra.mxu0 %vm15288_vm2, %v14324_v30  ;;  %13290 = vmatprep.mubr.msk.f32.mxu0 %vm68_vm0, %v15238_v41 }
 0x720   :  { %14332 = vmatprep.subr.msk.bf16.mxu1 %vm15288_vm2, %v14330_v37 }
 0x722   :  { %13291 = vmatmul.mubr.msk.f32.gmra.mrb[58].mxu0 %vm68_vm0, %v15244_v42 }
 0x723   :  { %13311 = vmatprep.mubr.msk.f32.mxu0 %vm428_vm1, %v2685_v38 }
 0x724   :  { %13305 = vmatmul.mubr.msk.f32.vlgmr.msra.gmra.mrb[54].mxu1 %vm428_vm1, %v2680_v49 }
 0x725   :  { %14335 = vmatpush3.bf16.xpose.msk.msra.mxu1 %vm15288_vm2, %v14330_v37  ;;  %13318 = vmatprep.mubr.msk.f32.mxu1 %vm428_vm1, %v2695_v40 }
 0x726   :  { %13312 = vmatmul.mubr.msk.f32.vlgmr.msra.gmra.mrb[60].mxu0 %vm428_vm1, %v2690_v43 }
 0x72c   :  { %13319 = vmatmul.mubr.msk.f32.vlgmr.msra.gmra.mrb[56].mxu1 %vm428_vm1, %v2700_v44 }
 0x7e8   :  { %v13283_v46 = vpop.f32.mrb[52].mxu0 }
 0x7e9   :  { %v2900_v48 = vadd.f32 %v13283_v46, %v11776_v45  ;;  %v2894_v50 = vpop.f32.mrb[53].mxu0 }
 0x7ea   :  { %v2895_v51 = vadd.f32 %v11776_v45, %v2894_v50 }
 0x7ec   :  { %v14336_v53 = vpack.c.bf16 %v2900_v48, %v2895_v51  ;;  %v13286_v54 = vpop.f32.mrb[54].mxu0 }
 0x7ed   :  { %v2910_v55 = vadd.f32 %v13286_v54, %v11776_v45  ;;  %v2904_v56 = vpop.f32.mrb[55].mxu0 }
 0x7ee   :  { %v2905_v47 = vadd.f32 %v11776_v45, %v2904_v56  ;;  %14337 = vmatprep.subr.bf16.mxu0 %v14336_v53 }
 0x7ef   :  { %v13299_v57 = vpop.f32.mrb[52].mxu1  ;;  %14339 = vmatpush3.bf16.msra.mxu0 %v14336_v53 }
 0x7f0   :  { %v15691_v58 = vpack.c.bf16 %v2910_v55, %v2905_v47  ;;  %v3282_v59 = vmul.f32 0.35355338, %v13299_v57  ;;  %v3011_v60 = vpop.f32.mrb[53].mxu1 }
 0x7f1   :  { %v3281_v61 = vmul.f32 0.35355338, %v3011_v60  ;;  %v13289_v5 = vpop.f32.mrb[56].mxu0 }
 0x7f2   :  { %v2920_v6 = vadd.f32 %v13289_v5, %v11776_v45  ;;  %v2914_v8 = vpop.f32.mrb[57].mxu0  ;;  %14341 = vmatprep.subr.bf16.mxu0 %v15691_v58  ;;  %v3290_v9 = vadd.f32 %v3282_v59, %v15325_v62 }
 0x7f3   :  { %v2915_v11 = vadd.f32 %v11776_v45, %v2914_v8  ;;  %v3289_v12 = vadd.f32 %v3281_v61, %v15325_v62 }
 0x7f4   :  { %v3300_v13 = vsel %vm793_vm4, %v3290_v9, -inf }
 0x7f5   :  { %v14344_v14 = vpack.c.bf16 %v2920_v6, %v2915_v11  ;;  %3301 = vmax.xlane.f32.xlu1 %v3300_v13  ;;  %v3297_v15 = vsel %vm793_vm4, %v3289_v12, -inf  ;;  %v13292_v17 = vpop.f32.mrb[58].mxu0 }
 0x7f6   :  { %3298 = vmax.xlane.f32.xlu0 %v3297_v15  ;;  %v2930_v4 = vadd.f32 %v13292_v17, %v11776_v45  ;;  %v2924_v3 = vpop.f32.mrb[59].mxu0 }
 0x7f7   :  { %v2925_v0 = vadd.f32 %v11776_v45, %v2924_v3  ;;  %v13306_v19 = vpop.f32.mrb[54].mxu1  ;;  %14345 = vmatprep.subr.bf16.mxu1 %v14344_v14 }
 0x7f8   :  { %v3284_v21 = vmul.f32 0.35355338, %v13306_v19  ;;  %v3098_v63 = vpop.f32.mrb[55].mxu1  ;;  %14347 = vmatpush3.bf16.msra.mxu1 %v14344_v14 }
 0x7f9   :  { %v15698_v10 = vpack.c.bf16 %v2930_v4, %v2925_v0  ;;  %v3283_v22 = vmul.f32 0.35355338, %v3098_v63  ;;  %v13313_v23 = vpop.f32.mrb[60].mxu0 }
 0x7fa   :  { %v3286_v18 = vmul.f32 0.35355338, %v13313_v23  ;;  %v3185_v7 = vpop.f32.mrb[61].mxu0  ;;  %v3292_v2 = vadd.f32 %v3284_v21, %v15325_v62 }
 0x7fb   :  { %v3285_v24 = vmul.f32 0.35355338, %v3185_v7  ;;  %v3291_v1 = vadd.f32 %v3283_v22, %v15325_v62 }
 0x7fc   :  { %v3306_v25 = vsel %vm793_vm4, %v3292_v2, -inf  ;;  %v3294_v27 = vadd.f32 %v3286_v18, %v15325_v62 }
 0x7fd   :  { %3307 = vmax.xlane.f32.xlu1 %v3306_v25  ;;  %v3303_v28 = vsel %vm793_vm4, %v3291_v1, -inf  ;;  %v3293_v30 = vadd.f32 %v3285_v24, %v15325_v62 }
 0x7fe   :  { %3304 = vmax.xlane.f32.xlu0 %v3303_v28  ;;  %v3312_v33 = vsel %vm793_vm4, %v3294_v27, -inf }
 0x7ff   :  { %v13320_v31 = vpop.f32.mrb[56].mxu1  ;;  %v3309_v37 = vsel %vm793_vm4, %v3293_v30, -inf }
 0x800   :  { %v3288_v32 = vmul.f32 0.35355338, %v13320_v31  ;;  %v3272_v20 = vpop.f32.mrb[57].mxu1 }
 0x801   :  { %v3287_v35 = vmul.f32 0.35355338, %v3272_v20  ;;  %3313 = vmax.xlane.f32.xlu1 %v3312_v33 }
 0x802   :  { %3310 = vmax.xlane.f32.xlu0 %v3309_v37  ;;  %v3296_v38 = vadd.f32 %v3288_v32, %v15325_v62 }
 0x803   :  { %v3295_v49 = vadd.f32 %v3287_v35, %v15325_v62 }
 0x804   :  { %v3318_v40 = vsel %vm793_vm4, %v3296_v38, -inf }
 0x805   :  { %3319 = vmax.xlane.f32.xlu1 %v3318_v40  ;;  %v3315_v43 = vsel %vm793_vm4, %v3295_v49, -inf }
 0x806   :  { %3316 = vmax.xlane.f32.xlu0 %v3315_v43 }
 0x882   :  { %v3302_v44 = vpop.xlane.xlu1 %3301 }
 0x883   :  { %v3322_v45 = vsub.f32 %v3290_v9, %v3302_v44  ;;  %v3299_v46 = vpop.xlane.xlu0 %3298 }
 0x884   :  { %v3321_v48 = vsub.f32 %v3289_v12, %v3299_v46 }
 0x885   :  { %v3331_v50 = vmul.f32 1.442695, %v3322_v45 }
 0x886   :  { %v3329_v51 = vmul.f32 1.442695, %v3321_v48 }
 0x887   :  { %14858 = vpow2.f32 %v3331_v50 }
 0x888   :  { %14860 = vpow2.f32 %v3329_v51 }
 0x88a   :  { %v3308_v53 = vpop.xlane.xlu1 %3307 }
 0x88b   :  { %v3324_v54 = vsub.f32 %v3292_v2, %v3308_v53  ;;  %v3305_v55 = vpop.xlane.xlu0 %3304 }
 0x88c   :  { %v3323_v56 = vsub.f32 %v3291_v1, %v3305_v55 }
 0x88d   :  { %v3335_v47 = vmul.f32 1.442695, %v3324_v54 }
 0x88e   :  { %v3333_v57 = vmul.f32 1.442695, %v3323_v56  ;;  %v3314_v59 = vpop.xlane.xlu1 %3313 }
 0x88f   :  { %14862 = vpow2.f32 %v3335_v47  ;;  %v3326_v60 = vsub.f32 %v3294_v27, %v3314_v59  ;;  %v3311_v61 = vpop.xlane.xlu0 %3310  ;;  %v11832_v59 = vld [vmem:[%s17152_s2 + $0xe8] sm:$0xff] }
 0x890   :  { %14864 = vpow2.f32 %v3333_v57  ;;  %v3325_v5 = vsub.f32 %v3293_v30, %v3311_v61  ;;  %v11831_v57 = vld [vmem:[%s17152_s2 + $0xe0] sm:$0xff] }
 0x891   :  { %v14859_v6 = vpop.eup %14858  ;;  %v3339_v8 = vmul.f32 1.442695, %v3326_v60  ;;  %v14360_v60 = vpack.c.bf16 %v11832_v59, %v11831_v57  ;;  %v11818_v61 = vld [vmem:[%s17152_s2 + $0x60] sm:$0xff] }
 0x892   :  { %v14861_v9 = vpop.eup %14860  ;;  %v3337_v11 = vmul.f32 1.442695, %v3325_v5  ;;  %v3320_v12 = vpop.xlane.xlu1 %3319  ;;  %v3348_v13 = vsel %vm793_vm4, %v14859_v6, 0.0  ;;  %v11819_v5 = vld [vmem:[%s17152_s2 + $0x68] sm:$0xff] }
 0x893   :  { %14866 = vpow2.f32 %v3339_v8  ;;  %v3328_v14 = vsub.f32 %v3296_v38, %v3320_v12  ;;  %3349 = vadd.xlane.f32.xlu1 %v3348_v13  ;;  %v3317_v15 = vpop.xlane.xlu0 %3316  ;;  %v3345_v17 = vsel %vm793_vm4, %v14861_v9, 0.0  ;;  %v11820_v8 = vld [vmem:[%s17152_s2 + $0x70] sm:$0xff]  ;;  %v11844_v12 = vld [vmem:[%s17152_s2 + $0x160] sm:$0xff]  ;;  %v11845_v13 = vld [vmem:[%s17152_s2 + $0x168] sm:$0xff] }
 0x894   :  { %14868 = vpow2.f32 %v3337_v11  ;;  %v3327_v4 = vsub.f32 %v3295_v49, %v3317_v15  ;;  %3346 = vadd.xlane.f32.xlu0 %v3345_v17  ;;  %v14368_v15 = vpack.c.bf16 %v11845_v13, %v11844_v12  ;;  %v11847_v17 = vld [vmem:[%s17152_s2 + $0x178] sm:$0xff] }
 0x895   :  { %v3343_v3 = vmul.f32 1.442695, %v3328_v14  ;;  %v11846_v14 = vld [vmem:[%s17152_s2 + $0x170] sm:$0xff] }
 0x896   :  { %v3341_v0 = vmul.f32 1.442695, %v3327_v4  ;;  %v14372_v4 = vpack.c.bf16 %v11847_v17, %v11846_v14 }
 0x897   :  { %14870 = vpow2.f32 %v3343_v3  ;;  %v11833_v3 = vld [vmem:[%s17152_s2 + $0xf0] sm:$0xff] }
 0x898   :  { %14872 = vpow2.f32 %v3341_v0  ;;  %v11834_v0 = vld [vmem:[%s17152_s2 + $0xf8] sm:$0xff] }
 0x899   :  { %v14863_v19 = vpop.eup %14862 }
 0x89a   :  { %v14865_v21 = vpop.eup %14864  ;;  %v3354_v63 = vsel %vm793_vm4, %v14863_v19, 0.0 }
 0x89b   :  { %3355 = vadd.xlane.f32.xlu1 %v3354_v63  ;;  %v3351_v22 = vsel %vm793_vm4, %v14865_v21, 0.0  ;;  %v14364_v63 = vpack.c.bf16 %v11834_v0, %v11833_v3 }
 0x89c   :  { %3352 = vadd.xlane.f32.xlu0 %v3351_v22 }
 0x89d   :  { %v14867_v23 = vpop.eup %14866 }
 0x89e   :  { %v14869_v18 = vpop.eup %14868  ;;  %v3360_v7 = vsel %vm793_vm4, %v14867_v23, 0.0 }
 0x89f   :  { %3361 = vadd.xlane.f32.xlu1 %v3360_v7  ;;  %v3357_v2 = vsel %vm793_vm4, %v14869_v18, 0.0 }
 0x8a0   :  { %3358 = vadd.xlane.f32.xlu0 %v3357_v2 }
 0x8a1   :  { %v14871_v24 = vpop.eup %14870 }
 0x8a2   :  { %v14873_v1 = vpop.eup %14872  ;;  %v3366_v25 = vsel %vm793_vm4, %v14871_v24, 0.0 }
 0x8a3   :  { %3367 = vadd.xlane.f32.xlu1 %v3366_v25  ;;  %v3363_v27 = vsel %vm793_vm4, %v14873_v1, 0.0  ;;  %v11822_v25 = vld [vmem:[%s17155_s5 + $0xb] ss:$0 sm:$0xff] }
 0x8a4   :  { %3364 = vadd.xlane.f32.xlu0 %v3363_v27 }
 0x920   :  { %v3350_v28 = vpop.xlane.xlu1 %3349 }
 0x921   :  { %14874 = vrcp.f32 %v3350_v28  ;;  %v3347_v30 = vpop.xlane.xlu0 %3346 }
 0x922   :  { %14876 = vrcp.f32 %v3347_v30 }
 0x928   :  { %v3356_v31 = vpop.xlane.xlu1 %3355 }
 0x929   :  { %14878 = vrcp.f32 %v3356_v31  ;;  %v3353_v32 = vpop.xlane.xlu0 %3352 }
 0x92a   :  { %14880 = vrcp.f32 %v3353_v32 }
 0x92b   :  { %v14875_v20 = vpop.eup %14874 }
 0x92c   :  { %v14877_v33 = vpop.eup %14876  ;;  %v3362_v35 = vpop.xlane.xlu1 %3361  ;;  %v3372_v49 = vmul.f32 %v14875_v20, %v14859_v6  ;;  %v14352_v6 = vpack.c.bf16 %v11819_v5, %v11818_v61 }
 0x92d   :  { %14882 = vrcp.f32 %v3362_v35  ;;  %v3359_v37 = vpop.xlane.xlu0 %3358  ;;  %v3370_v38 = vmul.f32 %v14877_v33, %v14861_v9  ;;  %v11821_v9 = vld [vmem:[%s17152_s2 + $0x78] sm:$0xff] }
 0x92e   :  { %14884 = vrcp.f32 %v3359_v37  ;;  %14353 = vmatprep.subr.bf16.mxu1 %v14352_v6  ;;  %v14356_v11 = vpack.c.bf16 %v11821_v9, %v11820_v8 }
 0x92f   :  { %13325 = vmatprep.mubr.msk.f32.mxu0 %vm793_vm4, %v3370_v38 }
 0x930   :  { %v3368_v40 = vpop.xlane.xlu1 %3367  ;;  %13326 = vmatmul.mubr.msk.f32.vlgmr.msra.gmra.mrb[62].mxu0 %vm793_vm4, %v3372_v49 }
 0x931   :  { %14886 = vrcp.f32 %v3368_v40  ;;  %14343 = vmatpush3.bf16.msra.mxu0 %v15691_v58  ;;  %v3365_v43 = vpop.xlane.xlu0 %3364 }
 0x932   :  { %14349 = vmatprep.subr.bf16.mxu0 %v15698_v10  ;;  %14888 = vrcp.f32 %v3365_v43 }
 0x933   :  { %v14879_v44 = vpop.eup %14878 }
 0x934   :  { %v14881_v45 = vpop.eup %14880  ;;  %v3376_v48 = vmul.f32 %v14879_v44, %v14863_v19 }
 0x935   :  { %v3374_v46 = vmul.f32 %v14881_v45, %v14865_v21 }
 0x937   :  { %v14883_v50 = vpop.eup %14882  ;;  %13332 = vmatprep.mubr.msk.f32.mxu0 %vm793_vm4, %v3374_v46 }
 0x938   :  { %v14885_v51 = vpop.eup %14884  ;;  %13333 = vmatmul.mubr.msk.f32.vlgmr.msra.gmra.mrb[64].mxu0 %vm793_vm4, %v3376_v48  ;;  %v3380_v54 = vmul.f32 %v14883_v50, %v14867_v23  ;;  %v11848_v48 = vld [vmem:[%s17155_s5 + $0x13] ss:$0 sm:$0xff] }
 0x939   :  { %14351 = vmatpush3.bf16.msra.mxu0 %v15698_v10  ;;  %v3378_v53 = vmul.f32 %v14885_v51, %v14869_v18  ;;  %v11809_v10 = vld [vmem:[%s17156_s3 + $0x10] sm:$0xff] }
 0x93a   :  { %13349 = vmatprep.subr.mxu0 %v11809_v10 }
 0x93b   :  { %v14887_v55 = vpop.eup %14886  ;;  %13339 = vmatprep.mubr.msk.f32.mxu1 %vm793_vm4, %v3378_v53 }
 0x93c   :  { %v14889_v58 = vpop.eup %14888  ;;  %13340 = vmatmul.mubr.msk.f32.vlgmr.msra.gmra.mrb[58].mxu1 %vm793_vm4, %v3380_v54  ;;  %v3384_v47 = vmul.f32 %v14887_v55, %v14871_v24 }
 0x93d   :  { %v3382_v56 = vmul.f32 %v14889_v58, %v14873_v1  ;;  %13371 = vmatprep.mubr.msk.f32.mxu1 %vm68_vm0, %v15180_v16  ;;  %14355 = vmatpush3.bf16.msra.mxu1 %v14352_v6  ;;  %v11835_v6 = vld [vmem:[%s17155_s5 + $0xf] ss:$0 sm:$0xff] }
 0x93e   :  { %14357 = vmatprep.subr.bf16.mxu1 %v14356_v11 }
 0x93f   :  { %13346 = vmatprep.mubr.msk.f32.mxu0 %vm793_vm4, %v3382_v56 }
 0x940   :  { %13347 = vmatmul.mubr.msk.f32.vlgmr.msra.gmra.mrb[66].mxu0 %vm793_vm4, %v3384_v47 }
 0x941   :  { %13350 = vmatpush3.msra.mxu0 %v11809_v10  ;;  %14359 = vmatpush3.bf16.msra.mxu1 %v14356_v11 }
 0x942   :  { %14361 = vmatprep.subr.bf16.mxu0 %v14360_v60  ;;  %14369 = vmatprep.subr.bf16.mxu1 %v14368_v15 }
 0x944   :  { %13372 = vmatmul.mubr.msk.f32.vlgmr.msra.gmra.mrb[60].mxu1 %vm68_vm0, %v15202_v26 }
 0x945   :  { %13374 = vmatprep.mubr.msk.f32.mxu1 %vm68_vm0, %v15209_v29  ;;  %14371 = vmatpush3.bf16.msra.mxu1 %v14368_v15 }
 0x946   :  { %14373 = vmatprep.subr.bf16.mxu1 %v14372_v4 }
 0x948   :  { %13375 = vmatmul.mubr.msk.f32.gmra.mrb[62].mxu1 %vm68_vm0, %v15219_v34 }
 0x949   :  { %13377 = vmatprep.mubr.msk.f32.mxu1 %vm68_vm0, %v15223_v36  ;;  %14375 = vmatpush3.bf16.msra.mxu1 %v14372_v4 }
 0x94c   :  { %13378 = vmatmul.mubr.msk.f32.gmra.mrb[64].mxu1 %vm68_vm0, %v15232_v39 }
 0x94d   :  { %13380 = vmatprep.mubr.msk.f32.mxu1 %vm68_vm0, %v15238_v41 }
 0x950   :  { %13381 = vmatmul.mubr.msk.f32.gmra.mrb[66].mxu1 %vm68_vm0, %v15244_v42 }
 0x951   :  { %13411 = vmatprep.mubr.msk.f32.mxu1 %vm68_vm0, %v15180_v16 }
 0x954   :  { %13412 = vmatmul.mubr.msk.f32.vlgmr.msra.gmra.mrb[68].mxu1 %vm68_vm0, %v15202_v26 }
 0x955   :  { %13414 = vmatprep.mubr.msk.f32.mxu1 %vm68_vm0, %v15209_v29 }
 0x958   :  { %13415 = vmatmul.mubr.msk.f32.gmra.mrb[70].mxu1 %vm68_vm0, %v15219_v34 }
 0x959   :  { %13417 = vmatprep.mubr.msk.f32.mxu1 %vm68_vm0, %v15223_v36 }
 0x95c   :  { %13418 = vmatmul.mubr.msk.f32.gmra.mrb[72].mxu1 %vm68_vm0, %v15232_v39 }
 0x95d   :  { %13420 = vmatprep.mubr.msk.f32.mxu1 %vm68_vm0, %v15238_v41 }
 0x960   :  { %13421 = vmatmul.mubr.msk.f32.gmra.mrb[74].mxu1 %vm68_vm0, %v15244_v42 }
 0xa03   :  { %v13327_v19 = vpop.f32.mrb[62].mxu0 }
 0xa04   :  { %v3457_v21 = vpop.f32.mrb[63].mxu0 }
 0xa05   :  { %13351 = vmatprep.mubr.msk.f32.mxu0 %vm428_vm1, %v3457_v21 }
 0xa06   :  { %13352 = vmatmul.mubr.msk.f32.vlgmr.msra.gmra.mrb[44].mxu0 %vm428_vm1, %v13327_v19 }
 0xa07   :  { %14363 = vmatpush3.bf16.msra.mxu0 %v14360_v60 }
 0xa08   :  { %14365 = vmatprep.subr.bf16.mxu0 %v14364_v63 }
 0xa0b   :  { %v13334_v22 = vpop.f32.mrb[64].mxu0  ;;  %14367 = vmatpush3.bf16.msra.mxu0 %v14364_v63 }
 0xa0c   :  { %v3538_v23 = vpop.f32.mrb[65].mxu0 }
 0xa0d   :  { %13354 = vmatprep.mubr.msk.f32.mxu0 %vm428_vm1, %v3538_v23 }
 0xa0e   :  { %13355 = vmatmul.mubr.msk.f32.gmra.mrb[46].mxu0 %vm428_vm1, %v13334_v22 }
 0xa0f   :  { %v13341_v18 = vpop.f32.mrb[58].mxu1 }
 0xa10   :  { %v3619_v7 = vpop.f32.mrb[59].mxu1 }
 0xa11   :  { %13357 = vmatprep.mubr.msk.f32.mxu0 %vm428_vm1, %v3619_v7 }
 0xa12   :  { %13358 = vmatmul.mubr.msk.f32.gmra.mrb[48].mxu0 %vm428_vm1, %v13341_v18 }
 0xa13   :  { %v13348_v2 = vpop.f32.mrb[66].mxu0 }
 0xa14   :  { %v3700_v24 = vpop.f32.mrb[67].mxu0 }
 0xa15   :  { %13360 = vmatprep.mubr.msk.f32.mxu0 %vm428_vm1, %v3700_v24 }
 0xa16   :  { %13361 = vmatmul.mubr.msk.f32.gmra.mrb[50].mxu0 %vm428_vm1, %v13348_v2 }
 0xa17   :  { %13391 = vmatprep.mubr.msk.f32.mxu0 %vm68_vm0, %v15180_v16  ;;  %v13373_v1 = vpop.f32.mrb[60].mxu1 }
 0xa18   :  { %v3930_v27 = vadd.f32 %v13373_v1, %v11822_v25  ;;  %v3924_v28 = vpop.f32.mrb[61].mxu1 }
 0xa19   :  { %v3925_v30 = vadd.f32 %v11822_v25, %v3924_v28 }
 0xa1a   :  { %13392 = vmatmul.mubr.msk.f32.vlgmr.msra.gmra.mrb[68].mxu0 %vm68_vm0, %v15202_v26 }
 0xa1b   :  { %13394 = vmatprep.mubr.msk.f32.mxu0 %vm68_vm0, %v15209_v29  ;;  %v13376_v31 = vpop.f32.mrb[62].mxu1 }
 0xa1c   :  { %v3940_v32 = vadd.f32 %v13376_v31, %v11822_v25  ;;  %v3934_v20 = vpop.f32.mrb[63].mxu1 }
 0xa1d   :  { %v3935_v33 = vadd.f32 %v11822_v25, %v3934_v20 }
 0xa1e   :  { %13395 = vmatmul.mubr.msk.f32.gmra.mrb[70].mxu0 %vm68_vm0, %v15219_v34 }
 0xa1f   :  { %13397 = vmatprep.mubr.msk.f32.mxu0 %vm68_vm0, %v15223_v36  ;;  %v13379_v35 = vpop.f32.mrb[64].mxu1  ;;  %13434 = vmatprep.mubr.msk.f32.mxu1 %vm428_vm1, %v3935_v33 }
 0xa20   :  { %v3950_v37 = vadd.f32 %v13379_v35, %v11822_v25  ;;  %v3944_v38 = vpop.f32.mrb[65].mxu1 }
 0xa21   :  { %v3945_v49 = vadd.f32 %v11822_v25, %v3944_v38 }
 0xa22   :  { %13398 = vmatmul.mubr.msk.f32.gmra.mrb[72].mxu0 %vm68_vm0, %v15232_v39 }
 0xa23   :  { %13400 = vmatprep.mubr.msk.f32.mxu0 %vm68_vm0, %v15238_v41  ;;  %v13382_v40 = vpop.f32.mrb[66].mxu1 }
 0xa24   :  { %v3960_v43 = vadd.f32 %v13382_v40, %v11822_v25  ;;  %v3954_v44 = vpop.f32.mrb[67].mxu1 }
 0xa25   :  { %v3955_v45 = vadd.f32 %v11822_v25, %v3954_v44 }
 0xa26   :  { %13401 = vmatmul.mubr.msk.f32.gmra.mrb[74].mxu0 %vm68_vm0, %v15244_v42 }
 0xa27   :  { %13427 = vmatprep.mubr.msk.f32.mxu0 %vm428_vm1, %v3925_v30  ;;  %v13413_v46 = vpop.f32.mrb[68].mxu1 }
 0xa28   :  { %v4160_v50 = vadd.f32 %v13413_v46, %v11848_v48  ;;  %v4154_v51 = vpop.f32.mrb[69].mxu1 }
 0xa29   :  { %v4155_v53 = vadd.f32 %v11848_v48, %v4154_v51 }
 0xa2b   :  { %v13416_v54 = vpop.f32.mrb[70].mxu1  ;;  %v14400_v56 = vpack.c.bf16 %v4160_v50, %v4155_v53 }
 0xa2c   :  { %v4170_v55 = vadd.f32 %v13416_v54, %v11848_v48  ;;  %v4164_v58 = vpop.f32.mrb[71].mxu1 }
 0xa2d   :  { %v4165_v47 = vadd.f32 %v11848_v48, %v4164_v58 }
 0xa2f   :  { %v14404_v10 = vpack.c.bf16 %v4170_v55, %v4165_v47  ;;  %v13419_v57 = vpop.f32.mrb[72].mxu1 }
 0xa30   :  { %v4180_v59 = vadd.f32 %v13419_v57, %v11848_v48  ;;  %v4174_v60 = vpop.f32.mrb[73].mxu1 }
 0xa31   :  { %v4175_v61 = vadd.f32 %v11848_v48, %v4174_v60 }
 0xa33   :  { %v15834_v5 = vpack.c.bf16 %v4180_v59, %v4175_v61  ;;  %v13422_v1 = vpop.f32.mrb[74].mxu1 }
 0xa34   :  { %v4190_v25 = vadd.f32 %v13422_v1, %v11848_v48 }
 0xaed   :  { %v13393_v8 = vpop.f32.mrb[68].mxu0 }
 0xaee   :  { %v4045_v9 = vadd.f32 %v13393_v8, %v11835_v6  ;;  %v4039_v11 = vpop.f32.mrb[69].mxu0 }
 0xaef   :  { %v4040_v12 = vadd.f32 %v11835_v6, %v4039_v11 }
 0xaf1   :  { %v14376_v13 = vpack.c.bf16 %v4045_v9, %v4040_v12  ;;  %v13396_v14 = vpop.f32.mrb[70].mxu0 }
 0xaf2   :  { %v4055_v15 = vadd.f32 %v13396_v14, %v11835_v6  ;;  %v4049_v17 = vpop.f32.mrb[71].mxu0 }
 0xaf3   :  { %v4050_v4 = vadd.f32 %v11835_v6, %v4049_v17  ;;  %14378 = vmatprep.subr.msk.bf16.mxu0 %vm15288_vm2, %v14376_v13 }
 0xaf4   :  { %14381 = vmatpush3.bf16.xpose.msk.msra.mxu0 %vm15288_vm2, %v14376_v13 }
 0xaf5   :  { %v14382_v3 = vpack.c.bf16 %v4055_v15, %v4050_v4  ;;  %v13399_v0 = vpop.f32.mrb[72].mxu0 }
 0xaf6   :  { %v4065_v19 = vadd.f32 %v13399_v0, %v11835_v6  ;;  %v4059_v21 = vpop.f32.mrb[73].mxu0 }
 0xaf7   :  { %v4060_v63 = vadd.f32 %v11835_v6, %v4059_v21  ;;  %14384 = vmatprep.subr.msk.bf16.mxu1 %vm15288_vm2, %v14382_v3 }
 0xaf8   :  { %14387 = vmatpush3.bf16.xpose.msk.msra.mxu1 %vm15288_vm2, %v14382_v3 }
 0xaf9   :  { %v14388_v22 = vpack.c.bf16 %v4065_v19, %v4060_v63  ;;  %v13402_v23 = vpop.f32.mrb[74].mxu0 }
 0xafa   :  { %v4075_v18 = vadd.f32 %v13402_v23, %v11835_v6  ;;  %v4069_v7 = vpop.f32.mrb[75].mxu0 }
 0xafb   :  { %v4070_v2 = vadd.f32 %v11835_v6, %v4069_v7  ;;  %13428 = vmatmul.mubr.msk.f32.vlgmr.msra.gmra.mrb[76].mxu0 %vm428_vm1, %v3930_v27  ;;  %14390 = vmatprep.subr.msk.bf16.mxu0 %vm15288_vm2, %v14388_v22  ;;  %v4184_v27 = vpop.f32.mrb[75].mxu1 }
 0xafc   :  { %14393 = vmatpush3.bf16.xpose.msk.msra.mxu0 %vm15288_vm2, %v14388_v22  ;;  %13441 = vmatprep.mubr.msk.f32.mxu0 %vm428_vm1, %v3945_v49  ;;  %v4185_v28 = vadd.f32 %v11848_v48, %v4184_v27 }
 0xafd   :  { %v14394_v24 = vpack.c.bf16 %v4075_v18, %v4070_v2  ;;  %14401 = vmatprep.subr.bf16.mxu0 %v14400_v56 }
 0xafe   :  { %v15862_v30 = vpack.c.bf16 %v4190_v25, %v4185_v28 }
 0xaff   :  { %13435 = vmatmul.mubr.msk.f32.vlgmr.msra.gmra.mrb[76].mxu1 %vm428_vm1, %v3940_v32  ;;  %14396 = vmatprep.subr.msk.bf16.mxu1 %vm15288_vm2, %v14394_v24 }
 0xb00   :  { %14399 = vmatpush3.bf16.xpose.msk.msra.mxu1 %vm15288_vm2, %v14394_v24  ;;  %13448 = vmatprep.mubr.msk.f32.mxu1 %vm428_vm1, %v3955_v45 }
 0xb01   :  { %14405 = vmatprep.subr.bf16.mxu1 %v14404_v10 }
 0xb03   :  { %13442 = vmatmul.mubr.msk.f32.vlgmr.msra.gmra.mrb[78].mxu0 %vm428_vm1, %v3950_v37 }
 0xb04   :  { %14403 = vmatpush3.bf16.msra.mxu0 %v14400_v56 }
 0xb05   :  { %14409 = vmatprep.subr.bf16.mxu0 %v15834_v5 }
 0xb07   :  { %13449 = vmatmul.mubr.msk.f32.vlgmr.msra.gmra.mrb[78].mxu1 %vm428_vm1, %v3960_v43 }
 0xb08   :  { %14407 = vmatpush3.bf16.msra.mxu1 %v14404_v10 }
 0xb09   :  { %14413 = vmatprep.subr.bf16.mxu1 %v15862_v30 }
 0xbce   :  { %v13429_v31 = vpop.f32.mrb[76].mxu0 }
 0xbcf   :  { %v4542_v32 = vmul.f32 0.35355338, %v13429_v31  ;;  %v4271_v20 = vpop.f32.mrb[77].mxu0 }
 0xbd0   :  { %v4541_v33 = vmul.f32 0.35355338, %v4271_v20 }
 0xbd1   :  { %v4550_v35 = vadd.f32 %v4542_v32, %v15325_v62 }
 0xbd2   :  { %v13436_v37 = vpop.f32.mrb[76].mxu1  ;;  %v4549_v38 = vadd.f32 %v4541_v33, %v15325_v62 }
 0xbd3   :  { %v4544_v49 = vmul.f32 0.35355338, %v13436_v37  ;;  %v4358_v40 = vpop.f32.mrb[77].mxu1  ;;  %v4560_v43 = vsel %vm793_vm4, %v4550_v35, -inf }
 0xbd4   :  { %v4543_v44 = vmul.f32 0.35355338, %v4358_v40  ;;  %4561 = vmax.xlane.f32.xlu1 %v4560_v43  ;;  %v4557_v45 = vsel %vm793_vm4, %v4549_v38, -inf }
 0xbd5   :  { %4558 = vmax.xlane.f32.xlu0 %v4557_v45  ;;  %v4552_v46 = vadd.f32 %v4544_v49, %v15325_v62 }
 0xbd6   :  { %v13443_v48 = vpop.f32.mrb[78].mxu0  ;;  %v4551_v50 = vadd.f32 %v4543_v44, %v15325_v62 }
 0xbd7   :  { %v4546_v51 = vmul.f32 0.35355338, %v13443_v48  ;;  %v4445_v53 = vpop.f32.mrb[79].mxu0  ;;  %v4566_v54 = vsel %vm793_vm4, %v4552_v46, -inf }
 0xbd8   :  { %v4545_v55 = vmul.f32 0.35355338, %v4445_v53  ;;  %4567 = vmax.xlane.f32.xlu1 %v4566_v54  ;;  %v4563_v58 = vsel %vm793_vm4, %v4551_v50, -inf }
 0xbd9   :  { %4564 = vmax.xlane.f32.xlu0 %v4563_v58  ;;  %v4554_v56 = vadd.f32 %v4546_v51, %v15325_v62 }
 0xbda   :  { %v13450_v47 = vpop.f32.mrb[78].mxu1  ;;  %v4553_v10 = vadd.f32 %v4545_v55, %v15325_v62 }
 0xbdb   :  { %v4548_v57 = vmul.f32 0.35355338, %v13450_v47  ;;  %v4532_v59 = vpop.f32.mrb[79].mxu1  ;;  %v4572_v60 = vsel %vm793_vm4, %v4554_v56, -inf }
 0xbdc   :  { %v4547_v61 = vmul.f32 0.35355338, %v4532_v59  ;;  %4573 = vmax.xlane.f32.xlu1 %v4572_v60  ;;  %v4569_v6 = vsel %vm793_vm4, %v4553_v10, -inf }
 0xbdd   :  { %4570 = vmax.xlane.f32.xlu0 %v4569_v6  ;;  %v4556_v8 = vadd.f32 %v4548_v57, %v15325_v62 }
 0xbde   :  { %v4555_v9 = vadd.f32 %v4547_v61, %v15325_v62 }
 0xbdf   :  { %v4578_v11 = vsel %vm793_vm4, %v4556_v8, -inf }
 0xbe0   :  { %4579 = vmax.xlane.f32.xlu1 %v4578_v11  ;;  %v4575_v12 = vsel %vm793_vm4, %v4555_v9, -inf }
 0xbe1   :  { %4576 = vmax.xlane.f32.xlu0 %v4575_v12 }
 0xc61   :  { %v4562_v13 = vpop.xlane.xlu1 %4561 }
 0xc62   :  { %v4582_v14 = vsub.f32 %v4550_v35, %v4562_v13  ;;  %v4559_v15 = vpop.xlane.xlu0 %4558 }
 0xc63   :  { %v4581_v17 = vsub.f32 %v4549_v38, %v4559_v15 }
 0xc64   :  { %v4591_v4 = vmul.f32 1.442695, %v4582_v14 }
 0xc65   :  { %v4589_v3 = vmul.f32 1.442695, %v4581_v17  ;;  %v4568_v0 = vpop.xlane.xlu1 %4567 }
 0xc66   :  { %14890 = vpow2.f32 %v4591_v4  ;;  %v4584_v19 = vsub.f32 %v4552_v46, %v4568_v0  ;;  %v4565_v21 = vpop.xlane.xlu0 %4564 }
 0xc67   :  { %14892 = vpow2.f32 %v4589_v3  ;;  %v4583_v63 = vsub.f32 %v4551_v50, %v4565_v21 }
 0xc68   :  { %v4595_v22 = vmul.f32 1.442695, %v4584_v19 }
 0xc69   :  { %v4593_v23 = vmul.f32 1.442695, %v4583_v63  ;;  %v4574_v18 = vpop.xlane.xlu1 %4573 }
 0xc6a   :  { %14894 = vpow2.f32 %v4595_v22  ;;  %v4586_v7 = vsub.f32 %v4554_v56, %v4574_v18  ;;  %v4571_v2 = vpop.xlane.xlu0 %4570 }
 0xc6b   :  { %14896 = vpow2.f32 %v4593_v23  ;;  %v4585_v24 = vsub.f32 %v4553_v10, %v4571_v2  ;;  %v11881_v23 = vld [vmem:[%s17156_s3 + $0x18] sm:$0xff] }
 0xc6c   :  { %v4599_v1 = vmul.f32 1.442695, %v4586_v7 }
 0xc6d   :  { %v4597_v25 = vmul.f32 1.442695, %v4585_v24  ;;  %v4580_v27 = vpop.xlane.xlu1 %4579 }
 0xc6e   :  { %14898 = vpow2.f32 %v4599_v1  ;;  %v4588_v28 = vsub.f32 %v4556_v8, %v4580_v27  ;;  %v4577_v31 = vpop.xlane.xlu0 %4576 }
 0xc6f   :  { %14900 = vpow2.f32 %v4597_v25  ;;  %v4587_v32 = vsub.f32 %v4555_v9, %v4577_v31 }
 0xc70   :  { %v14891_v20 = vpop.eup %14890  ;;  %v4603_v33 = vmul.f32 1.442695, %v4588_v28  ;;  %v11890_v28 = vld [vmem:[%s17155_s5 + $0x4] ss:$0 sm:$0xff] }
 0xc71   :  { %v14893_v35 = vpop.eup %14892  ;;  %v4601_v37 = vmul.f32 1.442695, %v4587_v32  ;;  %v4608_v38 = vsel %vm793_vm4, %v14891_v20, 0.0 }
 0xc72   :  { %14902 = vpow2.f32 %v4603_v33  ;;  %4609 = vadd.xlane.f32.xlu1 %v4608_v38  ;;  %v4605_v49 = vsel %vm793_vm4, %v14893_v35, 0.0 }
 0xc73   :  { %14904 = vpow2.f32 %v4601_v37  ;;  %4606 = vadd.xlane.f32.xlu0 %v4605_v49 }
 0xc74   :  { %v14895_v40 = vpop.eup %14894 }
 0xc75   :  { %v14897_v43 = vpop.eup %14896  ;;  %v4614_v44 = vsel %vm793_vm4, %v14895_v40, 0.0 }
 0xc76   :  { %4615 = vadd.xlane.f32.xlu1 %v4614_v44  ;;  %v4611_v45 = vsel %vm793_vm4, %v14897_v43, 0.0 }
 0xc77   :  { %4612 = vadd.xlane.f32.xlu0 %v4611_v45 }
 0xc78   :  { %v14899_v46 = vpop.eup %14898 }
 0xc79   :  { %v14901_v48 = vpop.eup %14900  ;;  %v4620_v50 = vsel %vm793_vm4, %v14899_v46, 0.0 }
 0xc7a   :  { %4621 = vadd.xlane.f32.xlu1 %v4620_v50  ;;  %v4617_v51 = vsel %vm793_vm4, %v14901_v48, 0.0 }
 0xc7b   :  { %4618 = vadd.xlane.f32.xlu0 %v4617_v51 }
 0xc7c   :  { %v14903_v53 = vpop.eup %14902 }
 0xc7d   :  { %v14905_v54 = vpop.eup %14904  ;;  %v4626_v55 = vsel %vm793_vm4, %v14903_v53, 0.0 }
 0xc7e   :  { %4627 = vadd.xlane.f32.xlu1 %v4626_v55  ;;  %v4623_v58 = vsel %vm793_vm4, %v14905_v54, 0.0 }
 0xc7f   :  { %4624 = vadd.xlane.f32.xlu0 %v4623_v58 }
 0xcff   :  { %v4610_v56 = vpop.xlane.xlu1 %4609 }
 0xd00   :  { %14906 = vrcp.f32 %v4610_v56  ;;  %v4607_v47 = vpop.xlane.xlu0 %4606 }
 0xd01   :  { %14908 = vrcp.f32 %v4607_v47 }
 0xd03   :  { %v4616_v10 = vpop.xlane.xlu1 %4615 }
 0xd04   :  { %14910 = vrcp.f32 %v4616_v10  ;;  %v4613_v57 = vpop.xlane.xlu0 %4612 }
 0xd05   :  { %14912 = vrcp.f32 %v4613_v57 }
 0xd07   :  { %v4622_v59 = vpop.xlane.xlu1 %4621 }
 0xd08   :  { %14914 = vrcp.f32 %v4622_v59  ;;  %v4619_v60 = vpop.xlane.xlu0 %4618 }
 0xd09   :  { %14916 = vrcp.f32 %v4619_v60 }
 0xd0a   :  { %v14907_v61 = vpop.eup %14906 }
 0xd0b   :  { %v14909_v6 = vpop.eup %14908  ;;  %v4628_v8 = vpop.xlane.xlu1 %4627  ;;  %v4632_v12 = vmul.f32 %v14907_v61, %v14891_v20 }
 0xd0c   :  { %14918 = vrcp.f32 %v4628_v8  ;;  %v4625_v9 = vpop.xlane.xlu0 %4624  ;;  %v4630_v11 = vmul.f32 %v14909_v6, %v14893_v35 }
 0xd0d   :  { %14920 = vrcp.f32 %v4625_v9 }
 0xd0e   :  { %v14911_v13 = vpop.eup %14910  ;;  %13455 = vmatprep.mubr.msk.f32.mxu0 %vm793_vm4, %v4630_v11 }
 0xd0f   :  { %v14913_v14 = vpop.eup %14912  ;;  %13456 = vmatmul.mubr.msk.f32.vlgmr.msra.gmra.mrb[80].mxu0 %vm793_vm4, %v4632_v12  ;;  %v4636_v17 = vmul.f32 %v14911_v13, %v14895_v40 }
 0xd10   :  { %14411 = vmatpush3.bf16.msra.mxu0 %v15834_v5  ;;  %v4634_v15 = vmul.f32 %v14913_v14, %v14897_v43 }
 0xd11   :  { %13479 = vmatprep.subr.mxu0 %v11881_v23 }
 0xd12   :  { %v14915_v4 = vpop.eup %14914  ;;  %13462 = vmatprep.mubr.msk.f32.mxu1 %vm793_vm4, %v4634_v15 }
 0xd13   :  { %v14917_v3 = vpop.eup %14916  ;;  %13463 = vmatmul.mubr.msk.f32.vlgmr.msra.gmra.mrb[80].mxu1 %vm793_vm4, %v4636_v17  ;;  %v4640_v19 = vmul.f32 %v14915_v4, %v14899_v46 }
 0xd14   :  { %14415 = vmatpush3.bf16.msra.mxu1 %v15862_v30  ;;  %v4638_v0 = vmul.f32 %v14917_v3, %v14901_v48 }
 0xd16   :  { %v14919_v21 = vpop.eup %14918  ;;  %13469 = vmatprep.mubr.msk.f32.mxu0 %vm793_vm4, %v4638_v0 }
 0xd17   :  { %v14921_v63 = vpop.eup %14920  ;;  %13470 = vmatmul.mubr.msk.f32.vlgmr.msra.gmra.mrb[82].mxu0 %vm793_vm4, %v4640_v19  ;;  %v4644_v5 = vmul.f32 %v14919_v21, %v14903_v53 }
 0xd18   :  { %v4642_v22 = vmul.f32 %v14921_v63, %v14905_v54  ;;  %13480 = vmatpush3.msra.mxu0 %v11881_v23 }
 0xd1a   :  { %13476 = vmatprep.mubr.msk.f32.mxu1 %vm793_vm4, %v4642_v22 }
 0xd1b   :  { %13477 = vmatmul.mubr.msk.f32.vlgmr.msra.gmra.mrb[82].mxu1 %vm793_vm4, %v4644_v5 }
 0xde2   :  { %v13457_v30 = vpop.f32.mrb[80].mxu0 }
 0xde3   :  { %v4717_v18 = vpop.f32.mrb[81].mxu0 }
 0xde4   :  { %13481 = vmatprep.mubr.msk.f32.mxu0 %vm428_vm1, %v4717_v18 }
 0xde5   :  { %13482 = vmatmul.mubr.msk.f32.vlgmr.msra.gmra.mrb[44].mxu0 %vm428_vm1, %v13457_v30 }
 0xde6   :  { %v13464_v7 = vpop.f32.mrb[80].mxu1 }
 0xde7   :  { %v4798_v2 = vpop.f32.mrb[81].mxu1 }
 0xde8   :  { %13484 = vmatprep.mubr.msk.f32.mxu0 %vm428_vm1, %v4798_v2 }
 0xde9   :  { %13485 = vmatmul.mubr.msk.f32.gmra.mrb[46].mxu0 %vm428_vm1, %v13464_v7 }
 0xdea   :  { %v13471_v24 = vpop.f32.mrb[82].mxu0 }
 0xdeb   :  { %v4879_v1 = vpop.f32.mrb[83].mxu0 }
 0xdec   :  { %13487 = vmatprep.mubr.msk.f32.mxu0 %vm428_vm1, %v4879_v1 }
 0xded   :  { %13488 = vmatmul.mubr.msk.f32.gmra.mrb[48].mxu0 %vm428_vm1, %v13471_v24 }
 0xdee   :  { %v13478_v25 = vpop.f32.mrb[82].mxu1 }
 0xdef   :  { %v4960_v27 = vpop.f32.mrb[83].mxu1 }
 0xdf0   :  { %13490 = vmatprep.mubr.msk.f32.mxu0 %vm428_vm1, %v4960_v27 }
 0xdf1   :  { %13491 = vmatmul.mubr.msk.f32.gmra.mrb[50].mxu0 %vm428_vm1, %v13478_v25 }
 0xeb8   :  { %v13483_v31 = vpop.f32.mrb[44].mxu0 }
 0xeb9   :  { %v5114_v32 = vadd.f32 %v13483_v31, %v11890_v28  ;;  %v5061_v20 = vpop.f32.mrb[45].mxu0 }
 0xeba   :  { %v5113_v33 = vadd.f32 %v11890_v28, %v5061_v20 }
 0xebb   :  { %v15914_v35 = vadd.f32 %v5114_v32, %v15202_v26 }
 0xebc   :  { %v15917_v37 = vadd.f32 %v5113_v33, %v15180_v16  ;;  %v13486_v38 = vpop.f32.mrb[46].mxu0 }
 0xebd   :  { %v5116_v49 = vadd.f32 %v13486_v38, %v11890_v28  ;;  %v5071_v40 = vpop.f32.mrb[47].mxu0  ;;  %v5134_v43 = vsel %vm68_vm0, %v15914_v35, 0.0 }
 0xebe   :  { %v5115_v44 = vadd.f32 %v11890_v28, %v5071_v40  ;;  %5135 = vadd.xlane.f32.xlu1 %v5134_v43  ;;  %v5131_v45 = vsel %vm68_vm0, %v15917_v37, 0.0 }
 0xebf   :  { %v15924_v46 = vadd.f32 %v5116_v49, %v15219_v34  ;;  %5132 = vadd.xlane.f32.xlu0 %v5131_v45 }
 0xec0   :  { %v15927_v26 = vadd.f32 %v5115_v44, %v15209_v29  ;;  %v13489_v16 = vpop.f32.mrb[48].mxu0 }
 0xec1   :  { %v5118_v48 = vadd.f32 %v13489_v16, %v11890_v28  ;;  %v5081_v50 = vpop.f32.mrb[49].mxu0  ;;  %v5140_v51 = vsel %vm68_vm0, %v15924_v46, 0.0  ;;  %v5260_v16 = vld [vmem:[%s17157_s4] sm:$0xff] }
 0xec2   :  { %v5117_v53 = vadd.f32 %v11890_v28, %v5081_v50  ;;  %5141 = vadd.xlane.f32.xlu1 %v5140_v51  ;;  %v5137_v54 = vsel %vm68_vm0, %v15927_v26, 0.0  ;;  %v11902_v50 = vld [vmem:[%s17157_s4 + $0x40] sm:$0xff] }
 0xec3   :  { %v15934_v55 = vadd.f32 %v5118_v48, %v15232_v39  ;;  %5138 = vadd.xlane.f32.xlu0 %v5137_v54  ;;  %v5261_v48 = vld [vmem:[%s17157_s4 + $0x8] sm:$0xff] }
 0xec4   :  { %v15937_v34 = vadd.f32 %v5117_v53, %v15223_v36  ;;  %v13492_v29 = vpop.f32.mrb[50].mxu0  ;;  %v14416_v51 = vpack.c.bf16 %v5261_v48, %v5260_v16  ;;  %v11903_v53 = vld [vmem:[%s17157_s4 + $0x48] sm:$0xff] }
 0xec5   :  { %v5120_v58 = vadd.f32 %v13492_v29, %v11890_v28  ;;  %v5091_v56 = vpop.f32.mrb[51].mxu0  ;;  %v5146_v47 = vsel %vm68_vm0, %v15934_v55, 0.0  ;;  %v14424_v54 = vpack.c.bf16 %v11903_v53, %v11902_v50  ;;  %v5262_v29 = vld [vmem:[%s17157_s4 + $0x10] sm:$0xff] }
 0xec6   :  { %v5119_v10 = vadd.f32 %v11890_v28, %v5091_v56  ;;  %5147 = vadd.xlane.f32.xlu1 %v5146_v47  ;;  %v5143_v57 = vsel %vm68_vm0, %v15937_v34, 0.0  ;;  %14417 = vmatprep.subr.bf16.mxu1 %v14416_v51  ;;  %v11904_v56 = vld [vmem:[%s17157_s4 + $0x50] sm:$0xff] }
 0xec7   :  { %v15944_v59 = vadd.f32 %v5120_v58, %v15244_v42  ;;  %5144 = vadd.xlane.f32.xlu0 %v5143_v57  ;;  %14425 = vmatprep.subr.bf16.mxu0 %v14424_v54  ;;  %v5263_v58 = vld [vmem:[%s17157_s4 + $0x18] sm:$0xff]  ;;  %v11917_v50 = vld [vmem:[%s17157_s4 + $0x90] sm:$0xff] }
 0xec8   :  { %v15947_v39 = vadd.f32 %v5119_v10, %v15238_v41  ;;  %14419 = vmatpush3.bf16.msra.mxu1 %v14416_v51  ;;  %14427 = vmatpush3.bf16.msra.mxu0 %v14424_v54  ;;  %v14420_v47 = vpack.c.bf16 %v5263_v58, %v5262_v29  ;;  %v11905_v10 = vld [vmem:[%s17157_s4 + $0x58] sm:$0xff] }
 0xec9   :  { %v5152_v36 = vsel %vm68_vm0, %v15944_v59, 0.0  ;;  %v14428_v57 = vpack.c.bf16 %v11905_v10, %v11904_v56 }
 0xeca   :  { %5153 = vadd.xlane.f32.xlu1 %v5152_v36  ;;  %v5149_v60 = vsel %vm68_vm0, %v15947_v39, 0.0  ;;  %14421 = vmatprep.subr.bf16.mxu1 %v14420_v47  ;;  %v11915_v36 = vld [vmem:[%s17157_s4 + $0x80] sm:$0xff] }
 0xecb   :  { %5150 = vadd.xlane.f32.xlu0 %v5149_v60  ;;  %14429 = vmatprep.subr.bf16.mxu0 %v14428_v57  ;;  %v11916_v60 = vld [vmem:[%s17157_s4 + $0x88] sm:$0xff] }
 0xecc   :  { %14423 = vmatpush3.bf16.msra.mxu1 %v14420_v47  ;;  %14431 = vmatpush3.bf16.msra.mxu0 %v14428_v57 }
 0xf4b   :  { %v5136_v61 = vpop.xlane.xlu1 %5135 }
 0xf4c   :  { %v5157_v6 = vmul.f32 0.03125, %v5136_v61  ;;  %v5133_v8 = vpop.xlane.xlu0 %5132  ;;  %v14432_v61 = vpack.c.bf16 %v11916_v60, %v11915_v36 }
 0xf4d   :  { %v5156_v9 = vmul.f32 0.03125, %v5133_v8 }
 0xf4e   :  { %v15954_v11 = vsub.f32 %v15914_v35, %v5157_v6  ;;  %14433 = vmatprep.subr.bf16.mxu1 %v14432_v61 }
 0xf4f   :  { %v15957_v42 = vsub.f32 %v15917_v37, %v5156_v9  ;;  %v5142_v41 = vpop.xlane.xlu1 %5141 }
 0xf50   :  { %v5159_v12 = vmul.f32 0.03125, %v5142_v41  ;;  %v5139_v13 = vpop.xlane.xlu0 %5138  ;;  %v5173_v14 = vmul.f32 %v15954_v11, %v15954_v11 }
 0xf51   :  { %v5158_v15 = vmul.f32 0.03125, %v5139_v13  ;;  %v5172_v17 = vmul.f32 %v15957_v42, %v15957_v42 }
 0xf52   :  { %v15964_v4 = vsub.f32 %v15924_v46, %v5159_v12  ;;  %v5183_v3 = vsel %vm68_vm0, %v5173_v14, 0.0 }
 0xf53   :  { %v15968_v0 = vsub.f32 %v15927_v26, %v5158_v15  ;;  %v5148_v19 = vpop.xlane.xlu1 %5147  ;;  %5184 = vadd.xlane.f32.xlu1 %v5183_v3  ;;  %v5180_v21 = vsel %vm68_vm0, %v5172_v17, 0.0 }
 0xf54   :  { %v5161_v63 = vmul.f32 0.03125, %v5148_v19  ;;  %5181 = vadd.xlane.f32.xlu0 %v5180_v21  ;;  %v5145_v22 = vpop.xlane.xlu0 %5144  ;;  %v5175_v5 = vmul.f32 %v15964_v4, %v15964_v4 }
 0xf55   :  { %v5160_v23 = vmul.f32 0.03125, %v5145_v22  ;;  %v5174_v30 = vmul.f32 %v15968_v0, %v15968_v0 }
 0xf56   :  { %v15976_v18 = vsub.f32 %v15934_v55, %v5161_v63  ;;  %v5189_v7 = vsel %vm68_vm0, %v5175_v5, 0.0 }
 0xf57   :  { %v15980_v2 = vsub.f32 %v15937_v34, %v5160_v23  ;;  %5190 = vadd.xlane.f32.xlu1 %v5189_v7  ;;  %v5154_v24 = vpop.xlane.xlu1 %5153  ;;  %v5186_v1 = vsel %vm68_vm0, %v5174_v30, 0.0 }
 0xf58   :  { %v5163_v25 = vmul.f32 0.03125, %v5154_v24  ;;  %5187 = vadd.xlane.f32.xlu0 %v5186_v1  ;;  %v5151_v27 = vpop.xlane.xlu0 %5150  ;;  %v5177_v28 = vmul.f32 %v15976_v18, %v15976_v18 }
 0xf59   :  { %v5162_v31 = vmul.f32 0.03125, %v5151_v27  ;;  %v5176_v32 = vmul.f32 %v15980_v2, %v15980_v2 }
 0xf5a   :  { %v15988_v20 = vsub.f32 %v15944_v59, %v5163_v25  ;;  %v5195_v33 = vsel %vm68_vm0, %v5177_v28, 0.0 }
 0xf5b   :  { %v15992_v38 = vsub.f32 %v15947_v39, %v5162_v31  ;;  %5196 = vadd.xlane.f32.xlu1 %v5195_v33  ;;  %v5192_v49 = vsel %vm68_vm0, %v5176_v32, 0.0  ;;  %v11891_v32 = vld [vmem:[%s17155_s5 + $0x2] ss:$0 sm:$0xff] }
 0xf5c   :  { %5193 = vadd.xlane.f32.xlu0 %v5192_v49  ;;  %v5179_v40 = vmul.f32 %v15988_v20, %v15988_v20 }
 0xf5d   :  { %v5178_v43 = vmul.f32 %v15992_v38, %v15992_v38 }
 0xf5e   :  { %v5201_v44 = vsel %vm68_vm0, %v5179_v40, 0.0 }
 0xf5f   :  { %5202 = vadd.xlane.f32.xlu1 %v5201_v44  ;;  %v5198_v45 = vsel %vm68_vm0, %v5178_v43, 0.0  ;;  %v11892_v44 = vld [vmem:[%s17155_s5 + $0x3] ss:$0 sm:$0xff] }
 0xf60   :  { %5199 = vadd.xlane.f32.xlu0 %v5198_v45 }
 0xfe0   :  { %v5185_v6 = vpop.xlane.xlu1 %5184 }
 0xfe1   :  { %v5205_v8 = vmul.f32 0.03125, %v5185_v6  ;;  %v5182_v9 = vpop.xlane.xlu0 %5181 }
 0xfe2   :  { %v5204_v41 = vmul.f32 0.03125, %v5182_v9 }
 0xfe3   :  { %v5213_v12 = vadd.f32 1e-05, %v5205_v8 }
 0xfe4   :  { %v5212_v13 = vadd.f32 1e-05, %v5204_v41  ;;  %v5191_v14 = vpop.xlane.xlu1 %5190 }
 0xfe5   :  { %14922 = vrsqrt.f32 %v5213_v12  ;;  %v5207_v15 = vmul.f32 0.03125, %v5191_v14  ;;  %v5188_v17 = vpop.xlane.xlu0 %5187 }
 0xfe6   :  { %14924 = vrsqrt.f32 %v5212_v13  ;;  %v5206_v3 = vmul.f32 0.03125, %v5188_v17 }
 0xfe7   :  { %v5215_v19 = vadd.f32 1e-05, %v5207_v15 }
 0xfe8   :  { %v5214_v21 = vadd.f32 1e-05, %v5206_v3  ;;  %v5197_v63 = vpop.xlane.xlu1 %5196 }
 0xfe9   :  { %14926 = vrsqrt.f32 %v5215_v19  ;;  %v5209_v22 = vmul.f32 0.03125, %v5197_v63  ;;  %v5194_v5 = vpop.xlane.xlu0 %5193  ;;  %v11921_v19 = vld [vmem:[%s17157_s4 + $0xb0] sm:$0xff] }
 0xfea   :  { %14928 = vrsqrt.f32 %v5214_v21  ;;  %v5208_v23 = vmul.f32 0.03125, %v5194_v5  ;;  %v11922_v21 = vld [vmem:[%s17157_s4 + $0xb8] sm:$0xff] }
 0xfeb   :  { %v5217_v30 = vadd.f32 1e-05, %v5209_v22  ;;  %v14444_v63 = vpack.c.bf16 %v11922_v21, %v11921_v19  ;;  %v11906_v22 = vld [vmem:[%s17155_s5 + $0x7] ss:$0 sm:$0xff] }
 0xfec   :  { %v5216_v7 = vadd.f32 1e-05, %v5208_v23  ;;  %v5203_v24 = vpop.xlane.xlu1 %5202  ;;  %v11893_v23 = vld [vmem:[%s17155_s5 + $0x6] ss:$0 sm:$0xff] }
 0xfed   :  { %14930 = vrsqrt.f32 %v5217_v30  ;;  %v5211_v1 = vmul.f32 0.03125, %v5203_v24  ;;  %v5200_v25 = vpop.xlane.xlu0 %5199 }
 0xfee   :  { %14932 = vrsqrt.f32 %v5216_v7  ;;  %v5210_v27 = vmul.f32 0.03125, %v5200_v25 }
 0xfef   :  { %v14923_v28 = vpop.eup %14922  ;;  %v5219_v31 = vadd.f32 1e-05, %v5211_v1 }
 0xff0   :  { %v14925_v33 = vpop.eup %14924  ;;  %v5229_v49 = vmul.f32 %v14923_v28, %v15954_v11  ;;  %v5218_v40 = vadd.f32 1e-05, %v5210_v27  ;;  %v11918_v11 = vld [vmem:[%s17157_s4 + $0x98] sm:$0xff] }
 0xff1   :  { %14934 = vrsqrt.f32 %v5219_v31  ;;  %v5228_v43 = vmul.f32 %v14925_v33, %v15957_v42  ;;  %v14436_v56 = vpack.c.bf16 %v11918_v11, %v11917_v50 }
 0xff2   :  { %14936 = vrsqrt.f32 %v5218_v40  ;;  %v5241_v45 = vmul.f32 %v11891_v32, %v5229_v49 }
 0xff3   :  { %v14927_v16 = vpop.eup %14926  ;;  %v5240_v48 = vmul.f32 %v11891_v32, %v5228_v43 }
 0xff4   :  { %v14929_v51 = vpop.eup %14928  ;;  %v5231_v53 = vmul.f32 %v14927_v16, %v15964_v4  ;;  %v5253_v29 = vadd.f32 %v11892_v44, %v5241_v45 }
 0xff5   :  { %v5252_v42 = vadd.f32 %v11892_v44, %v5240_v48  ;;  %v5230_v54 = vmul.f32 %v14929_v51, %v15968_v0 }
 0xff6   :  { %v5243_v58 = vmul.f32 %v11891_v32, %v5231_v53 }
 0xff7   :  { %v14931_v47 = vpop.eup %14930  ;;  %13501 = vmatprep.mubr.msk.f32.mxu1 %vm68_vm0, %v5252_v42  ;;  %13521 = vmatprep.mubr.msk.f32.mxu0 %vm68_vm0, %v5252_v42  ;;  %v5242_v10 = vmul.f32 %v11891_v32, %v5230_v54 }
 0xff8   :  { %v14933_v57 = vpop.eup %14932  ;;  %13502 = vmatmul.mubr.msk.f32.vlgmr.msra.gmra.mrb[84].mxu1 %vm68_vm0, %v5253_v29  ;;  %13522 = vmatmul.mubr.msk.f32.vlgmr.msra.gmra.mrb[84].mxu0 %vm68_vm0, %v5253_v29  ;;  %v5233_v36 = vmul.f32 %v14931_v47, %v15976_v18  ;;  %v5255_v0 = vadd.f32 %v11892_v44, %v5243_v58 }
 0xff9   :  { %v5254_v4 = vadd.f32 %v11892_v44, %v5242_v10  ;;  %v5232_v60 = vmul.f32 %v14933_v57, %v15980_v2  ;;  %14435 = vmatpush3.bf16.msra.mxu1 %v14432_v61 }
 0xffa   :  { %v5245_v6 = vmul.f32 %v11891_v32, %v5233_v36  ;;  %14437 = vmatprep.subr.bf16.mxu1 %v14436_v56 }
 0xffb   :  { %v14935_v8 = vpop.eup %14934  ;;  %13504 = vmatprep.mubr.msk.f32.mxu1 %vm68_vm0, %v5254_v4  ;;  %13524 = vmatprep.mubr.msk.f32.mxu0 %vm68_vm0, %v5254_v4  ;;  %v5244_v9 = vmul.f32 %v11891_v32, %v5232_v60 }
 0xffc   :  { %v14937_v41 = vpop.eup %14936  ;;  %13505 = vmatmul.mubr.msk.f32.gmra.mrb[86].mxu1 %vm68_vm0, %v5255_v0  ;;  %13525 = vmatmul.mubr.msk.f32.gmra.mrb[86].mxu0 %vm68_vm0, %v5255_v0  ;;  %v5235_v18 = vmul.f32 %v14935_v8, %v15988_v20  ;;  %v5257_v61 = vadd.f32 %v11892_v44, %v5245_v6  ;;  %v11919_v20 = vld [vmem:[%s17157_s4 + $0xa0] sm:$0xff] }
 0xffd   :  { %v5256_v12 = vadd.f32 %v11892_v44, %v5244_v9  ;;  %v5234_v2 = vmul.f32 %v14937_v41, %v15992_v38  ;;  %14439 = vmatpush3.bf16.msra.mxu1 %v14436_v56  ;;  %v11920_v38 = vld [vmem:[%s17157_s4 + $0xa8] sm:$0xff] }
 0xffe   :  { %v5247_v13 = vmul.f32 %v11891_v32, %v5235_v18  ;;  %v14440_v3 = vpack.c.bf16 %v11920_v38, %v11919_v20 }
 0xfff   :  { %13507 = vmatprep.mubr.msk.f32.mxu1 %vm68_vm0, %v5256_v12  ;;  %13527 = vmatprep.mubr.msk.f32.mxu0 %vm68_vm0, %v5256_v12  ;;  %v5246_v14 = vmul.f32 %v11891_v32, %v5234_v2 }
0x1000   :  { %13508 = vmatmul.mubr.msk.f32.gmra.mrb[88].mxu1 %vm68_vm0, %v5257_v61  ;;  %13528 = vmatmul.mubr.msk.f32.gmra.mrb[88].mxu0 %vm68_vm0, %v5257_v61  ;;  %v5259_v17 = vadd.f32 %v11892_v44, %v5247_v13 }
0x1001   :  { %v5258_v15 = vadd.f32 %v11892_v44, %v5246_v14  ;;  %14441 = vmatprep.subr.bf16.mxu1 %v14440_v3 }
0x1002   :  { %14443 = vmatpush3.bf16.msra.mxu1 %v14440_v3  ;;  %v11923_v3 = vld [vmem:[%s17155_s5 + $0x5] ss:$0 sm:$0xff] }
0x1003   :  { %13510 = vmatprep.mubr.msk.f32.mxu1 %vm68_vm0, %v5258_v15  ;;  %13530 = vmatprep.mubr.msk.f32.mxu0 %vm68_vm0, %v5258_v15 }
0x1004   :  { %13511 = vmatmul.mubr.msk.f32.gmra.mrb[90].mxu1 %vm68_vm0, %v5259_v17  ;;  %13531 = vmatmul.mubr.msk.f32.gmra.mrb[90].mxu0 %vm68_vm0, %v5259_v17 }
0x1005   :  { %14445 = vmatprep.subr.bf16.mxu1 %v14444_v63 }
0x1006   :  { %14447 = vmatpush3.bf16.msra.mxu1 %v14444_v63 }
0x10cb   :  { %v13503_v5 = vpop.f32.mrb[84].mxu1  ;;  %v13523_v30 = vpop.f32.mrb[84].mxu0 }
0x10cc   :  { %v5480_v7 = vadd.f32 %v13523_v30, %v11906_v22  ;;  %v5359_v24 = vpop.f32.mrb[85].mxu1  ;;  %v5474_v1 = vpop.f32.mrb[85].mxu0  ;;  %v5365_v27 = vadd.f32 %v13503_v5, %v11893_v23 }
0x10cd   :  { %v5475_v25 = vadd.f32 %v11906_v22, %v5474_v1  ;;  %v5360_v31 = vadd.f32 %v11893_v23, %v5359_v24 }
0x10ce   :  { %v5514_v28 = vmax.f32 %v5480_v7, 0.0 }
0x10cf   :  { %v5513_v32 = vmax.f32 %v5475_v25, 0.0  ;;  %v13506_v33 = vpop.f32.mrb[86].mxu1  ;;  %v13526_v49 = vpop.f32.mrb[86].mxu0 }
0x10d0   :  { %v5522_v40 = vmul.f32 %v5514_v28, %v5365_v27  ;;  %v5490_v43 = vadd.f32 %v13526_v49, %v11906_v22  ;;  %v5369_v44 = vpop.f32.mrb[87].mxu1  ;;  %v5484_v45 = vpop.f32.mrb[87].mxu0  ;;  %v5375_v50 = vadd.f32 %v13506_v33, %v11893_v23 }
0x10d1   :  { %v5521_v16 = vmul.f32 %v5513_v32, %v5360_v31  ;;  %v5485_v48 = vadd.f32 %v11906_v22, %v5484_v45  ;;  %v5370_v51 = vadd.f32 %v11893_v23, %v5369_v44 }
0x10d2   :  { %v5516_v11 = vmax.f32 %v5490_v43, 0.0 }
0x10d3   :  { %v5515_v53 = vmax.f32 %v5485_v48, 0.0  ;;  %v13509_v42 = vpop.f32.mrb[88].mxu1  ;;  %v13529_v54 = vpop.f32.mrb[88].mxu0  ;;  %13549 = vmatprep.mubr.msk.f32.mxu1 %vm5543_vm5, %v5521_v16 }
0x10d4   :  { %v5524_v29 = vmul.f32 %v5516_v11, %v5375_v50  ;;  %v5500_v58 = vadd.f32 %v13529_v54, %v11906_v22  ;;  %v5379_v56 = vpop.f32.mrb[89].mxu1  ;;  %v5494_v47 = vpop.f32.mrb[89].mxu0  ;;  %13550 = vmatmul.mubr.msk.f32.vlgmr.msra.gmra.mrb[92].mxu1 %vm5543_vm5, %v5522_v40  ;;  %v5385_v36 = vadd.f32 %v13509_v42, %v11893_v23 }
0x10d5   :  { %v5523_v10 = vmul.f32 %v5515_v53, %v5370_v51  ;;  %v5495_v57 = vadd.f32 %v11906_v22, %v5494_v47  ;;  %v5380_v60 = vadd.f32 %v11893_v23, %v5379_v56 }
0x10d6   :  { %v5518_v4 = vmax.f32 %v5500_v58, 0.0 }
0x10d7   :  { %v5517_v0 = vmax.f32 %v5495_v57, 0.0  ;;  %v13512_v6 = vpop.f32.mrb[90].mxu1  ;;  %v13532_v8 = vpop.f32.mrb[90].mxu0  ;;  %13552 = vmatprep.mubr.msk.f32.mxu1 %vm5543_vm5, %v5523_v10 }
0x10d8   :  { %v5526_v9 = vmul.f32 %v5518_v4, %v5385_v36  ;;  %v5510_v41 = vadd.f32 %v13532_v8, %v11906_v22  ;;  %v5389_v18 = vpop.f32.mrb[91].mxu1  ;;  %v5504_v12 = vpop.f32.mrb[91].mxu0  ;;  %13553 = vmatmul.mubr.msk.f32.gmra.mrb[94].mxu1 %vm5543_vm5, %v5524_v29  ;;  %v5395_v13 = vadd.f32 %v13512_v6, %v11893_v23 }
0x10d9   :  { %v5525_v2 = vmul.f32 %v5517_v0, %v5380_v60  ;;  %v5505_v61 = vadd.f32 %v11906_v22, %v5504_v12  ;;  %v5390_v15 = vadd.f32 %v11893_v23, %v5389_v18 }
0x10da   :  { %v5520_v14 = vmax.f32 %v5510_v41, 0.0 }
0x10db   :  { %v5519_v17 = vmax.f32 %v5505_v61, 0.0  ;;  %13555 = vmatprep.mubr.msk.f32.mxu1 %vm5543_vm5, %v5525_v2 }
0x10dc   :  { %v5528_v20 = vmul.f32 %v5520_v14, %v5395_v13  ;;  %13556 = vmatmul.mubr.msk.f32.gmra.mrb[96].mxu1 %vm5543_vm5, %v5526_v9 }
0x10dd   :  { %v5527_v38 = vmul.f32 %v5519_v17, %v5390_v15 }
0x10df   :  { %13558 = vmatprep.mubr.msk.f32.mxu1 %vm5543_vm5, %v5527_v38 }
0x10e0   :  { %13559 = vmatmul.mubr.msk.f32.gmra.mrb[98].mxu1 %vm5543_vm5, %v5528_v20 }
0x11a7   :  { %v13551_v19 = vpop.f32.mrb[92].mxu1 }
0x11a8   :  { %v5640_v21 = vadd.f32 %v13551_v19, %v11923_v3  ;;  %v5634_v63 = vpop.f32.mrb[93].mxu1 }
0x11a9   :  { %v5635_v22 = vadd.f32 %v11923_v3, %v5634_v63 }
0x11aa   :  { %v16097_v5 = vadd.f32 %v5640_v21, %v15914_v35 }
0x11ab   :  { %v16100_v23 = vadd.f32 %v5635_v22, %v15917_v37  ;;  %v13554_v30 = vpop.f32.mrb[94].mxu1 }
0x11ac   :  { %v5650_v7 = vadd.f32 %v13554_v30, %v11923_v3  ;;  %v5644_v24 = vpop.f32.mrb[95].mxu1  ;;  %v5686_v1 = vsel %vm68_vm0, %v16097_v5, 0.0 }
0x11ad   :  { %v5645_v25 = vadd.f32 %v11923_v3, %v5644_v24  ;;  %5687 = vadd.xlane.f32.xlu1 %v5686_v1  ;;  %v5683_v27 = vsel %vm68_vm0, %v16100_v23, 0.0 }
0x11ae   :  { %v16107_v28 = vadd.f32 %v5650_v7, %v15924_v46  ;;  %5684 = vadd.xlane.f32.xlu0 %v5683_v27 }
0x11af   :  { %v16110_v35 = vadd.f32 %v5645_v25, %v15927_v26  ;;  %v13557_v37 = vpop.f32.mrb[96].mxu1 }
0x11b0   :  { %v5660_v31 = vadd.f32 %v13557_v37, %v11923_v3  ;;  %v5654_v32 = vpop.f32.mrb[97].mxu1  ;;  %v5692_v33 = vsel %vm68_vm0, %v16107_v28, 0.0  ;;  %v11934_v37 = vld [vmem:[%s17152_s2 + $0x180] sm:$0xff] }
0x11b1   :  { %v5655_v49 = vadd.f32 %v11923_v3, %v5654_v32  ;;  %5693 = vadd.xlane.f32.xlu1 %v5692_v33  ;;  %v5689_v40 = vsel %vm68_vm0, %v16110_v35, 0.0  ;;  %v11947_v32 = vld [vmem:[%s17152_s2 + $0x200] sm:$0xff] }
0x11b2   :  { %v16117_v43 = vadd.f32 %v5660_v31, %v15934_v55  ;;  %5690 = vadd.xlane.f32.xlu0 %v5689_v40  ;;  %v11935_v31 = vld [vmem:[%s17152_s2 + $0x188] sm:$0xff] }
0x11b3   :  { %v16120_v46 = vadd.f32 %v5655_v49, %v15937_v34  ;;  %v13560_v26 = vpop.f32.mrb[98].mxu1  ;;  %v14448_v33 = vpack.c.bf16 %v11935_v31, %v11934_v37  ;;  %v11948_v49 = vld [vmem:[%s17152_s2 + $0x208] sm:$0xff] }
0x11b4   :  { %v5670_v44 = vadd.f32 %v13560_v26, %v11923_v3  ;;  %v5664_v45 = vpop.f32.mrb[99].mxu1  ;;  %v5698_v16 = vsel %vm68_vm0, %v16117_v43, 0.0  ;;  %v14456_v40 = vpack.c.bf16 %v11948_v49, %v11947_v32  ;;  %v11936_v26 = vld [vmem:[%s17152_s2 + $0x190] sm:$0xff] }
0x11b5   :  { %v5665_v48 = vadd.f32 %v11923_v3, %v5664_v45  ;;  %5699 = vadd.xlane.f32.xlu1 %v5698_v16  ;;  %v5695_v50 = vsel %vm68_vm0, %v16120_v46, 0.0  ;;  %14449 = vmatprep.subr.bf16.mxu0 %v14448_v33  ;;  %v11949_v45 = vld [vmem:[%s17152_s2 + $0x210] sm:$0xff] }
0x11b6   :  { %v16127_v11 = vadd.f32 %v5670_v44, %v15944_v59  ;;  %5696 = vadd.xlane.f32.xlu0 %v5695_v50  ;;  %14457 = vmatprep.subr.bf16.mxu1 %v14456_v40  ;;  %v11937_v44 = vld [vmem:[%s17152_s2 + $0x198] sm:$0xff]  ;;  %v11962_v32 = vld [vmem:[%s17152_s2 + $0x290] sm:$0xff] }
0x11b7   :  { %v16130_v55 = vadd.f32 %v5665_v48, %v15947_v39  ;;  %14451 = vmatpush3.bf16.msra.mxu0 %v14448_v33  ;;  %14459 = vmatpush3.bf16.msra.mxu1 %v14456_v40  ;;  %v14452_v16 = vpack.c.bf16 %v11937_v44, %v11936_v26  ;;  %v11950_v48 = vld [vmem:[%s17152_s2 + $0x218] sm:$0xff] }
0x11b8   :  { %v5704_v34 = vsel %vm68_vm0, %v16127_v11, 0.0  ;;  %v14460_v50 = vpack.c.bf16 %v11950_v48, %v11949_v45 }
0x11b9   :  { %5705 = vadd.xlane.f32.xlu1 %v5704_v34  ;;  %v5701_v51 = vsel %vm68_vm0, %v16130_v55, 0.0  ;;  %14453 = vmatprep.subr.bf16.mxu0 %v14452_v16  ;;  %v11960_v34 = vld [vmem:[%s17152_s2 + $0x280] sm:$0xff] }
0x11ba   :  { %5702 = vadd.xlane.f32.xlu0 %v5701_v51  ;;  %14461 = vmatprep.subr.bf16.mxu1 %v14460_v50  ;;  %v11961_v51 = vld [vmem:[%s17152_s2 + $0x288] sm:$0xff] }
0x11bb   :  { %14455 = vmatpush3.bf16.msra.mxu0 %v14452_v16  ;;  %14463 = vmatpush3.bf16.msra.mxu1 %v14460_v50 }
0x123a   :  { %v5688_v53 = vpop.xlane.xlu1 %5687 }
0x123b   :  { %v5708_v42 = vmul.f32 0.03125, %v5688_v53  ;;  %v5685_v54 = vpop.xlane.xlu0 %5684  ;;  %v14464_v53 = vpack.c.bf16 %v11961_v51, %v11960_v34 }
0x123c   :  { %v5707_v29 = vmul.f32 0.03125, %v5685_v54 }
0x123d   :  { %v16137_v58 = vsub.f32 %v16097_v5, %v5708_v42  ;;  %14465 = vmatprep.subr.bf16.mxu0 %v14464_v53 }
0x123e   :  { %v16140_v59 = vsub.f32 %v16100_v23, %v5707_v29  ;;  %v5694_v39 = vpop.xlane.xlu1 %5693 }
0x123f   :  { %v5710_v56 = vmul.f32 0.03125, %v5694_v39  ;;  %v5691_v47 = vpop.xlane.xlu0 %5690  ;;  %v5724_v10 = vmul.f32 %v16137_v58, %v16137_v58 }
0x1240   :  { %v5709_v57 = vmul.f32 0.03125, %v5691_v47  ;;  %v5723_v36 = vmul.f32 %v16140_v59, %v16140_v59 }
0x1241   :  { %v16147_v4 = vsub.f32 %v16107_v28, %v5710_v56  ;;  %v5734_v60 = vsel %vm68_vm0, %v5724_v10, 0.0 }
0x1242   :  { %v16151_v0 = vsub.f32 %v16110_v35, %v5709_v57  ;;  %v5700_v6 = vpop.xlane.xlu1 %5699  ;;  %5735 = vadd.xlane.f32.xlu1 %v5734_v60  ;;  %v5731_v8 = vsel %vm68_vm0, %v5723_v36, 0.0 }
0x1243   :  { %v5712_v9 = vmul.f32 0.03125, %v5700_v6  ;;  %v5697_v41 = vpop.xlane.xlu0 %5696  ;;  %5732 = vadd.xlane.f32.xlu0 %v5731_v8  ;;  %v5726_v18 = vmul.f32 %v16147_v4, %v16147_v4 }
0x1244   :  { %v5711_v12 = vmul.f32 0.03125, %v5697_v41  ;;  %v5725_v2 = vmul.f32 %v16151_v0, %v16151_v0 }
0x1245   :  { %v16159_v61 = vsub.f32 %v16117_v43, %v5712_v9  ;;  %v5740_v13 = vsel %vm68_vm0, %v5726_v18, 0.0 }
0x1246   :  { %v16163_v14 = vsub.f32 %v16120_v46, %v5711_v12  ;;  %5741 = vadd.xlane.f32.xlu1 %v5740_v13  ;;  %v5706_v15 = vpop.xlane.xlu1 %5705  ;;  %v5737_v17 = vsel %vm68_vm0, %v5725_v2, 0.0 }
0x1247   :  { %v5714_v20 = vmul.f32 0.03125, %v5706_v15  ;;  %5738 = vadd.xlane.f32.xlu0 %v5737_v17  ;;  %v5703_v38 = vpop.xlane.xlu0 %5702  ;;  %v5728_v3 = vmul.f32 %v16159_v61, %v16159_v61 }
0x1248   :  { %v5713_v19 = vmul.f32 0.03125, %v5703_v38  ;;  %v5727_v21 = vmul.f32 %v16163_v14, %v16163_v14 }
0x1249   :  { %v16171_v63 = vsub.f32 %v16127_v11, %v5714_v20  ;;  %v5746_v22 = vsel %vm68_vm0, %v5728_v3, 0.0 }
0x124a   :  { %v16175_v30 = vsub.f32 %v16130_v55, %v5713_v19  ;;  %5747 = vadd.xlane.f32.xlu1 %v5746_v22  ;;  %v5743_v7 = vsel %vm68_vm0, %v5727_v21, 0.0  ;;  %v11932_v19 = vld [vmem:[%s17155_s5 + $0x18] ss:$0 sm:$0xff] }
0x124b   :  { %5744 = vadd.xlane.f32.xlu0 %v5743_v7  ;;  %v5730_v24 = vmul.f32 %v16171_v63, %v16171_v63 }
0x124c   :  { %v5729_v1 = vmul.f32 %v16175_v30, %v16175_v30 }
0x124d   :  { %v5752_v25 = vsel %vm68_vm0, %v5730_v24, 0.0 }
0x124e   :  { %5753 = vadd.xlane.f32.xlu1 %v5752_v25  ;;  %v5749_v27 = vsel %vm68_vm0, %v5729_v1, 0.0  ;;  %v11933_v25 = vld [vmem:[%s17155_s5 + $0x19] ss:$0 sm:$0xff] }
0x124f   :  { %5750 = vadd.xlane.f32.xlu0 %v5749_v27 }
0x12cf   :  { %v5736_v42 = vpop.xlane.xlu1 %5735 }
0x12d0   :  { %v5756_v54 = vmul.f32 0.03125, %v5736_v42  ;;  %v5733_v29 = vpop.xlane.xlu0 %5732 }
0x12d1   :  { %v5755_v39 = vmul.f32 0.03125, %v5733_v29 }
0x12d2   :  { %v5764_v56 = vadd.f32 1e-05, %v5756_v54 }
0x12d3   :  { %v5763_v47 = vadd.f32 1e-05, %v5755_v39  ;;  %v5742_v10 = vpop.xlane.xlu1 %5741 }
0x12d4   :  { %14938 = vrsqrt.f32 %v5764_v56  ;;  %v5758_v57 = vmul.f32 0.03125, %v5742_v10  ;;  %v5739_v36 = vpop.xlane.xlu0 %5738 }
0x12d5   :  { %14940 = vrsqrt.f32 %v5763_v47  ;;  %v5757_v60 = vmul.f32 0.03125, %v5739_v36  ;;  %v16304_v36 = vld [vmem:[%s17155_s5 + $0x20] ss:$0 sm:$0xff] }
0x12d6   :  { %v5766_v6 = vadd.f32 1e-05, %v5758_v57  ;;  %v11951_v57 = vld [vmem:[%s17155_s5 + $0x24] ss:$0 sm:$0xff] }
0x12d7   :  { %v5765_v8 = vadd.f32 1e-05, %v5757_v60  ;;  %v5748_v9 = vpop.xlane.xlu1 %5747 }
0x12d8   :  { %14942 = vrsqrt.f32 %v5766_v6  ;;  %v5760_v41 = vmul.f32 0.03125, %v5748_v9  ;;  %v5745_v18 = vpop.xlane.xlu0 %5744 }
0x12d9   :  { %14944 = vrsqrt.f32 %v5765_v8  ;;  %v5759_v12 = vmul.f32 0.03125, %v5745_v18 }
0x12da   :  { %v5768_v2 = vadd.f32 1e-05, %v5760_v41 }
0x12db   :  { %v5767_v13 = vadd.f32 1e-05, %v5759_v12  ;;  %v5754_v15 = vpop.xlane.xlu1 %5753 }
0x12dc   :  { %14946 = vrsqrt.f32 %v5768_v2  ;;  %v5762_v17 = vmul.f32 0.03125, %v5754_v15  ;;  %v5751_v20 = vpop.xlane.xlu0 %5750 }
0x12dd   :  { %14948 = vrsqrt.f32 %v5767_v13  ;;  %v5761_v38 = vmul.f32 0.03125, %v5751_v20 }
0x12de   :  { %v14939_v3 = vpop.eup %14938  ;;  %v5770_v21 = vadd.f32 1e-05, %v5762_v17 }
0x12df   :  { %v14941_v22 = vpop.eup %14940  ;;  %v5780_v7 = vmul.f32 %v14939_v3, %v16137_v58  ;;  %v5769_v24 = vadd.f32 1e-05, %v5761_v38  ;;  %v11963_v58 = vld [vmem:[%s17152_s2 + $0x298] sm:$0xff] }
0x12e0   :  { %v5779_v1 = vmul.f32 %v14941_v22, %v16140_v59  ;;  %14950 = vrsqrt.f32 %v5770_v21  ;;  %v14468_v45 = vpack.c.bf16 %v11963_v58, %v11962_v32 }
0x12e1   :  { %v5792_v27 = vmul.f32 %v11932_v19, %v5780_v7  ;;  %14952 = vrsqrt.f32 %v5769_v24 }
0x12e2   :  { %v14943_v37 = vpop.eup %14942  ;;  %v5791_v31 = vmul.f32 %v11932_v19, %v5779_v1 }
0x12e3   :  { %v14945_v33 = vpop.eup %14944  ;;  %v5782_v59 = vmul.f32 %v14943_v37, %v16147_v4  ;;  %v16232_v26 = vadd.f32 %v11933_v25, %v5792_v27 }
0x12e4   :  { %v16229_v49 = vadd.f32 %v11933_v25, %v5791_v31  ;;  %v5781_v40 = vmul.f32 %v14945_v33, %v16151_v0 }
0x12e5   :  { %v5794_v44 = vmul.f32 %v11932_v19, %v5782_v59 }
0x12e6   :  { %v14947_v16 = vpop.eup %14946  ;;  %v5793_v48 = vmul.f32 %v11932_v19, %v5781_v40  ;;  %13569 = vmatprep.mubr.msk.f32.mxu0 %vm68_vm0, %v16229_v49  ;;  %13589 = vmatprep.mubr.msk.f32.mxu1 %vm68_vm0, %v16229_v49 }
0x12e7   :  { %v14949_v50 = vpop.eup %14948  ;;  %v5784_v34 = vmul.f32 %v14947_v16, %v16159_v61  ;;  %13570 = vmatmul.mubr.msk.f32.vlgmr.msra.gmra.mrb[92].mxu0 %vm68_vm0, %v16232_v26  ;;  %13590 = vmatmul.mubr.msk.f32.vlgmr.msra.gmra.mrb[100].mxu1 %vm68_vm0, %v16232_v26  ;;  %v16246_v51 = vadd.f32 %v11933_v25, %v5794_v44  ;;  %v11964_v16 = vld [vmem:[%s17155_s5 + $0x28] ss:$0 sm:$0xff] }
0x12e8   :  { %v16243_v4 = vadd.f32 %v11933_v25, %v5793_v48  ;;  %v5783_v0 = vmul.f32 %v14949_v50, %v16163_v14  ;;  %14467 = vmatpush3.bf16.msra.mxu0 %v14464_v53 }
0x12e9   :  { %v5796_v42 = vmul.f32 %v11932_v19, %v5784_v34  ;;  %14469 = vmatprep.subr.bf16.mxu0 %v14468_v45 }
0x12ea   :  { %v14951_v54 = vpop.eup %14950  ;;  %v5795_v29 = vmul.f32 %v11932_v19, %v5783_v0  ;;  %13572 = vmatprep.mubr.msk.f32.mxu0 %vm68_vm0, %v16243_v4  ;;  %13592 = vmatprep.mubr.msk.f32.mxu1 %vm68_vm0, %v16243_v4 }
0x12eb   :  { %v14953_v61 = vpop.eup %14952  ;;  %v5786_v39 = vmul.f32 %v14951_v54, %v16171_v63  ;;  %13573 = vmatmul.mubr.msk.f32.gmra.mrb[94].mxu0 %vm68_vm0, %v16246_v51  ;;  %13593 = vmatmul.mubr.msk.f32.gmra.mrb[102].mxu1 %vm68_vm0, %v16246_v51  ;;  %v16260_v56 = vadd.f32 %v11933_v25, %v5796_v42 }
0x12ec   :  { %v16257_v14 = vadd.f32 %v11933_v25, %v5795_v29  ;;  %v5785_v53 = vmul.f32 %v14953_v61, %v16175_v30  ;;  %14471 = vmatpush3.bf16.msra.mxu0 %v14468_v45 }
0x12ed   :  { %v5798_v47 = vmul.f32 %v11932_v19, %v5786_v39 }
0x12ee   :  { %v5797_v10 = vmul.f32 %v11932_v19, %v5785_v53  ;;  %13575 = vmatprep.mubr.msk.f32.mxu0 %vm68_vm0, %v16257_v14  ;;  %13595 = vmatprep.mubr.msk.f32.mxu1 %vm68_vm0, %v16257_v14 }
0x12ef   :  { %13576 = vmatmul.mubr.msk.f32.gmra.mrb[96].mxu0 %vm68_vm0, %v16260_v56  ;;  %13596 = vmatmul.mubr.msk.f32.gmra.mrb[104].mxu1 %vm68_vm0, %v16260_v56  ;;  %v16272_v30 = vadd.f32 %v11933_v25, %v5798_v47 }
0x12f0   :  { %v16270_v63 = vadd.f32 %v11933_v25, %v5797_v10 }
0x12f2   :  { %13578 = vmatprep.mubr.msk.f32.mxu0 %vm68_vm0, %v16270_v63  ;;  %13598 = vmatprep.mubr.msk.f32.mxu1 %vm68_vm0, %v16270_v63 }
0x12f3   :  { %13579 = vmatmul.mubr.msk.f32.gmra.mrb[98].mxu0 %vm68_vm0, %v16272_v30  ;;  %13599 = vmatmul.mubr.msk.f32.gmra.mrb[106].mxu1 %vm68_vm0, %v16272_v30 }
0x12f4   :  { %13609 = vmatprep.mubr.msk.f32.mxu0 %vm68_vm0, %v16229_v49 }
0x12f7   :  { %13610 = vmatmul.mubr.msk.f32.vlgmr.msra.gmra.mrb[100].mxu0 %vm68_vm0, %v16232_v26 }
0x12f8   :  { %13612 = vmatprep.mubr.msk.f32.mxu0 %vm68_vm0, %v16243_v4 }
0x12fb   :  { %13613 = vmatmul.mubr.msk.f32.gmra.mrb[102].mxu0 %vm68_vm0, %v16246_v51 }
0x12fc   :  { %13615 = vmatprep.mubr.msk.f32.mxu0 %vm68_vm0, %v16257_v14 }
0x12ff   :  { %13616 = vmatmul.mubr.msk.f32.gmra.mrb[104].mxu0 %vm68_vm0, %v16260_v56 }
0x1300   :  { %13618 = vmatprep.mubr.msk.f32.mxu0 %vm68_vm0, %v16270_v63 }
0x1303   :  { %13619 = vmatmul.mubr.msk.f32.gmra.mrb[106].mxu0 %vm68_vm0, %v16272_v30 }
0x13ba   :  { %v13571_v60 = vpop.f32.mrb[92].mxu0  ;;  %v13591_v6 = vpop.f32.mrb[100].mxu1 }
0x13bb   :  { %v6032_v8 = vadd.f32 %v13591_v6, %v11951_v57  ;;  %v5911_v9 = vpop.f32.mrb[93].mxu0  ;;  %v6026_v41 = vpop.f32.mrb[101].mxu1  ;;  %v5917_v37 = vadd.f32 %v13571_v60, %v16304_v36 }
0x13bc   :  { %v5912_v18 = vadd.f32 %v16304_v36, %v5911_v9  ;;  %v6027_v12 = vadd.f32 %v11951_v57, %v6026_v41 }
0x13be   :  { %v14472_v2 = vpack.c.bf16 %v6032_v8, %v6027_v12  ;;  %v13574_v13 = vpop.f32.mrb[94].mxu0  ;;  %v13594_v15 = vpop.f32.mrb[102].mxu1  ;;  %13625 = vmatprep.mubr.msk.f32.mxu1 %vm428_vm1, %v5912_v18 }
0x13bf   :  { %v6042_v17 = vadd.f32 %v13594_v15, %v11951_v57  ;;  %v5921_v20 = vpop.f32.mrb[95].mxu0  ;;  %v6036_v38 = vpop.f32.mrb[103].mxu1  ;;  %v5927_v54 = vadd.f32 %v13574_v13, %v16304_v36 }
0x13c0   :  { %v6037_v3 = vadd.f32 %v11951_v57, %v6036_v38  ;;  %14474 = vmatprep.subr.msk.bf16.mxu1 %vm15288_vm2, %v14472_v2  ;;  %v5922_v33 = vadd.f32 %v16304_v36, %v5921_v20 }
0x13c1   :  { %14477 = vmatpush3.bf16.xpose.msk.msra.mxu1 %vm15288_vm2, %v14472_v2 }
0x13c2   :  { %v14478_v19 = vpack.c.bf16 %v6042_v17, %v6037_v3  ;;  %v13577_v21 = vpop.f32.mrb[96].mxu0  ;;  %v13597_v22 = vpop.f32.mrb[104].mxu1 }
0x13c3   :  { %v6052_v7 = vadd.f32 %v13597_v22, %v11951_v57  ;;  %v5931_v24 = vpop.f32.mrb[97].mxu0  ;;  %v6046_v1 = vpop.f32.mrb[105].mxu1  ;;  %v5937_v39 = vadd.f32 %v13577_v21, %v16304_v36 }
0x13c4   :  { %v5932_v25 = vadd.f32 %v16304_v36, %v5931_v24  ;;  %v6047_v27 = vadd.f32 %v11951_v57, %v6046_v1  ;;  %14480 = vmatprep.subr.msk.bf16.mxu1 %vm15288_vm2, %v14478_v19 }
0x13c6   :  { %v14484_v31 = vpack.c.bf16 %v6052_v7, %v6047_v27  ;;  %v13580_v32 = vpop.f32.mrb[98].mxu0  ;;  %v13600_v58 = vpop.f32.mrb[106].mxu1  ;;  %13639 = vmatprep.mubr.msk.f32.mxu0 %vm428_vm1, %v5932_v25 }
0x13c7   :  { %v6062_v59 = vadd.f32 %v13600_v58, %v11951_v57  ;;  %v5941_v40 = vpop.f32.mrb[99].mxu0  ;;  %v6056_v44 = vpop.f32.mrb[107].mxu1  ;;  %v5947_v18 = vadd.f32 %v13580_v32, %v16304_v36 }
0x13c8   :  { %v6057_v45 = vadd.f32 %v11951_v57, %v6056_v44  ;;  %13626 = vmatmul.mubr.msk.f32.vlgmr.msra.gmra.mrb[108].mxu1 %vm428_vm1, %v5917_v37  ;;  %14486 = vmatprep.subr.msk.bf16.mxu0 %vm15288_vm2, %v14484_v31  ;;  %v5942_v10 = vadd.f32 %v16304_v36, %v5941_v40 }
0x13c9   :  { %14483 = vmatpush3.bf16.xpose.msk.msra.mxu1 %vm15288_vm2, %v14478_v19  ;;  %13632 = vmatprep.mubr.msk.f32.mxu1 %vm428_vm1, %v5922_v33 }
0x13ca   :  { %v14490_v48 = vpack.c.bf16 %v6062_v59, %v6057_v45  ;;  %14489 = vmatpush3.bf16.xpose.msk.msra.mxu0 %vm15288_vm2, %v14484_v31  ;;  %v13611_v50 = vpop.f32.mrb[100].mxu0 }
0x13cb   :  { %v6147_v34 = vadd.f32 %v13611_v50, %v11964_v16  ;;  %v6141_v0 = vpop.f32.mrb[101].mxu0 }
0x13cc   :  { %v6142_v42 = vadd.f32 %v11964_v16, %v6141_v0  ;;  %14492 = vmatprep.subr.msk.bf16.mxu1 %vm15288_vm2, %v14490_v48 }
0x13ce   :  { %v14496_v29 = vpack.c.bf16 %v6147_v34, %v6142_v42  ;;  %v13614_v61 = vpop.f32.mrb[102].mxu0 }
0x13cf   :  { %v6157_v53 = vadd.f32 %v13614_v61, %v11964_v16  ;;  %v6151_v47 = vpop.f32.mrb[103].mxu0 }
0x13d0   :  { %v6152_v57 = vadd.f32 %v11964_v16, %v6151_v47  ;;  %13633 = vmatmul.mubr.msk.f32.vlgmr.msra.gmra.mrb[110].mxu1 %vm428_vm1, %v5927_v54  ;;  %14497 = vmatprep.subr.bf16.mxu0 %v14496_v29 }
0x13d1   :  { %13640 = vmatmul.mubr.msk.f32.vlgmr.msra.gmra.mrb[108].mxu0 %vm428_vm1, %v5937_v39  ;;  %14495 = vmatpush3.bf16.xpose.msk.msra.mxu1 %vm15288_vm2, %v14490_v48 }
0x13d2   :  { %v16338_v60 = vpack.c.bf16 %v6157_v53, %v6152_v57  ;;  %13646 = vmatprep.mubr.msk.f32.mxu1 %vm428_vm1, %v5942_v10  ;;  %14499 = vmatpush3.bf16.msra.mxu0 %v14496_v29  ;;  %v13617_v6 = vpop.f32.mrb[104].mxu0 }
0x13d3   :  { %v6167_v8 = vadd.f32 %v13617_v6, %v11964_v16  ;;  %v6161_v9 = vpop.f32.mrb[105].mxu0 }
0x13d4   :  { %v6162_v41 = vadd.f32 %v11964_v16, %v6161_v9  ;;  %14501 = vmatprep.subr.bf16.mxu0 %v16338_v60 }
0x13d6   :  { %v14504_v12 = vpack.c.bf16 %v6167_v8, %v6162_v41  ;;  %v13620_v2 = vpop.f32.mrb[106].mxu0 }
0x13d7   :  { %v6177_v13 = vadd.f32 %v13620_v2, %v11964_v16  ;;  %v6171_v15 = vpop.f32.mrb[107].mxu0 }
0x13d8   :  { %v6172_v17 = vadd.f32 %v11964_v16, %v6171_v15  ;;  %13647 = vmatmul.mubr.msk.f32.vlgmr.msra.gmra.mrb[112].mxu1 %vm428_vm1, %v5947_v18  ;;  %14505 = vmatprep.subr.bf16.mxu1 %v14504_v12 }
0x13d9   :  { %14507 = vmatpush3.bf16.msra.mxu1 %v14504_v12 }
0x13da   :  { %v16344_v20 = vpack.c.bf16 %v6177_v13, %v6172_v17 }
0x149b   :  { %v13627_v38 = vpop.f32.mrb[108].mxu1 }
0x149c   :  { %v6529_v3 = vmul.f32 0.35355338, %v13627_v38  ;;  %v6258_v19 = vpop.f32.mrb[109].mxu1 }
0x149d   :  { %v6528_v21 = vmul.f32 0.35355338, %v6258_v19 }
0x149e   :  { %v6537_v22 = vadd.f32 %v6529_v3, %v15325_v62 }
0x149f   :  { %v6536_v7 = vadd.f32 %v6528_v21, %v15325_v62 }
0x14a0   :  { %v6547_v36 = vsel %vm793_vm4, %v6537_v22, -inf }
0x14a1   :  { %6548 = vmax.xlane.f32.xlu1 %v6547_v36  ;;  %v6544_v24 = vsel %vm793_vm4, %v6536_v7, -inf }
0x14a2   :  { %6545 = vmax.xlane.f32.xlu0 %v6544_v24 }
0x14a3   :  { %v13634_v1 = vpop.f32.mrb[110].mxu1 }
0x14a4   :  { %v6531_v25 = vmul.f32 0.35355338, %v13634_v1  ;;  %v13641_v27 = vpop.f32.mrb[108].mxu0  ;;  %v6345_v37 = vpop.f32.mrb[111].mxu1 }
0x14a5   :  { %v6530_v31 = vmul.f32 0.35355338, %v6345_v37  ;;  %v6432_v32 = vpop.f32.mrb[109].mxu0  ;;  %v6533_v45 = vmul.f32 0.35355338, %v13641_v27 }
0x14a6   :  { %v6539_v58 = vadd.f32 %v6531_v25, %v15325_v62  ;;  %v6532_v50 = vmul.f32 0.35355338, %v6432_v32 }
0x14a7   :  { %v6538_v33 = vadd.f32 %v6530_v31, %v15325_v62  ;;  %v6541_v54 = vadd.f32 %v6533_v45, %v15325_v62 }
0x14a8   :  { %v6553_v59 = vsel %vm793_vm4, %v6539_v58, -inf  ;;  %v6540_v61 = vadd.f32 %v6532_v50, %v15325_v62 }
0x14a9   :  { %6554 = vmax.xlane.f32.xlu1 %v6553_v59  ;;  %v6550_v40 = vsel %vm793_vm4, %v6538_v33, -inf  ;;  %v6559_v53 = vsel %vm793_vm4, %v6541_v54, -inf }
0x14aa   :  { %6551 = vmax.xlane.f32.xlu0 %v6550_v40  ;;  %v6556_v47 = vsel %vm793_vm4, %v6540_v61, -inf }
0x14ab   :  { %v13648_v44 = vpop.f32.mrb[112].mxu1 }
0x14ac   :  { %v6535_v16 = vmul.f32 0.35355338, %v13648_v44  ;;  %v6519_v48 = vpop.f32.mrb[113].mxu1 }
0x14ad   :  { %v6534_v34 = vmul.f32 0.35355338, %v6519_v48 }
0x14ae   :  { %v6543_v0 = vadd.f32 %v6535_v16, %v15325_v62 }
0x14af   :  { %v6542_v42 = vadd.f32 %v6534_v34, %v15325_v62 }
0x14b0   :  { %v6565_v29 = vsel %vm793_vm4, %v6543_v0, -inf }
0x14b1   :  { %6566 = vmax.xlane.f32.xlu1 %v6565_v29  ;;  %v6562_v39 = vsel %vm793_vm4, %v6542_v42, -inf }
0x14b2   :  { %6563 = vmax.xlane.f32.xlu0 %v6562_v39  ;;  %v11999_v39 = vld [vmem:[%s17152_s2 + $0x1a8] sm:$0xff] }
0x14b5   :  { %6560 = vmax.xlane.f32.xlu1 %v6559_v53 }
0x14b6   :  { %6557 = vmax.xlane.f32.xlu0 %v6556_v47 }
0x152e   :  { %v6549_v10 = vpop.xlane.xlu1 %6548 }
0x152f   :  { %v6569_v57 = vsub.f32 %v6537_v22, %v6549_v10  ;;  %v6546_v6 = vpop.xlane.xlu0 %6545 }
0x1530   :  { %v6568_v8 = vsub.f32 %v6536_v7, %v6546_v6 }
0x1531   :  { %v6578_v9 = vmul.f32 1.442695, %v6569_v57 }
0x1532   :  { %v6576_v41 = vmul.f32 1.442695, %v6568_v8 }
0x1533   :  { %14954 = vpow2.f32 %v6578_v9 }
0x1534   :  { %14956 = vpow2.f32 %v6576_v41 }
0x1536   :  { %v6555_v18 = vpop.xlane.xlu1 %6554 }
0x1537   :  { %v6571_v12 = vsub.f32 %v6539_v58, %v6555_v18  ;;  %v6552_v2 = vpop.xlane.xlu0 %6551 }
0x1538   :  { %v6570_v13 = vsub.f32 %v6538_v33, %v6552_v2 }
0x1539   :  { %v6582_v15 = vmul.f32 1.442695, %v6571_v12 }
0x153a   :  { %v6580_v17 = vmul.f32 1.442695, %v6570_v13 }
0x153b   :  { %14958 = vpow2.f32 %v6582_v15  ;;  %v12011_v15 = vld [vmem:[%s17152_s2 + $0x220] sm:$0xff] }
0x153c   :  { %14960 = vpow2.f32 %v6580_v17  ;;  %v12012_v17 = vld [vmem:[%s17152_s2 + $0x228] sm:$0xff] }
0x153d   :  { %v14955_v38 = vpop.eup %14954 }
0x153e   :  { %v14957_v3 = vpop.eup %14956  ;;  %v6567_v19 = vpop.xlane.xlu1 %6566  ;;  %v6595_v21 = vsel %vm793_vm4, %v14955_v38, 0.0 }
0x153f   :  { %v6575_v22 = vsub.f32 %v6543_v0, %v6567_v19  ;;  %6596 = vadd.xlane.f32.xlu1 %v6595_v21  ;;  %v6564_v7 = vpop.xlane.xlu0 %6563  ;;  %v6592_v36 = vsel %vm793_vm4, %v14957_v3, 0.0 }
0x1540   :  { %v6574_v24 = vsub.f32 %v6542_v42, %v6564_v7  ;;  %6593 = vadd.xlane.f32.xlu0 %v6592_v36  ;;  %v12013_v36 = vld [vmem:[%s17152_s2 + $0x230] sm:$0xff] }
0x1541   :  { %v6590_v1 = vmul.f32 1.442695, %v6575_v22 }
0x1542   :  { %v6588_v25 = vmul.f32 1.442695, %v6574_v24  ;;  %v6561_v27 = vpop.xlane.xlu1 %6560  ;;  %v12014_v24 = vld [vmem:[%s17152_s2 + $0x238] sm:$0xff] }
0x1543   :  { %14962 = vpow2.f32 %v6590_v1  ;;  %v6573_v37 = vsub.f32 %v6541_v54, %v6561_v27  ;;  %v6558_v31 = vpop.xlane.xlu0 %6557 }
0x1544   :  { %14964 = vpow2.f32 %v6588_v25  ;;  %v6572_v32 = vsub.f32 %v6540_v61, %v6558_v31  ;;  %v11998_v61 = vld [vmem:[%s17152_s2 + $0x1a0] sm:$0xff] }
0x1545   :  { %v14959_v58 = vpop.eup %14958  ;;  %v6586_v33 = vmul.f32 1.442695, %v6573_v37  ;;  %v14512_v53 = vpack.c.bf16 %v11999_v39, %v11998_v61  ;;  %v14524_v37 = vpack.c.bf16 %v12014_v24, %v12013_v36 }
0x1546   :  { %v14961_v59 = vpop.eup %14960  ;;  %v6584_v40 = vmul.f32 1.442695, %v6572_v32  ;;  %v6601_v44 = vsel %vm793_vm4, %v14959_v58, 0.0  ;;  %v12001_v32 = vld [vmem:[%s17152_s2 + $0x1b8] sm:$0xff] }
0x1547   :  { %14966 = vpow2.f32 %v6586_v33  ;;  %6602 = vadd.xlane.f32.xlu1 %v6601_v44  ;;  %v6598_v45 = vsel %vm793_vm4, %v14961_v59, 0.0  ;;  %14513 = vmatprep.subr.bf16.mxu1 %v14512_v53  ;;  %v12024_v44 = vld [vmem:[%s17152_s2 + $0x2a0] sm:$0xff] }
0x1548   :  { %14968 = vpow2.f32 %v6584_v40  ;;  %6599 = vadd.xlane.f32.xlu0 %v6598_v45  ;;  %v12025_v45 = vld [vmem:[%s17152_s2 + $0x2a8] sm:$0xff] }
0x154d   :  { %v14963_v16 = vpop.eup %14962 }
0x154e   :  { %v14965_v48 = vpop.eup %14964  ;;  %v6613_v50 = vsel %vm793_vm4, %v14963_v16, 0.0 }
0x154f   :  { %6614 = vadd.xlane.f32.xlu1 %v6613_v50  ;;  %v6610_v34 = vsel %vm793_vm4, %v14965_v48, 0.0  ;;  %v12027_v50 = vld [vmem:[%s17152_s2 + $0x2b8] sm:$0xff] }
0x1550   :  { %6611 = vadd.xlane.f32.xlu0 %v6610_v34 }
0x1551   :  { %v14967_v0 = vpop.eup %14966 }
0x1552   :  { %v14969_v42 = vpop.eup %14968  ;;  %v6607_v54 = vsel %vm793_vm4, %v14967_v0, 0.0 }
0x1553   :  { %6608 = vadd.xlane.f32.xlu1 %v6607_v54  ;;  %v6604_v29 = vsel %vm793_vm4, %v14969_v42, 0.0 }
0x1554   :  { %6605 = vadd.xlane.f32.xlu0 %v6604_v29 }
0x15cc   :  { %v6597_v47 = vpop.xlane.xlu1 %6596 }
0x15cd   :  { %14970 = vrcp.f32 %v6597_v47  ;;  %v6594_v10 = vpop.xlane.xlu0 %6593 }
0x15ce   :  { %14972 = vrcp.f32 %v6594_v10  ;;  %v12015_v10 = vld [vmem:[%s17155_s5 + $0x25] ss:$0 sm:$0xff] }
0x15d4   :  { %v6603_v57 = vpop.xlane.xlu1 %6602 }
0x15d5   :  { %14974 = vrcp.f32 %v6603_v57  ;;  %v6600_v6 = vpop.xlane.xlu0 %6599 }
0x15d6   :  { %14976 = vrcp.f32 %v6600_v6 }
0x15d7   :  { %v14971_v8 = vpop.eup %14970 }
0x15d8   :  { %v14973_v9 = vpop.eup %14972  ;;  %v6619_v18 = vmul.f32 %v14971_v8, %v14955_v38 }
0x15d9   :  { %v6617_v41 = vmul.f32 %v14973_v9, %v14957_v3 }
0x15db   :  { %13653 = vmatprep.mubr.msk.f32.mxu0 %vm793_vm4, %v6617_v41  ;;  %v12002_v41 = vld [vmem:[%s17155_s5 + $0x21] ss:$0 sm:$0xff] }
0x15dc   :  { %v6615_v12 = vpop.xlane.xlu1 %6614  ;;  %13654 = vmatmul.mubr.msk.f32.vlgmr.msra.gmra.mrb[110].mxu0 %vm793_vm4, %v6619_v18 }
0x15dd   :  { %14978 = vrcp.f32 %v6615_v12  ;;  %14503 = vmatpush3.bf16.msra.mxu0 %v16338_v60  ;;  %v6612_v2 = vpop.xlane.xlu0 %6611  ;;  %v14520_v60 = vpack.c.bf16 %v12012_v17, %v12011_v15 }
0x15de   :  { %14509 = vmatprep.subr.bf16.mxu0 %v16344_v20  ;;  %14980 = vrcp.f32 %v6612_v2 }
0x15df   :  { %v14975_v13 = vpop.eup %14974 }
0x15e0   :  { %v14977_v38 = vpop.eup %14976  ;;  %v6609_v3 = vpop.xlane.xlu1 %6608  ;;  %v6623_v22 = vmul.f32 %v14975_v13, %v14959_v58 }
0x15e1   :  { %14982 = vrcp.f32 %v6609_v3  ;;  %v6606_v19 = vpop.xlane.xlu0 %6605  ;;  %v6621_v21 = vmul.f32 %v14977_v38, %v14961_v59 }
0x15e2   :  { %14984 = vrcp.f32 %v6606_v19 }
0x15e3   :  { %13660 = vmatprep.mubr.msk.f32.mxu0 %vm793_vm4, %v6621_v21 }
0x15e4   :  { %13661 = vmatmul.mubr.msk.f32.vlgmr.msra.gmra.mrb[112].mxu0 %vm793_vm4, %v6623_v22 }
0x15e5   :  { %14511 = vmatpush3.bf16.msra.mxu0 %v16344_v20  ;;  %v12000_v20 = vld [vmem:[%s17152_s2 + $0x1b0] sm:$0xff] }
0x15e6   :  { %14521 = vmatprep.subr.bf16.mxu0 %v14520_v60  ;;  %v14516_v40 = vpack.c.bf16 %v12001_v32, %v12000_v20 }
0x15e7   :  { %v14979_v7 = vpop.eup %14978 }
0x15e8   :  { %v14981_v1 = vpop.eup %14980  ;;  %v6631_v27 = vmul.f32 %v14979_v7, %v14963_v16  ;;  %v14528_v16 = vpack.c.bf16 %v12025_v45, %v12024_v44 }
0x15e9   :  { %v6629_v25 = vmul.f32 %v14981_v1, %v14965_v48  ;;  %v12026_v48 = vld [vmem:[%s17152_s2 + $0x2b0] sm:$0xff] }
0x15ea   :  { %v14532_v34 = vpack.c.bf16 %v12027_v50, %v12026_v48 }
0x15eb   :  { %v14983_v31 = vpop.eup %14982  ;;  %13674 = vmatprep.mubr.msk.f32.mxu0 %vm793_vm4, %v6629_v25 }
0x15ec   :  { %v14985_v58 = vpop.eup %14984  ;;  %13675 = vmatmul.mubr.msk.f32.vlgmr.msra.gmra.mrb[114].mxu0 %vm793_vm4, %v6631_v27  ;;  %v6627_v59 = vmul.f32 %v14983_v31, %v14967_v0 }
0x15ed   :  { %14523 = vmatpush3.bf16.msra.mxu0 %v14520_v60  ;;  %13705 = vmatprep.mubr.msk.f32.mxu0 %vm68_vm0, %v16229_v49  ;;  %v6625_v33 = vmul.f32 %v14985_v58, %v14969_v42 }
0x15ee   :  { %14525 = vmatprep.subr.bf16.mxu0 %v14524_v37 }
0x15ef   :  { %13667 = vmatprep.mubr.msk.f32.mxu1 %vm793_vm4, %v6625_v33 }
0x15f0   :  { %13668 = vmatmul.mubr.msk.f32.vlgmr.msra.gmra.mrb[114].mxu1 %vm793_vm4, %v6627_v59 }
0x15f1   :  { %14515 = vmatpush3.bf16.msra.mxu1 %v14512_v53  ;;  %14527 = vmatpush3.bf16.msra.mxu0 %v14524_v37 }
0x15f2   :  { %13685 = vmatprep.mubr.msk.f32.mxu1 %vm68_vm0, %v16229_v49  ;;  %14517 = vmatprep.subr.bf16.mxu1 %v14516_v40 }
0x15f4   :  { %13706 = vmatmul.mubr.msk.f32.vlgmr.msra.gmra.mrb[116].mxu0 %vm68_vm0, %v16232_v26 }
0x15f5   :  { %14519 = vmatpush3.bf16.msra.mxu1 %v14516_v40  ;;  %13708 = vmatprep.mubr.msk.f32.mxu0 %vm68_vm0, %v16243_v4 }
0x15f6   :  { %14529 = vmatprep.subr.bf16.mxu1 %v14528_v16 }
0x15f8   :  { %13686 = vmatmul.mubr.msk.f32.vlgmr.msra.gmra.mrb[116].mxu1 %vm68_vm0, %v16232_v26  ;;  %13709 = vmatmul.mubr.msk.f32.gmra.mrb[118].mxu0 %vm68_vm0, %v16246_v51 }
0x15f9   :  { %13688 = vmatprep.mubr.msk.f32.mxu1 %vm68_vm0, %v16243_v4  ;;  %13711 = vmatprep.mubr.msk.f32.mxu0 %vm68_vm0, %v16257_v14 }
0x15fa   :  { %14531 = vmatpush3.bf16.msra.mxu1 %v14528_v16  ;;  %v12028_v16 = vld [vmem:[%s17155_s5 + $0x29] ss:$0 sm:$0xff] }
0x15fb   :  { %14533 = vmatprep.subr.bf16.mxu1 %v14532_v34 }
0x15fc   :  { %13689 = vmatmul.mubr.msk.f32.gmra.mrb[118].mxu1 %vm68_vm0, %v16246_v51  ;;  %13712 = vmatmul.mubr.msk.f32.gmra.mrb[120].mxu0 %vm68_vm0, %v16260_v56 }
0x15fd   :  { %13691 = vmatprep.mubr.msk.f32.mxu1 %vm68_vm0, %v16257_v14  ;;  %13714 = vmatprep.mubr.msk.f32.mxu0 %vm68_vm0, %v16270_v63 }
0x15fe   :  { %14535 = vmatpush3.bf16.msra.mxu1 %v14532_v34 }
0x1600   :  { %13692 = vmatmul.mubr.msk.f32.gmra.mrb[120].mxu1 %vm68_vm0, %v16260_v56  ;;  %13715 = vmatmul.mubr.msk.f32.gmra.mrb[122].mxu0 %vm68_vm0, %v16272_v30 }
0x1601   :  { %13694 = vmatprep.mubr.msk.f32.mxu1 %vm68_vm0, %v16270_v63 }
0x1604   :  { %13695 = vmatmul.mubr.msk.f32.gmra.mrb[122].mxu1 %vm68_vm0, %v16272_v30 }
0x1605   :  { %13725 = vmatprep.mubr.msk.f32.mxu1 %vm68_vm0, %v16229_v49 }
0x1608   :  { %13726 = vmatmul.mubr.msk.f32.vlgmr.msra.gmra.mrb[124].mxu1 %vm68_vm0, %v16232_v26 }
0x1609   :  { %13728 = vmatprep.mubr.msk.f32.mxu1 %vm68_vm0, %v16243_v4 }
0x160c   :  { %13729 = vmatmul.mubr.msk.f32.gmra.mrb[126].mxu1 %vm68_vm0, %v16246_v51 }
0x160d   :  { %13731 = vmatprep.mubr.msk.f32.mxu1 %vm68_vm0, %v16257_v14 }
0x1610   :  { %13732 = vmatmul.mubr.msk.f32.gmra.mrb[128].mxu1 %vm68_vm0, %v16260_v56 }
0x1611   :  { %13734 = vmatprep.mubr.msk.f32.mxu1 %vm68_vm0, %v16270_v63 }
0x1614   :  { %13735 = vmatmul.mubr.msk.f32.gmra.mrb[130].mxu1 %vm68_vm0, %v16272_v30 }
0x16af   :  { %v16465_v0 = vpop.f32.mrb[110].mxu0 }
0x16b0   :  { %v16467_v42 = vpop.f32.mrb[111].mxu0 }
0x16b7   :  { %v16469_v54 = vpop.f32.mrb[112].mxu0 }
0x16b8   :  { %v16471_v29 = vpop.f32.mrb[113].mxu0 }
0x16bf   :  { %v16473_v61 = vpop.f32.mrb[114].mxu0 }
0x16c0   :  { %v16475_v39 = vpop.f32.mrb[115].mxu0 }
0x16c3   :  { %v16477_v53 = vpop.f32.mrb[114].mxu1 }
0x16c4   :  { %v16479_v47 = vpop.f32.mrb[115].mxu1 }
0x16c7   :  { %v13707_v57 = vpop.f32.mrb[116].mxu0 }
0x16c8   :  { %v7155_v6 = vadd.f32 %v13707_v57, %v12015_v10  ;;  %v7149_v8 = vpop.f32.mrb[117].mxu0 }
0x16c9   :  { %v7150_v9 = vadd.f32 %v12015_v10, %v7149_v8 }
0x16cb   :  { %v14536_v18 = vpack.c.bf16 %v7155_v6, %v7150_v9  ;;  %v13687_v12 = vpop.f32.mrb[116].mxu1  ;;  %v13710_v2 = vpop.f32.mrb[118].mxu0 }
0x16cc   :  { %v7165_v13 = vadd.f32 %v13710_v2, %v12015_v10  ;;  %v7034_v15 = vpop.f32.mrb[117].mxu1  ;;  %v7159_v17 = vpop.f32.mrb[119].mxu0  ;;  %v7040_v1 = vadd.f32 %v13687_v12, %v12002_v41 }
0x16cd   :  { %v7035_v38 = vadd.f32 %v12002_v41, %v7034_v15  ;;  %v7160_v3 = vadd.f32 %v12015_v10, %v7159_v17  ;;  %14538 = vmatprep.subr.msk.bf16.mxu0 %vm15288_vm2, %v14536_v18 }
0x16ce   :  { %14541 = vmatpush3.bf16.xpose.msk.msra.mxu0 %vm15288_vm2, %v14536_v18 }
0x16cf   :  { %v14542_v19 = vpack.c.bf16 %v7165_v13, %v7160_v3  ;;  %v13690_v21 = vpop.f32.mrb[118].mxu1  ;;  %v13713_v22 = vpop.f32.mrb[120].mxu0  ;;  %13741 = vmatprep.mubr.msk.f32.mxu0 %vm428_vm1, %v7035_v38 }
0x16d0   :  { %v7175_v60 = vadd.f32 %v13713_v22, %v12015_v10  ;;  %v7044_v7 = vpop.f32.mrb[119].mxu1  ;;  %v7169_v36 = vpop.f32.mrb[121].mxu0  ;;  %v7050_v48 = vadd.f32 %v13690_v21, %v12002_v41 }
0x16d1   :  { %v7170_v24 = vadd.f32 %v12015_v10, %v7169_v36  ;;  %14544 = vmatprep.subr.msk.bf16.mxu0 %vm15288_vm2, %v14542_v19  ;;  %v7045_v31 = vadd.f32 %v12002_v41, %v7044_v7 }
0x16d3   :  { %v14548_v25 = vpack.c.bf16 %v7175_v60, %v7170_v24  ;;  %v13693_v27 = vpop.f32.mrb[120].mxu1  ;;  %v13716_v37 = vpop.f32.mrb[122].mxu0 }
0x16d4   :  { %v7185_v20 = vadd.f32 %v13716_v37, %v12015_v10  ;;  %v7054_v32 = vpop.f32.mrb[121].mxu1  ;;  %v7179_v58 = vpop.f32.mrb[123].mxu0  ;;  %v7060_v34 = vadd.f32 %v13693_v27, %v12002_v41 }
0x16d5   :  { %v7055_v33 = vadd.f32 %v12002_v41, %v7054_v32  ;;  %v7180_v59 = vadd.f32 %v12015_v10, %v7179_v58  ;;  %13742 = vmatmul.mubr.msk.f32.vlgmr.msra.gmra.mrb[124].mxu0 %vm428_vm1, %v7040_v1  ;;  %14550 = vmatprep.subr.msk.bf16.mxu1 %vm15288_vm2, %v14548_v25 }
0x16d6   :  { %14547 = vmatpush3.bf16.xpose.msk.msra.mxu0 %vm15288_vm2, %v14542_v19  ;;  %13748 = vmatprep.mubr.msk.f32.mxu0 %vm428_vm1, %v7045_v31 }
0x16d7   :  { %v14554_v40 = vpack.c.bf16 %v7185_v20, %v7180_v59  ;;  %14553 = vmatpush3.bf16.xpose.msk.msra.mxu1 %vm15288_vm2, %v14548_v25  ;;  %v13696_v44 = vpop.f32.mrb[122].mxu1  ;;  %13755 = vmatprep.mubr.msk.f32.mxu1 %vm428_vm1, %v7055_v33 }
0x16d8   :  { %v7064_v45 = vpop.f32.mrb[123].mxu1  ;;  %v7070_v15 = vadd.f32 %v13696_v44, %v12002_v41 }
0x16d9   :  { %14556 = vmatprep.subr.msk.bf16.mxu0 %vm15288_vm2, %v14554_v40  ;;  %v7065_v6 = vadd.f32 %v12002_v41, %v7064_v45 }
0x16db   :  { %v13727_v50 = vpop.f32.mrb[124].mxu1 }
0x16dc   :  { %v7270_v10 = vadd.f32 %v13727_v50, %v12028_v16  ;;  %v7264_v57 = vpop.f32.mrb[125].mxu1 }
0x16dd   :  { %v7265_v8 = vadd.f32 %v12028_v16, %v7264_v57  ;;  %13749 = vmatmul.mubr.msk.f32.vlgmr.msra.gmra.mrb[126].mxu0 %vm428_vm1, %v7050_v48 }
0x16de   :  { %13756 = vmatmul.mubr.msk.f32.vlgmr.msra.gmra.mrb[132].mxu1 %vm428_vm1, %v7060_v34  ;;  %14559 = vmatpush3.bf16.xpose.msk.msra.mxu0 %vm15288_vm2, %v14554_v40 }
0x16df   :  { %v14560_v9 = vpack.c.bf16 %v7270_v10, %v7265_v8  ;;  %13762 = vmatprep.mubr.msk.f32.mxu0 %vm428_vm1, %v7065_v6  ;;  %v13730_v18 = vpop.f32.mrb[126].mxu1 }
0x16e0   :  { %v7280_v12 = vadd.f32 %v13730_v18, %v12028_v16  ;;  %v7274_v2 = vpop.f32.mrb[127].mxu1 }
0x16e1   :  { %v7275_v13 = vadd.f32 %v12028_v16, %v7274_v2  ;;  %14561 = vmatprep.subr.bf16.mxu1 %v14560_v9 }
0x16e2   :  { %14563 = vmatpush3.bf16.msra.mxu1 %v14560_v9 }
0x16e3   :  { %v14564_v17 = vpack.c.bf16 %v7280_v12, %v7275_v13  ;;  %v13733_v38 = vpop.f32.mrb[128].mxu1 }
0x16e4   :  { %v7290_v3 = vadd.f32 %v13733_v38, %v12028_v16  ;;  %v7284_v19 = vpop.f32.mrb[129].mxu1 }
0x16e5   :  { %v7285_v21 = vadd.f32 %v12028_v16, %v7284_v19  ;;  %13763 = vmatmul.mubr.msk.f32.vlgmr.msra.gmra.mrb[128].mxu0 %vm428_vm1, %v7070_v15  ;;  %14565 = vmatprep.subr.bf16.mxu0 %v14564_v17 }
0x16e6   :  { %14567 = vmatpush3.bf16.msra.mxu0 %v14564_v17 }
0x16e7   :  { %v16514_v22 = vpack.c.bf16 %v7290_v3, %v7285_v21  ;;  %v13736_v60 = vpop.f32.mrb[130].mxu1 }
0x16e8   :  { %v7300_v7 = vadd.f32 %v13736_v60, %v12028_v16  ;;  %v7294_v36 = vpop.f32.mrb[131].mxu1 }
0x16e9   :  { %v7295_v24 = vadd.f32 %v12028_v16, %v7294_v36  ;;  %14569 = vmatprep.subr.bf16.mxu1 %v16514_v22 }
0x16eb   :  { %v16517_v1 = vpack.c.bf16 %v7300_v7, %v7295_v24 }
0x16ed   :  { %14573 = vmatprep.subr.bf16.mxu0 %v16517_v1 }
0x17a8   :  { %v13743_v41 = vpop.f32.mrb[124].mxu0 }
0x17a9   :  { %v7652_v25 = vmul.f32 0.35355338, %v13743_v41  ;;  %v7381_v27 = vpop.f32.mrb[125].mxu0 }
0x17aa   :  { %v7651_v37 = vmul.f32 0.35355338, %v7381_v27 }
0x17ab   :  { %v7660_v31 = vadd.f32 %v7652_v25, %v15325_v62 }
0x17ac   :  { %v7659_v20 = vadd.f32 %v7651_v37, %v15325_v62 }
0x17ad   :  { %v7670_v32 = vsel %vm793_vm4, %v7660_v31, -inf }
0x17ae   :  { %7671 = vmax.xlane.f32.xlu1 %v7670_v32  ;;  %v7667_v58 = vsel %vm793_vm4, %v7659_v20, -inf }
0x17af   :  { %7668 = vmax.xlane.f32.xlu0 %v7667_v58 }
0x17b0   :  { %v13750_v33 = vpop.f32.mrb[126].mxu0 }
0x17b1   :  { %v7654_v59 = vmul.f32 0.35355338, %v13750_v33  ;;  %v13757_v40 = vpop.f32.mrb[132].mxu1  ;;  %v7468_v44 = vpop.f32.mrb[127].mxu0 }
0x17b2   :  { %v7653_v45 = vmul.f32 0.35355338, %v7468_v44  ;;  %v7555_v16 = vpop.f32.mrb[133].mxu1  ;;  %v7656_v6 = vmul.f32 0.35355338, %v13757_v40 }
0x17b3   :  { %v7662_v48 = vadd.f32 %v7654_v59, %v15325_v62  ;;  %v7655_v18 = vmul.f32 0.35355338, %v7555_v16 }
0x17b4   :  { %v7661_v50 = vadd.f32 %v7653_v45, %v15325_v62  ;;  %v7664_v15 = vadd.f32 %v7656_v6, %v15325_v62 }
0x17b5   :  { %v7676_v34 = vsel %vm793_vm4, %v7662_v48, -inf  ;;  %v7663_v38 = vadd.f32 %v7655_v18, %v15325_v62 }
0x17b6   :  { %7677 = vmax.xlane.f32.xlu1 %v7676_v34  ;;  %v7673_v10 = vsel %vm793_vm4, %v7661_v50, -inf  ;;  %v7682_v19 = vsel %vm793_vm4, %v7664_v15, -inf }
0x17b7   :  { %7674 = vmax.xlane.f32.xlu0 %v7673_v10  ;;  %v7679_v21 = vsel %vm793_vm4, %v7663_v38, -inf }
0x17b8   :  { %v13764_v57 = vpop.f32.mrb[128].mxu0 }
0x17b9   :  { %v7658_v8 = vmul.f32 0.35355338, %v13764_v57  ;;  %v7642_v9 = vpop.f32.mrb[129].mxu0 }
0x17ba   :  { %v7657_v12 = vmul.f32 0.35355338, %v7642_v9 }
0x17bb   :  { %v7666_v2 = vadd.f32 %v7658_v8, %v15325_v62 }
0x17bc   :  { %v7665_v13 = vadd.f32 %v7657_v12, %v15325_v62 }
0x17bd   :  { %v7688_v17 = vsel %vm793_vm4, %v7666_v2, -inf }
0x17be   :  { %7689 = vmax.xlane.f32.xlu1 %v7688_v17  ;;  %v7685_v3 = vsel %vm793_vm4, %v7665_v13, -inf }
0x17bf   :  { %7686 = vmax.xlane.f32.xlu0 %v7685_v3 }
0x17c2   :  { %7683 = vmax.xlane.f32.xlu1 %v7682_v19 }
0x17c3   :  { %7680 = vmax.xlane.f32.xlu0 %v7679_v21 }
0x183b   :  { %v7672_v60 = vpop.xlane.xlu1 %7671 }
0x183c   :  { %v7692_v7 = vsub.f32 %v7660_v31, %v7672_v60  ;;  %v7669_v36 = vpop.xlane.xlu0 %7668 }
0x183d   :  { %v7691_v24 = vsub.f32 %v7659_v20, %v7669_v36 }
0x183e   :  { %v7701_v41 = vmul.f32 1.442695, %v7692_v7 }
0x183f   :  { %v7699_v25 = vmul.f32 1.442695, %v7691_v24 }
0x1840   :  { %14986 = vpow2.f32 %v7701_v41 }
0x1841   :  { %14988 = vpow2.f32 %v7699_v25 }
0x1843   :  { %v7678_v27 = vpop.xlane.xlu1 %7677 }
0x1844   :  { %v7694_v37 = vsub.f32 %v7662_v48, %v7678_v27  ;;  %v7675_v32 = vpop.xlane.xlu0 %7674 }
0x1845   :  { %v7693_v58 = vsub.f32 %v7661_v50, %v7675_v32 }
0x1846   :  { %v7705_v33 = vmul.f32 1.442695, %v7694_v37 }
0x1847   :  { %v7703_v59 = vmul.f32 1.442695, %v7693_v58 }
0x1848   :  { %14990 = vpow2.f32 %v7705_v33 }
0x1849   :  { %14992 = vpow2.f32 %v7703_v59 }
0x184a   :  { %v14987_v40 = vpop.eup %14986 }
0x184b   :  { %v14989_v44 = vpop.eup %14988  ;;  %v7690_v45 = vpop.xlane.xlu1 %7689  ;;  %v7718_v16 = vsel %vm793_vm4, %v14987_v40, 0.0 }
0x184c   :  { %v7698_v31 = vsub.f32 %v7666_v2, %v7690_v45  ;;  %7719 = vadd.xlane.f32.xlu1 %v7718_v16  ;;  %v7687_v20 = vpop.xlane.xlu0 %7686  ;;  %v7715_v34 = vsel %vm793_vm4, %v14989_v44, 0.0 }
0x184d   :  { %v7697_v10 = vsub.f32 %v7665_v13, %v7687_v20  ;;  %7716 = vadd.xlane.f32.xlu0 %v7715_v34  ;;  %v12078_v20 = vld [vmem:[%s17152_s2 + $0x1c0] sm:$0xff] }
0x184e   :  { %v7713_v57 = vmul.f32 1.442695, %v7698_v31 }
0x184f   :  { %v7711_v48 = vmul.f32 1.442695, %v7697_v10  ;;  %v7684_v6 = vpop.xlane.xlu1 %7683 }
0x1850   :  { %14994 = vpow2.f32 %v7713_v57  ;;  %v7696_v50 = vsub.f32 %v7664_v15, %v7684_v6  ;;  %v7681_v8 = vpop.xlane.xlu0 %7680 }
0x1851   :  { %14996 = vpow2.f32 %v7711_v48  ;;  %v7695_v9 = vsub.f32 %v7663_v38, %v7681_v8  ;;  %v12081_v8 = vld [vmem:[%s17152_s2 + $0x1d8] sm:$0xff] }
0x1852   :  { %v14991_v18 = vpop.eup %14990  ;;  %v7709_v12 = vmul.f32 1.442695, %v7696_v50  ;;  %v12080_v50 = vld [vmem:[%s17152_s2 + $0x1d0] sm:$0xff] }
0x1853   :  { %v14993_v17 = vpop.eup %14992  ;;  %v7707_v3 = vmul.f32 1.442695, %v7695_v9  ;;  %v7724_v2 = vsel %vm793_vm4, %v14991_v18, 0.0 }
0x1854   :  { %14998 = vpow2.f32 %v7709_v12  ;;  %7725 = vadd.xlane.f32.xlu1 %v7724_v2  ;;  %v7721_v19 = vsel %vm793_vm4, %v14993_v17, 0.0  ;;  %v12092_v2 = vld [vmem:[%s17152_s2 + $0x248] sm:$0xff] }
0x1855   :  { %15000 = vpow2.f32 %v7707_v3  ;;  %7722 = vadd.xlane.f32.xlu0 %v7721_v19 }
0x185a   :  { %v14995_v13 = vpop.eup %14994 }
0x185b   :  { %v14997_v21 = vpop.eup %14996  ;;  %v7736_v60 = vsel %vm793_vm4, %v14995_v13, 0.0 }
0x185c   :  { %7737 = vadd.xlane.f32.xlu1 %v7736_v60  ;;  %v7733_v15 = vsel %vm793_vm4, %v14997_v21, 0.0 }
0x185d   :  { %7734 = vadd.xlane.f32.xlu0 %v7733_v15  ;;  %v12093_v15 = vld [vmem:[%s17152_s2 + $0x250] sm:$0xff] }
0x185e   :  { %v14999_v38 = vpop.eup %14998 }
0x185f   :  { %v15001_v7 = vpop.eup %15000  ;;  %v7730_v36 = vsel %vm793_vm4, %v14999_v38, 0.0 }
0x1860   :  { %7731 = vadd.xlane.f32.xlu1 %v7730_v36  ;;  %v7727_v24 = vsel %vm793_vm4, %v15001_v7, 0.0  ;;  %v12094_v36 = vld [vmem:[%s17152_s2 + $0x258] sm:$0xff] }
0x1861   :  { %7728 = vadd.xlane.f32.xlu0 %v7727_v24  ;;  %v14588_v24 = vpack.c.bf16 %v12094_v36, %v12093_v15 }
0x18d9   :  { %v7720_v41 = vpop.xlane.xlu1 %7719 }
0x18da   :  { %15002 = vrcp.f32 %v7720_v41  ;;  %v7717_v25 = vpop.xlane.xlu0 %7716  ;;  %v12104_v41 = vld [vmem:[%s17152_s2 + $0x2c0] sm:$0xff] }
0x18db   :  { %15004 = vrcp.f32 %v7717_v25  ;;  %v12105_v25 = vld [vmem:[%s17152_s2 + $0x2c8] sm:$0xff] }
0x18e1   :  { %v7726_v27 = vpop.xlane.xlu1 %7725 }
0x18e2   :  { %15006 = vrcp.f32 %v7726_v27  ;;  %v7723_v37 = vpop.xlane.xlu0 %7722 }
0x18e3   :  { %15008 = vrcp.f32 %v7723_v37 }
0x18e4   :  { %v15003_v32 = vpop.eup %15002 }
0x18e5   :  { %v15005_v58 = vpop.eup %15004  ;;  %v7742_v59 = vmul.f32 %v15003_v32, %v14987_v40  ;;  %v14592_v32 = vpack.c.bf16 %v12105_v25, %v12104_v41 }
0x18e6   :  { %v7740_v33 = vmul.f32 %v15005_v58, %v14989_v44  ;;  %v12079_v44 = vld [vmem:[%s17152_s2 + $0x1c8] sm:$0xff] }
0x18e7   :  { %v14576_v6 = vpack.c.bf16 %v12079_v44, %v12078_v20  ;;  %v16631_v20 = vld [vmem:[%s17155_s5 + $0x22] ss:$0 sm:$0xff] }
0x18e8   :  { %13769 = vmatprep.mubr.msk.f32.mxu1 %vm793_vm4, %v7740_v33 }
0x18e9   :  { %v7738_v45 = vpop.xlane.xlu1 %7737  ;;  %13770 = vmatmul.mubr.msk.f32.vlgmr.msra.gmra.mrb[134].mxu1 %vm793_vm4, %v7742_v59 }
0x18ea   :  { %15010 = vrcp.f32 %v7738_v45  ;;  %14571 = vmatpush3.bf16.msra.mxu1 %v16514_v22  ;;  %v7735_v16 = vpop.xlane.xlu0 %7734 }
0x18eb   :  { %15012 = vrcp.f32 %v7735_v16 }
0x18ec   :  { %v15007_v31 = vpop.eup %15006 }
0x18ed   :  { %v15009_v40 = vpop.eup %15008  ;;  %v7732_v34 = vpop.xlane.xlu1 %7731  ;;  %v7746_v48 = vmul.f32 %v15007_v31, %v14991_v18 }
0x18ee   :  { %15014 = vrcp.f32 %v7732_v34  ;;  %v7729_v10 = vpop.xlane.xlu0 %7728  ;;  %v7744_v57 = vmul.f32 %v15009_v40, %v14993_v17  ;;  %v14580_v17 = vpack.c.bf16 %v12081_v8, %v12080_v50 }
0x18ef   :  { %15016 = vrcp.f32 %v7729_v10  ;;  %v12106_v10 = vld [vmem:[%s17152_s2 + $0x2d0] sm:$0xff] }
0x18f0   :  { %13776 = vmatprep.mubr.msk.f32.mxu0 %vm793_vm4, %v7744_v57  ;;  %v12107_v57 = vld [vmem:[%s17152_s2 + $0x2d8] sm:$0xff] }
0x18f1   :  { %13777 = vmatmul.mubr.msk.f32.vlgmr.msra.gmra.mrb[130].mxu0 %vm793_vm4, %v7746_v48 }
0x18f2   :  { %14575 = vmatpush3.bf16.msra.mxu0 %v16517_v1  ;;  %v12091_v1 = vld [vmem:[%s17152_s2 + $0x240] sm:$0xff] }
0x18f3   :  { %14577 = vmatprep.subr.bf16.mxu0 %v14576_v6  ;;  %v14584_v60 = vpack.c.bf16 %v12092_v2, %v12091_v1 }
0x18f4   :  { %v15011_v22 = vpop.eup %15010 }
0x18f5   :  { %v15013_v9 = vpop.eup %15012  ;;  %v7754_v12 = vmul.f32 %v15011_v22, %v14995_v13  ;;  %v14596_v22 = vpack.c.bf16 %v12107_v57, %v12106_v10 }
0x18f6   :  { %v7752_v18 = vmul.f32 %v15013_v9, %v14997_v21 }
0x18f8   :  { %v15015_v3 = vpop.eup %15014  ;;  %13790 = vmatprep.mubr.msk.f32.mxu0 %vm793_vm4, %v7752_v18 }
0x18f9   :  { %v15017_v19 = vpop.eup %15016  ;;  %13791 = vmatmul.mubr.msk.f32.vlgmr.msra.gmra.mrb[132].mxu0 %vm793_vm4, %v7754_v12  ;;  %v7750_v21 = vmul.f32 %v15015_v3, %v14999_v38  ;;  %v12061_v38 = vld [vmem:[%s17156_s3 + $0x28] sm:$0xff] }
0x18fa   :  { %14579 = vmatpush3.bf16.msra.mxu0 %v14576_v6  ;;  %13829 = vmatprep.mubr.msk.f32.mxu0 %vm68_vm0, %v16229_v49  ;;  %v7748_v13 = vmul.f32 %v15017_v19, %v15001_v7  ;;  %v11997_v7 = vld [vmem:[%s17156_s3 + $0x20] sm:$0xff] }
0x18fb   :  { %14581 = vmatprep.subr.bf16.mxu0 %v14580_v17  ;;  %13793 = vmatprep.subr.mxu1 %v12061_v38 }
0x18fc   :  { %13783 = vmatprep.mubr.msk.f32.mxu1 %vm793_vm4, %v7748_v13 }
0x18fd   :  { %13784 = vmatmul.mubr.msk.f32.vlgmr.msra.gmra.mrb[136].mxu1 %vm793_vm4, %v7750_v21 }
0x18fe   :  { %14583 = vmatpush3.bf16.msra.mxu0 %v14580_v17  ;;  %13794 = vmatpush3.msra.mxu1 %v12061_v38 }
0x18ff   :  { %14585 = vmatprep.subr.bf16.mxu0 %v14584_v60  ;;  %13807 = vmatprep.subr.mxu1 %v11997_v7 }
0x1901   :  { %13830 = vmatmul.mubr.msk.f32.vlgmr.msra.gmra.mrb[134].mxu0 %vm68_vm0, %v16232_v26 }
0x1902   :  { %13832 = vmatprep.mubr.msk.f32.mxu0 %vm68_vm0, %v16243_v4  ;;  %14587 = vmatpush3.bf16.msra.mxu0 %v14584_v60 }
0x1903   :  { %14589 = vmatprep.subr.bf16.mxu0 %v14588_v24 }
0x1905   :  { %13833 = vmatmul.mubr.msk.f32.gmra.mrb[136].mxu0 %vm68_vm0, %v16246_v51 }
0x1906   :  { %13835 = vmatprep.mubr.msk.f32.mxu0 %vm68_vm0, %v16257_v14  ;;  %14591 = vmatpush3.bf16.msra.mxu0 %v14588_v24 }
0x1909   :  { %13836 = vmatmul.mubr.msk.f32.gmra.mrb[138].mxu0 %vm68_vm0, %v16260_v56 }
0x190a   :  { %13838 = vmatprep.mubr.msk.f32.mxu0 %vm68_vm0, %v16270_v63 }
0x190d   :  { %13839 = vmatmul.mubr.msk.f32.gmra.mrb[140].mxu0 %vm68_vm0, %v16272_v30 }
0x190e   :  { %13849 = vmatprep.mubr.msk.f32.mxu0 %vm68_vm0, %v16229_v49 }
0x1911   :  { %13850 = vmatmul.mubr.msk.f32.vlgmr.msra.gmra.mrb[142].mxu0 %vm68_vm0, %v16232_v26 }
0x1912   :  { %13852 = vmatprep.mubr.msk.f32.mxu0 %vm68_vm0, %v16243_v4 }
0x1915   :  { %13853 = vmatmul.mubr.msk.f32.gmra.mrb[144].mxu0 %vm68_vm0, %v16246_v51 }
0x1916   :  { %13855 = vmatprep.mubr.msk.f32.mxu0 %vm68_vm0, %v16257_v14 }
0x1919   :  { %13856 = vmatmul.mubr.msk.f32.gmra.mrb[146].mxu0 %vm68_vm0, %v16260_v56 }
0x191a   :  { %13858 = vmatprep.mubr.msk.f32.mxu0 %vm68_vm0, %v16270_v63 }
0x191d   :  { %13859 = vmatmul.mubr.msk.f32.gmra.mrb[148].mxu0 %vm68_vm0, %v16272_v30 }
0x19bc   :  { %v13771_v27 = vpop.f32.mrb[134].mxu1 }
0x19bd   :  { %v7827_v37 = vpop.f32.mrb[135].mxu1 }
0x19be   :  { %13795 = vmatprep.mubr.msk.f32.mxu1 %vm428_vm1, %v7827_v37 }
0x19bf   :  { %13796 = vmatmul.mubr.msk.f32.vlgmr.msra.gmra.mrb[138].mxu1 %vm428_vm1, %v13771_v27 }
0x19c0   :  { %13808 = vmatpush3.msra.mxu1 %v11997_v7 }
0x19c1   :  { %14593 = vmatprep.subr.bf16.mxu1 %v14592_v32 }
0x19c4   :  { %v13778_v58 = vpop.f32.mrb[130].mxu0 }
0x19c5   :  { %v7908_v33 = vpop.f32.mrb[131].mxu0 }
0x19c6   :  { %13798 = vmatprep.mubr.msk.f32.mxu1 %vm428_vm1, %v7908_v33  ;;  %v12108_v33 = vld [vmem:[%s17155_s5 + $0x2a] ss:$0 sm:$0xff] }
0x19c7   :  { %13799 = vmatmul.mubr.msk.f32.gmra.mrb[140].mxu1 %vm428_vm1, %v13778_v58 }
0x19cc   :  { %v13792_v59 = vpop.f32.mrb[132].mxu0 }
0x19cd   :  { %v8070_v45 = vpop.f32.mrb[133].mxu0 }
0x19d0   :  { %v13785_v16 = vpop.f32.mrb[136].mxu1 }
0x19d1   :  { %v7989_v31 = vpop.f32.mrb[137].mxu1 }
0x19d2   :  { %13801 = vmatprep.mubr.msk.f32.mxu1 %vm428_vm1, %v7989_v31 }
0x19d3   :  { %13802 = vmatmul.mubr.msk.f32.gmra.mrb[142].mxu1 %vm428_vm1, %v13785_v16 }
0x19d4   :  { %v13831_v44 = vpop.f32.mrb[134].mxu0  ;;  %13804 = vmatprep.mubr.msk.f32.mxu1 %vm428_vm1, %v8070_v45 }
0x19d5   :  { %v8415_v40 = vpop.f32.mrb[135].mxu0  ;;  %v8421_v21 = vadd.f32 %v13831_v44, %v16631_v20 }
0x19d6   :  { %v8416_v34 = vadd.f32 %v16631_v20, %v8415_v40 }
0x19d7   :  { %13805 = vmatmul.mubr.msk.f32.gmra.mrb[144].mxu1 %vm428_vm1, %v13792_v59 }
0x19d8   :  { %v13834_v48 = vpop.f32.mrb[136].mxu0  ;;  %13885 = vmatprep.mubr.msk.f32.mxu0 %vm428_vm1, %v8416_v34  ;;  %13809 = vmatprep.mubr.msk.f32.mxu1 %vm428_vm1, %v16467_v42 }
0x19d9   :  { %v8425_v6 = vpop.f32.mrb[137].mxu0  ;;  %v8431_v25 = vadd.f32 %v13834_v48, %v16631_v20 }
0x19da   :  { %v8426_v36 = vadd.f32 %v16631_v20, %v8425_v6 }
0x19db   :  { %13810 = vmatmul.mubr.msk.f32.vlgmr.msra.gmra.mrb[138].mxu1 %vm428_vm1, %v16465_v0  ;;  %v12095_v0 = vld [vmem:[%s17155_s5 + $0x26] ss:$0 sm:$0xff] }
0x19dc   :  { %v13837_v50 = vpop.f32.mrb[138].mxu0  ;;  %13812 = vmatprep.mubr.msk.f32.mxu1 %vm428_vm1, %v16471_v29  ;;  %14595 = vmatpush3.bf16.msra.mxu1 %v14592_v32 }
0x19dd   :  { %v8435_v8 = vpop.f32.mrb[139].mxu0  ;;  %14597 = vmatprep.subr.bf16.mxu1 %v14596_v22  ;;  %v8441_v32 = vadd.f32 %v13837_v50, %v16631_v20 }
0x19de   :  { %v8436_v27 = vadd.f32 %v16631_v20, %v8435_v8 }
0x19df   :  { %13813 = vmatmul.mubr.msk.f32.gmra.mrb[140].mxu1 %vm428_vm1, %v16469_v54 }
0x19e0   :  { %v13840_v9 = vpop.f32.mrb[140].mxu0  ;;  %13815 = vmatprep.mubr.msk.f32.mxu1 %vm428_vm1, %v16479_v47  ;;  %14599 = vmatpush3.bf16.msra.mxu1 %v14596_v22 }
0x19e1   :  { %v8445_v42 = vpop.f32.mrb[141].mxu0  ;;  %v8451_v58 = vadd.f32 %v13840_v9, %v16631_v20 }
0x19e2   :  { %v8446_v37 = vadd.f32 %v16631_v20, %v8445_v42 }
0x19e3   :  { %13816 = vmatmul.mubr.msk.f32.gmra.mrb[142].mxu1 %vm428_vm1, %v16477_v53 }
0x19e4   :  { %v13851_v29 = vpop.f32.mrb[142].mxu0  ;;  %13818 = vmatprep.mubr.msk.f32.mxu1 %vm428_vm1, %v16475_v39 }
0x19e5   :  { %v8536_v18 = vadd.f32 %v13851_v29, %v12095_v0  ;;  %v8530_v12 = vpop.f32.mrb[143].mxu0 }
0x19e6   :  { %v8531_v54 = vadd.f32 %v12095_v0, %v8530_v12 }
0x19e7   :  { %13819 = vmatmul.mubr.msk.f32.gmra.mrb[144].mxu1 %vm428_vm1, %v16473_v61 }
0x19e8   :  { %v14600_v47 = vpack.c.bf16 %v8536_v18, %v8531_v54  ;;  %v13854_v17 = vpop.f32.mrb[144].mxu0  ;;  %13869 = vmatprep.mubr.msk.f32.mxu1 %vm68_vm0, %v16229_v49 }
0x19e9   :  { %v8546_v3 = vadd.f32 %v13854_v17, %v12095_v0  ;;  %v8540_v1 = vpop.f32.mrb[145].mxu0 }
0x19ea   :  { %v8541_v2 = vadd.f32 %v12095_v0, %v8540_v1  ;;  %14602 = vmatprep.subr.msk.bf16.mxu0 %vm15288_vm2, %v14600_v47 }
0x19eb   :  { %14605 = vmatpush3.bf16.xpose.msk.msra.mxu0 %vm15288_vm2, %v14600_v47  ;;  %13870 = vmatmul.mubr.msk.f32.vlgmr.msra.gmra.mrb[146].mxu1 %vm68_vm0, %v16232_v26 }
0x19ec   :  { %v14606_v39 = vpack.c.bf16 %v8546_v3, %v8541_v2  ;;  %v13857_v53 = vpop.f32.mrb[146].mxu0  ;;  %13872 = vmatprep.mubr.msk.f32.mxu1 %vm68_vm0, %v16243_v4 }
0x19ed   :  { %v8556_v61 = vadd.f32 %v13857_v53, %v12095_v0  ;;  %v8550_v19 = vpop.f32.mrb[147].mxu0 }
0x19ee   :  { %v8551_v13 = vadd.f32 %v12095_v0, %v8550_v19  ;;  %14608 = vmatprep.subr.msk.bf16.mxu0 %vm15288_vm2, %v14606_v39 }
0x19ef   :  { %13873 = vmatmul.mubr.msk.f32.gmra.mrb[148].mxu1 %vm68_vm0, %v16246_v51 }
0x19f0   :  { %v14612_v60 = vpack.c.bf16 %v8556_v61, %v8551_v13  ;;  %v13860_v15 = vpop.f32.mrb[148].mxu0  ;;  %13875 = vmatprep.mubr.msk.f32.mxu1 %vm68_vm0, %v16257_v14 }
0x19f1   :  { %v8566_v24 = vadd.f32 %v13860_v15, %v12095_v0  ;;  %v8560_v38 = vpop.f32.mrb[149].mxu0 }
0x19f2   :  { %v8561_v7 = vadd.f32 %v12095_v0, %v8560_v38  ;;  %13886 = vmatmul.mubr.msk.f32.vlgmr.msra.gmra.mrb[150].mxu0 %vm428_vm1, %v8421_v21  ;;  %14614 = vmatprep.subr.msk.bf16.mxu1 %vm15288_vm2, %v14612_v60 }
0x19f3   :  { %14611 = vmatpush3.bf16.xpose.msk.msra.mxu0 %vm15288_vm2, %v14606_v39  ;;  %13892 = vmatprep.mubr.msk.f32.mxu0 %vm428_vm1, %v8426_v36 }
0x19f4   :  { %v14618_v41 = vpack.c.bf16 %v8566_v24, %v8561_v7  ;;  %14617 = vmatpush3.bf16.xpose.msk.msra.mxu1 %vm15288_vm2, %v14612_v60 }
0x19f5   :  { %13876 = vmatmul.mubr.msk.f32.gmra.mrb[150].mxu1 %vm68_vm0, %v16260_v56 }
0x19f6   :  { %13878 = vmatprep.mubr.msk.f32.mxu1 %vm68_vm0, %v16270_v63  ;;  %14620 = vmatprep.subr.msk.bf16.mxu0 %vm15288_vm2, %v14618_v41 }
0x19f9   :  { %13879 = vmatmul.mubr.msk.f32.gmra.mrb[152].mxu1 %vm68_vm0, %v16272_v30 }
0x19fa   :  { %13899 = vmatprep.mubr.msk.f32.mxu1 %vm428_vm1, %v8436_v27  ;;  %13893 = vmatmul.mubr.msk.f32.vlgmr.msra.gmra.mrb[152].mxu0 %vm428_vm1, %v8431_v25 }
0x19fb   :  { %14623 = vmatpush3.bf16.xpose.msk.msra.mxu0 %vm15288_vm2, %v14618_v41  ;;  %13906 = vmatprep.mubr.msk.f32.mxu0 %vm428_vm1, %v8446_v37 }
0x19fd   :  { %13900 = vmatmul.mubr.msk.f32.vlgmr.msra.gmra.mrb[154].mxu1 %vm428_vm1, %v8441_v32 }
0x1a02   :  { %13907 = vmatmul.mubr.msk.f32.vlgmr.msra.gmra.mrb[154].mxu0 %vm428_vm1, %v8451_v58 }
0x1abe   :  { %v13871_v59 = vpop.f32.mrb[146].mxu1 }
0x1abf   :  { %v8651_v45 = vadd.f32 %v13871_v59, %v12108_v33  ;;  %v8645_v16 = vpop.f32.mrb[147].mxu1 }
0x1ac0   :  { %v8646_v31 = vadd.f32 %v12108_v33, %v8645_v16 }
0x1ac2   :  { %v14624_v44 = vpack.c.bf16 %v8651_v45, %v8646_v31  ;;  %v13874_v40 = vpop.f32.mrb[148].mxu1 }
0x1ac3   :  { %v8661_v34 = vadd.f32 %v13874_v40, %v12108_v33  ;;  %v8655_v10 = vpop.f32.mrb[149].mxu1 }
0x1ac4   :  { %v8656_v57 = vadd.f32 %v12108_v33, %v8655_v10  ;;  %14625 = vmatprep.subr.bf16.mxu1 %v14624_v44 }
0x1ac5   :  { %v13887_v48 = vpop.f32.mrb[150].mxu0  ;;  %14627 = vmatpush3.bf16.msra.mxu1 %v14624_v44 }
0x1ac6   :  { %v16711_v6 = vpack.c.bf16 %v8661_v34, %v8656_v57  ;;  %v9033_v20 = vmul.f32 0.35355338, %v13887_v48  ;;  %v8762_v22 = vpop.f32.mrb[151].mxu0 }
0x1ac7   :  { %v9032_v50 = vmul.f32 0.35355338, %v8762_v22 }
0x1ac8   :  { %v9041_v8 = vadd.f32 %v9033_v20, %v15325_v62  ;;  %v13877_v9 = vpop.f32.mrb[150].mxu1  ;;  %14629 = vmatprep.subr.bf16.mxu1 %v16711_v6 }
0x1ac9   :  { %v9040_v42 = vadd.f32 %v9032_v50, %v15325_v62  ;;  %v8671_v0 = vadd.f32 %v13877_v9, %v12108_v33  ;;  %v8665_v29 = vpop.f32.mrb[151].mxu1 }
0x1aca   :  { %v8666_v18 = vadd.f32 %v12108_v33, %v8665_v29  ;;  %v9051_v12 = vsel %vm793_vm4, %v9041_v8, -inf }
0x1acb   :  { %9052 = vmax.xlane.f32.xlu1 %v9051_v12  ;;  %v9048_v54 = vsel %vm793_vm4, %v9040_v42, -inf }
0x1acc   :  { %v14632_v47 = vpack.c.bf16 %v8671_v0, %v8666_v18  ;;  %v13880_v17 = vpop.f32.mrb[152].mxu1  ;;  %9049 = vmax.xlane.f32.xlu0 %v9048_v54 }
0x1acd   :  { %v8681_v3 = vadd.f32 %v13880_v17, %v12108_v33  ;;  %v8675_v1 = vpop.f32.mrb[153].mxu1  ;;  %v13894_v2 = vpop.f32.mrb[152].mxu0 }
0x1ace   :  { %v8676_v39 = vadd.f32 %v12108_v33, %v8675_v1  ;;  %v9035_v53 = vmul.f32 0.35355338, %v13894_v2  ;;  %14633 = vmatprep.subr.bf16.mxu0 %v14632_v47  ;;  %v8849_v61 = vpop.f32.mrb[153].mxu0 }
0x1acf   :  { %v9034_v19 = vmul.f32 0.35355338, %v8849_v61  ;;  %14635 = vmatpush3.bf16.msra.mxu0 %v14632_v47 }
0x1ad0   :  { %v16718_v13 = vpack.c.bf16 %v8681_v3, %v8676_v39  ;;  %v9043_v21 = vadd.f32 %v9035_v53, %v15325_v62  ;;  %v13901_v60 = vpop.f32.mrb[154].mxu1 }
0x1ad1   :  { %v9042_v15 = vadd.f32 %v9034_v19, %v15325_v62  ;;  %v9037_v36 = vmul.f32 0.35355338, %v13901_v60  ;;  %v8936_v24 = vpop.f32.mrb[155].mxu1 }
0x1ad2   :  { %v9036_v38 = vmul.f32 0.35355338, %v8936_v24  ;;  %v9057_v7 = vsel %vm793_vm4, %v9043_v21, -inf }
0x1ad3   :  { %v9045_v41 = vadd.f32 %v9037_v36, %v15325_v62  ;;  %9058 = vmax.xlane.f32.xlu1 %v9057_v7  ;;  %v9054_v25 = vsel %vm793_vm4, %v9042_v15, -inf }
0x1ad4   :  { %v9044_v27 = vadd.f32 %v9036_v38, %v15325_v62  ;;  %9055 = vmax.xlane.f32.xlu0 %v9054_v25 }
0x1ad5   :  { %v13908_v37 = vpop.f32.mrb[154].mxu0  ;;  %v9063_v33 = vsel %vm793_vm4, %v9045_v41, -inf }
0x1ad6   :  { %v9039_v32 = vmul.f32 0.35355338, %v13908_v37  ;;  %v9023_v58 = vpop.f32.mrb[155].mxu0  ;;  %v9060_v45 = vsel %vm793_vm4, %v9044_v27, -inf }
0x1ad7   :  { %v9038_v59 = vmul.f32 0.35355338, %v9023_v58  ;;  %9064 = vmax.xlane.f32.xlu1 %v9063_v33 }
0x1ad8   :  { %v9047_v16 = vadd.f32 %v9039_v32, %v15325_v62  ;;  %9061 = vmax.xlane.f32.xlu0 %v9060_v45 }
0x1ad9   :  { %v9046_v31 = vadd.f32 %v9038_v59, %v15325_v62 }
0x1ada   :  { %v9069_v44 = vsel %vm793_vm4, %v9047_v16, -inf }
0x1adb   :  { %9070 = vmax.xlane.f32.xlu1 %v9069_v44  ;;  %v9066_v40 = vsel %vm793_vm4, %v9046_v31, -inf }
0x1adc   :  { %9067 = vmax.xlane.f32.xlu0 %v9066_v40 }
0x1b58   :  { %v9053_v34 = vpop.xlane.xlu1 %9052 }
0x1b59   :  { %v9073_v10 = vsub.f32 %v9041_v8, %v9053_v34  ;;  %v9050_v57 = vpop.xlane.xlu0 %9049 }
0x1b5a   :  { %v9072_v48 = vsub.f32 %v9040_v42, %v9050_v57 }
0x1b5b   :  { %v9082_v20 = vmul.f32 1.442695, %v9073_v10 }
0x1b5c   :  { %v9080_v22 = vmul.f32 1.442695, %v9072_v48 }
0x1b5d   :  { %15018 = vpow2.f32 %v9082_v20 }
0x1b5e   :  { %15020 = vpow2.f32 %v9080_v22 }
0x1b60   :  { %v9059_v50 = vpop.xlane.xlu1 %9058 }
0x1b61   :  { %v9075_v9 = vsub.f32 %v9043_v21, %v9059_v50  ;;  %v9056_v0 = vpop.xlane.xlu0 %9055 }
0x1b62   :  { %v9074_v29 = vsub.f32 %v9042_v15, %v9056_v0 }
0x1b63   :  { %v9086_v18 = vmul.f32 1.442695, %v9075_v9 }
0x1b64   :  { %v9084_v12 = vmul.f32 1.442695, %v9074_v29  ;;  %v9065_v54 = vpop.xlane.xlu1 %9064 }
0x1b65   :  { %15022 = vpow2.f32 %v9086_v18  ;;  %v9077_v47 = vsub.f32 %v9045_v41, %v9065_v54  ;;  %v9062_v17 = vpop.xlane.xlu0 %9061 }
0x1b66   :  { %15024 = vpow2.f32 %v9084_v12  ;;  %v9076_v3 = vsub.f32 %v9044_v27, %v9062_v17 }
0x1b67   :  { %v15019_v1 = vpop.eup %15018  ;;  %v9090_v8 = vmul.f32 1.442695, %v9077_v47 }
0x1b68   :  { %v15021_v2 = vpop.eup %15020  ;;  %v9088_v42 = vmul.f32 1.442695, %v9076_v3  ;;  %v9071_v39 = vpop.xlane.xlu1 %9070  ;;  %v9099_v53 = vsel %vm793_vm4, %v15019_v1, 0.0 }
0x1b69   :  { %15026 = vpow2.f32 %v9090_v8  ;;  %v9079_v61 = vsub.f32 %v9047_v16, %v9071_v39  ;;  %9100 = vadd.xlane.f32.xlu1 %v9099_v53  ;;  %v9068_v19 = vpop.xlane.xlu0 %9067  ;;  %v9096_v21 = vsel %vm793_vm4, %v15021_v2, 0.0  ;;  %v12150_v16 = vld [vmem:[%s17152_s2 + $0x1e0] sm:$0xff]  ;;  %v12153_v8 = vld [vmem:[%s17152_s2 + $0x1f8] sm:$0xff] }
0x1b6a   :  { %15028 = vpow2.f32 %v9088_v42  ;;  %v9078_v60 = vsub.f32 %v9046_v31, %v9068_v19  ;;  %9097 = vadd.xlane.f32.xlu0 %v9096_v21  ;;  %v12151_v31 = vld [vmem:[%s17152_s2 + $0x1e8] sm:$0xff] }
0x1b6b   :  { %v9094_v15 = vmul.f32 1.442695, %v9079_v61  ;;  %v14640_v44 = vpack.c.bf16 %v12151_v31, %v12150_v16  ;;  %v12176_v61 = vld [vmem:[%s17152_s2 + $0x2e0] sm:$0xff]  ;;  %v12177_v19 = vld [vmem:[%s17152_s2 + $0x2e8] sm:$0xff] }
0x1b6c   :  { %v9092_v36 = vmul.f32 1.442695, %v9078_v60 }
0x1b6d   :  { %15030 = vpow2.f32 %v9094_v15  ;;  %14641 = vmatprep.subr.bf16.mxu0 %v14640_v44  ;;  %v14656_v15 = vpack.c.bf16 %v12177_v19, %v12176_v61 }
0x1b6e   :  { %15032 = vpow2.f32 %v9092_v36  ;;  %v12178_v36 = vld [vmem:[%s17152_s2 + $0x2f0] sm:$0xff] }
0x1b6f   :  { %v15023_v24 = vpop.eup %15022 }
0x1b70   :  { %v15025_v38 = vpop.eup %15024  ;;  %v9105_v7 = vsel %vm793_vm4, %v15023_v24, 0.0 }
0x1b71   :  { %9106 = vadd.xlane.f32.xlu1 %v9105_v7  ;;  %v9102_v41 = vsel %vm793_vm4, %v15025_v38, 0.0  ;;  %v12141_v7 = vld [vmem:[%s17156_s3 + $0x30] sm:$0xff] }
0x1b72   :  { %9103 = vadd.xlane.f32.xlu0 %v9102_v41  ;;  %v12163_v41 = vld [vmem:[%s17152_s2 + $0x260] sm:$0xff] }
0x1b73   :  { %v15027_v25 = vpop.eup %15026 }
0x1b74   :  { %v15029_v27 = vpop.eup %15028  ;;  %v9111_v37 = vsel %vm793_vm4, %v15027_v25, 0.0 }
0x1b75   :  { %9112 = vadd.xlane.f32.xlu1 %v9111_v37  ;;  %v9108_v32 = vsel %vm793_vm4, %v15029_v27, 0.0  ;;  %v12165_v37 = vld [vmem:[%s17152_s2 + $0x270] sm:$0xff] }
0x1b76   :  { %9109 = vadd.xlane.f32.xlu0 %v9108_v32  ;;  %v12166_v32 = vld [vmem:[%s17152_s2 + $0x278] sm:$0xff] }
0x1b77   :  { %v15031_v58 = vpop.eup %15030 }
0x1b78   :  { %v15033_v33 = vpop.eup %15032  ;;  %v9117_v59 = vsel %vm793_vm4, %v15031_v58, 0.0 }
0x1b79   :  { %9118 = vadd.xlane.f32.xlu1 %v9117_v59  ;;  %v9114_v45 = vsel %vm793_vm4, %v15033_v33, 0.0  ;;  %v14652_v59 = vpack.c.bf16 %v12166_v32, %v12165_v37 }
0x1b7a   :  { %9115 = vadd.xlane.f32.xlu0 %v9114_v45 }
0x1bf6   :  { %v9101_v40 = vpop.xlane.xlu1 %9100 }
0x1bf7   :  { %15034 = vrcp.f32 %v9101_v40  ;;  %v9098_v34 = vpop.xlane.xlu0 %9097 }
0x1bf8   :  { %15036 = vrcp.f32 %v9098_v34 }
0x1bfe   :  { %v9107_v10 = vpop.xlane.xlu1 %9106 }
0x1bff   :  { %15038 = vrcp.f32 %v9107_v10  ;;  %v9104_v57 = vpop.xlane.xlu0 %9103  ;;  %v12154_v10 = vld [vmem:[%s17155_s5 + $0x23] ss:$0 sm:$0xff] }
0x1c00   :  { %15040 = vrcp.f32 %v9104_v57 }
0x1c01   :  { %v15035_v48 = vpop.eup %15034 }
0x1c02   :  { %v15037_v20 = vpop.eup %15036  ;;  %v9113_v22 = vpop.xlane.xlu1 %9112  ;;  %v9123_v0 = vmul.f32 %v15035_v48, %v15019_v1  ;;  %v12152_v1 = vld [vmem:[%s17152_s2 + $0x1f0] sm:$0xff] }
0x1c03   :  { %15042 = vrcp.f32 %v9113_v22  ;;  %v9110_v50 = vpop.xlane.xlu0 %9109  ;;  %v9121_v9 = vmul.f32 %v15037_v20, %v15021_v2  ;;  %v14644_v39 = vpack.c.bf16 %v12153_v8, %v12152_v1 }
0x1c04   :  { %15044 = vrcp.f32 %v9110_v50 }
0x1c05   :  { %13913 = vmatprep.mubr.msk.f32.mxu1 %vm793_vm4, %v9121_v9 }
0x1c06   :  { %v9119_v29 = vpop.xlane.xlu1 %9118  ;;  %13914 = vmatmul.mubr.msk.f32.vlgmr.msra.gmra.mrb[156].mxu1 %vm793_vm4, %v9123_v0 }
0x1c07   :  { %15046 = vrcp.f32 %v9119_v29  ;;  %14631 = vmatpush3.bf16.msra.mxu1 %v16711_v6  ;;  %v9116_v18 = vpop.xlane.xlu0 %9115 }
0x1c08   :  { %14637 = vmatprep.subr.bf16.mxu1 %v16718_v13  ;;  %15048 = vrcp.f32 %v9116_v18 }
0x1c09   :  { %v15039_v12 = vpop.eup %15038 }
0x1c0a   :  { %v15041_v54 = vpop.eup %15040  ;;  %v9127_v17 = vmul.f32 %v15039_v12, %v15023_v24  ;;  %v12179_v24 = vld [vmem:[%s17152_s2 + $0x2f8] sm:$0xff] }
0x1c0b   :  { %v9125_v47 = vmul.f32 %v15041_v54, %v15025_v38  ;;  %v14660_v38 = vpack.c.bf16 %v12179_v24, %v12178_v36 }
0x1c0d   :  { %v15043_v3 = vpop.eup %15042  ;;  %13920 = vmatprep.mubr.msk.f32.mxu1 %vm793_vm4, %v9125_v47 }
0x1c0e   :  { %v15045_v6 = vpop.eup %15044  ;;  %13921 = vmatmul.mubr.msk.f32.vlgmr.msra.gmra.mrb[158].mxu1 %vm793_vm4, %v9127_v17  ;;  %v9131_v42 = vmul.f32 %v15043_v3, %v15027_v25  ;;  %v12164_v25 = vld [vmem:[%s17152_s2 + $0x268] sm:$0xff] }
0x1c0f   :  { %14639 = vmatpush3.bf16.msra.mxu1 %v16718_v13  ;;  %v9129_v2 = vmul.f32 %v15045_v6, %v15029_v27  ;;  %v14648_v27 = vpack.c.bf16 %v12164_v25, %v12163_v41 }
0x1c10   :  { %13937 = vmatprep.subr.mxu1 %v12141_v7 }
0x1c11   :  { %v15047_v53 = vpop.eup %15046  ;;  %13927 = vmatprep.mubr.msk.f32.mxu0 %vm793_vm4, %v9129_v2 }
0x1c12   :  { %v15049_v21 = vpop.eup %15048  ;;  %13928 = vmatmul.mubr.msk.f32.vlgmr.msra.gmra.mrb[156].mxu0 %vm793_vm4, %v9131_v42  ;;  %v9135_v60 = vmul.f32 %v15047_v53, %v15031_v58 }
0x1c13   :  { %14643 = vmatpush3.bf16.msra.mxu0 %v14640_v44  ;;  %13959 = vmatprep.mubr.msk.f32.mxu0 %vm68_vm0, %v16229_v49  ;;  %v9133_v13 = vmul.f32 %v15049_v21, %v15033_v33 }
0x1c14   :  { %14645 = vmatprep.subr.bf16.mxu0 %v14644_v39 }
0x1c15   :  { %13934 = vmatprep.mubr.msk.f32.mxu1 %vm793_vm4, %v9133_v13 }
0x1c16   :  { %13935 = vmatmul.mubr.msk.f32.vlgmr.msra.gmra.mrb[160].mxu1 %vm793_vm4, %v9135_v60 }
0x1c17   :  { %14647 = vmatpush3.bf16.msra.mxu0 %v14644_v39  ;;  %13938 = vmatpush3.msra.mxu1 %v12141_v7 }
0x1c18   :  { %14657 = vmatprep.subr.bf16.mxu0 %v14656_v15  ;;  %14649 = vmatprep.subr.bf16.mxu1 %v14648_v27 }
0x1c1a   :  { %13960 = vmatmul.mubr.msk.f32.vlgmr.msra.gmra.mrb[158].mxu0 %vm68_vm0, %v16232_v26 }
0x1c1b   :  { %13962 = vmatprep.mubr.msk.f32.mxu0 %vm68_vm0, %v16243_v4  ;;  %14659 = vmatpush3.bf16.msra.mxu0 %v14656_v15 }
0x1c1c   :  { %14661 = vmatprep.subr.bf16.mxu0 %v14660_v38 }
0x1c1e   :  { %13963 = vmatmul.mubr.msk.f32.gmra.mrb[160].mxu0 %vm68_vm0, %v16246_v51 }
0x1c1f   :  { %13965 = vmatprep.mubr.msk.f32.mxu0 %vm68_vm0, %v16257_v14  ;;  %14663 = vmatpush3.bf16.msra.mxu0 %v14660_v38  ;;  %v12167_v38 = vld [vmem:[%s17155_s5 + $0x27] ss:$0 sm:$0xff] }
0x1c22   :  { %13966 = vmatmul.mubr.msk.f32.gmra.mrb[162].mxu0 %vm68_vm0, %v16260_v56 }
0x1c23   :  { %13968 = vmatprep.mubr.msk.f32.mxu0 %vm68_vm0, %v16270_v63 }
0x1c26   :  { %13969 = vmatmul.mubr.msk.f32.gmra.mrb[164].mxu0 %vm68_vm0, %v16272_v30 }
0x1c27   :  { %13999 = vmatprep.mubr.msk.f32.mxu0 %vm68_vm0, %v16229_v49 }
0x1c2a   :  { %14000 = vmatmul.mubr.msk.f32.vlgmr.msra.gmra.mrb[166].mxu0 %vm68_vm0, %v16232_v26 }
0x1c2b   :  { %14002 = vmatprep.mubr.msk.f32.mxu0 %vm68_vm0, %v16243_v4 }
0x1c2e   :  { %14003 = vmatmul.mubr.msk.f32.gmra.mrb[168].mxu0 %vm68_vm0, %v16246_v51 }
0x1c2f   :  { %14005 = vmatprep.mubr.msk.f32.mxu0 %vm68_vm0, %v16257_v14 }
0x1c32   :  { %14006 = vmatmul.mubr.msk.f32.gmra.mrb[170].mxu0 %vm68_vm0, %v16260_v56 }
0x1c33   :  { %14008 = vmatprep.mubr.msk.f32.mxu0 %vm68_vm0, %v16270_v63 }
0x1c36   :  { %14009 = vmatmul.mubr.msk.f32.gmra.mrb[172].mxu0 %vm68_vm0, %v16272_v30 }
0x1cd9   :  { %v13915_v58 = vpop.f32.mrb[156].mxu1 }
0x1cda   :  { %v9208_v33 = vpop.f32.mrb[157].mxu1 }
0x1cdb   :  { %13939 = vmatprep.mubr.msk.f32.mxu1 %vm428_vm1, %v9208_v33 }
0x1cdc   :  { %13940 = vmatmul.mubr.msk.f32.vlgmr.msra.gmra.mrb[138].mxu1 %vm428_vm1, %v13915_v58 }
0x1cdd   :  { %14651 = vmatpush3.bf16.msra.mxu1 %v14648_v27 }
0x1cde   :  { %14653 = vmatprep.subr.bf16.mxu1 %v14652_v59 }
0x1ce1   :  { %v13922_v45 = vpop.f32.mrb[158].mxu1  ;;  %14655 = vmatpush3.bf16.msra.mxu1 %v14652_v59 }
0x1ce2   :  { %v9289_v16 = vpop.f32.mrb[159].mxu1 }
0x1ce3   :  { %13942 = vmatprep.mubr.msk.f32.mxu1 %vm428_vm1, %v9289_v16 }
0x1ce4   :  { %13943 = vmatmul.mubr.msk.f32.gmra.mrb[140].mxu1 %vm428_vm1, %v13922_v45 }
0x1ce5   :  { %v13929_v31 = vpop.f32.mrb[156].mxu0 }
0x1ce6   :  { %v9370_v44 = vpop.f32.mrb[157].mxu0 }
0x1ce7   :  { %13945 = vmatprep.mubr.msk.f32.mxu1 %vm428_vm1, %v9370_v44 }
0x1ce8   :  { %13946 = vmatmul.mubr.msk.f32.gmra.mrb[142].mxu1 %vm428_vm1, %v13929_v31 }
0x1ce9   :  { %v13936_v40 = vpop.f32.mrb[160].mxu1 }
0x1cea   :  { %v9451_v34 = vpop.f32.mrb[161].mxu1 }
0x1ceb   :  { %13948 = vmatprep.mubr.msk.f32.mxu1 %vm428_vm1, %v9451_v34 }
0x1cec   :  { %13949 = vmatmul.mubr.msk.f32.gmra.mrb[144].mxu1 %vm428_vm1, %v13936_v40 }
0x1ced   :  { %v13961_v57 = vpop.f32.mrb[158].mxu0  ;;  %13979 = vmatprep.mubr.msk.f32.mxu1 %vm68_vm0, %v16229_v49 }
0x1cee   :  { %v16835_v48 = vadd.f32 %v13961_v57, %v12154_v10  ;;  %v9675_v20 = vpop.f32.mrb[159].mxu0 }
0x1cef   :  { %v9676_v54 = vadd.f32 %v12154_v10, %v9675_v20 }
0x1cf0   :  { %13980 = vmatmul.mubr.msk.f32.vlgmr.msra.gmra.mrb[162].mxu1 %vm68_vm0, %v16232_v26 }
0x1cf1   :  { %v13964_v22 = vpop.f32.mrb[160].mxu0  ;;  %13982 = vmatprep.mubr.msk.f32.mxu1 %vm68_vm0, %v16243_v4 }
0x1cf2   :  { %v16841_v50 = vadd.f32 %v13964_v22, %v12154_v10  ;;  %v9685_v9 = vpop.f32.mrb[161].mxu0 }
0x1cf3   :  { %v9686_v0 = vadd.f32 %v12154_v10, %v9685_v9 }
0x1cf4   :  { %13983 = vmatmul.mubr.msk.f32.gmra.mrb[164].mxu1 %vm68_vm0, %v16246_v51 }
0x1cf5   :  { %v13967_v29 = vpop.f32.mrb[162].mxu0  ;;  %14022 = vmatprep.mubr.msk.f32.mxu0 %vm428_vm1, %v9686_v0  ;;  %13985 = vmatprep.mubr.msk.f32.mxu1 %vm68_vm0, %v16257_v14  ;;  %v12180_v14 = vld [vmem:[%s17155_s5 + $0x2b] ss:$0 sm:$0xff] }
0x1cf6   :  { %v16848_v49 = vadd.f32 %v13967_v29, %v12154_v10  ;;  %v9695_v26 = vpop.f32.mrb[163].mxu0 }
0x1cf7   :  { %v9696_v18 = vadd.f32 %v12154_v10, %v9695_v26 }
0x1cf8   :  { %13986 = vmatmul.mubr.msk.f32.gmra.mrb[166].mxu1 %vm68_vm0, %v16260_v56 }
0x1cf9   :  { %v13970_v4 = vpop.f32.mrb[164].mxu0  ;;  %13988 = vmatprep.mubr.msk.f32.mxu1 %vm68_vm0, %v16270_v63 }
0x1cfa   :  { %v16854_v12 = vadd.f32 %v13970_v4, %v12154_v10  ;;  %v9705_v51 = vpop.f32.mrb[165].mxu0 }
0x1cfb   :  { %v9706_v47 = vadd.f32 %v12154_v10, %v9705_v51 }
0x1cfc   :  { %13989 = vmatmul.mubr.msk.f32.gmra.mrb[168].mxu1 %vm68_vm0, %v16272_v30 }
0x1cfd   :  { %v14001_v17 = vpop.f32.mrb[166].mxu0  ;;  %14015 = vmatprep.mubr.msk.f32.mxu1 %vm428_vm1, %v9676_v54 }
0x1cfe   :  { %v9911_v56 = vadd.f32 %v14001_v17, %v12180_v14  ;;  %v9905_v3 = vpop.f32.mrb[167].mxu0 }
0x1cff   :  { %v9906_v1 = vadd.f32 %v12180_v14, %v9905_v3 }
0x1d01   :  { %v14688_v8 = vpack.c.bf16 %v9911_v56, %v9906_v1  ;;  %v14004_v63 = vpop.f32.mrb[168].mxu0 }
0x1d02   :  { %v9921_v6 = vadd.f32 %v14004_v63, %v12180_v14  ;;  %v9915_v2 = vpop.f32.mrb[169].mxu0 }
0x1d03   :  { %v9916_v42 = vadd.f32 %v12180_v14, %v9915_v2 }
0x1d05   :  { %v14692_v39 = vpack.c.bf16 %v9921_v6, %v9916_v42  ;;  %v14007_v53 = vpop.f32.mrb[170].mxu0 }
0x1d06   :  { %v9931_v61 = vadd.f32 %v14007_v53, %v12180_v14  ;;  %v9925_v19 = vpop.f32.mrb[171].mxu0 }
0x1d07   :  { %v9926_v21 = vadd.f32 %v12180_v14, %v9925_v19 }
0x1d09   :  { %v16862_v13 = vpack.c.bf16 %v9931_v61, %v9926_v21  ;;  %v14010_v60 = vpop.f32.mrb[172].mxu0 }
0x1d0a   :  { %v9941_v30 = vadd.f32 %v14010_v60, %v12180_v14  ;;  %v9935_v15 = vpop.f32.mrb[173].mxu0 }
0x1d0b   :  { %v9936_v36 = vadd.f32 %v12180_v14, %v9935_v15 }
0x1d0d   :  { %v16864_v24 = vpack.c.bf16 %v9941_v30, %v9936_v36 }
0x1dc3   :  { %v13981_v7 = vpop.f32.mrb[162].mxu1 }
0x1dc4   :  { %v9796_v41 = vadd.f32 %v13981_v7, %v12167_v38  ;;  %v9790_v25 = vpop.f32.mrb[163].mxu1 }
0x1dc5   :  { %v9791_v27 = vadd.f32 %v12167_v38, %v9790_v25 }
0x1dc7   :  { %v14664_v37 = vpack.c.bf16 %v9796_v41, %v9791_v27  ;;  %v13984_v32 = vpop.f32.mrb[164].mxu1 }
0x1dc8   :  { %v9806_v58 = vadd.f32 %v13984_v32, %v12167_v38  ;;  %v9800_v33 = vpop.f32.mrb[165].mxu1 }
0x1dc9   :  { %v9801_v59 = vadd.f32 %v12167_v38, %v9800_v33  ;;  %14666 = vmatprep.subr.msk.bf16.mxu1 %vm15288_vm2, %v14664_v37 }
0x1dca   :  { %14669 = vmatpush3.bf16.xpose.msk.msra.mxu1 %vm15288_vm2, %v14664_v37 }
0x1dcb   :  { %v14670_v45 = vpack.c.bf16 %v9806_v58, %v9801_v59  ;;  %v13987_v16 = vpop.f32.mrb[166].mxu1 }
0x1dcc   :  { %v9816_v31 = vadd.f32 %v13987_v16, %v12167_v38  ;;  %v9810_v44 = vpop.f32.mrb[167].mxu1 }
0x1dcd   :  { %v9811_v40 = vadd.f32 %v12167_v38, %v9810_v44  ;;  %14672 = vmatprep.subr.msk.bf16.mxu0 %vm15288_vm2, %v14670_v45 }
0x1dce   :  { %14675 = vmatpush3.bf16.xpose.msk.msra.mxu0 %vm15288_vm2, %v14670_v45 }
0x1dcf   :  { %v14676_v34 = vpack.c.bf16 %v9816_v31, %v9811_v40  ;;  %v13990_v10 = vpop.f32.mrb[168].mxu1 }
0x1dd0   :  { %v9826_v57 = vadd.f32 %v13990_v10, %v12167_v38  ;;  %v9820_v20 = vpop.f32.mrb[169].mxu1 }
0x1dd1   :  { %v9821_v22 = vadd.f32 %v12167_v38, %v9820_v20  ;;  %14016 = vmatmul.mubr.msk.f32.vlgmr.msra.gmra.mrb[170].mxu1 %vm428_vm1, %v16835_v48  ;;  %14678 = vmatprep.subr.msk.bf16.mxu1 %vm15288_vm2, %v14676_v34 }
0x1dd2   :  { %14681 = vmatpush3.bf16.xpose.msk.msra.mxu1 %vm15288_vm2, %v14676_v34  ;;  %14029 = vmatprep.mubr.msk.f32.mxu1 %vm428_vm1, %v9696_v18 }
0x1dd3   :  { %v14682_v9 = vpack.c.bf16 %v9826_v57, %v9821_v22  ;;  %14689 = vmatprep.subr.bf16.mxu1 %v14688_v8 }
0x1dd5   :  { %14023 = vmatmul.mubr.msk.f32.vlgmr.msra.gmra.mrb[174].mxu0 %vm428_vm1, %v16841_v50  ;;  %14684 = vmatprep.subr.msk.bf16.mxu0 %vm15288_vm2, %v14682_v9 }
0x1dd6   :  { %14687 = vmatpush3.bf16.xpose.msk.msra.mxu0 %vm15288_vm2, %v14682_v9  ;;  %14036 = vmatprep.mubr.msk.f32.mxu0 %vm428_vm1, %v9706_v47 }
0x1dd7   :  { %14693 = vmatprep.subr.bf16.mxu0 %v14692_v39 }
0x1dd9   :  { %14030 = vmatmul.mubr.msk.f32.vlgmr.msra.gmra.mrb[172].mxu1 %vm428_vm1, %v16848_v49 }
0x1dda   :  { %14691 = vmatpush3.bf16.msra.mxu1 %v14688_v8 }
0x1ddb   :  { %14697 = vmatprep.subr.bf16.mxu1 %v16862_v13 }
0x1ddd   :  { %14037 = vmatmul.mubr.msk.f32.vlgmr.msra.gmra.mrb[176].mxu0 %vm428_vm1, %v16854_v12 }
0x1dde   :  { %14695 = vmatpush3.bf16.msra.mxu0 %v14692_v39 }
0x1ddf   :  { %14701 = vmatprep.subr.bf16.mxu0 %v16864_v24 }
0x1ea4   :  { %v14017_v48 = vpop.f32.mrb[170].mxu1 }
0x1ea5   :  { %v10293_v50 = vmul.f32 0.35355338, %v14017_v48  ;;  %v10022_v0 = vpop.f32.mrb[171].mxu1 }
0x1ea6   :  { %v10292_v52 = vmul.f32 0.35355338, %v10022_v0 }
0x1ea7   :  { %v10301_v29 = vadd.f32 %v10293_v50, %v15325_v62 }
0x1ea8   :  { %v10300_v26 = vadd.f32 %v10292_v52, %v15325_v62  ;;  %v14024_v18 = vpop.f32.mrb[174].mxu0 }
0x1ea9   :  { %v10295_v4 = vmul.f32 0.35355338, %v14024_v18  ;;  %v10109_v49 = vpop.f32.mrb[175].mxu0  ;;  %v10311_v51 = vsel %vm793_vm4, %v10301_v29, -inf }
0x1eaa   :  { %v10294_v54 = vmul.f32 0.35355338, %v10109_v49  ;;  %10312 = vmax.xlane.f32.xlu1 %v10311_v51  ;;  %v10308_v12 = vsel %vm793_vm4, %v10300_v26, -inf }
0x1eab   :  { %v10303_v47 = vadd.f32 %v10295_v4, %v15325_v62  ;;  %10309 = vmax.xlane.f32.xlu0 %v10308_v12 }
0x1eac   :  { %v10302_v14 = vadd.f32 %v10294_v54, %v15325_v62  ;;  %v14031_v17 = vpop.f32.mrb[172].mxu1 }
0x1ead   :  { %v10297_v56 = vmul.f32 0.35355338, %v14031_v17  ;;  %v10196_v3 = vpop.f32.mrb[173].mxu1  ;;  %v10317_v1 = vsel %vm793_vm4, %v10303_v47, -inf }
0x1eae   :  { %v10296_v8 = vmul.f32 0.35355338, %v10196_v3  ;;  %10318 = vmax.xlane.f32.xlu1 %v10317_v1  ;;  %v10314_v63 = vsel %vm793_vm4, %v10302_v14, -inf }
0x1eaf   :  { %v10305_v6 = vadd.f32 %v10297_v56, %v15325_v62  ;;  %10315 = vmax.xlane.f32.xlu0 %v10314_v63 }
0x1eb0   :  { %v10304_v2 = vadd.f32 %v10296_v8, %v15325_v62  ;;  %v14038_v42 = vpop.f32.mrb[176].mxu0 }
0x1eb1   :  { %v10299_v39 = vmul.f32 0.35355338, %v14038_v42  ;;  %v10283_v53 = vpop.f32.mrb[177].mxu0  ;;  %v10323_v61 = vsel %vm793_vm4, %v10305_v6, -inf }
0x1eb2   :  { %v10298_v19 = vmul.f32 0.35355338, %v10283_v53  ;;  %10324 = vmax.xlane.f32.xlu1 %v10323_v61  ;;  %v10320_v21 = vsel %vm793_vm4, %v10304_v2, -inf }
0x1eb3   :  { %v10307_v60 = vadd.f32 %v10299_v39, %v15325_v62  ;;  %10321 = vmax.xlane.f32.xlu0 %v10320_v21 }
0x1eb4   :  { %v10306_v30 = vadd.f32 %v10298_v19, %v15325_v62 }
0x1eb5   :  { %v10329_v15 = vsel %vm793_vm4, %v10307_v60, -inf }
0x1eb6   :  { %10330 = vmax.xlane.f32.xlu1 %v10329_v15  ;;  %v10326_v36 = vsel %vm793_vm4, %v10306_v30, -inf }
0x1eb7   :  { %10327 = vmax.xlane.f32.xlu0 %v10326_v36 }
0x1f37   :  { %v10313_v38 = vpop.xlane.xlu1 %10312 }
0x1f38   :  { %v10333_v7 = vsub.f32 %v10301_v29, %v10313_v38  ;;  %v10310_v41 = vpop.xlane.xlu0 %10309 }
0x1f39   :  { %v10332_v25 = vsub.f32 %v10300_v26, %v10310_v41 }
0x1f3a   :  { %v10342_v27 = vmul.f32 1.442695, %v10333_v7 }
0x1f3b   :  { %v10340_v37 = vmul.f32 1.442695, %v10332_v25  ;;  %v10319_v32 = vpop.xlane.xlu1 %10318 }
0x1f3c   :  { %15050 = vpow2.f32 %v10342_v27  ;;  %v10335_v58 = vsub.f32 %v10303_v47, %v10319_v32  ;;  %v10316_v33 = vpop.xlane.xlu0 %10315 }
0x1f3d   :  { %15052 = vpow2.f32 %v10340_v37  ;;  %v10334_v59 = vsub.f32 %v10302_v14, %v10316_v33 }
0x1f3e   :  { %v10346_v45 = vmul.f32 1.442695, %v10335_v58 }
0x1f3f   :  { %v10344_v62 = vmul.f32 1.442695, %v10334_v59  ;;  %v10325_v16 = vpop.xlane.xlu1 %10324  ;;  %v12213_v59 = vld [vmem:[%s17156_s3 + $0x38] sm:$0xff] }
0x1f40   :  { %15054 = vpow2.f32 %v10346_v45  ;;  %v10337_v31 = vsub.f32 %v10305_v6, %v10325_v16  ;;  %v10322_v44 = vpop.xlane.xlu0 %10321 }
0x1f41   :  { %15056 = vpow2.f32 %v10344_v62  ;;  %v10336_v40 = vsub.f32 %v10304_v2, %v10322_v44 }
0x1f42   :  { %v10350_v34 = vmul.f32 1.442695, %v10337_v31 }
0x1f43   :  { %v10348_v10 = vmul.f32 1.442695, %v10336_v40  ;;  %v10331_v57 = vpop.xlane.xlu1 %10330 }
0x1f44   :  { %15058 = vpow2.f32 %v10350_v34  ;;  %v10339_v20 = vsub.f32 %v10307_v60, %v10331_v57  ;;  %v10328_v22 = vpop.xlane.xlu0 %10327 }
0x1f45   :  { %15060 = vpow2.f32 %v10348_v10  ;;  %v10338_v9 = vsub.f32 %v10306_v30, %v10328_v22  ;;  %v12222_v10 = vld [vmem:[%s17155_s5 + $0x1c] ss:$0 sm:$0xff] }
0x1f46   :  { %v15051_v48 = vpop.eup %15050  ;;  %v10354_v50 = vmul.f32 1.442695, %v10339_v20 }
0x1f47   :  { %v15053_v0 = vpop.eup %15052  ;;  %v10352_v52 = vmul.f32 1.442695, %v10338_v9  ;;  %v10359_v29 = vsel %vm793_vm4, %v15051_v48, 0.0 }
0x1f48   :  { %15062 = vpow2.f32 %v10354_v50  ;;  %10360 = vadd.xlane.f32.xlu1 %v10359_v29  ;;  %v10356_v26 = vsel %vm793_vm4, %v15053_v0, 0.0 }
0x1f49   :  { %15064 = vpow2.f32 %v10352_v52  ;;  %10357 = vadd.xlane.f32.xlu0 %v10356_v26 }
0x1f4a   :  { %v15055_v18 = vpop.eup %15054 }
0x1f4b   :  { %v15057_v4 = vpop.eup %15056  ;;  %v10365_v49 = vsel %vm793_vm4, %v15055_v18, 0.0 }
0x1f4c   :  { %10366 = vadd.xlane.f32.xlu1 %v10365_v49  ;;  %v10362_v51 = vsel %vm793_vm4, %v15057_v4, 0.0 }
0x1f4d   :  { %10363 = vadd.xlane.f32.xlu0 %v10362_v51 }
0x1f4e   :  { %v15059_v54 = vpop.eup %15058 }
0x1f4f   :  { %v15061_v12 = vpop.eup %15060  ;;  %v10371_v47 = vsel %vm793_vm4, %v15059_v54, 0.0 }
0x1f50   :  { %10372 = vadd.xlane.f32.xlu1 %v10371_v47  ;;  %v10368_v14 = vsel %vm793_vm4, %v15061_v12, 0.0 }
0x1f51   :  { %10369 = vadd.xlane.f32.xlu0 %v10368_v14 }
0x1f52   :  { %v15063_v17 = vpop.eup %15062 }
0x1f53   :  { %v15065_v56 = vpop.eup %15064  ;;  %v10377_v3 = vsel %vm793_vm4, %v15063_v17, 0.0 }
0x1f54   :  { %10378 = vadd.xlane.f32.xlu1 %v10377_v3  ;;  %v10374_v1 = vsel %vm793_vm4, %v15065_v56, 0.0 }
0x1f55   :  { %10375 = vadd.xlane.f32.xlu0 %v10374_v1 }
0x1fd5   :  { %v10361_v8 = vpop.xlane.xlu1 %10360 }
0x1fd6   :  { %15066 = vrcp.f32 %v10361_v8  ;;  %v10358_v63 = vpop.xlane.xlu0 %10357 }
0x1fd7   :  { %15068 = vrcp.f32 %v10358_v63 }
0x1fd9   :  { %v10367_v6 = vpop.xlane.xlu1 %10366 }
0x1fda   :  { %15070 = vrcp.f32 %v10367_v6  ;;  %v10364_v2 = vpop.xlane.xlu0 %10363 }
0x1fdb   :  { %15072 = vrcp.f32 %v10364_v2 }
0x1fdd   :  { %v10373_v42 = vpop.xlane.xlu1 %10372 }
0x1fde   :  { %15074 = vrcp.f32 %v10373_v42  ;;  %v10370_v39 = vpop.xlane.xlu0 %10369 }
0x1fdf   :  { %15076 = vrcp.f32 %v10370_v39 }
0x1fe0   :  { %v15067_v53 = vpop.eup %15066 }
0x1fe1   :  { %v15069_v61 = vpop.eup %15068  ;;  %v10379_v19 = vpop.xlane.xlu1 %10378  ;;  %v10383_v30 = vmul.f32 %v15067_v53, %v15051_v48 }
0x1fe2   :  { %15078 = vrcp.f32 %v10379_v19  ;;  %v10376_v21 = vpop.xlane.xlu0 %10375  ;;  %v10381_v60 = vmul.f32 %v15069_v61, %v15053_v0 }
0x1fe3   :  { %15080 = vrcp.f32 %v10376_v21 }
0x1fe4   :  { %v15071_v15 = vpop.eup %15070  ;;  %14043 = vmatprep.mubr.msk.f32.mxu1 %vm793_vm4, %v10381_v60 }
0x1fe5   :  { %v15073_v36 = vpop.eup %15072  ;;  %14044 = vmatmul.mubr.msk.f32.vlgmr.msra.gmra.mrb[174].mxu1 %vm793_vm4, %v10383_v30  ;;  %v10387_v7 = vmul.f32 %v15071_v15, %v15055_v18 }
0x1fe6   :  { %14699 = vmatpush3.bf16.msra.mxu1 %v16862_v13  ;;  %v10385_v38 = vmul.f32 %v15073_v36, %v15057_v4 }
0x1fe7   :  { %14067 = vmatprep.subr.mxu1 %v12213_v59 }
0x1fe8   :  { %v15075_v41 = vpop.eup %15074  ;;  %14050 = vmatprep.mubr.msk.f32.mxu0 %vm793_vm4, %v10385_v38 }
0x1fe9   :  { %v15077_v25 = vpop.eup %15076  ;;  %14051 = vmatmul.mubr.msk.f32.vlgmr.msra.gmra.mrb[178].mxu0 %vm793_vm4, %v10387_v7  ;;  %v10391_v37 = vmul.f32 %v15075_v41, %v15059_v54 }
0x1fea   :  { %14703 = vmatpush3.bf16.msra.mxu0 %v16864_v24  ;;  %v10389_v27 = vmul.f32 %v15077_v25, %v15061_v12 }
0x1fec   :  { %v15079_v32 = vpop.eup %15078  ;;  %14057 = vmatprep.mubr.msk.f32.mxu1 %vm793_vm4, %v10389_v27 }
0x1fed   :  { %v15081_v58 = vpop.eup %15080  ;;  %14058 = vmatmul.mubr.msk.f32.vlgmr.msra.gmra.mrb[176].mxu1 %vm793_vm4, %v10391_v37  ;;  %v10395_v13 = vmul.f32 %v15079_v32, %v15063_v17 }
0x1fee   :  { %v10393_v33 = vmul.f32 %v15081_v58, %v15065_v56  ;;  %14068 = vmatpush3.msra.mxu1 %v12213_v59 }
0x1ff0   :  { %14064 = vmatprep.mubr.msk.f32.mxu0 %vm793_vm4, %v10393_v33 }
0x1ff1   :  { %14065 = vmatmul.mubr.msk.f32.vlgmr.msra.gmra.mrb[180].mxu0 %vm793_vm4, %v10395_v13 }
0x20b8   :  { %v14045_v24 = vpop.f32.mrb[174].mxu1 }
0x20b9   :  { %v10468_v45 = vpop.f32.mrb[175].mxu1 }
0x20ba   :  { %14069 = vmatprep.mubr.msk.f32.mxu1 %vm428_vm1, %v10468_v45 }
0x20bb   :  { %14070 = vmatmul.mubr.msk.f32.vlgmr.msra.gmra.mrb[138].mxu1 %vm428_vm1, %v14045_v24 }
0x20bc   :  { %v14052_v62 = vpop.f32.mrb[178].mxu0 }
0x20bd   :  { %v10549_v16 = vpop.f32.mrb[179].mxu0 }
0x20be   :  { %14072 = vmatprep.mubr.msk.f32.mxu1 %vm428_vm1, %v10549_v16 }
0x20bf   :  { %14073 = vmatmul.mubr.msk.f32.gmra.mrb[140].mxu1 %vm428_vm1, %v14052_v62 }
0x20c0   :  { %v14059_v31 = vpop.f32.mrb[176].mxu1 }
0x20c1   :  { %v10630_v44 = vpop.f32.mrb[177].mxu1 }
0x20c2   :  { %14075 = vmatprep.mubr.msk.f32.mxu1 %vm428_vm1, %v10630_v44 }
0x20c3   :  { %14076 = vmatmul.mubr.msk.f32.gmra.mrb[142].mxu1 %vm428_vm1, %v14059_v31 }
0x20c4   :  { %v14066_v40 = vpop.f32.mrb[180].mxu0 }
0x20c5   :  { %v10711_v34 = vpop.f32.mrb[181].mxu0 }
0x20c6   :  { %14078 = vmatprep.mubr.msk.f32.mxu1 %vm428_vm1, %v10711_v34 }
0x20c7   :  { %14079 = vmatmul.mubr.msk.f32.gmra.mrb[144].mxu1 %vm428_vm1, %v14066_v40 }
0x218e   :  { %v14071_v57 = vpop.f32.mrb[138].mxu1 }
0x218f   :  { %v10865_v20 = vadd.f32 %v14071_v57, %v12222_v10  ;;  %v10812_v22 = vpop.f32.mrb[139].mxu1 }
0x2190   :  { %v10864_v9 = vadd.f32 %v12222_v10, %v10812_v22 }
0x2191   :  { %v10873_v48 = vadd.f32 %v10865_v20, %v16097_v5 }
0x2192   :  { %v16947_v50 = vadd.f32 %v10864_v9, %v16100_v23  ;;  %v14074_v0 = vpop.f32.mrb[140].mxu1 }
0x2193   :  { %v10867_v52 = vadd.f32 %v14074_v0, %v12222_v10  ;;  %v10822_v29 = vpop.f32.mrb[141].mxu1  ;;  %v10885_v26 = vsel %vm68_vm0, %v10873_v48, 0.0 }
0x2194   :  { %v10866_v18 = vadd.f32 %v12222_v10, %v10822_v29  ;;  %10886 = vadd.xlane.f32.xlu1 %v10885_v26  ;;  %v10882_v4 = vsel %vm68_vm0, %v16947_v50, 0.0  ;;  %v12225_v26 = vld [vmem:[%s17157_s4 + $0xc0] sm:$0xff] }
0x2195   :  { %v10875_v49 = vadd.f32 %v10867_v52, %v16107_v28  ;;  %10883 = vadd.xlane.f32.xlu0 %v10882_v4  ;;  %v12238_v4 = vld [vmem:[%s17157_s4 + $0x100] sm:$0xff] }
0x2196   :  { %v16954_v51 = vadd.f32 %v10866_v18, %v16110_v35  ;;  %v14077_v5 = vpop.f32.mrb[142].mxu1  ;;  %v12226_v18 = vld [vmem:[%s17157_s4 + $0xc8] sm:$0xff] }
0x2197   :  { %v10869_v54 = vadd.f32 %v14077_v5, %v12222_v10  ;;  %v10832_v23 = vpop.f32.mrb[143].mxu1  ;;  %v10891_v12 = vsel %vm68_vm0, %v10875_v49, 0.0  ;;  %v12239_v5 = vld [vmem:[%s17157_s4 + $0x108] sm:$0xff] }
0x2198   :  { %v10868_v47 = vadd.f32 %v12222_v10, %v10832_v23  ;;  %10892 = vadd.xlane.f32.xlu1 %v10891_v12  ;;  %v10888_v14 = vsel %vm68_vm0, %v16954_v51, 0.0  ;;  %v12227_v23 = vld [vmem:[%s17157_s4 + $0xd0] sm:$0xff]  ;;  %v12228_v12 = vld [vmem:[%s17157_s4 + $0xd8] sm:$0xff] }
0x2199   :  { %v10877_v17 = vadd.f32 %v10869_v54, %v16117_v43  ;;  %10889 = vadd.xlane.f32.xlu0 %v10888_v14  ;;  %v14712_v54 = vpack.c.bf16 %v12239_v5, %v12238_v4  ;;  %v14708_v14 = vpack.c.bf16 %v12228_v12, %v12227_v23 }
0x219a   :  { %v16961_v56 = vadd.f32 %v10868_v47, %v16120_v46  ;;  %v14080_v28 = vpop.f32.mrb[144].mxu1  ;;  %v12240_v47 = vld [vmem:[%s17157_s4 + $0x110] sm:$0xff] }
0x219b   :  { %v10871_v3 = vadd.f32 %v14080_v28, %v12222_v10  ;;  %v10842_v35 = vpop.f32.mrb[145].mxu1  ;;  %v10897_v1 = vsel %vm68_vm0, %v10877_v17, 0.0  ;;  %14713 = vmatprep.subr.bf16.mxu1 %v14712_v54 }
0x219c   :  { %v10870_v8 = vadd.f32 %v12222_v10, %v10842_v35  ;;  %10898 = vadd.xlane.f32.xlu1 %v10897_v1  ;;  %v10894_v63 = vsel %vm68_vm0, %v16961_v56, 0.0  ;;  %14715 = vmatpush3.bf16.msra.mxu1 %v14712_v54  ;;  %v12252_v35 = vld [vmem:[%s17157_s4 + $0x148] sm:$0xff] }
0x219d   :  { %v10879_v6 = vadd.f32 %v10871_v3, %v16127_v11  ;;  %10895 = vadd.xlane.f32.xlu0 %v10894_v63  ;;  %v12251_v3 = vld [vmem:[%s17157_s4 + $0x140] sm:$0xff] }
0x219e   :  { %v16968_v2 = vadd.f32 %v10870_v8, %v16130_v55  ;;  %v14720_v1 = vpack.c.bf16 %v12252_v35, %v12251_v3 }
0x219f   :  { %v10903_v43 = vsel %vm68_vm0, %v10879_v6, 0.0 }
0x21a0   :  { %10904 = vadd.xlane.f32.xlu1 %v10903_v43  ;;  %v10900_v46 = vsel %vm68_vm0, %v16968_v2, 0.0 }
0x21a1   :  { %10901 = vadd.xlane.f32.xlu0 %v10900_v46 }
0x2221   :  { %v10887_v42 = vpop.xlane.xlu1 %10886 }
0x2222   :  { %v10907_v39 = vmul.f32 0.03125, %v10887_v42  ;;  %v10884_v53 = vpop.xlane.xlu0 %10883 }
0x2223   :  { %v10906_v61 = vmul.f32 0.03125, %v10884_v53 }
0x2224   :  { %v16973_v19 = vsub.f32 %v10873_v48, %v10907_v39 }
0x2225   :  { %v16976_v21 = vsub.f32 %v16947_v50, %v10906_v61  ;;  %v10893_v11 = vpop.xlane.xlu1 %10892 }
0x2226   :  { %v10909_v60 = vmul.f32 0.03125, %v10893_v11  ;;  %v10890_v55 = vpop.xlane.xlu0 %10889  ;;  %v10923_v30 = vmul.f32 %v16973_v19, %v16973_v19 }
0x2227   :  { %v10908_v15 = vmul.f32 0.03125, %v10890_v55  ;;  %v10922_v36 = vmul.f32 %v16976_v21, %v16976_v21 }
0x2228   :  { %v16982_v38 = vsub.f32 %v10875_v49, %v10909_v60  ;;  %v10933_v7 = vsel %vm68_vm0, %v10923_v30, 0.0  ;;  %v14704_v49 = vpack.c.bf16 %v12226_v18, %v12225_v26 }
0x2229   :  { %v16986_v41 = vsub.f32 %v16954_v51, %v10908_v15  ;;  %v10899_v25 = vpop.xlane.xlu1 %10898  ;;  %10934 = vadd.xlane.f32.xlu1 %v10933_v7  ;;  %v10930_v27 = vsel %vm68_vm0, %v10922_v36, 0.0 }
0x222a   :  { %v10911_v37 = vmul.f32 0.03125, %v10899_v25  ;;  %10931 = vadd.xlane.f32.xlu0 %v10930_v27  ;;  %v10896_v32 = vpop.xlane.xlu0 %10895  ;;  %v10925_v58 = vmul.f32 %v16982_v38, %v16982_v38  ;;  %14705 = vmatprep.subr.bf16.mxu0 %v14704_v49 }
0x222b   :  { %v10910_v33 = vmul.f32 0.03125, %v10896_v32  ;;  %v10924_v13 = vmul.f32 %v16986_v41, %v16986_v41  ;;  %14707 = vmatpush3.bf16.msra.mxu0 %v14704_v49 }
0x222c   :  { %v16993_v59 = vsub.f32 %v10877_v17, %v10911_v37  ;;  %v10939_v24 = vsel %vm68_vm0, %v10925_v58, 0.0  ;;  %v12241_v17 = vld [vmem:[%s17157_s4 + $0x118] sm:$0xff]  ;;  %14709 = vmatprep.subr.bf16.mxu0 %v14708_v14 }
0x222d   :  { %v16997_v45 = vsub.f32 %v16961_v56, %v10910_v33  ;;  %10940 = vadd.xlane.f32.xlu1 %v10939_v24  ;;  %v10905_v62 = vpop.xlane.xlu1 %10904  ;;  %v10936_v16 = vsel %vm68_vm0, %v10924_v13, 0.0  ;;  %v14716_v28 = vpack.c.bf16 %v12241_v17, %v12240_v47 }
0x222e   :  { %v10913_v31 = vmul.f32 0.03125, %v10905_v62  ;;  %10937 = vadd.xlane.f32.xlu0 %v10936_v16  ;;  %v10902_v44 = vpop.xlane.xlu0 %10901  ;;  %v10927_v40 = vmul.f32 %v16993_v59, %v16993_v59  ;;  %v12223_v62 = vld [vmem:[%s17155_s5 + $0x1a] ss:$0 sm:$0xff] }
0x222f   :  { %v10912_v34 = vmul.f32 0.03125, %v10902_v44  ;;  %v10926_v10 = vmul.f32 %v16997_v45, %v16997_v45  ;;  %14717 = vmatprep.subr.bf16.mxu1 %v14716_v28  ;;  %14711 = vmatpush3.bf16.msra.mxu0 %v14708_v14 }
0x2230   :  { %v17004_v57 = vsub.f32 %v10879_v6, %v10913_v31  ;;  %v10945_v20 = vsel %vm68_vm0, %v10927_v40, 0.0  ;;  %14719 = vmatpush3.bf16.msra.mxu1 %v14716_v28  ;;  %14721 = vmatprep.subr.bf16.mxu0 %v14720_v1 }
0x2231   :  { %v17008_v22 = vsub.f32 %v16968_v2, %v10912_v34  ;;  %10946 = vadd.xlane.f32.xlu1 %v10945_v20  ;;  %v10942_v9 = vsel %vm68_vm0, %v10926_v10, 0.0  ;;  %v12224_v34 = vld [vmem:[%s17155_s5 + $0x1b] ss:$0 sm:$0xff] }
0x2232   :  { %10943 = vadd.xlane.f32.xlu0 %v10942_v9  ;;  %v10929_v48 = vmul.f32 %v17004_v57, %v17004_v57 }
0x2233   :  { %v10928_v0 = vmul.f32 %v17008_v22, %v17008_v22 }
0x2234   :  { %v10951_v52 = vsel %vm68_vm0, %v10929_v48, 0.0  ;;  %v12253_v48 = vld [vmem:[%s17157_s4 + $0x150] sm:$0xff] }
0x2235   :  { %10952 = vadd.xlane.f32.xlu1 %v10951_v52  ;;  %v10948_v29 = vsel %vm68_vm0, %v10928_v0, 0.0 }
0x2236   :  { %10949 = vadd.xlane.f32.xlu0 %v10948_v29 }
0x22b6   :  { %v10935_v8 = vpop.xlane.xlu1 %10934 }
0x22b7   :  { %v10955_v63 = vmul.f32 0.03125, %v10935_v8  ;;  %v10932_v6 = vpop.xlane.xlu0 %10931 }
0x22b8   :  { %v10954_v43 = vmul.f32 0.03125, %v10932_v6 }
0x22b9   :  { %v10963_v46 = vadd.f32 1e-05, %v10955_v63 }
0x22ba   :  { %v10962_v42 = vadd.f32 1e-05, %v10954_v43  ;;  %v10941_v39 = vpop.xlane.xlu1 %10940 }
0x22bb   :  { %15082 = vrsqrt.f32 %v10963_v46  ;;  %v10957_v53 = vmul.f32 0.03125, %v10941_v39  ;;  %v10938_v61 = vpop.xlane.xlu0 %10937  ;;  %v12257_v46 = vld [vmem:[%s17157_s4 + $0x170] sm:$0xff] }
0x22bc   :  { %15084 = vrsqrt.f32 %v10962_v42  ;;  %v10956_v11 = vmul.f32 0.03125, %v10938_v61  ;;  %v12258_v42 = vld [vmem:[%s17157_s4 + $0x178] sm:$0xff] }
0x22bd   :  { %v10965_v60 = vadd.f32 1e-05, %v10957_v53  ;;  %v14732_v39 = vpack.c.bf16 %v12258_v42, %v12257_v46  ;;  %v12242_v53 = vld [vmem:[%s17155_s5 + $0x1f] ss:$0 sm:$0xff] }
0x22be   :  { %v10964_v55 = vadd.f32 1e-05, %v10956_v11  ;;  %v10947_v30 = vpop.xlane.xlu1 %10946  ;;  %v12229_v11 = vld [vmem:[%s17155_s5 + $0x1e] ss:$0 sm:$0xff] }
0x22bf   :  { %15086 = vrsqrt.f32 %v10965_v60  ;;  %v10959_v15 = vmul.f32 0.03125, %v10947_v30  ;;  %v10944_v36 = vpop.xlane.xlu0 %10943 }
0x22c0   :  { %15088 = vrsqrt.f32 %v10964_v55  ;;  %v10958_v7 = vmul.f32 0.03125, %v10944_v36 }
0x22c1   :  { %v10967_v25 = vadd.f32 1e-05, %v10959_v15 }
0x22c2   :  { %v10966_v27 = vadd.f32 1e-05, %v10958_v7  ;;  %v10953_v37 = vpop.xlane.xlu1 %10952 }
0x22c3   :  { %15090 = vrsqrt.f32 %v10967_v25  ;;  %v10961_v32 = vmul.f32 0.03125, %v10953_v37  ;;  %v10950_v58 = vpop.xlane.xlu0 %10949 }
0x22c4   :  { %15092 = vrsqrt.f32 %v10966_v27  ;;  %v10960_v33 = vmul.f32 0.03125, %v10950_v58 }
0x22c5   :  { %v15083_v13 = vpop.eup %15082  ;;  %v10969_v24 = vadd.f32 1e-05, %v10961_v32 }
0x22c6   :  { %v15085_v16 = vpop.eup %15084  ;;  %v10979_v31 = vmul.f32 %v15083_v13, %v16973_v19  ;;  %v10968_v44 = vadd.f32 1e-05, %v10960_v33  ;;  %v12254_v19 = vld [vmem:[%s17157_s4 + $0x158] sm:$0xff] }
0x22c7   :  { %15094 = vrsqrt.f32 %v10969_v24  ;;  %v10978_v40 = vmul.f32 %v15085_v16, %v16976_v21  ;;  %v14724_v4 = vpack.c.bf16 %v12254_v19, %v12253_v48 }
0x22c8   :  { %15096 = vrsqrt.f32 %v10968_v44  ;;  %v10991_v10 = vmul.f32 %v12223_v62, %v10979_v31 }
0x22c9   :  { %v15087_v20 = vpop.eup %15086  ;;  %v10990_v9 = vmul.f32 %v12223_v62, %v10978_v40 }
0x22ca   :  { %v15089_v0 = vpop.eup %15088  ;;  %v10981_v52 = vmul.f32 %v15087_v20, %v16982_v38  ;;  %v11003_v26 = vadd.f32 %v12224_v34, %v10991_v10 }
0x22cb   :  { %v11002_v21 = vadd.f32 %v12224_v34, %v10990_v9  ;;  %v10980_v29 = vmul.f32 %v15089_v0, %v16986_v41 }
0x22cc   :  { %v10993_v18 = vmul.f32 %v12223_v62, %v10981_v52 }
0x22cd   :  { %v15091_v49 = vpop.eup %15090  ;;  %14089 = vmatprep.mubr.msk.f32.mxu0 %vm68_vm0, %v11002_v21  ;;  %14109 = vmatprep.mubr.msk.f32.mxu1 %vm68_vm0, %v11002_v21  ;;  %v10992_v5 = vmul.f32 %v12223_v62, %v10980_v29 }
0x22ce   :  { %v15093_v54 = vpop.eup %15092  ;;  %14090 = vmatmul.mubr.msk.f32.vlgmr.msra.gmra.mrb[182].mxu0 %vm68_vm0, %v11003_v26  ;;  %14110 = vmatmul.mubr.msk.f32.vlgmr.msra.gmra.mrb[178].mxu1 %vm68_vm0, %v11003_v26  ;;  %v10983_v23 = vmul.f32 %v15091_v49, %v16993_v59  ;;  %v11005_v41 = vadd.f32 %v12224_v34, %v10993_v18 }
0x22cf   :  { %v11004_v38 = vadd.f32 %v12224_v34, %v10992_v5  ;;  %v10982_v12 = vmul.f32 %v15093_v54, %v16997_v45  ;;  %14723 = vmatpush3.bf16.msra.mxu0 %v14720_v1 }
0x22d0   :  { %v10995_v47 = vmul.f32 %v12223_v62, %v10983_v23  ;;  %14725 = vmatprep.subr.bf16.mxu0 %v14724_v4 }
0x22d1   :  { %v15095_v14 = vpop.eup %15094  ;;  %14092 = vmatprep.mubr.msk.f32.mxu0 %vm68_vm0, %v11004_v38  ;;  %14112 = vmatprep.mubr.msk.f32.mxu1 %vm68_vm0, %v11004_v38  ;;  %v10994_v17 = vmul.f32 %v12223_v62, %v10982_v12 }
0x22d2   :  { %v15097_v28 = vpop.eup %15096  ;;  %14093 = vmatmul.mubr.msk.f32.gmra.mrb[184].mxu0 %vm68_vm0, %v11005_v41  ;;  %14113 = vmatmul.mubr.msk.f32.gmra.mrb[180].mxu1 %vm68_vm0, %v11005_v41  ;;  %v10985_v59 = vmul.f32 %v15095_v14, %v17004_v57  ;;  %v11007_v35 = vadd.f32 %v12224_v34, %v10995_v47  ;;  %v12255_v57 = vld [vmem:[%s17157_s4 + $0x160] sm:$0xff] }
0x22d3   :  { %v11006_v3 = vadd.f32 %v12224_v34, %v10994_v17  ;;  %v10984_v45 = vmul.f32 %v15097_v28, %v17008_v22  ;;  %14727 = vmatpush3.bf16.msra.mxu0 %v14724_v4  ;;  %v12256_v22 = vld [vmem:[%s17157_s4 + $0x168] sm:$0xff] }
0x22d4   :  { %v10997_v1 = vmul.f32 %v12223_v62, %v10985_v59  ;;  %v14728_v43 = vpack.c.bf16 %v12256_v22, %v12255_v57 }
0x22d5   :  { %14095 = vmatprep.mubr.msk.f32.mxu0 %vm68_vm0, %v11006_v3  ;;  %14115 = vmatprep.mubr.msk.f32.mxu1 %vm68_vm0, %v11006_v3  ;;  %v10996_v8 = vmul.f32 %v12223_v62, %v10984_v45 }
0x22d6   :  { %14096 = vmatmul.mubr.msk.f32.gmra.mrb[186].mxu0 %vm68_vm0, %v11007_v35  ;;  %14116 = vmatmul.mubr.msk.f32.gmra.mrb[182].mxu1 %vm68_vm0, %v11007_v35  ;;  %v11009_v6 = vadd.f32 %v12224_v34, %v10997_v1 }
0x22d7   :  { %v11008_v63 = vadd.f32 %v12224_v34, %v10996_v8  ;;  %14729 = vmatprep.subr.bf16.mxu0 %v14728_v43 }
0x22d8   :  { %14731 = vmatpush3.bf16.msra.mxu0 %v14728_v43 }
0x22d9   :  { %14098 = vmatprep.mubr.msk.f32.mxu0 %vm68_vm0, %v11008_v63  ;;  %14118 = vmatprep.mubr.msk.f32.mxu1 %vm68_vm0, %v11008_v63 }
0x22da   :  { %14099 = vmatmul.mubr.msk.f32.gmra.mrb[188].mxu0 %vm68_vm0, %v11009_v6  ;;  %14119 = vmatmul.mubr.msk.f32.gmra.mrb[184].mxu1 %vm68_vm0, %v11009_v6  ;;  %v12259_v6 = vld [vmem:[%s17155_s5 + $0x1d] ss:$0 sm:$0xff] }
0x22db   :  { %14733 = vmatprep.subr.bf16.mxu0 %v14732_v39 }
0x22dc   :  { %14735 = vmatpush3.bf16.msra.mxu0 %v14732_v39 }
0x23a1   :  { %v14091_v61 = vpop.f32.mrb[182].mxu0  ;;  %v14111_v60 = vpop.f32.mrb[178].mxu1 }
0x23a2   :  { %v11231_v55 = vadd.f32 %v14111_v60, %v12242_v53  ;;  %v11110_v30 = vpop.f32.mrb[183].mxu0  ;;  %v11225_v15 = vpop.f32.mrb[179].mxu1  ;;  %v11116_v7 = vadd.f32 %v14091_v61, %v12229_v11 }
0x23a3   :  { %v11226_v36 = vadd.f32 %v12242_v53, %v11225_v15  ;;  %v11111_v27 = vadd.f32 %v12229_v11, %v11110_v30 }
0x23a4   :  { %v11265_v25 = vmax.f32 %v11231_v55, 0.0 }
0x23a5   :  { %v11264_v37 = vmax.f32 %v11226_v36, 0.0  ;;  %v14094_v32 = vpop.f32.mrb[184].mxu0  ;;  %v14114_v58 = vpop.f32.mrb[180].mxu1 }
0x23a6   :  { %v11273_v33 = vmul.f32 %v11265_v25, %v11116_v7  ;;  %v11241_v13 = vadd.f32 %v14114_v58, %v12242_v53  ;;  %v11120_v24 = vpop.f32.mrb[185].mxu0  ;;  %v11235_v62 = vpop.f32.mrb[181].mxu1  ;;  %v11126_v44 = vadd.f32 %v14094_v32, %v12229_v11 }
0x23a7   :  { %v11272_v16 = vmul.f32 %v11264_v37, %v11111_v27  ;;  %v11236_v31 = vadd.f32 %v12242_v53, %v11235_v62  ;;  %v11121_v34 = vadd.f32 %v12229_v11, %v11120_v24 }
0x23a8   :  { %v11267_v40 = vmax.f32 %v11241_v13, 0.0 }
0x23a9   :  { %v11266_v10 = vmax.f32 %v11236_v31, 0.0  ;;  %v14097_v20 = vpop.f32.mrb[186].mxu0  ;;  %v14117_v9 = vpop.f32.mrb[182].mxu1  ;;  %14137 = vmatprep.mubr.msk.f32.mxu0 %vm5543_vm5, %v11272_v16 }
0x23aa   :  { %v11275_v48 = vmul.f32 %v11267_v40, %v11126_v44  ;;  %v11251_v19 = vadd.f32 %v14117_v9, %v12242_v53  ;;  %v11130_v0 = vpop.f32.mrb[187].mxu0  ;;  %v11245_v52 = vpop.f32.mrb[183].mxu1  ;;  %14138 = vmatmul.mubr.msk.f32.vlgmr.msra.gmra.mrb[190].mxu0 %vm5543_vm5, %v11273_v33  ;;  %v11136_v26 = vadd.f32 %v14097_v20, %v12229_v11 }
0x23ab   :  { %v11274_v21 = vmul.f32 %v11266_v10, %v11121_v34  ;;  %v11246_v29 = vadd.f32 %v12242_v53, %v11245_v52  ;;  %v11131_v4 = vadd.f32 %v12229_v11, %v11130_v0 }
0x23ac   :  { %v11269_v18 = vmax.f32 %v11251_v19, 0.0 }
0x23ad   :  { %v11268_v49 = vmax.f32 %v11246_v29, 0.0  ;;  %v14100_v5 = vpop.f32.mrb[188].mxu0  ;;  %v14120_v54 = vpop.f32.mrb[184].mxu1  ;;  %14140 = vmatprep.mubr.msk.f32.mxu0 %vm5543_vm5, %v11274_v21  ;;  %v15101_v21 = vmov 0.0|0.0   ;;  %v11509_v29 = vld [vmem:[%s17158_s6] sm:$0xff] }
0x23ae   :  { %v11277_v23 = vmul.f32 %v11269_v18, %v11136_v26  ;;  %v11261_v38 = vadd.f32 %v14120_v54, %v12242_v53  ;;  %v11140_v12 = vpop.f32.mrb[189].mxu0  ;;  %v11255_v41 = vpop.f32.mrb[185].mxu1  ;;  %14141 = vmatmul.mubr.msk.f32.gmra.mrb[192].mxu0 %vm5543_vm5, %v11275_v48  ;;  %v11146_v17 = vadd.f32 %v14100_v5, %v12229_v11  ;;  %14736 = vmatprep.subr.bf16.mxu1 %v15101_v21  ;;  %v11510_v26 = vld [vmem:[%s17158_s6 + $0x8] sm:$0xff]  ;;  %v11511_v18 = vld [vmem:[%s17158_s6 + $0x10] sm:$0xff]  ;;  %v11512_v5 = vld [vmem:[%s17158_s6 + $0x18] sm:$0xff] }
0x23af   :  { %v11276_v47 = vmul.f32 %v11268_v49, %v11131_v4  ;;  %v11256_v14 = vadd.f32 %v12242_v53, %v11255_v41  ;;  %v11141_v59 = vadd.f32 %v12229_v11, %v11140_v12  ;;  %v15103_v4 = vmov 0.0  }
0x23b0   :  { %v11271_v28 = vmax.f32 %v11261_v38, 0.0  ;;  %14157 = vmatprep.mubr.msk.f32.mxu1 %vm15102_vm10, %v15103_v4  ;;  %v14737_v49 = vpack.c.bf16 %v11510_v26, %v11509_v29  ;;  %v14740_v54 = vpack.c.bf16 %v11512_v5, %v11511_v18 }
0x23b1   :  { %v11270_v3 = vmax.f32 %v11256_v14, 0.0  ;;  %14143 = vmatprep.mubr.msk.f32.mxu0 %vm5543_vm5, %v11276_v47  ;;  %v12268_v47 = vld [vmem:[%s17155_s5 + $0x30] ss:$0 sm:$0xff] }
0x23b2   :  { %v11279_v45 = vmul.f32 %v11271_v28, %v11146_v17  ;;  %14144 = vmatmul.mubr.msk.f32.gmra.mrb[194].mxu0 %vm5543_vm5, %v11277_v23  ;;  %14738 = vmatpush3.bf16.msra.mxu1 %v14737_v49 }
0x23b3   :  { %v11278_v35 = vmul.f32 %v11270_v3, %v11141_v59  ;;  %14739 = vmatprep.subr.bf16.mxu1 %v15101_v21 }
0x23b5   :  { %14146 = vmatprep.mubr.msk.f32.mxu0 %vm5543_vm5, %v11278_v35 }
0x23b6   :  { %14147 = vmatmul.mubr.msk.f32.gmra.mrb[196].mxu0 %vm5543_vm5, %v11279_v45  ;;  %14741 = vmatpush3.bf16.msra.mxu1 %v14740_v54 }
0x247d   :  { %v14139_v1 = vpop.f32.mrb[190].mxu0 }
0x247e   :  { %v11384_v8 = vpop.f32.mrb[191].mxu0 }
0x247f   :  { %v11385_v53 = vadd.f32 %v12259_v6, %v11384_v8  ;;  %v12269_v8 = vld [vmem:[%s17155_s5 + $0x31] ss:$0 sm:$0xff] }
0x2481   :  { %v14142_v63 = vpop.f32.mrb[192].mxu0  ;;  %v11419_v36 = vadd.f32 %v11385_v53, %v16947_v50 }
0x2482   :  { %v11393_v57 = vpop.f32.mrb[193].mxu0 }
0x2483   :  { %v11394_v22 = vadd.f32 %v12259_v6, %v11393_v57 }
0x2485   :  { %v14145_v43 = vpop.f32.mrb[194].mxu0  ;;  %v11420_v42 = vadd.f32 %v11394_v22, %v16954_v51 }
0x2486   :  { %v11402_v46 = vpop.f32.mrb[195].mxu0 }
0x2487   :  { %v11403_v39 = vadd.f32 %v12259_v6, %v11402_v46  ;;  %v11429_v55 = vrot.slane %v11420_v42, 7 }
0x2489   :  { %v11421_v61 = vadd.f32 %v11403_v39, %v16961_v56  ;;  %v14148_v11 = vpop.f32.mrb[196].mxu0  ;;  %v11431_v27 = vsel %vm11430_vm6, %v11429_v55, %v11419_v36 }
0x248a   :  { %v11411_v60 = vpop.f32.mrb[197].mxu0 }
0x248b   :  { %v11412_v30 = vadd.f32 %v12259_v6, %v11411_v60  ;;  %v11432_v15 = vrot.slane %v11421_v61, 6 }
0x248d   :  { %v11422_v7 = vadd.f32 %v11412_v30, %v16968_v2  ;;  %v11434_v51 = vsel %vm11433_vm7, %v11432_v15, %v11431_v27 }
0x248f   :  { %v11435_v25 = vrot.slane %v11422_v7, 5 }
0x2491   :  { %v11437_v56 = vsel %vm11436_vm8, %v11435_v25, %v11434_v51  ;;  %v12270_v25 = vld [vmem:[%s17155_s5 + $0x32] ss:$0 sm:$0xff] }
0x2492   :  { %v11440_v37 = vsel %vm11439_vm9, %v11437_v56, 0.0 }
0x2493   :  { %11441 = vadd.xlane.f32.xlu0 %v11440_v37 }
0x2520   :  { %v11442_v32 = vpop.xlane.xlu0 %11441 }
0x2521   :  { %v11443_v58 = vmul.f32 0.03125, %v11442_v32 }
0x2523   :  { %v11445_v33 = vrot.slane %v11443_v58, 1  ;;  %v11446_v13 = vrot.slane %v11443_v58, 2  ;;  %v11447_v50 = vrot.slane %v11443_v58, 3  ;;  %v11452_v24 = vsub.f32 %v11419_v36, %v11443_v58 }
0x2525   :  { %v11453_v2 = vsub.f32 %v11420_v42, %v11445_v33  ;;  %v11454_v62 = vsub.f32 %v11421_v61, %v11446_v13  ;;  %v11455_v16 = vsub.f32 %v11422_v7, %v11447_v50  ;;  %v11456_v34 = vmul.f32 %v11452_v24, %v11452_v24 }
0x2527   :  { %v11457_v31 = vmul.f32 %v11453_v2, %v11453_v2  ;;  %v11458_v44 = vmul.f32 %v11454_v62, %v11454_v62  ;;  %v11459_v40 = vmul.f32 %v11455_v16, %v11455_v16 }
0x2529   :  { %v11464_v10 = vrot.slane %v11457_v31, 7  ;;  %v11466_v20 = vrot.slane %v11458_v44, 6  ;;  %v11468_v48 = vrot.slane %v11459_v40, 5 }
0x252b   :  { %v11465_v9 = vsel %vm11430_vm6, %v11464_v10, %v11456_v34 }
0x252c   :  { %v11467_v19 = vsel %vm11433_vm7, %v11466_v20, %v11465_v9 }
0x252d   :  { %v11469_v0 = vsel %vm11436_vm8, %v11468_v48, %v11467_v19 }
0x252e   :  { %v11471_v52 = vsel %vm11439_vm9, %v11469_v0, 0.0 }
0x252f   :  { %11472 = vadd.xlane.f32.xlu1 %v11471_v52 }
0x25bc   :  { %v11473_v23 = vpop.xlane.xlu1 %11472 }
0x25bd   :  { %v11474_v38 = vmul.f32 0.03125, %v11473_v23 }
0x25bf   :  { %v11475_v12 = vadd.f32 1e-05, %v11474_v38 }
0x25c1   :  { %15098 = vrsqrt.f32 %v11475_v12 }
0x25cb   :  { %v15099_v41 = vpop.eup %15098 }
0x25cc   :  { %v11478_v14 = vrot.slane %v15099_v41, 1  ;;  %v11479_v17 = vrot.slane %v15099_v41, 2  ;;  %v11480_v28 = vrot.slane %v15099_v41, 3  ;;  %v11485_v59 = vmul.f32 %v15099_v41, %v11452_v24 }
0x25ce   :  { %v11486_v3 = vmul.f32 %v11478_v14, %v11453_v2  ;;  %v11487_v45 = vmul.f32 %v11479_v17, %v11454_v62  ;;  %v11488_v35 = vmul.f32 %v11480_v28, %v11455_v16  ;;  %v11493_v1 = vmul.f32 %v12268_v47, %v11485_v59 }
0x25d0   :  { %v11494_v63 = vmul.f32 %v12268_v47, %v11486_v3  ;;  %v11495_v6 = vmul.f32 %v12268_v47, %v11487_v45  ;;  %v11496_v57 = vmul.f32 %v12268_v47, %v11488_v35  ;;  %v11501_v22 = vadd.f32 %v12269_v8, %v11493_v1 }
0x25d2   :  { %v11502_v43 = vadd.f32 %v12269_v8, %v11494_v63  ;;  %v11503_v46 = vadd.f32 %v12269_v8, %v11495_v6  ;;  %v11504_v42 = vadd.f32 %v12269_v8, %v11496_v57  ;;  %v11505_v11 = vmax.f32 %v11501_v22, 0.0 }
0x25d4   :  { %v11506_v39 = vmax.f32 %v11502_v43, 0.0  ;;  %v11507_v53 = vmax.f32 %v11503_v46, 0.0  ;;  %v11508_v61 = vmax.f32 %v11504_v42, 0.0 }
0x25d6   :  { %v11522_v60 = vrot.slane %v11506_v39, 7  ;;  %v11524_v55 = vrot.slane %v11507_v53, 6  ;;  %v11526_v15 = vrot.slane %v11508_v61, 5 }
0x25d8   :  { %v11523_v30 = vsel %vm11430_vm6, %v11522_v60, %v11505_v11 }
0x25d9   :  { %v11525_v36 = vsel %vm11433_vm7, %v11524_v55, %v11523_v30 }
0x25da   :  { %v11527_v7 = vsel %vm11436_vm8, %v11526_v15, %v11525_v36 }
0x25db   :  { %14158 = vmatmul.mubr.msk.f32.vlgmr.msra.gmra.mrb[186].mxu1 %vm68_vm0, %v11527_v7 }
0x26ae   :  { %v11596_v27 = vpop.f32.mrb[186].mxu1 }
0x26af   :  { %v11597_v51 = vadd.f32 %v12270_v25, %v11596_v27  ;;  %v14159_v56 = vpop.f32.mrb[187].mxu1 }
0x26b1   :  { %11600 = vst [vmem:[%s17159_s7] sm:$0xf] %v11597_v51 }

</bundles_post_ra>
